<compile_context>
chip_gen: v7x
topology: tpu7x:2x2x1
jax: 0.10.0
libtpu: 0.0.40
codegen_flags: <defaults>
</compile_context>

<pallas_src>
import math
import functools

import jax
import jax.numpy as jnp
from jax.experimental import pallas as pl
from jax.experimental.pallas import tpu as pltpu

_EPS = 1e-5
_LANE = 128


def _round_up(x, m):
    return ((x + m - 1) // m) * m


# ----------------------------------------------------------------------------
# In-kernel helpers
# ----------------------------------------------------------------------------
def _mm(a, w_bf16):
    """MXU matmul: bf16 operands, f32 accumulation."""
    return jnp.dot(a.astype(jnp.bfloat16), w_bf16,
                   preferred_element_type=jnp.float32)


def _layernorm(x, g, b, d_real, d_pad):
    """LayerNorm over a zero-padded last dim, normalizing over d_real columns.

    Padded columns of x are exactly zero and padded gamma/beta are zero, so
    padded output columns stay exactly zero (keeps the padding invariant)."""
    mean = jnp.sum(x, axis=-1, keepdims=True) * (1.0 / d_real)
    diff = x - mean
    var = (jnp.sum(diff * diff, axis=-1, keepdims=True)
           - (d_pad - d_real) * mean * mean) * (1.0 / d_real)
    return diff * jax.lax.rsqrt(var + _EPS) * g + b


def _mha(q, k, v, nhead, dhp):
    """Multi-head attention for ONE batch; heads are 128-aligned column blocks.

    q: (s_q, nhead*dhp) f32; k, v: (s_kv, nhead*dhp) f32.  The 1/sqrt(dh)
    scale is folded into the Q projection weights at pack time.  Score and
    P.V matmuls use bf16 operands (f32 accumulation); softmax stays f32."""
    heads = []
    for h in range(nhead):                       # short static head loop only
        c0 = h * dhp
        qh = q[:, c0:c0 + dhp].astype(jnp.bfloat16)
        kh = k[:, c0:c0 + dhp].astype(jnp.bfloat16)
        s = jax.lax.dot_general(qh, kh, (((1,), (1,)), ((), ())),
                                preferred_element_type=jnp.float32)
        s = s - jnp.max(s, axis=-1, keepdims=True)
        p = jnp.exp(s)
        p = p / jnp.sum(p, axis=-1, keepdims=True)      # exact division
        heads.append(jnp.dot(p.astype(jnp.bfloat16),
                             v[:, c0:c0 + dhp].astype(jnp.bfloat16),
                             preferred_element_type=jnp.float32))
    return jnp.concatenate(heads, axis=-1)       # (s_q, nhead*dhp), lane-dense


# ----------------------------------------------------------------------------
# Pallas kernels
# ----------------------------------------------------------------------------
def _enc_stack_kernel(x_ref, pe_ref,
                      wqkv_ref, bqkv_ref, wo_ref, bo_ref,
                      g1_ref, b1_ref, w1_ref, fb1_ref, w2_ref, fb2_ref,
                      g2_ref, b2_ref, gf_ref, bf_ref,
                      o_ref, act_ref,
                      *, nhead, dhp, d_real, d_pad, emb_scale):
    l = pl.program_id(1)
    n_layers = pl.num_programs(1)
    hp = nhead * dhp

    @pl.when(l == 0)
    def _init():
        # fold embedding*sqrt(D) + positional encoding into the first step
        act_ref[...] = x_ref[...] * emb_scale + pe_ref[...]

    x = act_ref[...]                                         # (S, Dp) f32

    # ---- self-attention (packed QKV, heads are 128-aligned column blocks) ---
    qkv = _mm(x, wqkv_ref[...]) + bqkv_ref[...]
    attn = _mha(qkv[:, :hp], qkv[:, hp:2 * hp], qkv[:, 2 * hp:], nhead, dhp)
    a = _mm(attn, wo_ref[...]) + bo_ref[...]
    y = _layernorm(x + a, g1_ref[...], b1_ref[...], d_real, d_pad)

    # ---- feed-forward ----
    h = jnp.maximum(_mm(y, w1_ref[...]) + fb1_ref[...], 0.0)
    f = _mm(h, w2_ref[...]) + fb2_ref[...]
    z = _layernorm(y + f, g2_ref[...], b2_ref[...], d_real, d_pad)
    act_ref[...] = z

    @pl.when(l == n_layers - 1)
    def _finalize():
        # encoder final LayerNorm fused; memory written once, as bf16
        o_ref[...] = _layernorm(z, gf_ref[...], bf_ref[...],
                                d_real, d_pad).astype(o_ref.dtype)


def _dec_stack_kernel(x_ref, pe_ref, mem_ref,
                      sa_wqkv_ref, sa_bqkv_ref, sa_wo_ref, sa_bo_ref,
                      g1_ref, b1_ref,
                      ca_wq_ref, ca_bq_ref, ca_wkv_ref, ca_bkv_ref,
                      ca_wo_ref, ca_bo_ref, g2_ref, b2_ref,
                      w1_ref, fb1_ref, w2_ref, fb2_ref, g3_ref, b3_ref,
                      gf_ref, bf_ref,
                      o_ref, act_ref,
                      *, nhead, dhp, d_real, d_pad, emb_scale):
    l = pl.program_id(1)
    n_layers = pl.num_programs(1)
    hp = nhead * dhp

    @pl.when(l == 0)
    def _init():
        act_ref[...] = x_ref[...] * emb_scale + pe_ref[...]

    x = act_ref[...]                                         # (S_tgt, Dp) f32
    mem = mem_ref[...]                                       # (S_src, Dp) bf16

    # ---- self-attention (tgt_mask=None, matching reference forward()) ----
    qkv = _mm(x, sa_wqkv_ref[...]) + sa_bqkv_ref[...]
    attn = _mha(qkv[:, :hp], qkv[:, hp:2 * hp], qkv[:, 2 * hp:], nhead, dhp)
    a = _mm(attn, sa_wo_ref[...]) + sa_bo_ref[...]
    y = _layernorm(x + a, g1_ref[...], b1_ref[...], d_real, d_pad)

    # ---- cross-attention against encoder memory ----
    q = _mm(y, ca_wq_ref[...]) + ca_bq_ref[...]
    kv = _mm(mem, ca_wkv_ref[...]) + ca_bkv_ref[...]
    attn2 = _mha(q, kv[:, :hp], kv[:, hp:], nhead, dhp)
    a2 = _mm(attn2, ca_wo_ref[...]) + ca_bo_ref[...]
    z = _layernorm(y + a2, g2_ref[...], b2_ref[...], d_real, d_pad)

    # ---- feed-forward ----
    h = jnp.maximum(_mm(z, w1_ref[...]) + fb1_ref[...], 0.0)
    f = _mm(h, w2_ref[...]) + fb2_ref[...]
    zz = _layernorm(z + f, g3_ref[...], b3_ref[...], d_real, d_pad)
    act_ref[...] = zz

    @pl.when(l == n_layers - 1)
    def _finalize():
        # decoder final LayerNorm fused here (so the vocab projection kernel
        # does not recompute it per vocab tile)
        o_ref[...] = _layernorm(zz, gf_ref[...], bf_ref[...],
                                d_real, d_pad).astype(o_ref.dtype)


def _proj_kernel(x_ref, w_ref, b_ref, o_ref):
    o_ref[...] = (jnp.dot(x_ref[...], w_ref[...],
                          preferred_element_type=jnp.float32)
                  + b_ref[...]).astype(o_ref.dtype)


# ----------------------------------------------------------------------------
# Pallas wrappers
# ----------------------------------------------------------------------------
def _stack_compiler_params(weight_arrays, act_bytes):
    n_layers = weight_arrays[0].shape[0]
    per_layer = sum(int(a.size) * a.dtype.itemsize
                    for a in weight_arrays) // n_layers
    need = 4 * per_layer + 8 * act_bytes + (4 << 20)   # 2x double-buffer+margin
    limit = int(min(max(need, 32 << 20), 48 << 20))
    return pltpu.CompilerParams(
        dimension_semantics=("parallel", "arbitrary"),
        vmem_limit_bytes=limit)


def _wspec(a):
    # stacked per-layer weight/bias: leading L dim squeezed, index_map -> layer
    return pl.BlockSpec((None,) + a.shape[1:], lambda b, l: (l, 0, 0))


def encoder_stack(x_emb, pe, w, *, nhead, dhp, d_real):
    """All encoder layers in one pallas_call; grid=(batch, layer)."""
    N, S, Dp = x_emb.shape
    L = w["wqkv"].shape[0]
    names = ["wqkv", "bqkv", "wo", "bo", "g1", "b1",
             "w1", "fb1", "w2", "fb2", "g2", "b2"]
    warrs = [w[n] for n in names]

    in_specs = ([pl.BlockSpec((None, S, Dp), lambda b, l: (b, 0, 0)),   # emb
                 pl.BlockSpec((S, Dp), lambda b, l: (0, 0))]            # pe
                + [_wspec(a) for a in warrs]
                + [pl.BlockSpec((1, Dp), lambda b, l: (0, 0)),          # final g
                   pl.BlockSpec((1, Dp), lambda b, l: (0, 0))])         # final b

    return pl.pallas_call(
        functools.partial(_enc_stack_kernel, nhead=nhead, dhp=dhp,
                          d_real=d_real, d_pad=Dp,
                          emb_scale=math.sqrt(d_real)),
        grid=(N, L),
        in_specs=in_specs,
        out_specs=pl.BlockSpec((None, S, Dp), lambda b, l: (b, 0, 0)),
        out_shape=jax.ShapeDtypeStruct((N, S, Dp), jnp.bfloat16),
        scratch_shapes=[pltpu.VMEM((S, Dp), jnp.float32)],
        compiler_params=_stack_compiler_params(warrs, S * Dp * 4),
    )(x_emb, pe, *warrs, w["norm_g"], w["norm_b"])


def decoder_stack(x_emb, pe, mem, w, *, nhead, dhp, d_real):
    """All decoder layers in one pallas_call; grid=(batch, layer)."""
    N, S_tgt, Dp = x_emb.shape
    S_src = mem.shape[1]
    L = w["sa_wqkv"].shape[0]
    names = ["sa_wqkv", "sa_bqkv", "sa_wo", "sa_bo", "g1", "b1",
             "ca_wq", "ca_bq", "ca_wkv", "ca_bkv", "ca_wo", "ca_bo",
             "g2", "b2", "w1", "fb1", "w2", "fb2", "g3", "b3"]
    warrs = [w[n] for n in names]

    in_specs = ([pl.BlockSpec((None, S_tgt, Dp), lambda b, l: (b, 0, 0)),
                 pl.BlockSpec((S_tgt, Dp), lambda b, l: (0, 0)),
                 pl.BlockSpec((None, S_src, Dp), lambda b, l: (b, 0, 0))]
                + [_wspec(a) for a in warrs]
                + [pl.BlockSpec((1, Dp), lambda b, l: (0, 0)),
                   pl.BlockSpec((1, Dp), lambda b, l: (0, 0))])

    act_bytes = (S_tgt + S_src) * Dp * 4
    return pl.pallas_call(
        functools.partial(_dec_stack_kernel, nhead=nhead, dhp=dhp,
                          d_real=d_real, d_pad=Dp,
                          emb_scale=math.sqrt(d_real)),
        grid=(N, L),
        in_specs=in_specs,
        out_specs=pl.BlockSpec((None, S_tgt, Dp), lambda b, l: (b, 0, 0)),
        out_shape=jax.ShapeDtypeStruct((N, S_tgt, Dp), jnp.bfloat16),
        scratch_shapes=[pltpu.VMEM((S_tgt, Dp), jnp.float32)],
        compiler_params=_stack_compiler_params(warrs, act_bytes),
    )(x_emb, pe, mem, *warrs, w["norm_g"], w["norm_b"])


def project(x, fc_w, fc_b):
    """Vocab projection.  x: (N, S, Dp) bf16 (already decoder-final-normed).

    Output is written s-major as (S, N*Vp), lane-dense tiles, so reshaping to
    (S, N, Vp) is free (no XLA transpose of the logits)."""
    N, S, Dp = x.shape
    Vp = fc_w.shape[1]
    tv = Vp
    for cand in (2048, 1024, 512, 256, 128):
        if Vp % cand == 0:
            tv = cand
            break
    nvt = Vp // tv
    out = pl.pallas_call(
        _proj_kernel,
        grid=(N, nvt),
        in_specs=[pl.BlockSpec((None, S, Dp), lambda n, j: (n, 0, 0)),
                  pl.BlockSpec((Dp, tv), lambda n, j: (0, j)),
                  pl.BlockSpec((1, tv), lambda n, j: (0, j))],
        out_specs=pl.BlockSpec((S, tv), lambda n, j: (0, n * nvt + j)),
        out_shape=jax.ShapeDtypeStruct((S, N * Vp), jnp.float32),
        compiler_params=pltpu.CompilerParams(
            dimension_semantics=("parallel", "parallel")),
    )(x, fc_w, fc_b)
    return out.reshape(S, N, Vp)


# ----------------------------------------------------------------------------
# Model forward (JAX glue: embedding gather + layout plumbing only)
# ----------------------------------------------------------------------------
def transformer_forward(packed, src_tokens, tgt_tokens, cfg):
    D = cfg["d_model"]
    V = cfg["vocab_size"]
    nhead = cfg["nhead"]
    dhp = _round_up(D // nhead, _LANE)
    S_src, N = src_tokens.shape
    S_tgt = tgt_tokens.shape[0]

    # Embedding gather stays in XLA (data-dependent gather).  Internal layout
    # is batch-major; sqrt(D) scale + positional encoding are applied inside
    # the first stacked-layer grid step.
    # TODO(synk): dropout (p=0.1) is a no-op (eval-mode); src_mask/tgt_mask=None
    #             matches the reference forward() call (no causal mask).
    src_emb = jnp.take(packed["embedding"], src_tokens.T, axis=0)  # (N,S,Dp) f32
    tgt_emb = jnp.take(packed["embedding"], tgt_tokens.T, axis=0)

    mem = encoder_stack(src_emb, packed["pe"][:S_src], packed["enc"],
                        nhead=nhead, dhp=dhp, d_real=D)            # bf16 memory
    dec = decoder_stack(tgt_emb, packed["pe"][:S_tgt], mem, packed["dec"],
                        nhead=nhead, dhp=dhp, d_real=D)            # bf16, final-normed
    logits = project(dec, packed["fc_w"], packed["fc_b"])          # (S_tgt,N,Vp)
    return logits[:, :, :V]                                        # drop vocab padding


# ----------------------------------------------------------------------------
# Parameters: spec-shaped init (mirrors nn.Transformer) + one-time packing
# ----------------------------------------------------------------------------
def init_params(key, cfg):
    D = cfg["d_model"]
    F = cfg["dim_feedforward"]
    V = cfg["vocab_size"]
    Lmax = cfg["max_seq_length"]
    counter = [0]

    def nk():
        counter[0] += 1
        return jax.random.fold_in(key, counter[0])

    def w(shape, scale=0.02):
        return scale * jax.random.normal(nk(), shape, jnp.float32)

    ones = lambda n: jnp.ones((n,), jnp.float32)
    zeros = lambda n: jnp.zeros((n,), jnp.float32)

    def attn_params():
        return {"wq": w((D, D)), "bq": zeros(D),
                "wk": w((D, D)), "bk": zeros(D),
                "wv": w((D, D)), "bv": zeros(D),
                "wo": w((D, D)), "bo": zeros(D)}

    def enc_layer_params():
        return {"sa": attn_params(),
                "ln1_g": ones(D), "ln1_b": zeros(D),
                "ff1_w": w((D, F)), "ff1_b": zeros(F),
                "ff2_w": w((F, D)), "ff2_b": zeros(D),
                "ln2_g": ones(D), "ln2_b": zeros(D)}

    def dec_layer_params():
        return {"sa": attn_params(), "ca": attn_params(),
                "ln1_g": ones(D), "ln1_b": zeros(D),
                "ln2_g": ones(D), "ln2_b": zeros(D),
                "ff1_w": w((D, F)), "ff1_b": zeros(F),
                "ff2_w": w((F, D)), "ff2_b": zeros(D),
                "ln3_g": ones(D), "ln3_b": zeros(D)}

    # sinusoidal positional-encoding buffer, identical to PositionalEncoding
    position = jnp.arange(Lmax, dtype=jnp.float32)[:, None]
    div_term = jnp.exp(jnp.arange(0, D, 2, dtype=jnp.float32)
                       * (-math.log(10000.0) / D))
    pe = jnp.zeros((Lmax, D), jnp.float32)
    pe = pe.at[:, 0::2].set(jnp.sin(position * div_term))
    pe = pe.at[:, 1::2].set(jnp.cos(position * div_term))

    return {
        "embedding": w((V, D), scale=1.0),
        "pe": pe,
        "enc_layers": [enc_layer_params() for _ in range(cfg["num_encoder_layers"])],
        "dec_layers": [dec_layer_params() for _ in range(cfg["num_decoder_layers"])],
        "enc_norm_g": ones(D), "enc_norm_b": zeros(D),
        "dec_norm_g": ones(D), "dec_norm_b": zeros(D),
        "fc_w": w((D, V)), "fc_b": zeros(V),
    }


def _pad2(a, rows, cols):
    a = jnp.asarray(a, jnp.float32)
    if a.ndim == 1:
        a = a[None, :]
    out = jnp.zeros((rows, cols), jnp.float32)
    return out.at[:a.shape[0], :a.shape[1]].set(a)


def _place_head_cols(w, dh, dhp, nhead, rows_pad):
    """(D, nhead*dh) -> (rows_pad, nhead*dhp): head h at cols [h*dhp, h*dhp+dh)."""
    D = w.shape[0]
    out = jnp.zeros((rows_pad, nhead * dhp), jnp.float32)
    for h in range(nhead):
        out = out.at[:D, h * dhp:h * dhp + dh].set(w[:, h * dh:(h + 1) * dh])
    return out


def _place_head_bias(b, dh, dhp, nhead):
    out = jnp.zeros((1, nhead * dhp), jnp.float32)
    for h in range(nhead):
        out = out.at[0, h * dhp:h * dhp + dh].set(b[h * dh:(h + 1) * dh])
    return out


def _place_head_rows(w, dh, dhp, nhead, cols_pad):
    """(nhead*dh, D) -> (nhead*dhp, cols_pad): head h rows at [h*dhp, h*dhp+dh)."""
    out = jnp.zeros((nhead * dhp, cols_pad), jnp.float32)
    for h in range(nhead):
        out = out.at[h * dhp:h * dhp + dh, :w.shape[1]].set(w[h * dh:(h + 1) * dh, :])
    return out


def pack_params(params, cfg):
    """One-time (outside jit) conversion to kernel-ready layout:
       * d_model / FF / vocab / per-head dims zero-padded to 128-lane multiples
         (128-aligned, lane-dense head blocks; exact via masked-denominator LN),
       * Q/K/V packed into a single (Dp, 3*Hp) projection; 1/sqrt(head_dim)
         folded into the Q weights/bias,
       * per-layer weights stacked with a leading L dim (grid-over-layers),
       * matmul weights stored as bf16 (MXU operands), everything else f32."""
    D = cfg["d_model"]
    F = cfg["dim_feedforward"]
    nhead = cfg["nhead"]
    dh = D // nhead
    Dp = _round_up(D, _LANE)
    dhp = _round_up(dh, _LANE)
    Fp = _round_up(F, _LANE)
    Vp = _round_up(cfg["vocab_size"], _LANE)
    qscale = 1.0 / math.sqrt(dh)
    bf16 = jnp.bfloat16

    def pack_self_attn(a):
        wqkv = jnp.concatenate([
            _place_head_cols(a["wq"] * qscale, dh, dhp, nhead, Dp),
            _place_head_cols(a["wk"], dh, dhp, nhead, Dp),
            _place_head_cols(a["wv"], dh, dhp, nhead, Dp)], axis=1)
        bqkv = jnp.concatenate([
            _place_head_bias(a["bq"] * qscale, dh, dhp, nhead),
            _place_head_bias(a["bk"], dh, dhp, nhead),
            _place_head_bias(a["bv"], dh, dhp, nhead)], axis=1)
        return {"wqkv": wqkv, "bqkv": bqkv,
                "wo": _place_head_rows(a["wo"], dh, dhp, nhead, Dp),
                "bo": _pad2(a["bo"], 1, Dp)}

    def pack_cross_attn(a):
        wkv = jnp.concatenate([
            _place_head_cols(a["wk"], dh, dhp, nhead, Dp),
            _place_head_cols(a["wv"], dh, dhp, nhead, Dp)], axis=1)
        bkv = jnp.concatenate([
            _place_head_bias(a["bk"], dh, dhp, nhead),
            _place_head_bias(a["bv"], dh, dhp, nhead)], axis=1)
        return {"wq": _place_head_cols(a["wq"] * qscale, dh, dhp, nhead, Dp),
                "bq": _place_head_bias(a["bq"] * qscale, dh, dhp, nhead),
                "wkv": wkv, "bkv": bkv,
                "wo": _place_head_rows(a["wo"], dh, dhp, nhead, Dp),
                "bo": _pad2(a["bo"], 1, Dp)}

    def pack_ff_ln(p):
        return {"w1": _pad2(p["ff1_w"], Dp, Fp), "fb1": _pad2(p["ff1_b"], 1, Fp),
                "w2": _pad2(p["ff2_w"], Fp, Dp), "fb2": _pad2(p["ff2_b"], 1, Dp)}

    enc_layers = []
    for p in params["enc_layers"]:
        sa = pack_self_attn(p["sa"])
        d = {"wqkv": sa["wqkv"], "bqkv": sa["bqkv"], "wo": sa["wo"], "bo": sa["bo"],
             "g1": _pad2(p["ln1_g"], 1, Dp), "b1": _pad2(p["ln1_b"], 1, Dp),
             "g2": _pad2(p["ln2_g"], 1, Dp), "b2": _pad2(p["ln2_b"], 1, Dp)}
        d.update(pack_ff_ln(p))
        enc_layers.append(d)

    dec_layers = []
    for p in params["dec_layers"]:
        sa = pack_self_attn(p["sa"])
        ca = pack_cross_attn(p["ca"])
        d = {"sa_wqkv": sa["wqkv"], "sa_bqkv": sa["bqkv"],
             "sa_wo": sa["wo"], "sa_bo": sa["bo"],
             "ca_wq": ca["wq"], "ca_bq": ca["bq"],
             "ca_wkv": ca["wkv"], "ca_bkv": ca["bkv"],
             "ca_wo": ca["wo"], "ca_bo": ca["bo"],
             "g1": _pad2(p["ln1_g"], 1, Dp), "b1": _pad2(p["ln1_b"], 1, Dp),
             "g2": _pad2(p["ln2_g"], 1, Dp), "b2": _pad2(p["ln2_b"], 1, Dp),
             "g3": _pad2(p["ln3_g"], 1, Dp), "b3": _pad2(p["ln3_b"], 1, Dp)}
        d.update(pack_ff_ln(p))
        dec_layers.append(d)

    bf16_names = {"wqkv", "wo", "w1", "w2",
                  "sa_wqkv", "sa_wo", "ca_wq", "ca_wkv", "ca_wo"}

    def stack(layers):
        out = {}
        for name in layers[0]:
            arr = jnp.stack([lay[name] for lay in layers], axis=0)
            out[name] = arr.astype(bf16) if name in bf16_names else arr
        return out

    enc = stack(enc_layers)
    enc["norm_g"] = _pad2(params["enc_norm_g"], 1, Dp)
    enc["norm_b"] = _pad2(params["enc_norm_b"], 1, Dp)
    dec = stack(dec_layers)
    dec["norm_g"] = _pad2(params["dec_norm_g"], 1, Dp)
    dec["norm_b"] = _pad2(params["dec_norm_b"], 1, Dp)

    return {
        "embedding": _pad2(params["embedding"], params["embedding"].shape[0], Dp),
        "pe": _pad2(params["pe"], params["pe"].shape[0], Dp),
        "enc": enc,
        "dec": dec,
        "fc_w": _pad2(params["fc_w"], Dp, Vp).astype(bf16),
        "fc_b": _pad2(params["fc_b"], 1, Vp),
    }


# ----------------------------------------------------------------------------
if __name__ == "__main__":
    cfg = dict(vocab_size=32, d_model=32, nhead=4,
               num_encoder_layers=2, num_decoder_layers=2,
               dim_feedforward=64, max_seq_length=16)

    key = jax.random.PRNGKey(0)
    params = init_params(key, cfg)
    packed = pack_params(params, cfg)

    S_src, S_tgt, N = 8, 8, 2
    src_tokens = jax.random.randint(jax.random.fold_in(key, 1001),
                                    (S_src, N), 0, cfg["vocab_size"], jnp.int32)
    tgt_tokens = jax.random.randint(jax.random.fold_in(key, 1002),
                                    (S_tgt, N), 0, cfg["vocab_size"], jnp.int32)

    fwd = jax.jit(functools.partial(transformer_forward, cfg=cfg))
    logits = fwd(packed, src_tokens, tgt_tokens)
    jax.block_until_ready(logits)

    assert logits.shape == (S_tgt, N, cfg["vocab_size"])
    assert bool(jnp.all(jnp.isfinite(logits)))
    print("KERNEL_OK")
</pallas_src>

<mosaic_0001>
module attributes {stable_mosaic.version = 11 : i64} {
  func.func @_proj_kernel(%arg0: i32, %arg1: i32, %arg2: memref<1x8x128xbf16, #tpu.memory_space<vmem>>, %arg3: memref<128x128xbf16, #tpu.memory_space<vmem>>, %arg4: memref<1x128xf32, #tpu.memory_space<vmem>>, %arg5: memref<8x128xf32, #tpu.memory_space<vmem>>) attributes {dimension_semantics = [#tpu.dimension_semantics<parallel>, #tpu.dimension_semantics<parallel>], iteration_bounds = array<i64: 2, 1>, scalar_prefetch = 0 : i64, scratch_operands = 0 : i64, tpu.core_type = #tpu.core_type<tc>, window_params = [{transform_indices = @transform_0, window_bounds = array<i64: 1, 8, 128>}, {transform_indices = @transform_1, window_bounds = array<i64: 128, 128>}, {transform_indices = @transform_2, window_bounds = array<i64: 1, 128>}, {transform_indices = @transform_3, window_bounds = array<i64: 8, 128>}]} {
    %c0 = arith.constant 0 : index
    %c0_0 = arith.constant 0 : index
    %c0_1 = arith.constant 0 : index
    %0 = vector.load %arg2[%c0, %c0_0, %c0_1] : memref<1x8x128xbf16, #tpu.memory_space<vmem>>, vector<1x8x128xbf16>
    %1 = vector.shape_cast %0 : vector<1x8x128xbf16> to vector<8x128xbf16>
    %c0_2 = arith.constant 0 : index
    %c0_3 = arith.constant 0 : index
    %2 = vector.load %arg3[%c0_2, %c0_3] : memref<128x128xbf16, #tpu.memory_space<vmem>>, vector<128x128xbf16>
    %cst = arith.constant dense<0.000000e+00> : vector<8x128xf32>
    %3 = tpu.matmul %1, %2, %cst {dimension_numbers = #tpu.dot_dimension_numbers<[1], [0], [0], [1], [0, 0, 1, 1], [], []>} : vector<8x128xbf16>, vector<128x128xbf16>, vector<8x128xf32> -> vector<8x128xf32>
    %c0_4 = arith.constant 0 : index
    %c0_5 = arith.constant 0 : index
    %4 = vector.load %arg4[%c0_4, %c0_5] : memref<1x128xf32, #tpu.memory_space<vmem>>, vector<1x128xf32>
    %5 = vector.broadcast %4 : vector<1x128xf32> to vector<8x128xf32>
    %6 = arith.addf %3, %5 : vector<8x128xf32>
    %c0_6 = arith.constant 0 : index
    %c0_7 = arith.constant 0 : index
    %7 = vector.load %arg5[%c0_6, %c0_7] : memref<8x128xf32, #tpu.memory_space<vmem>>, vector<8x128xf32>
    tpu.vector_store %arg5[%c0_6, %c0_7], %6 {strides = array<i32>} : memref<8x128xf32, #tpu.memory_space<vmem>>, vector<8x128xf32>,
    return
  }
  func.func @transform_0(%arg0: i32, %arg1: i32) -> (i32, i32, i32) {
    %c0_i32 = arith.constant 0 : i32
    %c0_i32_0 = arith.constant 0 : i32
    %c0_i32_1 = arith.constant 0 : i32
    return %arg0, %c0_i32, %c0_i32_0 : i32, i32, i32
  }
  func.func @transform_1(%arg0: i32, %arg1: i32) -> (i32, i32) {
    %c0_i32 = arith.constant 0 : i32
    %c0_i32_0 = arith.constant 0 : i32
    return %c0_i32, %arg1 : i32, i32
  }
  func.func @transform_2(%arg0: i32, %arg1: i32) -> (i32, i32) {
    %c0_i32 = arith.constant 0 : i32
    %c0_i32_0 = arith.constant 0 : i32
    return %c0_i32, %arg1 : i32, i32
  }
  func.func @transform_3(%arg0: i32, %arg1: i32) -> (i32, i32) {
    %c1_i32 = arith.constant 1 : i32
    %0 = arith.muli %arg0, %c1_i32 : i32
    %1 = arith.addi %0, %arg1 : i32
    %c0_i32 = arith.constant 0 : i32
    %c0_i32_0 = arith.constant 0 : i32
    return %c0_i32, %1 : i32, i32
  }
}

module attributes {stable_mosaic.version = 11 : i64} {
  func.func @_enc_stack_kernel(%arg0: i32, %arg1: i32, %arg2: memref<1x8x128xf32, #tpu.memory_space<vmem>>, %arg3: memref<8x128xf32, #tpu.memory_space<vmem>>, %arg4: memref<1x128x1536xbf16, #tpu.memory_space<vmem>>, %arg5: memref<1x1x1536xf32, #tpu.memory_space<vmem>>, %arg6: memref<1x512x128xbf16, #tpu.memory_space<vmem>>, %arg7: memref<1x1x128xf32, #tpu.memory_space<vmem>>, %arg8: memref<1x1x128xf32, #tpu.memory_space<vmem>>, %arg9: memref<1x1x128xf32, #tpu.memory_space<vmem>>, %arg10: memref<1x128x128xbf16, #tpu.memory_space<vmem>>, %arg11: memref<1x1x128xf32, #tpu.memory_space<vmem>>, %arg12: memref<1x128x128xbf16, #tpu.memory_space<vmem>>, %arg13: memref<1x1x128xf32, #tpu.memory_space<vmem>>, %arg14: memref<1x1x128xf32, #tpu.memory_space<vmem>>, %arg15: memref<1x1x128xf32, #tpu.memory_space<vmem>>, %arg16: memref<1x128xf32, #tpu.memory_space<vmem>>, %arg17: memref<1x128xf32, #tpu.memory_space<vmem>>, %arg18: memref<1x8x128xbf16, #tpu.memory_space<vmem>>, %arg19: memref<8x128xf32, #tpu.memory_space<vmem>>) attributes {dimension_semantics = [#tpu.dimension_semantics<parallel>, #tpu.dimension_semantics<arbitrary>], iteration_bounds = array<i64: 2, 2>, scalar_prefetch = 0 : i64, scratch_operands = 1 : i64, tpu.core_type = #tpu.core_type<tc>, window_params = [{transform_indices = @transform_0, window_bounds = array<i64: 1, 8, 128>}, {pipeline_mode = #tpu.pipeline_mode<synchronous>, transform_indices = @transform_1, window_bounds = array<i64: 8, 128>}, {transform_indices = @transform_2, window_bounds = array<i64: 1, 128, 1536>}, {transform_indices = @transform_3, window_bounds = array<i64: 1, 1, 1536>}, {transform_indices = @transform_4, window_bounds = array<i64: 1, 512, 128>}, {transform_indices = @transform_5, window_bounds = array<i64: 1, 1, 128>}, {transform_indices = @transform_6, window_bounds = array<i64: 1, 1, 128>}, {transform_indices = @transform_7, window_bounds = array<i64: 1, 1, 128>}, {transform_indices = @transform_8, window_bounds = array<i64: 1, 128, 128>}, {transform_indices = @transform_9, window_bounds = array<i64: 1, 1, 128>}, {transform_indices = @transform_10, window_bounds = array<i64: 1, 128, 128>}, {transform_indices = @transform_11, window_bounds = array<i64: 1, 1, 128>}, {transform_indices = @transform_12, window_bounds = array<i64: 1, 1, 128>}, {transform_indices = @transform_13, window_bounds = array<i64: 1, 1, 128>}, {pipeline_mode = #tpu.pipeline_mode<synchronous>, transform_indices = @transform_14, window_bounds = array<i64: 1, 128>}, {pipeline_mode = #tpu.pipeline_mode<synchronous>, transform_indices = @transform_15, window_bounds = array<i64: 1, 128>}, {transform_indices = @transform_16, window_bounds = array<i64: 1, 8, 128>}]} {
    %c0_i32 = arith.constant 0 : i32
    %0 = arith.cmpi eq, %arg1, %c0_i32 : i32
    %1 = arith.extui %0 : i1 to i32
    %c0_i32_0 = arith.constant 0 : i32
    %2 = arith.cmpi ne, %1, %c0_i32_0 : i32
    scf.if %2 {
      %c0_73 = arith.constant 0 : index
      %c0_74 = arith.constant 0 : index
      %c0_75 = arith.constant 0 : index
      %176 = vector.load %arg2[%c0_73, %c0_74, %c0_75] : memref<1x8x128xf32, #tpu.memory_space<vmem>>, vector<1x8x128xf32>
      %177 = vector.shape_cast %176 : vector<1x8x128xf32> to vector<8x128xf32>
      %cst_76 = arith.constant 5.65685415 : f32
      %178 = vector.broadcast %cst_76 : f32 to vector<8x128xf32>
      %179 = arith.mulf %177, %178 : vector<8x128xf32>
      %c0_77 = arith.constant 0 : index
      %c0_78 = arith.constant 0 : index
      %180 = vector.load %arg3[%c0_77, %c0_78] : memref<8x128xf32, #tpu.memory_space<vmem>>, vector<8x128xf32>
      %181 = arith.addf %179, %180 : vector<8x128xf32>
      %c0_79 = arith.constant 0 : index
      %c0_80 = arith.constant 0 : index
      %182 = vector.load %arg19[%c0_79, %c0_80] : memref<8x128xf32, #tpu.memory_space<vmem>>, vector<8x128xf32>
      tpu.vector_store %arg19[%c0_79, %c0_80], %181 {strides = array<i32>} : memref<8x128xf32, #tpu.memory_space<vmem>>, vector<8x128xf32>,
    } else {
    }
    %c0 = arith.constant 0 : index
    %c0_1 = arith.constant 0 : index
    %3 = vector.load %arg19[%c0, %c0_1] : memref<8x128xf32, #tpu.memory_space<vmem>>, vector<8x128xf32>
    %c0_2 = arith.constant 0 : index
    %c0_3 = arith.constant 0 : index
    %c0_4 = arith.constant 0 : index
    %4 = vector.load %arg4[%c0_2, %c0_3, %c0_4] : memref<1x128x1536xbf16, #tpu.memory_space<vmem>>, vector<1x128x1536xbf16>
    %5 = vector.shape_cast %4 : vector<1x128x1536xbf16> to vector<128x1536xbf16>
    %6 = arith.truncf %3 : vector<8x128xf32> to vector<8x128xbf16>
    %cst = arith.constant dense<0.000000e+00> : vector<8x1536xf32>
    %7 = tpu.matmul %6, %5, %cst {dimension_numbers = #tpu.dot_dimension_numbers<[1], [0], [0], [1], [0, 0, 1, 1], [], []>} : vector<8x128xbf16>, vector<128x1536xbf16>, vector<8x1536xf32> -> vector<8x1536xf32>
    %c0_5 = arith.constant 0 : index
    %c0_6 = arith.constant 0 : index
    %c0_7 = arith.constant 0 : index
    %8 = vector.load %arg5[%c0_5, %c0_6, %c0_7] : memref<1x1x1536xf32, #tpu.memory_space<vmem>>, vector<1x1x1536xf32>
    %9 = vector.shape_cast %8 : vector<1x1x1536xf32> to vector<1x1536xf32>
    %10 = vector.broadcast %9 : vector<1x1536xf32> to vector<8x1536xf32>
    %11 = arith.addf %7, %10 : vector<8x1536xf32>
    %12 = vector.extract_strided_slice %11 {offsets = [0, 0], sizes = [8, 512], strides = [1, 1]} : vector<8x1536xf32> to vector<8x512xf32>
    %13 = vector.extract_strided_slice %11 {offsets = [0, 512], sizes = [8, 512], strides = [1, 1]} : vector<8x1536xf32> to vector<8x512xf32>
    %14 = vector.extract_strided_slice %11 {offsets = [0, 1024], sizes = [8, 512], strides = [1, 1]} : vector<8x1536xf32> to vector<8x512xf32>
    %15 = vector.extract_strided_slice %12 {offsets = [0, 0], sizes = [8, 128], strides = [1, 1]} : vector<8x512xf32> to vector<8x128xf32>
    %16 = arith.truncf %15 : vector<8x128xf32> to vector<8x128xbf16>
    %17 = vector.extract_strided_slice %13 {offsets = [0, 0], sizes = [8, 128], strides = [1, 1]} : vector<8x512xf32> to vector<8x128xf32>
    %18 = arith.truncf %17 : vector<8x128xf32> to vector<8x128xbf16>
    %cst_8 = arith.constant dense<0.000000e+00> : vector<8x8xf32>
    %19 = tpu.matmul %16, %18, %cst_8 {dimension_numbers = #tpu.dot_dimension_numbers<[1], [1], [0], [0], [0, 0, 1, 0], [], []>} : vector<8x128xbf16>, vector<8x128xbf16>, vector<8x8xf32> -> vector<8x8xf32>
    %cst_9 = arith.constant dense<0xFF800000> : vector<8xf32>
    %20 = vector.multi_reduction <maximumf>, %19, %cst_9 [1] : vector<8x8xf32> to vector<8xf32>
    %21 = vector.shape_cast %20 : vector<8xf32> to vector<8x1xf32>
    %22 = vector.broadcast %21 : vector<8x1xf32> to vector<8x8xf32>
    %23 = arith.subf %19, %22 : vector<8x8xf32>
    %24 = math.exp %23 : vector<8x8xf32>
    %cst_10 = arith.constant dense<0.000000e+00> : vector<8xf32>
    %25 = vector.multi_reduction <add>, %24, %cst_10 [1] : vector<8x8xf32> to vector<8xf32>
    %26 = vector.shape_cast %25 : vector<8xf32> to vector<8x1xf32>
    %27 = vector.broadcast %26 : vector<8x1xf32> to vector<8x8xf32>
    %28 = arith.divf %24, %27 : vector<8x8xf32>
    %29 = arith.truncf %28 : vector<8x8xf32> to vector<8x8xbf16>
    %30 = vector.extract_strided_slice %14 {offsets = [0, 0], sizes = [8, 128], strides = [1, 1]} : vector<8x512xf32> to vector<8x128xf32>
    %31 = arith.truncf %30 : vector<8x128xf32> to vector<8x128xbf16>
    %cst_11 = arith.constant dense<0.000000e+00> : vector<8x128xf32>
    %32 = tpu.matmul %29, %31, %cst_11 {dimension_numbers = #tpu.dot_dimension_numbers<[1], [0], [0], [1], [0, 0, 1, 1], [], []>} : vector<8x8xbf16>, vector<8x128xbf16>, vector<8x128xf32> -> vector<8x128xf32>
    %33 = vector.extract_strided_slice %12 {offsets = [0, 128], sizes = [8, 128], strides = [1, 1]} : vector<8x512xf32> to vector<8x128xf32>
    %34 = arith.truncf %33 : vector<8x128xf32> to vector<8x128xbf16>
    %35 = vector.extract_strided_slice %13 {offsets = [0, 128], sizes = [8, 128], strides = [1, 1]} : vector<8x512xf32> to vector<8x128xf32>
    %36 = arith.truncf %35 : vector<8x128xf32> to vector<8x128xbf16>
    %cst_12 = arith.constant dense<0.000000e+00> : vector<8x8xf32>
    %37 = tpu.matmul %34, %36, %cst_12 {dimension_numbers = #tpu.dot_dimension_numbers<[1], [1], [0], [0], [0, 0, 1, 0], [], []>} : vector<8x128xbf16>, vector<8x128xbf16>, vector<8x8xf32> -> vector<8x8xf32>
    %cst_13 = arith.constant dense<0xFF800000> : vector<8xf32>
    %38 = vector.multi_reduction <maximumf>, %37, %cst_13 [1] : vector<8x8xf32> to vector<8xf32>
    %39 = vector.shape_cast %38 : vector<8xf32> to vector<8x1xf32>
    %40 = vector.broadcast %39 : vector<8x1xf32> to vector<8x8xf32>
    %41 = arith.subf %37, %40 : vector<8x8xf32>
    %42 = math.exp %41 : vector<8x8xf32>
    %cst_14 = arith.constant dense<0.000000e+00> : vector<8xf32>
    %43 = vector.multi_reduction <add>, %42, %cst_14 [1] : vector<8x8xf32> to vector<8xf32>
    %44 = vector.shape_cast %43 : vector<8xf32> to vector<8x1xf32>
    %45 = vector.broadcast %44 : vector<8x1xf32> to vector<8x8xf32>
    %46 = arith.divf %42, %45 : vector<8x8xf32>
    %47 = arith.truncf %46 : vector<8x8xf32> to vector<8x8xbf16>
    %48 = vector.extract_strided_slice %14 {offsets = [0, 128], sizes = [8, 128], strides = [1, 1]} : vector<8x512xf32> to vector<8x128xf32>
    %49 = arith.truncf %48 : vector<8x128xf32> to vector<8x128xbf16>
    %cst_15 = arith.constant dense<0.000000e+00> : vector<8x128xf32>
    %50 = tpu.matmul %47, %49, %cst_15 {dimension_numbers = #tpu.dot_dimension_numbers<[1], [0], [0], [1], [0, 0, 1, 1], [], []>} : vector<8x8xbf16>, vector<8x128xbf16>, vector<8x128xf32> -> vector<8x128xf32>
    %51 = vector.extract_strided_slice %12 {offsets = [0, 256], sizes = [8, 128], strides = [1, 1]} : vector<8x512xf32> to vector<8x128xf32>
    %52 = arith.truncf %51 : vector<8x128xf32> to vector<8x128xbf16>
    %53 = vector.extract_strided_slice %13 {offsets = [0, 256], sizes = [8, 128], strides = [1, 1]} : vector<8x512xf32> to vector<8x128xf32>
    %54 = arith.truncf %53 : vector<8x128xf32> to vector<8x128xbf16>
    %cst_16 = arith.constant dense<0.000000e+00> : vector<8x8xf32>
    %55 = tpu.matmul %52, %54, %cst_16 {dimension_numbers = #tpu.dot_dimension_numbers<[1], [1], [0], [0], [0, 0, 1, 0], [], []>} : vector<8x128xbf16>, vector<8x128xbf16>, vector<8x8xf32> -> vector<8x8xf32>
    %cst_17 = arith.constant dense<0xFF800000> : vector<8xf32>
    %56 = vector.multi_reduction <maximumf>, %55, %cst_17 [1] : vector<8x8xf32> to vector<8xf32>
    %57 = vector.shape_cast %56 : vector<8xf32> to vector<8x1xf32>
    %58 = vector.broadcast %57 : vector<8x1xf32> to vector<8x8xf32>
    %59 = arith.subf %55, %58 : vector<8x8xf32>
    %60 = math.exp %59 : vector<8x8xf32>
    %cst_18 = arith.constant dense<0.000000e+00> : vector<8xf32>
    %61 = vector.multi_reduction <add>, %60, %cst_18 [1] : vector<8x8xf32> to vector<8xf32>
    %62 = vector.shape_cast %61 : vector<8xf32> to vector<8x1xf32>
    %63 = vector.broadcast %62 : vector<8x1xf32> to vector<8x8xf32>
    %64 = arith.divf %60, %63 : vector<8x8xf32>
    %65 = arith.truncf %64 : vector<8x8xf32> to vector<8x8xbf16>
    %66 = vector.extract_strided_slice %14 {offsets = [0, 256], sizes = [8, 128], strides = [1, 1]} : vector<8x512xf32> to vector<8x128xf32>
    %67 = arith.truncf %66 : vector<8x128xf32> to vector<8x128xbf16>
    %cst_19 = arith.constant dense<0.000000e+00> : vector<8x128xf32>
    %68 = tpu.matmul %65, %67, %cst_19 {dimension_numbers = #tpu.dot_dimension_numbers<[1], [0], [0], [1], [0, 0, 1, 1], [], []>} : vector<8x8xbf16>, vector<8x128xbf16>, vector<8x128xf32> -> vector<8x128xf32>
    %69 = vector.extract_strided_slice %12 {offsets = [0, 384], sizes = [8, 128], strides = [1, 1]} : vector<8x512xf32> to vector<8x128xf32>
    %70 = arith.truncf %69 : vector<8x128xf32> to vector<8x128xbf16>
    %71 = vector.extract_strided_slice %13 {offsets = [0, 384], sizes = [8, 128], strides = [1, 1]} : vector<8x512xf32> to vector<8x128xf32>
    %72 = arith.truncf %71 : vector<8x128xf32> to vector<8x128xbf16>
    %cst_20 = arith.constant dense<0.000000e+00> : vector<8x8xf32>
    %73 = tpu.matmul %70, %72, %cst_20 {dimension_numbers = #tpu.dot_dimension_numbers<[1], [1], [0], [0], [0, 0, 1, 0], [], []>} : vector<8x128xbf16>, vector<8x128xbf16>, vector<8x8xf32> -> vector<8x8xf32>
    %cst_21 = arith.constant dense<0xFF800000> : vector<8xf32>
    %74 = vector.multi_reduction <maximumf>, %73, %cst_21 [1] : vector<8x8xf32> to vector<8xf32>
    %75 = vector.shape_cast %74 : vector<8xf32> to vector<8x1xf32>
    %76 = vector.broadcast %75 : vector<8x1xf32> to vector<8x8xf32>
    %77 = arith.subf %73, %76 : vector<8x8xf32>
    %78 = math.exp %77 : vector<8x8xf32>
    %cst_22 = arith.constant dense<0.000000e+00> : vector<8xf32>
    %79 = vector.multi_reduction <add>, %78, %cst_22 [1] : vector<8x8xf32> to vector<8xf32>
    %80 = vector.shape_cast %79 : vector<8xf32> to vector<8x1xf32>
    %81 = vector.broadcast %80 : vector<8x1xf32> to vector<8x8xf32>
    %82 = arith.divf %78, %81 : vector<8x8xf32>
    %83 = arith.truncf %82 : vector<8x8xf32> to vector<8x8xbf16>
    %84 = vector.extract_strided_slice %14 {offsets = [0, 384], sizes = [8, 128], strides = [1, 1]} : vector<8x512xf32> to vector<8x128xf32>
    %85 = arith.truncf %84 : vector<8x128xf32> to vector<8x128xbf16>
    %cst_23 = arith.constant dense<0.000000e+00> : vector<8x128xf32>
    %86 = tpu.matmul %83, %85, %cst_23 {dimension_numbers = #tpu.dot_dimension_numbers<[1], [0], [0], [1], [0, 0, 1, 1], [], []>} : vector<8x8xbf16>, vector<8x128xbf16>, vector<8x128xf32> -> vector<8x128xf32>
    %87 = tpu.concatenate %32, %50, %68, %86 in 1 : vector<8x128xf32>, vector<8x128xf32>, vector<8x128xf32>, vector<8x128xf32> -> vector<8x512xf32>
    %c0_24 = arith.constant 0 : index
    %c0_25 = arith.constant 0 : index
    %c0_26 = arith.constant 0 : index
    %88 = vector.load %arg6[%c0_24, %c0_25, %c0_26] : memref<1x512x128xbf16, #tpu.memory_space<vmem>>, vector<1x512x128xbf16>
    %89 = vector.shape_cast %88 : vector<1x512x128xbf16> to vector<512x128xbf16>
    %90 = arith.truncf %87 : vector<8x512xf32> to vector<8x512xbf16>
    %cst_27 = arith.constant dense<0.000000e+00> : vector<8x128xf32>
    %91 = tpu.matmul %90, %89, %cst_27 {dimension_numbers = #tpu.dot_dimension_numbers<[1], [0], [0], [1], [0, 0, 1, 1], [], []>} : vector<8x512xbf16>, vector<512x128xbf16>, vector<8x128xf32> -> vector<8x128xf32>
    %c0_28 = arith.constant 0 : index
    %c0_29 = arith.constant 0 : index
    %c0_30 = arith.constant 0 : index
    %92 = vector.load %arg7[%c0_28, %c0_29, %c0_30] : memref<1x1x128xf32, #tpu.memory_space<vmem>>, vector<1x1x128xf32>
    %93 = vector.shape_cast %92 : vector<1x1x128xf32> to vector<1x128xf32>
    %94 = vector.broadcast %93 : vector<1x128xf32> to vector<8x128xf32>
    %95 = arith.addf %91, %94 : vector<8x128xf32>
    %96 = arith.addf %3, %95 : vector<8x128xf32>
    %c0_31 = arith.constant 0 : index
    %c0_32 = arith.constant 0 : index
    %c0_33 = arith.constant 0 : index
    %97 = vector.load %arg8[%c0_31, %c0_32, %c0_33] : memref<1x1x128xf32, #tpu.memory_space<vmem>>, vector<1x1x128xf32>
    %98 = vector.shape_cast %97 : vector<1x1x128xf32> to vector<1x128xf32>
    %c0_34 = arith.constant 0 : index
    %c0_35 = arith.constant 0 : index
    %c0_36 = arith.constant 0 : index
    %99 = vector.load %arg9[%c0_34, %c0_35, %c0_36] : memref<1x1x128xf32, #tpu.memory_space<vmem>>, vector<1x1x128xf32>
    %100 = vector.shape_cast %99 : vector<1x1x128xf32> to vector<1x128xf32>
    %cst_37 = arith.constant dense<0.000000e+00> : vector<8xf32>
    %101 = vector.multi_reduction <add>, %96, %cst_37 [1] : vector<8x128xf32> to vector<8xf32>
    %102 = vector.shape_cast %101 : vector<8xf32> to vector<8x1xf32>
    %cst_38 = arith.constant 3.125000e-02 : f32
    %103 = vector.broadcast %cst_38 : f32 to vector<8x1xf32>
    %104 = arith.mulf %102, %103 : vector<8x1xf32>
    %105 = vector.broadcast %104 : vector<8x1xf32> to vector<8x128xf32>
    %106 = arith.subf %96, %105 : vector<8x128xf32>
    %107 = arith.mulf %106, %106 : vector<8x128xf32>
    %cst_39 = arith.constant dense<0.000000e+00> : vector<8xf32>
    %108 = vector.multi_reduction <add>, %107, %cst_39 [1] : vector<8x128xf32> to vector<8xf32>
    %109 = vector.shape_cast %108 : vector<8xf32> to vector<8x1xf32>
    %cst_40 = arith.constant 9.600000e+01 : f32
    %110 = vector.broadcast %cst_40 : f32 to vector<8x1xf32>
    %111 = arith.mulf %110, %104 : vector<8x1xf32>
    %112 = arith.mulf %111, %104 : vector<8x1xf32>
    %113 = arith.subf %109, %112 : vector<8x1xf32>
    %cst_41 = arith.constant 3.125000e-02 : f32
    %114 = vector.broadcast %cst_41 : f32 to vector<8x1xf32>
    %115 = arith.mulf %113, %114 : vector<8x1xf32>
    %cst_42 = arith.constant 9.99999974E-6 : f32
    %116 = vector.broadcast %cst_42 : f32 to vector<8x1xf32>
    %117 = arith.addf %115, %116 : vector<8x1xf32>
    %118 = math.rsqrt %117 : vector<8x1xf32>
    %119 = vector.broadcast %118 : vector<8x1xf32> to vector<8x128xf32>
    %120 = arith.mulf %106, %119 : vector<8x128xf32>
    %121 = vector.broadcast %98 : vector<1x128xf32> to vector<8x128xf32>
    %122 = arith.mulf %120, %121 : vector<8x128xf32>
    %123 = vector.broadcast %100 : vector<1x128xf32> to vector<8x128xf32>
    %124 = arith.addf %122, %123 : vector<8x128xf32>
    %c0_43 = arith.constant 0 : index
    %c0_44 = arith.constant 0 : index
    %c0_45 = arith.constant 0 : index
    %125 = vector.load %arg10[%c0_43, %c0_44, %c0_45] : memref<1x128x128xbf16, #tpu.memory_space<vmem>>, vector<1x128x128xbf16>
    %126 = vector.shape_cast %125 : vector<1x128x128xbf16> to vector<128x128xbf16>
    %127 = arith.truncf %124 : vector<8x128xf32> to vector<8x128xbf16>
    %cst_46 = arith.constant dense<0.000000e+00> : vector<8x128xf32>
    %128 = tpu.matmul %127, %126, %cst_46 {dimension_numbers = #tpu.dot_dimension_numbers<[1], [0], [0], [1], [0, 0, 1, 1], [], []>} : vector<8x128xbf16>, vector<128x128xbf16>, vector<8x128xf32> -> vector<8x128xf32>
    %c0_47 = arith.constant 0 : index
    %c0_48 = arith.constant 0 : index
    %c0_49 = arith.constant 0 : index
    %129 = vector.load %arg11[%c0_47, %c0_48, %c0_49] : memref<1x1x128xf32, #tpu.memory_space<vmem>>, vector<1x1x128xf32>
    %130 = vector.shape_cast %129 : vector<1x1x128xf32> to vector<1x128xf32>
    %131 = vector.broadcast %130 : vector<1x128xf32> to vector<8x128xf32>
    %132 = arith.addf %128, %131 : vector<8x128xf32>
    %cst_50 = arith.constant 0.000000e+00 : f32
    %133 = vector.broadcast %cst_50 : f32 to vector<8x128xf32>
    %134 = arith.maximumf %132, %133 : vector<8x128xf32>
    %c0_51 = arith.constant 0 : index
    %c0_52 = arith.constant 0 : index
    %c0_53 = arith.constant 0 : index
    %135 = vector.load %arg12[%c0_51, %c0_52, %c0_53] : memref<1x128x128xbf16, #tpu.memory_space<vmem>>, vector<1x128x128xbf16>
    %136 = vector.shape_cast %135 : vector<1x128x128xbf16> to vector<128x128xbf16>
    %137 = arith.truncf %134 : vector<8x128xf32> to vector<8x128xbf16>
    %cst_54 = arith.constant dense<0.000000e+00> : vector<8x128xf32>
    %138 = tpu.matmul %137, %136, %cst_54 {dimension_numbers = #tpu.dot_dimension_numbers<[1], [0], [0], [1], [0, 0, 1, 1], [], []>} : vector<8x128xbf16>, vector<128x128xbf16>, vector<8x128xf32> -> vector<8x128xf32>
    %c0_55 = arith.constant 0 : index
    %c0_56 = arith.constant 0 : index
    %c0_57 = arith.constant 0 : index
    %139 = vector.load %arg13[%c0_55, %c0_56, %c0_57] : memref<1x1x128xf32, #tpu.memory_space<vmem>>, vector<1x1x128xf32>
    %140 = vector.shape_cast %139 : vector<1x1x128xf32> to vector<1x128xf32>
    %141 = vector.broadcast %140 : vector<1x128xf32> to vector<8x128xf32>
    %142 = arith.addf %138, %141 : vector<8x128xf32>
    %143 = arith.addf %124, %142 : vector<8x128xf32>
    %c0_58 = arith.constant 0 : index
    %c0_59 = arith.constant 0 : index
    %c0_60 = arith.constant 0 : index
    %144 = vector.load %arg14[%c0_58, %c0_59, %c0_60] : memref<1x1x128xf32, #tpu.memory_space<vmem>>, vector<1x1x128xf32>
    %145 = vector.shape_cast %144 : vector<1x1x128xf32> to vector<1x128xf32>
    %c0_61 = arith.constant 0 : index
    %c0_62 = arith.constant 0 : index
    %c0_63 = arith.constant 0 : index
    %146 = vector.load %arg15[%c0_61, %c0_62, %c0_63] : memref<1x1x128xf32, #tpu.memory_space<vmem>>, vector<1x1x128xf32>
    %147 = vector.shape_cast %146 : vector<1x1x128xf32> to vector<1x128xf32>
    %cst_64 = arith.constant dense<0.000000e+00> : vector<8xf32>
    %148 = vector.multi_reduction <add>, %143, %cst_64 [1] : vector<8x128xf32> to vector<8xf32>
    %149 = vector.shape_cast %148 : vector<8xf32> to vector<8x1xf32>
    %cst_65 = arith.constant 3.125000e-02 : f32
    %150 = vector.broadcast %cst_65 : f32 to vector<8x1xf32>
    %151 = arith.mulf %149, %150 : vector<8x1xf32>
    %152 = vector.broadcast %151 : vector<8x1xf32> to vector<8x128xf32>
    %153 = arith.subf %143, %152 : vector<8x128xf32>
    %154 = arith.mulf %153, %153 : vector<8x128xf32>
    %cst_66 = arith.constant dense<0.000000e+00> : vector<8xf32>
    %155 = vector.multi_reduction <add>, %154, %cst_66 [1] : vector<8x128xf32> to vector<8xf32>
    %156 = vector.shape_cast %155 : vector<8xf32> to vector<8x1xf32>
    %cst_67 = arith.constant 9.600000e+01 : f32
    %157 = vector.broadcast %cst_67 : f32 to vector<8x1xf32>
    %158 = arith.mulf %157, %151 : vector<8x1xf32>
    %159 = arith.mulf %158, %151 : vector<8x1xf32>
    %160 = arith.subf %156, %159 : vector<8x1xf32>
    %cst_68 = arith.constant 3.125000e-02 : f32
    %161 = vector.broadcast %cst_68 : f32 to vector<8x1xf32>
    %162 = arith.mulf %160, %161 : vector<8x1xf32>
    %cst_69 = arith.constant 9.99999974E-6 : f32
    %163 = vector.broadcast %cst_69 : f32 to vector<8x1xf32>
    %164 = arith.addf %162, %163 : vector<8x1xf32>
    %165 = math.rsqrt %164 : vector<8x1xf32>
    %166 = vector.broadcast %165 : vector<8x1xf32> to vector<8x128xf32>
    %167 = arith.mulf %153, %166 : vector<8x128xf32>
    %168 = vector.broadcast %145 : vector<1x128xf32> to vector<8x128xf32>
    %169 = arith.mulf %167, %168 : vector<8x128xf32>
    %170 = vector.broadcast %147 : vector<1x128xf32> to vector<8x128xf32>
    %171 = arith.addf %169, %170 : vector<8x128xf32>
    %c0_70 = arith.constant 0 : index
    %c0_71 = arith.constant 0 : index
    %172 = vector.load %arg19[%c0_70, %c0_71] : memref<8x128xf32, #tpu.memory_space<vmem>>, vector<8x128xf32>
    tpu.vector_store %arg19[%c0_70, %c0_71], %171 {strides = array<i32>} : memref<8x128xf32, #tpu.memory_space<vmem>>, vector<8x128xf32>,
    %c1_i32 = arith.constant 1 : i32
    %173 = arith.cmpi eq, %arg1, %c1_i32 : i32
    %174 = arith.extui %173 : i1 to i32
    %c0_i32_72 = arith.constant 0 : i32
    %175 = arith.cmpi ne, %174, %c0_i32_72 : i32
    scf.if %175 {
      %c0_73 = arith.constant 0 : index
      %c0_74 = arith.constant 0 : index
      %176 = vector.load %arg16[%c0_73, %c0_74] : memref<1x128xf32, #tpu.memory_space<vmem>>, vector<1x128xf32>
      %c0_75 = arith.constant 0 : index
      %c0_76 = arith.constant 0 : index
      %177 = vector.load %arg17[%c0_75, %c0_76] : memref<1x128xf32, #tpu.memory_space<vmem>>, vector<1x128xf32>
      %cst_77 = arith.constant dense<0.000000e+00> : vector<8xf32>
      %178 = vector.multi_reduction <add>, %171, %cst_77 [1] : vector<8x128xf32> to vector<8xf32>
      %179 = vector.shape_cast %178 : vector<8xf32> to vector<8x1xf32>
      %cst_78 = arith.constant 3.125000e-02 : f32
      %180 = vector.broadcast %cst_78 : f32 to vector<8x1xf32>
      %181 = arith.mulf %179, %180 : vector<8x1xf32>
      %182 = vector.broadcast %181 : vector<8x1xf32> to vector<8x128xf32>
      %183 = arith.subf %171, %182 : vector<8x128xf32>
      %184 = arith.mulf %183, %183 : vector<8x128xf32>
      %cst_79 = arith.constant dense<0.000000e+00> : vector<8xf32>
      %185 = vector.multi_reduction <add>, %184, %cst_79 [1] : vector<8x128xf32> to vector<8xf32>
      %186 = vector.shape_cast %185 : vector<8xf32> to vector<8x1xf32>
      %cst_80 = arith.constant 9.600000e+01 : f32
      %187 = vector.broadcast %cst_80 : f32 to vector<8x1xf32>
      %188 = arith.mulf %187, %181 : vector<8x1xf32>
      %189 = arith.mulf %188, %181 : vector<8x1xf32>
      %190 = arith.subf %186, %189 : vector<8x1xf32>
      %cst_81 = arith.constant 3.125000e-02 : f32
      %191 = vector.broadcast %cst_81 : f32 to vector<8x1xf32>
      %192 = arith.mulf %190, %191 : vector<8x1xf32>
      %cst_82 = arith.constant 9.99999974E-6 : f32
      %193 = vector.broadcast %cst_82 : f32 to vector<8x1xf32>
      %194 = arith.addf %192, %193 : vector<8x1xf32>
      %195 = math.rsqrt %194 : vector<8x1xf32>
      %196 = vector.broadcast %195 : vector<8x1xf32> to vector<8x128xf32>
      %197 = arith.mulf %183, %196 : vector<8x128xf32>
      %198 = vector.broadcast %176 : vector<1x128xf32> to vector<8x128xf32>
      %199 = arith.mulf %197, %198 : vector<8x128xf32>
      %200 = vector.broadcast %177 : vector<1x128xf32> to vector<8x128xf32>
      %201 = arith.addf %199, %200 : vector<8x128xf32>
      %202 = arith.truncf %201 : vector<8x128xf32> to vector<8x128xbf16>
      %c0_83 = arith.constant 0 : index
      %c0_84 = arith.constant 0 : index
      %c0_85 = arith.constant 0 : index
      %203 = vector.load %arg18[%c0_83, %c0_84, %c0_85] : memref<1x8x128xbf16, #tpu.memory_space<vmem>>, vector<1x8x128xbf16>
      %204 = vector.shape_cast %203 : vector<1x8x128xbf16> to vector<8x128xbf16>
      %205 = vector.shape_cast %202 : vector<8x128xbf16> to vector<1x8x128xbf16>
      tpu.vector_store %arg18[%c0_83, %c0_84, %c0_85], %205 {strides = array<i32>} : memref<1x8x128xbf16, #tpu.memory_space<vmem>>, vector<1x8x128xbf16>,
    } else {
    }
    return
  }
  func.func @transform_0(%arg0: i32, %arg1: i32) -> (i32, i32, i32) {
    %c0_i32 = arith.constant 0 : i32
    %c0_i32_0 = arith.constant 0 : i32
    %c0_i32_1 = arith.constant 0 : i32
    return %arg0, %c0_i32, %c0_i32_0 : i32, i32, i32
  }
  func.func @transform_1(%arg0: i32, %arg1: i32) -> (i32, i32) {
    %c0_i32 = arith.constant 0 : i32
    %c0_i32_0 = arith.constant 0 : i32
    %c0_i32_1 = arith.constant 0 : i32
    return %c0_i32, %c0_i32_0 : i32, i32
  }
  func.func @transform_2(%arg0: i32, %arg1: i32) -> (i32, i32, i32) {
    %c0_i32 = arith.constant 0 : i32
    %c0_i32_0 = arith.constant 0 : i32
    %c0_i32_1 = arith.constant 0 : i32
    return %arg1, %c0_i32, %c0_i32_0 : i32, i32, i32
  }
  func.func @transform_3(%arg0: i32, %arg1: i32) -> (i32, i32, i32) {
    %c0_i32 = arith.constant 0 : i32
    %c0_i32_0 = arith.constant 0 : i32
    %c0_i32_1 = arith.constant 0 : i32
    return %arg1, %c0_i32, %c0_i32_0 : i32, i32, i32
  }
  func.func @transform_4(%arg0: i32, %arg1: i32) -> (i32, i32, i32) {
    %c0_i32 = arith.constant 0 : i32
    %c0_i32_0 = arith.constant 0 : i32
    %c0_i32_1 = arith.constant 0 : i32
    return %arg1, %c0_i32, %c0_i32_0 : i32, i32, i32
  }
  func.func @transform_5(%arg0: i32, %arg1: i32) -> (i32, i32, i32) {
    %c0_i32 = arith.constant 0 : i32
    %c0_i32_0 = arith.constant 0 : i32
    %c0_i32_1 = arith.constant 0 : i32
    return %arg1, %c0_i32, %c0_i32_0 : i32, i32, i32
  }
  func.func @transform_6(%arg0: i32, %arg1: i32) -> (i32, i32, i32) {
    %c0_i32 = arith.constant 0 : i32
    %c0_i32_0 = arith.constant 0 : i32
    %c0_i32_1 = arith.constant 0 : i32
    return %arg1, %c0_i32, %c0_i32_0 : i32, i32, i32
  }
  func.func @transform_7(%arg0: i32, %arg1: i32) -> (i32, i32, i32) {
    %c0_i32 = arith.constant 0 : i32
    %c0_i32_0 = arith.constant 0 : i32
    %c0_i32_1 = arith.constant 0 : i32
    return %arg1, %c0_i32, %c0_i32_0 : i32, i32, i32
  }
  func.func @transform_8(%arg0: i32, %arg1: i32) -> (i32, i32, i32) {
    %c0_i32 = arith.constant 0 : i32
    %c0_i32_0 = arith.constant 0 : i32
    %c0_i32_1 = arith.constant 0 : i32
    return %arg1, %c0_i32, %c0_i32_0 : i32, i32, i32
  }
  func.func @transform_9(%arg0: i32, %arg1: i32) -> (i32, i32, i32) {
    %c0_i32 = arith.constant 0 : i32
    %c0_i32_0 = arith.constant 0 : i32
    %c0_i32_1 = arith.constant 0 : i32
    return %arg1, %c0_i32, %c0_i32_0 : i32, i32, i32
  }
  func.func @transform_10(%arg0: i32, %arg1: i32) -> (i32, i32, i32) {
    %c0_i32 = arith.constant 0 : i32
    %c0_i32_0 = arith.constant 0 : i32
    %c0_i32_1 = arith.constant 0 : i32
    return %arg1, %c0_i32, %c0_i32_0 : i32, i32, i32
  }
  func.func @transform_11(%arg0: i32, %arg1: i32) -> (i32, i32, i32) {
    %c0_i32 = arith.constant 0 : i32
    %c0_i32_0 = arith.constant 0 : i32
    %c0_i32_1 = arith.constant 0 : i32
    return %arg1, %c0_i32, %c0_i32_0 : i32, i32, i32
  }
  func.func @transform_12(%arg0: i32, %arg1: i32) -> (i32, i32, i32) {
    %c0_i32 = arith.constant 0 : i32
    %c0_i32_0 = arith.constant 0 : i32
    %c0_i32_1 = arith.constant 0 : i32
    return %arg1, %c0_i32, %c0_i32_0 : i32, i32, i32
  }
  func.func @transform_13(%arg0: i32, %arg1: i32) -> (i32, i32, i32) {
    %c0_i32 = arith.constant 0 : i32
    %c0_i32_0 = arith.constant 0 : i32
    %c0_i32_1 = arith.constant 0 : i32
    return %arg1, %c0_i32, %c0_i32_0 : i32, i32, i32
  }
  func.func @transform_14(%arg0: i32, %arg1: i32) -> (i32, i32) {
    %c0_i32 = arith.constant 0 : i32
    %c0_i32_0 = arith.constant 0 : i32
    %c0_i32_1 = arith.constant 0 : i32
    return %c0_i32, %c0_i32_0 : i32, i32
  }
  func.func @transform_15(%arg0: i32, %arg1: i32) -> (i32, i32) {
    %c0_i32 = arith.constant 0 : i32
    %c0_i32_0 = arith.constant 0 : i32
    %c0_i32_1 = arith.constant 0 : i32
    return %c0_i32, %c0_i32_0 : i32, i32
  }
  func.func @transform_16(%arg0: i32, %arg1: i32) -> (i32, i32, i32) {
    %c0_i32 = arith.constant 0 : i32
    %c0_i32_0 = arith.constant 0 : i32
    %c0_i32_1 = arith.constant 0 : i32
    return %arg0, %c0_i32, %c0_i32_0 : i32, i32, i32
  }
}

module attributes {stable_mosaic.version = 11 : i64} {
  func.func @_dec_stack_kernel(%arg0: i32, %arg1: i32, %arg2: memref<1x8x128xf32, #tpu.memory_space<vmem>>, %arg3: memref<8x128xf32, #tpu.memory_space<vmem>>, %arg4: memref<1x8x128xbf16, #tpu.memory_space<vmem>>, %arg5: memref<1x128x1536xbf16, #tpu.memory_space<vmem>>, %arg6: memref<1x1x1536xf32, #tpu.memory_space<vmem>>, %arg7: memref<1x512x128xbf16, #tpu.memory_space<vmem>>, %arg8: memref<1x1x128xf32, #tpu.memory_space<vmem>>, %arg9: memref<1x1x128xf32, #tpu.memory_space<vmem>>, %arg10: memref<1x1x128xf32, #tpu.memory_space<vmem>>, %arg11: memref<1x128x512xbf16, #tpu.memory_space<vmem>>, %arg12: memref<1x1x512xf32, #tpu.memory_space<vmem>>, %arg13: memref<1x128x1024xbf16, #tpu.memory_space<vmem>>, %arg14: memref<1x1x1024xf32, #tpu.memory_space<vmem>>, %arg15: memref<1x512x128xbf16, #tpu.memory_space<vmem>>, %arg16: memref<1x1x128xf32, #tpu.memory_space<vmem>>, %arg17: memref<1x1x128xf32, #tpu.memory_space<vmem>>, %arg18: memref<1x1x128xf32, #tpu.memory_space<vmem>>, %arg19: memref<1x128x128xbf16, #tpu.memory_space<vmem>>, %arg20: memref<1x1x128xf32, #tpu.memory_space<vmem>>, %arg21: memref<1x128x128xbf16, #tpu.memory_space<vmem>>, %arg22: memref<1x1x128xf32, #tpu.memory_space<vmem>>, %arg23: memref<1x1x128xf32, #tpu.memory_space<vmem>>, %arg24: memref<1x1x128xf32, #tpu.memory_space<vmem>>, %arg25: memref<1x128xf32, #tpu.memory_space<vmem>>, %arg26: memref<1x128xf32, #tpu.memory_space<vmem>>, %arg27: memref<1x8x128xbf16, #tpu.memory_space<vmem>>, %arg28: memref<8x128xf32, #tpu.memory_space<vmem>>) attributes {dimension_semantics = [#tpu.dimension_semantics<parallel>, #tpu.dimension_semantics<arbitrary>], iteration_bounds = array<i64: 2, 2>, scalar_prefetch = 0 : i64, scratch_operands = 1 : i64, tpu.core_type = #tpu.core_type<tc>, window_params = [{transform_indices = @transform_0, window_bounds = array<i64: 1, 8, 128>}, {pipeline_mode = #tpu.pipeline_mode<synchronous>, transform_indices = @transform_1, window_bounds = array<i64: 8, 128>}, {transform_indices = @transform_2, window_bounds = array<i64: 1, 8, 128>}, {transform_indices = @transform_3, window_bounds = array<i64: 1, 128, 1536>}, {transform_indices = @transform_4, window_bounds = array<i64: 1, 1, 1536>}, {transform_indices = @transform_5, window_bounds = array<i64: 1, 512, 128>}, {transform_indices = @transform_6, window_bounds = array<i64: 1, 1, 128>}, {transform_indices = @transform_7, window_bounds = array<i64: 1, 1, 128>}, {transform_indices = @transform_8, window_bounds = array<i64: 1, 1, 128>}, {transform_indices = @transform_9, window_bounds = array<i64: 1, 128, 512>}, {transform_indices = @transform_10, window_bounds = array<i64: 1, 1, 512>}, {transform_indices = @transform_11, window_bounds = array<i64: 1, 128, 1024>}, {transform_indices = @transform_12, window_bounds = array<i64: 1, 1, 1024>}, {transform_indices = @transform_13, window_bounds = array<i64: 1, 512, 128>}, {transform_indices = @transform_14, window_bounds = array<i64: 1, 1, 128>}, {transform_indices = @transform_15, window_bounds = array<i64: 1, 1, 128>}, {transform_indices = @transform_16, window_bounds = array<i64: 1, 1, 128>}, {transform_indices = @transform_17, window_bounds = array<i64: 1, 128, 128>}, {transform_indices = @transform_18, window_bounds = array<i64: 1, 1, 128>}, {transform_indices = @transform_19, window_bounds = array<i64: 1, 128, 128>}, {transform_indices = @transform_20, window_bounds = array<i64: 1, 1, 128>}, {transform_indices = @transform_21, window_bounds = array<i64: 1, 1, 128>}, {transform_indices = @transform_22, window_bounds = array<i64: 1, 1, 128>}, {pipeline_mode = #tpu.pipeline_mode<synchronous>, transform_indices = @transform_23, window_bounds = array<i64: 1, 128>}, {pipeline_mode = #tpu.pipeline_mode<synchronous>, transform_indices = @transform_24, window_bounds = array<i64: 1, 128>}, {transform_indices = @transform_25, window_bounds = array<i64: 1, 8, 128>}]} {
    %c0_i32 = arith.constant 0 : i32
    %0 = arith.cmpi eq, %arg1, %c0_i32 : i32
    %1 = arith.extui %0 : i1 to i32
    %c0_i32_0 = arith.constant 0 : i32
    %2 = arith.cmpi ne, %1, %c0_i32_0 : i32
    scf.if %2 {
      %c0_125 = arith.constant 0 : index
      %c0_126 = arith.constant 0 : index
      %c0_127 = arith.constant 0 : index
      %305 = vector.load %arg2[%c0_125, %c0_126, %c0_127] : memref<1x8x128xf32, #tpu.memory_space<vmem>>, vector<1x8x128xf32>
      %306 = vector.shape_cast %305 : vector<1x8x128xf32> to vector<8x128xf32>
      %cst_128 = arith.constant 5.65685415 : f32
      %307 = vector.broadcast %cst_128 : f32 to vector<8x128xf32>
      %308 = arith.mulf %306, %307 : vector<8x128xf32>
      %c0_129 = arith.constant 0 : index
      %c0_130 = arith.constant 0 : index
      %309 = vector.load %arg3[%c0_129, %c0_130] : memref<8x128xf32, #tpu.memory_space<vmem>>, vector<8x128xf32>
      %310 = arith.addf %308, %309 : vector<8x128xf32>
      %c0_131 = arith.constant 0 : index
      %c0_132 = arith.constant 0 : index
      %311 = vector.load %arg28[%c0_131, %c0_132] : memref<8x128xf32, #tpu.memory_space<vmem>>, vector<8x128xf32>
      tpu.vector_store %arg28[%c0_131, %c0_132], %310 {strides = array<i32>} : memref<8x128xf32, #tpu.memory_space<vmem>>, vector<8x128xf32>,
    } else {
    }
    %c0 = arith.constant 0 : index
    %c0_1 = arith.constant 0 : index
    %3 = vector.load %arg28[%c0, %c0_1] : memref<8x128xf32, #tpu.memory_space<vmem>>, vector<8x128xf32>
    %c0_2 = arith.constant 0 : index
    %c0_3 = arith.constant 0 : index
    %c0_4 = arith.constant 0 : index
    %4 = vector.load %arg4[%c0_2, %c0_3, %c0_4] : memref<1x8x128xbf16, #tpu.memory_space<vmem>>, vector<1x8x128xbf16>
    %5 = vector.shape_cast %4 : vector<1x8x128xbf16> to vector<8x128xbf16>
    %c0_5 = arith.constant 0 : index
    %c0_6 = arith.constant 0 : index
    %c0_7 = arith.constant 0 : index
    %6 = vector.load %arg5[%c0_5, %c0_6, %c0_7] : memref<1x128x1536xbf16, #tpu.memory_space<vmem>>, vector<1x128x1536xbf16>
    %7 = vector.shape_cast %6 : vector<1x128x1536xbf16> to vector<128x1536xbf16>
    %8 = arith.truncf %3 : vector<8x128xf32> to vector<8x128xbf16>
    %cst = arith.constant dense<0.000000e+00> : vector<8x1536xf32>
    %9 = tpu.matmul %8, %7, %cst {dimension_numbers = #tpu.dot_dimension_numbers<[1], [0], [0], [1], [0, 0, 1, 1], [], []>} : vector<8x128xbf16>, vector<128x1536xbf16>, vector<8x1536xf32> -> vector<8x1536xf32>
    %c0_8 = arith.constant 0 : index
    %c0_9 = arith.constant 0 : index
    %c0_10 = arith.constant 0 : index
    %10 = vector.load %arg6[%c0_8, %c0_9, %c0_10] : memref<1x1x1536xf32, #tpu.memory_space<vmem>>, vector<1x1x1536xf32>
    %11 = vector.shape_cast %10 : vector<1x1x1536xf32> to vector<1x1536xf32>
    %12 = vector.broadcast %11 : vector<1x1536xf32> to vector<8x1536xf32>
    %13 = arith.addf %9, %12 : vector<8x1536xf32>
    %14 = vector.extract_strided_slice %13 {offsets = [0, 0], sizes = [8, 512], strides = [1, 1]} : vector<8x1536xf32> to vector<8x512xf32>
    %15 = vector.extract_strided_slice %13 {offsets = [0, 512], sizes = [8, 512], strides = [1, 1]} : vector<8x1536xf32> to vector<8x512xf32>
    %16 = vector.extract_strided_slice %13 {offsets = [0, 1024], sizes = [8, 512], strides = [1, 1]} : vector<8x1536xf32> to vector<8x512xf32>
    %17 = vector.extract_strided_slice %14 {offsets = [0, 0], sizes = [8, 128], strides = [1, 1]} : vector<8x512xf32> to vector<8x128xf32>
    %18 = arith.truncf %17 : vector<8x128xf32> to vector<8x128xbf16>
    %19 = vector.extract_strided_slice %15 {offsets = [0, 0], sizes = [8, 128], strides = [1, 1]} : vector<8x512xf32> to vector<8x128xf32>
    %20 = arith.truncf %19 : vector<8x128xf32> to vector<8x128xbf16>
    %cst_11 = arith.constant dense<0.000000e+00> : vector<8x8xf32>
    %21 = tpu.matmul %18, %20, %cst_11 {dimension_numbers = #tpu.dot_dimension_numbers<[1], [1], [0], [0], [0, 0, 1, 0], [], []>} : vector<8x128xbf16>, vector<8x128xbf16>, vector<8x8xf32> -> vector<8x8xf32>
    %cst_12 = arith.constant dense<0xFF800000> : vector<8xf32>
    %22 = vector.multi_reduction <maximumf>, %21, %cst_12 [1] : vector<8x8xf32> to vector<8xf32>
    %23 = vector.shape_cast %22 : vector<8xf32> to vector<8x1xf32>
    %24 = vector.broadcast %23 : vector<8x1xf32> to vector<8x8xf32>
    %25 = arith.subf %21, %24 : vector<8x8xf32>
    %26 = math.exp %25 : vector<8x8xf32>
    %cst_13 = arith.constant dense<0.000000e+00> : vector<8xf32>
    %27 = vector.multi_reduction <add>, %26, %cst_13 [1] : vector<8x8xf32> to vector<8xf32>
    %28 = vector.shape_cast %27 : vector<8xf32> to vector<8x1xf32>
    %29 = vector.broadcast %28 : vector<8x1xf32> to vector<8x8xf32>
    %30 = arith.divf %26, %29 : vector<8x8xf32>
    %31 = arith.truncf %30 : vector<8x8xf32> to vector<8x8xbf16>
    %32 = vector.extract_strided_slice %16 {offsets = [0, 0], sizes = [8, 128], strides = [1, 1]} : vector<8x512xf32> to vector<8x128xf32>
    %33 = arith.truncf %32 : vector<8x128xf32> to vector<8x128xbf16>
    %cst_14 = arith.constant dense<0.000000e+00> : vector<8x128xf32>
    %34 = tpu.matmul %31, %33, %cst_14 {dimension_numbers = #tpu.dot_dimension_numbers<[1], [0], [0], [1], [0, 0, 1, 1], [], []>} : vector<8x8xbf16>, vector<8x128xbf16>, vector<8x128xf32> -> vector<8x128xf32>
    %35 = vector.extract_strided_slice %14 {offsets = [0, 128], sizes = [8, 128], strides = [1, 1]} : vector<8x512xf32> to vector<8x128xf32>
    %36 = arith.truncf %35 : vector<8x128xf32> to vector<8x128xbf16>
    %37 = vector.extract_strided_slice %15 {offsets = [0, 128], sizes = [8, 128], strides = [1, 1]} : vector<8x512xf32> to vector<8x128xf32>
    %38 = arith.truncf %37 : vector<8x128xf32> to vector<8x128xbf16>
    %cst_15 = arith.constant dense<0.000000e+00> : vector<8x8xf32>
    %39 = tpu.matmul %36, %38, %cst_15 {dimension_numbers = #tpu.dot_dimension_numbers<[1], [1], [0], [0], [0, 0, 1, 0], [], []>} : vector<8x128xbf16>, vector<8x128xbf16>, vector<8x8xf32> -> vector<8x8xf32>
    %cst_16 = arith.constant dense<0xFF800000> : vector<8xf32>
    %40 = vector.multi_reduction <maximumf>, %39, %cst_16 [1] : vector<8x8xf32> to vector<8xf32>
    %41 = vector.shape_cast %40 : vector<8xf32> to vector<8x1xf32>
    %42 = vector.broadcast %41 : vector<8x1xf32> to vector<8x8xf32>
    %43 = arith.subf %39, %42 : vector<8x8xf32>
    %44 = math.exp %43 : vector<8x8xf32>
    %cst_17 = arith.constant dense<0.000000e+00> : vector<8xf32>
    %45 = vector.multi_reduction <add>, %44, %cst_17 [1] : vector<8x8xf32> to vector<8xf32>
    %46 = vector.shape_cast %45 : vector<8xf32> to vector<8x1xf32>
    %47 = vector.broadcast %46 : vector<8x1xf32> to vector<8x8xf32>
    %48 = arith.divf %44, %47 : vector<8x8xf32>
    %49 = arith.truncf %48 : vector<8x8xf32> to vector<8x8xbf16>
    %50 = vector.extract_strided_slice %16 {offsets = [0, 128], sizes = [8, 128], strides = [1, 1]} : vector<8x512xf32> to vector<8x128xf32>
    %51 = arith.truncf %50 : vector<8x128xf32> to vector<8x128xbf16>
    %cst_18 = arith.constant dense<0.000000e+00> : vector<8x128xf32>
    %52 = tpu.matmul %49, %51, %cst_18 {dimension_numbers = #tpu.dot_dimension_numbers<[1], [0], [0], [1], [0, 0, 1, 1], [], []>} : vector<8x8xbf16>, vector<8x128xbf16>, vector<8x128xf32> -> vector<8x128xf32>
    %53 = vector.extract_strided_slice %14 {offsets = [0, 256], sizes = [8, 128], strides = [1, 1]} : vector<8x512xf32> to vector<8x128xf32>
    %54 = arith.truncf %53 : vector<8x128xf32> to vector<8x128xbf16>
    %55 = vector.extract_strided_slice %15 {offsets = [0, 256], sizes = [8, 128], strides = [1, 1]} : vector<8x512xf32> to vector<8x128xf32>
    %56 = arith.truncf %55 : vector<8x128xf32> to vector<8x128xbf16>
    %cst_19 = arith.constant dense<0.000000e+00> : vector<8x8xf32>
    %57 = tpu.matmul %54, %56, %cst_19 {dimension_numbers = #tpu.dot_dimension_numbers<[1], [1], [0], [0], [0, 0, 1, 0], [], []>} : vector<8x128xbf16>, vector<8x128xbf16>, vector<8x8xf32> -> vector<8x8xf32>
    %cst_20 = arith.constant dense<0xFF800000> : vector<8xf32>
    %58 = vector.multi_reduction <maximumf>, %57, %cst_20 [1] : vector<8x8xf32> to vector<8xf32>
    %59 = vector.shape_cast %58 : vector<8xf32> to vector<8x1xf32>
    %60 = vector.broadcast %59 : vector<8x1xf32> to vector<8x8xf32>
    %61 = arith.subf %57, %60 : vector<8x8xf32>
    %62 = math.exp %61 : vector<8x8xf32>
    %cst_21 = arith.constant dense<0.000000e+00> : vector<8xf32>
    %63 = vector.multi_reduction <add>, %62, %cst_21 [1] : vector<8x8xf32> to vector<8xf32>
    %64 = vector.shape_cast %63 : vector<8xf32> to vector<8x1xf32>
    %65 = vector.broadcast %64 : vector<8x1xf32> to vector<8x8xf32>
    %66 = arith.divf %62, %65 : vector<8x8xf32>
    %67 = arith.truncf %66 : vector<8x8xf32> to vector<8x8xbf16>
    %68 = vector.extract_strided_slice %16 {offsets = [0, 256], sizes = [8, 128], strides = [1, 1]} : vector<8x512xf32> to vector<8x128xf32>
    %69 = arith.truncf %68 : vector<8x128xf32> to vector<8x128xbf16>
    %cst_22 = arith.constant dense<0.000000e+00> : vector<8x128xf32>
    %70 = tpu.matmul %67, %69, %cst_22 {dimension_numbers = #tpu.dot_dimension_numbers<[1], [0], [0], [1], [0, 0, 1, 1], [], []>} : vector<8x8xbf16>, vector<8x128xbf16>, vector<8x128xf32> -> vector<8x128xf32>
    %71 = vector.extract_strided_slice %14 {offsets = [0, 384], sizes = [8, 128], strides = [1, 1]} : vector<8x512xf32> to vector<8x128xf32>
    %72 = arith.truncf %71 : vector<8x128xf32> to vector<8x128xbf16>
    %73 = vector.extract_strided_slice %15 {offsets = [0, 384], sizes = [8, 128], strides = [1, 1]} : vector<8x512xf32> to vector<8x128xf32>
    %74 = arith.truncf %73 : vector<8x128xf32> to vector<8x128xbf16>
    %cst_23 = arith.constant dense<0.000000e+00> : vector<8x8xf32>
    %75 = tpu.matmul %72, %74, %cst_23 {dimension_numbers = #tpu.dot_dimension_numbers<[1], [1], [0], [0], [0, 0, 1, 0], [], []>} : vector<8x128xbf16>, vector<8x128xbf16>, vector<8x8xf32> -> vector<8x8xf32>
    %cst_24 = arith.constant dense<0xFF800000> : vector<8xf32>
    %76 = vector.multi_reduction <maximumf>, %75, %cst_24 [1] : vector<8x8xf32> to vector<8xf32>
    %77 = vector.shape_cast %76 : vector<8xf32> to vector<8x1xf32>
    %78 = vector.broadcast %77 : vector<8x1xf32> to vector<8x8xf32>
    %79 = arith.subf %75, %78 : vector<8x8xf32>
    %80 = math.exp %79 : vector<8x8xf32>
    %cst_25 = arith.constant dense<0.000000e+00> : vector<8xf32>
    %81 = vector.multi_reduction <add>, %80, %cst_25 [1] : vector<8x8xf32> to vector<8xf32>
    %82 = vector.shape_cast %81 : vector<8xf32> to vector<8x1xf32>
    %83 = vector.broadcast %82 : vector<8x1xf32> to vector<8x8xf32>
    %84 = arith.divf %80, %83 : vector<8x8xf32>
    %85 = arith.truncf %84 : vector<8x8xf32> to vector<8x8xbf16>
    %86 = vector.extract_strided_slice %16 {offsets = [0, 384], sizes = [8, 128], strides = [1, 1]} : vector<8x512xf32> to vector<8x128xf32>
    %87 = arith.truncf %86 : vector<8x128xf32> to vector<8x128xbf16>
    %cst_26 = arith.constant dense<0.000000e+00> : vector<8x128xf32>
    %88 = tpu.matmul %85, %87, %cst_26 {dimension_numbers = #tpu.dot_dimension_numbers<[1], [0], [0], [1], [0, 0, 1, 1], [], []>} : vector<8x8xbf16>, vector<8x128xbf16>, vector<8x128xf32> -> vector<8x128xf32>
    %89 = tpu.concatenate %34, %52, %70, %88 in 1 : vector<8x128xf32>, vector<8x128xf32>, vector<8x128xf32>, vector<8x128xf32> -> vector<8x512xf32>
    %c0_27 = arith.constant 0 : index
    %c0_28 = arith.constant 0 : index
    %c0_29 = arith.constant 0 : index
    %90 = vector.load %arg7[%c0_27, %c0_28, %c0_29] : memref<1x512x128xbf16, #tpu.memory_space<vmem>>, vector<1x512x128xbf16>
    %91 = vector.shape_cast %90 : vector<1x512x128xbf16> to vector<512x128xbf16>
    %92 = arith.truncf %89 : vector<8x512xf32> to vector<8x512xbf16>
    %cst_30 = arith.constant dense<0.000000e+00> : vector<8x128xf32>
    %93 = tpu.matmul %92, %91, %cst_30 {dimension_numbers = #tpu.dot_dimension_numbers<[1], [0], [0], [1], [0, 0, 1, 1], [], []>} : vector<8x512xbf16>, vector<512x128xbf16>, vector<8x128xf32> -> vector<8x128xf32>
    %c0_31 = arith.constant 0 : index
    %c0_32 = arith.constant 0 : index
    %c0_33 = arith.constant 0 : index
    %94 = vector.load %arg8[%c0_31, %c0_32, %c0_33] : memref<1x1x128xf32, #tpu.memory_space<vmem>>, vector<1x1x128xf32>
    %95 = vector.shape_cast %94 : vector<1x1x128xf32> to vector<1x128xf32>
    %96 = vector.broadcast %95 : vector<1x128xf32> to vector<8x128xf32>
    %97 = arith.addf %93, %96 : vector<8x128xf32>
    %98 = arith.addf %3, %97 : vector<8x128xf32>
    %c0_34 = arith.constant 0 : index
    %c0_35 = arith.constant 0 : index
    %c0_36 = arith.constant 0 : index
    %99 = vector.load %arg9[%c0_34, %c0_35, %c0_36] : memref<1x1x128xf32, #tpu.memory_space<vmem>>, vector<1x1x128xf32>
    %100 = vector.shape_cast %99 : vector<1x1x128xf32> to vector<1x128xf32>
    %c0_37 = arith.constant 0 : index
    %c0_38 = arith.constant 0 : index
    %c0_39 = arith.constant 0 : index
    %101 = vector.load %arg10[%c0_37, %c0_38, %c0_39] : memref<1x1x128xf32, #tpu.memory_space<vmem>>, vector<1x1x128xf32>
    %102 = vector.shape_cast %101 : vector<1x1x128xf32> to vector<1x128xf32>
    %cst_40 = arith.constant dense<0.000000e+00> : vector<8xf32>
    %103 = vector.multi_reduction <add>, %98, %cst_40 [1] : vector<8x128xf32> to vector<8xf32>
    %104 = vector.shape_cast %103 : vector<8xf32> to vector<8x1xf32>
    %cst_41 = arith.constant 3.125000e-02 : f32
    %105 = vector.broadcast %cst_41 : f32 to vector<8x1xf32>
    %106 = arith.mulf %104, %105 : vector<8x1xf32>
    %107 = vector.broadcast %106 : vector<8x1xf32> to vector<8x128xf32>
    %108 = arith.subf %98, %107 : vector<8x128xf32>
    %109 = arith.mulf %108, %108 : vector<8x128xf32>
    %cst_42 = arith.constant dense<0.000000e+00> : vector<8xf32>
    %110 = vector.multi_reduction <add>, %109, %cst_42 [1] : vector<8x128xf32> to vector<8xf32>
    %111 = vector.shape_cast %110 : vector<8xf32> to vector<8x1xf32>
    %cst_43 = arith.constant 9.600000e+01 : f32
    %112 = vector.broadcast %cst_43 : f32 to vector<8x1xf32>
    %113 = arith.mulf %112, %106 : vector<8x1xf32>
    %114 = arith.mulf %113, %106 : vector<8x1xf32>
    %115 = arith.subf %111, %114 : vector<8x1xf32>
    %cst_44 = arith.constant 3.125000e-02 : f32
    %116 = vector.broadcast %cst_44 : f32 to vector<8x1xf32>
    %117 = arith.mulf %115, %116 : vector<8x1xf32>
    %cst_45 = arith.constant 9.99999974E-6 : f32
    %118 = vector.broadcast %cst_45 : f32 to vector<8x1xf32>
    %119 = arith.addf %117, %118 : vector<8x1xf32>
    %120 = math.rsqrt %119 : vector<8x1xf32>
    %121 = vector.broadcast %120 : vector<8x1xf32> to vector<8x128xf32>
    %122 = arith.mulf %108, %121 : vector<8x128xf32>
    %123 = vector.broadcast %100 : vector<1x128xf32> to vector<8x128xf32>
    %124 = arith.mulf %122, %123 : vector<8x128xf32>
    %125 = vector.broadcast %102 : vector<1x128xf32> to vector<8x128xf32>
    %126 = arith.addf %124, %125 : vector<8x128xf32>
    %c0_46 = arith.constant 0 : index
    %c0_47 = arith.constant 0 : index
    %c0_48 = arith.constant 0 : index
    %127 = vector.load %arg11[%c0_46, %c0_47, %c0_48] : memref<1x128x512xbf16, #tpu.memory_space<vmem>>, vector<1x128x512xbf16>
    %128 = vector.shape_cast %127 : vector<1x128x512xbf16> to vector<128x512xbf16>
    %129 = arith.truncf %126 : vector<8x128xf32> to vector<8x128xbf16>
    %cst_49 = arith.constant dense<0.000000e+00> : vector<8x512xf32>
    %130 = tpu.matmul %129, %128, %cst_49 {dimension_numbers = #tpu.dot_dimension_numbers<[1], [0], [0], [1], [0, 0, 1, 1], [], []>} : vector<8x128xbf16>, vector<128x512xbf16>, vector<8x512xf32> -> vector<8x512xf32>
    %c0_50 = arith.constant 0 : index
    %c0_51 = arith.constant 0 : index
    %c0_52 = arith.constant 0 : index
    %131 = vector.load %arg12[%c0_50, %c0_51, %c0_52] : memref<1x1x512xf32, #tpu.memory_space<vmem>>, vector<1x1x512xf32>
    %132 = vector.shape_cast %131 : vector<1x1x512xf32> to vector<1x512xf32>
    %133 = vector.broadcast %132 : vector<1x512xf32> to vector<8x512xf32>
    %134 = arith.addf %130, %133 : vector<8x512xf32>
    %c0_53 = arith.constant 0 : index
    %c0_54 = arith.constant 0 : index
    %c0_55 = arith.constant 0 : index
    %135 = vector.load %arg13[%c0_53, %c0_54, %c0_55] : memref<1x128x1024xbf16, #tpu.memory_space<vmem>>, vector<1x128x1024xbf16>
    %136 = vector.shape_cast %135 : vector<1x128x1024xbf16> to vector<128x1024xbf16>
    %cst_56 = arith.constant dense<0.000000e+00> : vector<8x1024xf32>
    %137 = tpu.matmul %5, %136, %cst_56 {dimension_numbers = #tpu.dot_dimension_numbers<[1], [0], [0], [1], [0, 0, 1, 1], [], []>} : vector<8x128xbf16>, vector<128x1024xbf16>, vector<8x1024xf32> -> vector<8x1024xf32>
    %c0_57 = arith.constant 0 : index
    %c0_58 = arith.constant 0 : index
    %c0_59 = arith.constant 0 : index
    %138 = vector.load %arg14[%c0_57, %c0_58, %c0_59] : memref<1x1x1024xf32, #tpu.memory_space<vmem>>, vector<1x1x1024xf32>
    %139 = vector.shape_cast %138 : vector<1x1x1024xf32> to vector<1x1024xf32>
    %140 = vector.broadcast %139 : vector<1x1024xf32> to vector<8x1024xf32>
    %141 = arith.addf %137, %140 : vector<8x1024xf32>
    %142 = vector.extract_strided_slice %141 {offsets = [0, 0], sizes = [8, 512], strides = [1, 1]} : vector<8x1024xf32> to vector<8x512xf32>
    %143 = vector.extract_strided_slice %141 {offsets = [0, 512], sizes = [8, 512], strides = [1, 1]} : vector<8x1024xf32> to vector<8x512xf32>
    %144 = vector.extract_strided_slice %134 {offsets = [0, 0], sizes = [8, 128], strides = [1, 1]} : vector<8x512xf32> to vector<8x128xf32>
    %145 = arith.truncf %144 : vector<8x128xf32> to vector<8x128xbf16>
    %146 = vector.extract_strided_slice %142 {offsets = [0, 0], sizes = [8, 128], strides = [1, 1]} : vector<8x512xf32> to vector<8x128xf32>
    %147 = arith.truncf %146 : vector<8x128xf32> to vector<8x128xbf16>
    %cst_60 = arith.constant dense<0.000000e+00> : vector<8x8xf32>
    %148 = tpu.matmul %145, %147, %cst_60 {dimension_numbers = #tpu.dot_dimension_numbers<[1], [1], [0], [0], [0, 0, 1, 0], [], []>} : vector<8x128xbf16>, vector<8x128xbf16>, vector<8x8xf32> -> vector<8x8xf32>
    %cst_61 = arith.constant dense<0xFF800000> : vector<8xf32>
    %149 = vector.multi_reduction <maximumf>, %148, %cst_61 [1] : vector<8x8xf32> to vector<8xf32>
    %150 = vector.shape_cast %149 : vector<8xf32> to vector<8x1xf32>
    %151 = vector.broadcast %150 : vector<8x1xf32> to vector<8x8xf32>
    %152 = arith.subf %148, %151 : vector<8x8xf32>
    %153 = math.exp %152 : vector<8x8xf32>
    %cst_62 = arith.constant dense<0.000000e+00> : vector<8xf32>
    %154 = vector.multi_reduction <add>, %153, %cst_62 [1] : vector<8x8xf32> to vector<8xf32>
    %155 = vector.shape_cast %154 : vector<8xf32> to vector<8x1xf32>
    %156 = vector.broadcast %155 : vector<8x1xf32> to vector<8x8xf32>
    %157 = arith.divf %153, %156 : vector<8x8xf32>
    %158 = arith.truncf %157 : vector<8x8xf32> to vector<8x8xbf16>
    %159 = vector.extract_strided_slice %143 {offsets = [0, 0], sizes = [8, 128], strides = [1, 1]} : vector<8x512xf32> to vector<8x128xf32>
    %160 = arith.truncf %159 : vector<8x128xf32> to vector<8x128xbf16>
    %cst_63 = arith.constant dense<0.000000e+00> : vector<8x128xf32>
    %161 = tpu.matmul %158, %160, %cst_63 {dimension_numbers = #tpu.dot_dimension_numbers<[1], [0], [0], [1], [0, 0, 1, 1], [], []>} : vector<8x8xbf16>, vector<8x128xbf16>, vector<8x128xf32> -> vector<8x128xf32>
    %162 = vector.extract_strided_slice %134 {offsets = [0, 128], sizes = [8, 128], strides = [1, 1]} : vector<8x512xf32> to vector<8x128xf32>
    %163 = arith.truncf %162 : vector<8x128xf32> to vector<8x128xbf16>
    %164 = vector.extract_strided_slice %142 {offsets = [0, 128], sizes = [8, 128], strides = [1, 1]} : vector<8x512xf32> to vector<8x128xf32>
    %165 = arith.truncf %164 : vector<8x128xf32> to vector<8x128xbf16>
    %cst_64 = arith.constant dense<0.000000e+00> : vector<8x8xf32>
    %166 = tpu.matmul %163, %165, %cst_64 {dimension_numbers = #tpu.dot_dimension_numbers<[1], [1], [0], [0], [0, 0, 1, 0], [], []>} : vector<8x128xbf16>, vector<8x128xbf16>, vector<8x8xf32> -> vector<8x8xf32>
    %cst_65 = arith.constant dense<0xFF800000> : vector<8xf32>
    %167 = vector.multi_reduction <maximumf>, %166, %cst_65 [1] : vector<8x8xf32> to vector<8xf32>
    %168 = vector.shape_cast %167 : vector<8xf32> to vector<8x1xf32>
    %169 = vector.broadcast %168 : vector<8x1xf32> to vector<8x8xf32>
    %170 = arith.subf %166, %169 : vector<8x8xf32>
    %171 = math.exp %170 : vector<8x8xf32>
    %cst_66 = arith.constant dense<0.000000e+00> : vector<8xf32>
    %172 = vector.multi_reduction <add>, %171, %cst_66 [1] : vector<8x8xf32> to vector<8xf32>
    %173 = vector.shape_cast %172 : vector<8xf32> to vector<8x1xf32>
    %174 = vector.broadcast %173 : vector<8x1xf32> to vector<8x8xf32>
    %175 = arith.divf %171, %174 : vector<8x8xf32>
    %176 = arith.truncf %175 : vector<8x8xf32> to vector<8x8xbf16>
    %177 = vector.extract_strided_slice %143 {offsets = [0, 128], sizes = [8, 128], strides = [1, 1]} : vector<8x512xf32> to vector<8x128xf32>
    %178 = arith.truncf %177 : vector<8x128xf32> to vector<8x128xbf16>
    %cst_67 = arith.constant dense<0.000000e+00> : vector<8x128xf32>
    %179 = tpu.matmul %176, %178, %cst_67 {dimension_numbers = #tpu.dot_dimension_numbers<[1], [0], [0], [1], [0, 0, 1, 1], [], []>} : vector<8x8xbf16>, vector<8x128xbf16>, vector<8x128xf32> -> vector<8x128xf32>
    %180 = vector.extract_strided_slice %134 {offsets = [0, 256], sizes = [8, 128], strides = [1, 1]} : vector<8x512xf32> to vector<8x128xf32>
    %181 = arith.truncf %180 : vector<8x128xf32> to vector<8x128xbf16>
    %182 = vector.extract_strided_slice %142 {offsets = [0, 256], sizes = [8, 128], strides = [1, 1]} : vector<8x512xf32> to vector<8x128xf32>
    %183 = arith.truncf %182 : vector<8x128xf32> to vector<8x128xbf16>
    %cst_68 = arith.constant dense<0.000000e+00> : vector<8x8xf32>
    %184 = tpu.matmul %181, %183, %cst_68 {dimension_numbers = #tpu.dot_dimension_numbers<[1], [1], [0], [0], [0, 0, 1, 0], [], []>} : vector<8x128xbf16>, vector<8x128xbf16>, vector<8x8xf32> -> vector<8x8xf32>
    %cst_69 = arith.constant dense<0xFF800000> : vector<8xf32>
    %185 = vector.multi_reduction <maximumf>, %184, %cst_69 [1] : vector<8x8xf32> to vector<8xf32>
    %186 = vector.shape_cast %185 : vector<8xf32> to vector<8x1xf32>
    %187 = vector.broadcast %186 : vector<8x1xf32> to vector<8x8xf32>
    %188 = arith.subf %184, %187 : vector<8x8xf32>
    %189 = math.exp %188 : vector<8x8xf32>
    %cst_70 = arith.constant dense<0.000000e+00> : vector<8xf32>
    %190 = vector.multi_reduction <add>, %189, %cst_70 [1] : vector<8x8xf32> to vector<8xf32>
    %191 = vector.shape_cast %190 : vector<8xf32> to vector<8x1xf32>
    %192 = vector.broadcast %191 : vector<8x1xf32> to vector<8x8xf32>
    %193 = arith.divf %189, %192 : vector<8x8xf32>
    %194 = arith.truncf %193 : vector<8x8xf32> to vector<8x8xbf16>
    %195 = vector.extract_strided_slice %143 {offsets = [0, 256], sizes = [8, 128], strides = [1, 1]} : vector<8x512xf32> to vector<8x128xf32>
    %196 = arith.truncf %195 : vector<8x128xf32> to vector<8x128xbf16>
    %cst_71 = arith.constant dense<0.000000e+00> : vector<8x128xf32>
    %197 = tpu.matmul %194, %196, %cst_71 {dimension_numbers = #tpu.dot_dimension_numbers<[1], [0], [0], [1], [0, 0, 1, 1], [], []>} : vector<8x8xbf16>, vector<8x128xbf16>, vector<8x128xf32> -> vector<8x128xf32>
    %198 = vector.extract_strided_slice %134 {offsets = [0, 384], sizes = [8, 128], strides = [1, 1]} : vector<8x512xf32> to vector<8x128xf32>
    %199 = arith.truncf %198 : vector<8x128xf32> to vector<8x128xbf16>
    %200 = vector.extract_strided_slice %142 {offsets = [0, 384], sizes = [8, 128], strides = [1, 1]} : vector<8x512xf32> to vector<8x128xf32>
    %201 = arith.truncf %200 : vector<8x128xf32> to vector<8x128xbf16>
    %cst_72 = arith.constant dense<0.000000e+00> : vector<8x8xf32>
    %202 = tpu.matmul %199, %201, %cst_72 {dimension_numbers = #tpu.dot_dimension_numbers<[1], [1], [0], [0], [0, 0, 1, 0], [], []>} : vector<8x128xbf16>, vector<8x128xbf16>, vector<8x8xf32> -> vector<8x8xf32>
    %cst_73 = arith.constant dense<0xFF800000> : vector<8xf32>
    %203 = vector.multi_reduction <maximumf>, %202, %cst_73 [1] : vector<8x8xf32> to vector<8xf32>
    %204 = vector.shape_cast %203 : vector<8xf32> to vector<8x1xf32>
    %205 = vector.broadcast %204 : vector<8x1xf32> to vector<8x8xf32>
    %206 = arith.subf %202, %205 : vector<8x8xf32>
    %207 = math.exp %206 : vector<8x8xf32>
    %cst_74 = arith.constant dense<0.000000e+00> : vector<8xf32>
    %208 = vector.multi_reduction <add>, %207, %cst_74 [1] : vector<8x8xf32> to vector<8xf32>
    %209 = vector.shape_cast %208 : vector<8xf32> to vector<8x1xf32>
    %210 = vector.broadcast %209 : vector<8x1xf32> to vector<8x8xf32>
    %211 = arith.divf %207, %210 : vector<8x8xf32>
    %212 = arith.truncf %211 : vector<8x8xf32> to vector<8x8xbf16>
    %213 = vector.extract_strided_slice %143 {offsets = [0, 384], sizes = [8, 128], strides = [1, 1]} : vector<8x512xf32> to vector<8x128xf32>
    %214 = arith.truncf %213 : vector<8x128xf32> to vector<8x128xbf16>
    %cst_75 = arith.constant dense<0.000000e+00> : vector<8x128xf32>
    %215 = tpu.matmul %212, %214, %cst_75 {dimension_numbers = #tpu.dot_dimension_numbers<[1], [0], [0], [1], [0, 0, 1, 1], [], []>} : vector<8x8xbf16>, vector<8x128xbf16>, vector<8x128xf32> -> vector<8x128xf32>
    %216 = tpu.concatenate %161, %179, %197, %215 in 1 : vector<8x128xf32>, vector<8x128xf32>, vector<8x128xf32>, vector<8x128xf32> -> vector<8x512xf32>
    %c0_76 = arith.constant 0 : index
    %c0_77 = arith.constant 0 : index
    %c0_78 = arith.constant 0 : index
    %217 = vector.load %arg15[%c0_76, %c0_77, %c0_78] : memref<1x512x128xbf16, #tpu.memory_space<vmem>>, vector<1x512x128xbf16>
    %218 = vector.shape_cast %217 : vector<1x512x128xbf16> to vector<512x128xbf16>
    %219 = arith.truncf %216 : vector<8x512xf32> to vector<8x512xbf16>
    %cst_79 = arith.constant dense<0.000000e+00> : vector<8x128xf32>
    %220 = tpu.matmul %219, %218, %cst_79 {dimension_numbers = #tpu.dot_dimension_numbers<[1], [0], [0], [1], [0, 0, 1, 1], [], []>} : vector<8x512xbf16>, vector<512x128xbf16>, vector<8x128xf32> -> vector<8x128xf32>
    %c0_80 = arith.constant 0 : index
    %c0_81 = arith.constant 0 : index
    %c0_82 = arith.constant 0 : index
    %221 = vector.load %arg16[%c0_80, %c0_81, %c0_82] : memref<1x1x128xf32, #tpu.memory_space<vmem>>, vector<1x1x128xf32>
    %222 = vector.shape_cast %221 : vector<1x1x128xf32> to vector<1x128xf32>
    %223 = vector.broadcast %222 : vector<1x128xf32> to vector<8x128xf32>
    %224 = arith.addf %220, %223 : vector<8x128xf32>
    %225 = arith.addf %126, %224 : vector<8x128xf32>
    %c0_83 = arith.constant 0 : index
    %c0_84 = arith.constant 0 : index
    %c0_85 = arith.constant 0 : index
    %226 = vector.load %arg17[%c0_83, %c0_84, %c0_85] : memref<1x1x128xf32, #tpu.memory_space<vmem>>, vector<1x1x128xf32>
    %227 = vector.shape_cast %226 : vector<1x1x128xf32> to vector<1x128xf32>
    %c0_86 = arith.constant 0 : index
    %c0_87 = arith.constant 0 : index
    %c0_88 = arith.constant 0 : index
    %228 = vector.load %arg18[%c0_86, %c0_87, %c0_88] : memref<1x1x128xf32, #tpu.memory_space<vmem>>, vector<1x1x128xf32>
    %229 = vector.shape_cast %228 : vector<1x1x128xf32> to vector<1x128xf32>
    %cst_89 = arith.constant dense<0.000000e+00> : vector<8xf32>
    %230 = vector.multi_reduction <add>, %225, %cst_89 [1] : vector<8x128xf32> to vector<8xf32>
    %231 = vector.shape_cast %230 : vector<8xf32> to vector<8x1xf32>
    %cst_90 = arith.constant 3.125000e-02 : f32
    %232 = vector.broadcast %cst_90 : f32 to vector<8x1xf32>
    %233 = arith.mulf %231, %232 : vector<8x1xf32>
    %234 = vector.broadcast %233 : vector<8x1xf32> to vector<8x128xf32>
    %235 = arith.subf %225, %234 : vector<8x128xf32>
    %236 = arith.mulf %235, %235 : vector<8x128xf32>
    %cst_91 = arith.constant dense<0.000000e+00> : vector<8xf32>
    %237 = vector.multi_reduction <add>, %236, %cst_91 [1] : vector<8x128xf32> to vector<8xf32>
    %238 = vector.shape_cast %237 : vector<8xf32> to vector<8x1xf32>
    %cst_92 = arith.constant 9.600000e+01 : f32
    %239 = vector.broadcast %cst_92 : f32 to vector<8x1xf32>
    %240 = arith.mulf %239, %233 : vector<8x1xf32>
    %241 = arith.mulf %240, %233 : vector<8x1xf32>
    %242 = arith.subf %238, %241 : vector<8x1xf32>
    %cst_93 = arith.constant 3.125000e-02 : f32
    %243 = vector.broadcast %cst_93 : f32 to vector<8x1xf32>
    %244 = arith.mulf %242, %243 : vector<8x1xf32>
    %cst_94 = arith.constant 9.99999974E-6 : f32
    %245 = vector.broadcast %cst_94 : f32 to vector<8x1xf32>
    %246 = arith.addf %244, %245 : vector<8x1xf32>
    %247 = math.rsqrt %246 : vector<8x1xf32>
    %248 = vector.broadcast %247 : vector<8x1xf32> to vector<8x128xf32>
    %249 = arith.mulf %235, %248 : vector<8x128xf32>
    %250 = vector.broadcast %227 : vector<1x128xf32> to vector<8x128xf32>
    %251 = arith.mulf %249, %250 : vector<8x128xf32>
    %252 = vector.broadcast %229 : vector<1x128xf32> to vector<8x128xf32>
    %253 = arith.addf %251, %252 : vector<8x128xf32>
    %c0_95 = arith.constant 0 : index
    %c0_96 = arith.constant 0 : index
    %c0_97 = arith.constant 0 : index
    %254 = vector.load %arg19[%c0_95, %c0_96, %c0_97] : memref<1x128x128xbf16, #tpu.memory_space<vmem>>, vector<1x128x128xbf16>
    %255 = vector.shape_cast %254 : vector<1x128x128xbf16> to vector<128x128xbf16>
    %256 = arith.truncf %253 : vector<8x128xf32> to vector<8x128xbf16>
    %cst_98 = arith.constant dense<0.000000e+00> : vector<8x128xf32>
    %257 = tpu.matmul %256, %255, %cst_98 {dimension_numbers = #tpu.dot_dimension_numbers<[1], [0], [0], [1], [0, 0, 1, 1], [], []>} : vector<8x128xbf16>, vector<128x128xbf16>, vector<8x128xf32> -> vector<8x128xf32>
    %c0_99 = arith.constant 0 : index
    %c0_100 = arith.constant 0 : index
    %c0_101 = arith.constant 0 : index
    %258 = vector.load %arg20[%c0_99, %c0_100, %c0_101] : memref<1x1x128xf32, #tpu.memory_space<vmem>>, vector<1x1x128xf32>
    %259 = vector.shape_cast %258 : vector<1x1x128xf32> to vector<1x128xf32>
    %260 = vector.broadcast %259 : vector<1x128xf32> to vector<8x128xf32>
    %261 = arith.addf %257, %260 : vector<8x128xf32>
    %cst_102 = arith.constant 0.000000e+00 : f32
    %262 = vector.broadcast %cst_102 : f32 to vector<8x128xf32>
    %263 = arith.maximumf %261, %262 : vector<8x128xf32>
    %c0_103 = arith.constant 0 : index
    %c0_104 = arith.constant 0 : index
    %c0_105 = arith.constant 0 : index
    %264 = vector.load %arg21[%c0_103, %c0_104, %c0_105] : memref<1x128x128xbf16, #tpu.memory_space<vmem>>, vector<1x128x128xbf16>
    %265 = vector.shape_cast %264 : vector<1x128x128xbf16> to vector<128x128xbf16>
    %266 = arith.truncf %263 : vector<8x128xf32> to vector<8x128xbf16>
    %cst_106 = arith.constant dense<0.000000e+00> : vector<8x128xf32>
    %267 = tpu.matmul %266, %265, %cst_106 {dimension_numbers = #tpu.dot_dimension_numbers<[1], [0], [0], [1], [0, 0, 1, 1], [], []>} : vector<8x128xbf16>, vector<128x128xbf16>, vector<8x128xf32> -> vector<8x128xf32>
    %c0_107 = arith.constant 0 : index
    %c0_108 = arith.constant 0 : index
    %c0_109 = arith.constant 0 : index
    %268 = vector.load %arg22[%c0_107, %c0_108, %c0_109] : memref<1x1x128xf32, #tpu.memory_space<vmem>>, vector<1x1x128xf32>
    %269 = vector.shape_cast %268 : vector<1x1x128xf32> to vector<1x128xf32>
    %270 = vector.broadcast %269 : vector<1x128xf32> to vector<8x128xf32>
    %271 = arith.addf %267, %270 : vector<8x128xf32>
    %272 = arith.addf %253, %271 : vector<8x128xf32>
    %c0_110 = arith.constant 0 : index
    %c0_111 = arith.constant 0 : index
    %c0_112 = arith.constant 0 : index
    %273 = vector.load %arg23[%c0_110, %c0_111, %c0_112] : memref<1x1x128xf32, #tpu.memory_space<vmem>>, vector<1x1x128xf32>
    %274 = vector.shape_cast %273 : vector<1x1x128xf32> to vector<1x128xf32>
    %c0_113 = arith.constant 0 : index
    %c0_114 = arith.constant 0 : index
    %c0_115 = arith.constant 0 : index
    %275 = vector.load %arg24[%c0_113, %c0_114, %c0_115] : memref<1x1x128xf32, #tpu.memory_space<vmem>>, vector<1x1x128xf32>
    %276 = vector.shape_cast %275 : vector<1x1x128xf32> to vector<1x128xf32>
    %cst_116 = arith.constant dense<0.000000e+00> : vector<8xf32>
    %277 = vector.multi_reduction <add>, %272, %cst_116 [1] : vector<8x128xf32> to vector<8xf32>
    %278 = vector.shape_cast %277 : vector<8xf32> to vector<8x1xf32>
    %cst_117 = arith.constant 3.125000e-02 : f32
    %279 = vector.broadcast %cst_117 : f32 to vector<8x1xf32>
    %280 = arith.mulf %278, %279 : vector<8x1xf32>
    %281 = vector.broadcast %280 : vector<8x1xf32> to vector<8x128xf32>
    %282 = arith.subf %272, %281 : vector<8x128xf32>
    %283 = arith.mulf %282, %282 : vector<8x128xf32>
    %cst_118 = arith.constant dense<0.000000e+00> : vector<8xf32>
    %284 = vector.multi_reduction <add>, %283, %cst_118 [1] : vector<8x128xf32> to vector<8xf32>
    %285 = vector.shape_cast %284 : vector<8xf32> to vector<8x1xf32>
    %cst_119 = arith.constant 9.600000e+01 : f32
    %286 = vector.broadcast %cst_119 : f32 to vector<8x1xf32>
    %287 = arith.mulf %286, %280 : vector<8x1xf32>
    %288 = arith.mulf %287, %280 : vector<8x1xf32>
    %289 = arith.subf %285, %288 : vector<8x1xf32>
    %cst_120 = arith.constant 3.125000e-02 : f32
    %290 = vector.broadcast %cst_120 : f32 to vector<8x1xf32>
    %291 = arith.mulf %289, %290 : vector<8x1xf32>
    %cst_121 = arith.constant 9.99999974E-6 : f32
    %292 = vector.broadcast %cst_121 : f32 to vector<8x1xf32>
    %293 = arith.addf %291, %292 : vector<8x1xf32>
    %294 = math.rsqrt %293 : vector<8x1xf32>
    %295 = vector.broadcast %294 : vector<8x1xf32> to vector<8x128xf32>
    %296 = arith.mulf %282, %295 : vector<8x128xf32>
    %297 = vector.broadcast %274 : vector<1x128xf32> to vector<8x128xf32>
    %298 = arith.mulf %296, %297 : vector<8x128xf32>
    %299 = vector.broadcast %276 : vector<1x128xf32> to vector<8x128xf32>
    %300 = arith.addf %298, %299 : vector<8x128xf32>
    %c0_122 = arith.constant 0 : index
    %c0_123 = arith.constant 0 : index
    %301 = vector.load %arg28[%c0_122, %c0_123] : memref<8x128xf32, #tpu.memory_space<vmem>>, vector<8x128xf32>
    tpu.vector_store %arg28[%c0_122, %c0_123], %300 {strides = array<i32>} : memref<8x128xf32, #tpu.memory_space<vmem>>, vector<8x128xf32>,
    %c1_i32 = arith.constant 1 : i32
    %302 = arith.cmpi eq, %arg1, %c1_i32 : i32
    %303 = arith.extui %302 : i1 to i32
    %c0_i32_124 = arith.constant 0 : i32
    %304 = arith.cmpi ne, %303, %c0_i32_124 : i32
    scf.if %304 {
      %c0_125 = arith.constant 0 : index
      %c0_126 = arith.constant 0 : index
      %305 = vector.load %arg25[%c0_125, %c0_126] : memref<1x128xf32, #tpu.memory_space<vmem>>, vector<1x128xf32>
      %c0_127 = arith.constant 0 : index
      %c0_128 = arith.constant 0 : index
      %306 = vector.load %arg26[%c0_127, %c0_128] : memref<1x128xf32, #tpu.memory_space<vmem>>, vector<1x128xf32>
      %cst_129 = arith.constant dense<0.000000e+00> : vector<8xf32>
      %307 = vector.multi_reduction <add>, %300, %cst_129 [1] : vector<8x128xf32> to vector<8xf32>
      %308 = vector.shape_cast %307 : vector<8xf32> to vector<8x1xf32>
      %cst_130 = arith.constant 3.125000e-02 : f32
      %309 = vector.broadcast %cst_130 : f32 to vector<8x1xf32>
      %310 = arith.mulf %308, %309 : vector<8x1xf32>
      %311 = vector.broadcast %310 : vector<8x1xf32> to vector<8x128xf32>
      %312 = arith.subf %300, %311 : vector<8x128xf32>
      %313 = arith.mulf %312, %312 : vector<8x128xf32>
      %cst_131 = arith.constant dense<0.000000e+00> : vector<8xf32>
      %314 = vector.multi_reduction <add>, %313, %cst_131 [1] : vector<8x128xf32> to vector<8xf32>
      %315 = vector.shape_cast %314 : vector<8xf32> to vector<8x1xf32>
      %cst_132 = arith.constant 9.600000e+01 : f32
      %316 = vector.broadcast %cst_132 : f32 to vector<8x1xf32>
      %317 = arith.mulf %316, %310 : vector<8x1xf32>
      %318 = arith.mulf %317, %310 : vector<8x1xf32>
      %319 = arith.subf %315, %318 : vector<8x1xf32>
      %cst_133 = arith.constant 3.125000e-02 : f32
      %320 = vector.broadcast %cst_133 : f32 to vector<8x1xf32>
      %321 = arith.mulf %319, %320 : vector<8x1xf32>
      %cst_134 = arith.constant 9.99999974E-6 : f32
      %322 = vector.broadcast %cst_134 : f32 to vector<8x1xf32>
      %323 = arith.addf %321, %322 : vector<8x1xf32>
      %324 = math.rsqrt %323 : vector<8x1xf32>
      %325 = vector.broadcast %324 : vector<8x1xf32> to vector<8x128xf32>
      %326 = arith.mulf %312, %325 : vector<8x128xf32>
      %327 = vector.broadcast %305 : vector<1x128xf32> to vector<8x128xf32>
      %328 = arith.mulf %326, %327 : vector<8x128xf32>
      %329 = vector.broadcast %306 : vector<1x128xf32> to vector<8x128xf32>
      %330 = arith.addf %328, %329 : vector<8x128xf32>
      %331 = arith.truncf %330 : vector<8x128xf32> to vector<8x128xbf16>
      %c0_135 = arith.constant 0 : index
      %c0_136 = arith.constant 0 : index
      %c0_137 = arith.constant 0 : index
      %332 = vector.load %arg27[%c0_135, %c0_136, %c0_137] : memref<1x8x128xbf16, #tpu.memory_space<vmem>>, vector<1x8x128xbf16>
      %333 = vector.shape_cast %332 : vector<1x8x128xbf16> to vector<8x128xbf16>
      %334 = vector.shape_cast %331 : vector<8x128xbf16> to vector<1x8x128xbf16>
      tpu.vector_store %arg27[%c0_135, %c0_136, %c0_137], %334 {strides = array<i32>} : memref<1x8x128xbf16, #tpu.memory_space<vmem>>, vector<1x8x128xbf16>,
    } else {
    }
    return
  }
  func.func @transform_0(%arg0: i32, %arg1: i32) -> (i32, i32, i32) {
    %c0_i32 = arith.constant 0 : i32
    %c0_i32_0 = arith.constant 0 : i32
    %c0_i32_1 = arith.constant 0 : i32
    return %arg0, %c0_i32, %c0_i32_0 : i32, i32, i32
  }
  func.func @transform_1(%arg0: i32, %arg1: i32) -> (i32, i32) {
    %c0_i32 = arith.constant 0 : i32
    %c0_i32_0 = arith.constant 0 : i32
    %c0_i32_1 = arith.constant 0 : i32
    return %c0_i32, %c0_i32_0 : i32, i32
  }
  func.func @transform_2(%arg0: i32, %arg1: i32) -> (i32, i32, i32) {
    %c0_i32 = arith.constant 0 : i32
    %c0_i32_0 = arith.constant 0 : i32
    %c0_i32_1 = arith.constant 0 : i32
    return %arg0, %c0_i32, %c0_i32_0 : i32, i32, i32
  }
  func.func @transform_3(%arg0: i32, %arg1: i32) -> (i32, i32, i32) {
    %c0_i32 = arith.constant 0 : i32
    %c0_i32_0 = arith.constant 0 : i32
    %c0_i32_1 = arith.constant 0 : i32
    return %arg1, %c0_i32, %c0_i32_0 : i32, i32, i32
  }
  func.func @transform_4(%arg0: i32, %arg1: i32) -> (i32, i32, i32) {
    %c0_i32 = arith.constant 0 : i32
    %c0_i32_0 = arith.constant 0 : i32
    %c0_i32_1 = arith.constant 0 : i32
    return %arg1, %c0_i32, %c0_i32_0 : i32, i32, i32
  }
  func.func @transform_5(%arg0: i32, %arg1: i32) -> (i32, i32, i32) {
    %c0_i32 = arith.constant 0 : i32
    %c0_i32_0 = arith.constant 0 : i32
    %c0_i32_1 = arith.constant 0 : i32
    return %arg1, %c0_i32, %c0_i32_0 : i32, i32, i32
  }
  func.func @transform_6(%arg0: i32, %arg1: i32) -> (i32, i32, i32) {
    %c0_i32 = arith.constant 0 : i32
    %c0_i32_0 = arith.constant 0 : i32
    %c0_i32_1 = arith.constant 0 : i32
    return %arg1, %c0_i32, %c0_i32_0 : i32, i32, i32
  }
  func.func @transform_7(%arg0: i32, %arg1: i32) -> (i32, i32, i32) {
    %c0_i32 = arith.constant 0 : i32
    %c0_i32_0 = arith.constant 0 : i32
    %c0_i32_1 = arith.constant 0 : i32
    return %arg1, %c0_i32, %c0_i32_0 : i32, i32, i32
  }
  func.func @transform_8(%arg0: i32, %arg1: i32) -> (i32, i32, i32) {
    %c0_i32 = arith.constant 0 : i32
    %c0_i32_0 = arith.constant 0 : i32
    %c0_i32_1 = arith.constant 0 : i32
    return %arg1, %c0_i32, %c0_i32_0 : i32, i32, i32
  }
  func.func @transform_9(%arg0: i32, %arg1: i32) -> (i32, i32, i32) {
    %c0_i32 = arith.constant 0 : i32
    %c0_i32_0 = arith.constant 0 : i32
    %c0_i32_1 = arith.constant 0 : i32
    return %arg1, %c0_i32, %c0_i32_0 : i32, i32, i32
  }
  func.func @transform_10(%arg0: i32, %arg1: i32) -> (i32, i32, i32) {
    %c0_i32 = arith.constant 0 : i32
    %c0_i32_0 = arith.constant 0 : i32
    %c0_i32_1 = arith.constant 0 : i32
    return %arg1, %c0_i32, %c0_i32_0 : i32, i32, i32
  }
  func.func @transform_11(%arg0: i32, %arg1: i32) -> (i32, i32, i32) {
    %c0_i32 = arith.constant 0 : i32
    %c0_i32_0 = arith.constant 0 : i32
    %c0_i32_1 = arith.constant 0 : i32
    return %arg1, %c0_i32, %c0_i32_0 : i32, i32, i32
  }
  func.func @transform_12(%arg0: i32, %arg1: i32) -> (i32, i32, i32) {
    %c0_i32 = arith.constant 0 : i32
    %c0_i32_0 = arith.constant 0 : i32
    %c0_i32_1 = arith.constant 0 : i32
    return %arg1, %c0_i32, %c0_i32_0 : i32, i32, i32
  }
  func.func @transform_13(%arg0: i32, %arg1: i32) -> (i32, i32, i32) {
    %c0_i32 = arith.constant 0 : i32
    %c0_i32_0 = arith.constant 0 : i32
    %c0_i32_1 = arith.constant 0 : i32
    return %arg1, %c0_i32, %c0_i32_0 : i32, i32, i32
  }
  func.func @transform_14(%arg0: i32, %arg1: i32) -> (i32, i32, i32) {
    %c0_i32 = arith.constant 0 : i32
    %c0_i32_0 = arith.constant 0 : i32
    %c0_i32_1 = arith.constant 0 : i32
    return %arg1, %c0_i32, %c0_i32_0 : i32, i32, i32
  }
  func.func @transform_15(%arg0: i32, %arg1: i32) -> (i32, i32, i32) {
    %c0_i32 = arith.constant 0 : i32
    %c0_i32_0 = arith.constant 0 : i32
    %c0_i32_1 = arith.constant 0 : i32
    return %arg1, %c0_i32, %c0_i32_0 : i32, i32, i32
  }
  func.func @transform_16(%arg0: i32, %arg1: i32) -> (i32, i32, i32) {
    %c0_i32 = arith.constant 0 : i32
    %c0_i32_0 = arith.constant 0 : i32
    %c0_i32_1 = arith.constant 0 : i32
    return %arg1, %c0_i32, %c0_i32_0 : i32, i32, i32
  }
  func.func @transform_17(%arg0: i32, %arg1: i32) -> (i32, i32, i32) {
    %c0_i32 = arith.constant 0 : i32
    %c0_i32_0 = arith.constant 0 : i32
    %c0_i32_1 = arith.constant 0 : i32
    return %arg1, %c0_i32, %c0_i32_0 : i32, i32, i32
  }
  func.func @transform_18(%arg0: i32, %arg1: i32) -> (i32, i32, i32) {
    %c0_i32 = arith.constant 0 : i32
    %c0_i32_0 = arith.constant 0 : i32
    %c0_i32_1 = arith.constant 0 : i32
    return %arg1, %c0_i32, %c0_i32_0 : i32, i32, i32
  }
  func.func @transform_19(%arg0: i32, %arg1: i32) -> (i32, i32, i32) {
    %c0_i32 = arith.constant 0 : i32
    %c0_i32_0 = arith.constant 0 : i32
    %c0_i32_1 = arith.constant 0 : i32
    return %arg1, %c0_i32, %c0_i32_0 : i32, i32, i32
  }
  func.func @transform_20(%arg0: i32, %arg1: i32) -> (i32, i32, i32) {
    %c0_i32 = arith.constant 0 : i32
    %c0_i32_0 = arith.constant 0 : i32
    %c0_i32_1 = arith.constant 0 : i32
    return %arg1, %c0_i32, %c0_i32_0 : i32, i32, i32
  }
  func.func @transform_21(%arg0: i32, %arg1: i32) -> (i32, i32, i32) {
    %c0_i32 = arith.constant 0 : i32
    %c0_i32_0 = arith.constant 0 : i32
    %c0_i32_1 = arith.constant 0 : i32
    return %arg1, %c0_i32, %c0_i32_0 : i32, i32, i32
  }
  func.func @transform_22(%arg0: i32, %arg1: i32) -> (i32, i32, i32) {
    %c0_i32 = arith.constant 0 : i32
    %c0_i32_0 = arith.constant 0 : i32
    %c0_i32_1 = arith.constant 0 : i32
    return %arg1, %c0_i32, %c0_i32_0 : i32, i32, i32
  }
  func.func @transform_23(%arg0: i32, %arg1: i32) -> (i32, i32) {
    %c0_i32 = arith.constant 0 : i32
    %c0_i32_0 = arith.constant 0 : i32
    %c0_i32_1 = arith.constant 0 : i32
    return %c0_i32, %c0_i32_0 : i32, i32
  }
  func.func @transform_24(%arg0: i32, %arg1: i32) -> (i32, i32) {
    %c0_i32 = arith.constant 0 : i32
    %c0_i32_0 = arith.constant 0 : i32
    %c0_i32_1 = arith.constant 0 : i32
    return %c0_i32, %c0_i32_0 : i32, i32
  }
  func.func @transform_25(%arg0: i32, %arg1: i32) -> (i32, i32, i32) {
    %c0_i32 = arith.constant 0 : i32
    %c0_i32_0 = arith.constant 0 : i32
    %c0_i32_1 = arith.constant 0 : i32
    return %arg0, %c0_i32, %c0_i32_0 : i32, i32, i32
  }
}

</mosaic_0001>

<bundles_post_ra>
// kernel: transformer_forward.5
= control target key start
LH: loop header
LB: loop body
LE: loop exit
PB: predicated region body
PF: predicated region fallthrough
CT: control target
= control target key end

     0   :  { %s549_s12 = smov 0   ;;  %s551_s13 = smov 0   ;;  %s613_s0 = inlined_call_operand.vmem [shape: bf16[2,8,128], index: 0, kind: input, shape index: {}]   ;;  %s614_s1 = inlined_call_operand.vmem [shape: bf16[128,128], index: 1, kind: input, shape index: {}]   ;;  %s615_s2 = inlined_call_operand.vmem [shape: f32[1,128], index: 2, kind: input, shape index: {}]   ;;  %s616_s3 = inlined_call_operand.vmem [shape: f32[8,256], index: 3, kind: output, shape index: {}]  }
   0x1   :  { %s553_s14 = smov 0  }
   0x2 LB: > { %s25_s15 = sadd.s32 1, %s521_s13  ;;  %p426_p0 = scmp.ge.s32.totalorder %s525_s14, 1  ;;  %s525_s14 = sphi %s553_s14, %s13_s14   ;;  %s521_s13 = sphi %s551_s13, %s618_s13   ;;  %s517_s12 = sphi %s549_s12, %s617_s12  }
   0x3   : > { %p27_p1 = scmp.ge.s32.totalorder %s25_s15, 2  ;;  %p167_p2 = scmp.lt.s32.totalorder %s525_s14, 3 }
   0x5   : > { %s620_s15 = smov (%p27_p1, %s25_s15), 0  ;;  %p168_p3 = pnand %p426_p0, %p167_p2 }
   0x6   : > { %v495_v0 = vld [vmem:[%s614_s1] sm:$0xff] (!%p168_p3)   ;;  %v527_v1 = vmov (!%p168_p3), 0.0   ;;  %v496_v2 = vld [vmem:[%s614_s1 + $0x8] sm:$0xff] (!%p168_p3)   ;;  %vm528_vm0 = vmmov (!%p168_p3), 0   ;;  %v497_v3 = vld [vmem:[%s614_s1 + $0x10] sm:$0xff] (!%p168_p3)   ;;  %p197_p4 = scmp.lt.s32.totalorder (!%p168_p3), %s517_s12, 1 }
   0x7   : > { %171 = sbr.rel (%p168_p3) target bundleno = 254 (0xfe), region = 32  ;;  %449 = vmatprep.subr.bf16.mxu0 (!%p168_p3), %v527_v1  ;;  %465 = vmatprep.mubr.msk.bf16.mxu0 (!%p168_p3), %vm528_vm0, %v527_v1  ;;  %v498_v4 = vld [vmem:[%s614_s1 + $0x18] sm:$0xff] (!%p168_p3)   ;;  %v499_v5 = vld [vmem:[%s614_s1 + $0x20] sm:$0xff] (!%p168_p3)   ;;  %v500_v6 = vld [vmem:[%s614_s1 + $0x28] sm:$0xff] (!%p168_p3)  }
   0x8   : > { %450 = vmatpush3.bf16.msra.mxu0 (!%p168_p3), %v495_v0  ;;  %v501_v7 = vld [vmem:[%s614_s1 + $0x30] sm:$0xff] (!%p168_p3)   ;;  %v502_v8 = vld [vmem:[%s614_s1 + $0x38] sm:$0xff] (!%p168_p3)   ;;  %v429_v10 = vld [vmem:[%s615_s2] ss:$0 sm:$0xff] (!%p168_p3) }
   0x9   : > { %451 = vmatprep.subr.bf16.mxu0 (!%p168_p3), %v527_v1 }
   0xc   : > { %452 = vmatpush3.bf16.msra.mxu0 (!%p168_p3), %v496_v2 }
   0xd   : > { %453 = vmatprep.subr.bf16.mxu0 (!%p168_p3), %v527_v1 }
   0xe   : > { %s622_s12 = smov (!%p197_p4, %s517_s12), 1 }
   0xf   : > { %s427_s30 = sshll.u32 %s622_s12, 2  ;;  %s428_s9 = sshll.u32 %s622_s12, 3 }
  0x10   : > { %454 = vmatpush3.bf16.msra.mxu0 %v497_v3  ;;  %s200_s8 = scalar_lea.vmem %s613_s0, %s427_s30  ;;  %s212_s18 = scalar_lea.vmem %s616_s3, %s428_s9 }
  0x11   : > { %455 = vmatprep.subr.bf16.mxu0 %v527_v1  ;;  %v215_v9 = vld [vmem:[%s200_s8] sm:$0xf] }
  0x14   : > { %456 = vmatpush3.bf16.msra.mxu0 %v498_v4 }
  0x15   : > { %457 = vmatprep.subr.bf16.mxu0 %v527_v1 }
  0x18   : > { %458 = vmatpush3.bf16.msra.mxu0 %v499_v5 }
  0x19   : > { %459 = vmatprep.subr.bf16.mxu0 %v527_v1 }
  0x1c   : > { %460 = vmatpush3.bf16.msra.mxu0 %v500_v6 }
  0x1d   : > { %461 = vmatprep.subr.bf16.mxu0 %v527_v1 }
  0x20   : > { %462 = vmatpush3.bf16.msra.mxu0 %v501_v7 }
  0x21   : > { %463 = vmatprep.subr.bf16.mxu0 %v527_v1 }
  0x24   : > { %464 = vmatpush3.bf16.msra.mxu0 %v502_v8 }
  0x27   : > { %466 = vmatmul.mubr.bf16.vlgmr.msra.gmra.mrb[0].mxu0 %v215_v9 }
  0xfa   : > { %v321_v11 = vpop.f32.mrb[0].mxu0 }
  0xfb   : > { %v322_v12 = vadd.f32 %v429_v10, %v321_v11  ;;  %v467_v13 = vpop.f32.mrb[1].mxu0 }
  0xfc   : > { %v324_v14 = vpop.f32.mrb[2].mxu0 }
  0xfd   : > { %327 = vst [vmem:[%s212_s18] sm:$0xff] %v322_v12  ;;  %v468_v15 = vpop.f32.mrb[3].mxu0 }
  0xfe PF: > { %s13_s14 = sadd.s32 1, %s525_s14   ;;  %s617_s12 = smov %s521_s13 }
  0xff   : > { %p10_p5 = scmp.ge.s32.totalorder %s13_s14, 4   ;;  %s618_s13 = smov %s620_s15 }
 0x101   :  { %12 = sbr.rel (!%p10_p5) target bundleno = 2 (0x2), region = 68 }

// kernel: transformer_forward.3
= control target key start
LH: loop header
LB: loop body
LE: loop exit
PB: predicated region body
PF: predicated region fallthrough
CT: control target
= control target key end

     0   :  { %s4373_s0 = inlined_call_operand.vmem [shape: f32[2,8,128], index: 0, kind: input, shape index: {}]   ;;  %s4374_s1 = inlined_call_operand.vmem [shape: f32[8,128], index: 1, kind: input, shape index: {}]   ;;  %s4375_s2 = inlined_call_operand.hbm [shape: bf16[2,128,1536], index: 2, kind: input, shape index: {}]   ;;  %s4376_s3 = inlined_call_operand.vmem [shape: f32[2,1,1536], index: 3, kind: input, shape index: {}]   ;;  %s4377_s4 = inlined_call_operand.hbm [shape: bf16[2,512,128], index: 4, kind: input, shape index: {}]   ;;  %s4378_s5 = inlined_call_operand.vmem [shape: f32[2,1,128], index: 5, kind: input, shape index: {}]   ;;  %s4379_s6 = inlined_call_operand.vmem [shape: f32[2,1,128], index: 6, kind: input, shape index: {}]   ;;  %s4380_s7 = inlined_call_operand.vmem [shape: f32[2,1,128], index: 7, kind: input, shape index: {}]   ;;  %s4381_s8 = inlined_call_operand.vmem [shape: bf16[2,128,128], index: 8, kind: input, shape index: {}]   ;;  %s4382_s9 = inlined_call_operand.vmem [shape: f32[2,1,128], index: 9, kind: input, shape index: {}]   ;;  %s4383_s10 = inlined_call_operand.vmem [shape: bf16[2,128,128], index: 10, kind: input, shape index: {}]   ;;  %s4384_s11 = inlined_call_operand.vmem [shape: f32[2,1,128], index: 11, kind: input, shape index: {}]   ;;  %s4385_s12 = inlined_call_operand.vmem [shape: f32[2,1,128], index: 12, kind: input, shape index: {}]   ;;  %s4386_s13 = inlined_call_operand.vmem [shape: f32[2,1,128], index: 13, kind: input, shape index: {}]   ;;  %s4387_s14 = inlined_call_operand.vmem [shape: f32[1,128], index: 14, kind: input, shape index: {}]   ;;  %s4388_s15 = inlined_call_operand.vmem [shape: f32[1,128], index: 15, kind: input, shape index: {}]   ;;  %s4389_s16 = inlined_call_operand.vmem [shape: bf16[2,8,128], index: 16, kind: output, shape index: {}]  }
   0x1   :  { %4398 = sst [smem:[#allocation18_spill]] %s4373_s0 }
   0x2   :  { %4399 = sst [smem:[#allocation19_spill]] %s4374_s1 }
   0x3   :  { %4400 = sst [smem:[#allocation20_spill]] %s4375_s2 }
   0x4   :  { %4401 = sst [smem:[#allocation21_spill]] %s4376_s3 }
   0x5   :  { %4402 = sst [smem:[#allocation22_spill]] %s4377_s4 }
   0x6   :  { %4403 = sst [smem:[#allocation23_spill]] %s4381_s8 }
   0x7   :  { %4404 = sst [smem:[#allocation24_spill]] %s4382_s9 }
   0x8   :  { %4405 = sst [smem:[#allocation25_spill]] %s4386_s13 }
   0x9   :  { %4406 = sst [smem:[#allocation26_spill]] %s4387_s14 }
   0xa   :  { %4407 = sst [smem:[#allocation27_spill]] %s4388_s15 }
   0xb   :  { %4408 = sst [smem:[#allocation28_spill]] %s4389_s16 }
   0xc   :  { %21 = vsyncpa [#allocation4], 0 }
   0xd   :  { %23 = vsyncpa [#allocation4 + $0x1], 0 }
   0xe   :  { %24 = vsyncpa [#allocation6], 0 }
   0xf   :  { %26 = vsyncpa [#allocation6 + $0x1], 0  ;;  %s3823_s21 = smov 0   ;;  %s3825_s22 = smov 0  }
  0x10   :  { %s3827_s23 = smov 0   ;;  %s3829_s24 = smov 0  }
  0x11   :  { %s3831_s25 = smov 0   ;;  %s3833_s26 = smov 0  }
  0x12   :  { %s3835_s27 = smov 0   ;;  %s3837_s28 = smov 0  }
  0x13 LB: > { %4409 = sst [smem:[#allocation9_spill]] %s3703_s22  ;;  %s2949_s29 = sadd.s32 4294967295, %s3727_s28   ;;  %s3727_s28 = sphi %s3837_s28, %s32_s28   ;;  %s3723_s27 = sphi %s3835_s27, %s4447_s27   ;;  %s3719_s26 = sphi %s3833_s26, %s4446_s26   ;;  %s3715_s25 = sphi %s3831_s25, %s4445_s25   ;;  %s3711_s24 = sphi %s3829_s24, %s4444_s24   ;;  %s3707_s23 = sphi %s3827_s23, %s4443_s23   ;;  %s3703_s22 = sphi %s3825_s22, %s4442_s22   ;;  %s3699_s21 = sphi %s3823_s21, %s4441_s21  }
  0x14   : > { %4410 = sst [smem:[#allocation10_spill]] %s3707_s23  ;;  %s41_s30 = sadd.s32 1, %s3719_s26 }
  0x15   : > { %4411 = sst [smem:[#allocation11_spill]] %s3719_s26  ;;  %p42_p0 = scmp.ge.s32.totalorder %s41_s30, 2 }
  0x16   : > { %4412 = sst [smem:[#allocation12_spill]] %s3723_s27  ;;  %s44_s0 = sadd.s32 1, %s3723_s27 }
  0x17   : > { %4413 = sst [smem:[#allocation13_spill]] %s3727_s28  ;;  %s98_s17 = sadd.s32 1, %s3707_s23 }
  0x18   : > { %p105_p1 = scmp.ne.s32.totalorder %s3707_s23, %s3703_s22  ;;  %s4449_s30 = smov (%p42_p0, %s41_s30), 0 }
  0x19   : > { %4414 = sst [smem:[#allocation14_spill]] %s4449_s30  ;;  %s4451_s0 = smov (!%p42_p0, %s44_s0), %s3723_s27 }
  0x1a   : > { %s95_s18 = ssub.s32 %s3719_s26, %s4449_s30  ;;  %p106_p2 = scmp.eq.s32.totalorder %s3727_s28, 0 }
  0x1b   : > { %p46_p3 = scmp.ge.s32.totalorder %s4451_s0, 2  ;;  %p96_p4 = scmp.eq.s32.totalorder %s95_s18, 0 }
  0x1c   : > { %p107_p5 = por %p106_p2, %p105_p1  ;;  %p111_p6 = scmp.ne.s32.totalorder %s3703_s22, %s3699_s21 }
  0x1d   : > { %s4453_s0 = smov (%p46_p3, %s4451_s0), 0  ;;  %p112_p7 = scmp.eq.s32.totalorder %s2949_s29, 0 }
  0x1e   : > { %4415 = sst [smem:[#allocation15_spill]] %s4453_s0  ;;  %p3310_p8 = scmp.lt.s32.totalorder %s3727_s28, 4 }
  0x1f   : > { %s3877_s19 = scalar_select %p96_p4, %s3707_s23, %s98_s17  }
  0x20   : > { %s3881_s20 = sand.u32 1, %s3707_s23   ;;  %p3883_p9 = por %p112_p7, %p111_p6 }
  0x21   : > { %4416 = sst [smem:[#allocation16_spill]] %s3877_s19  ;;  %s3295_s30 = smul.u32 768, %s3881_s20 }
  0x22   : > { %s4417_s15 = scalar_select %p3883_p9, 1, 0 }
  0x23   : > { %p3888_p10 = pnand %p3310_p8, %p107_p5  ;;  %s3296_s21 = smul.u32 12288, %s3719_s26 }
  0x24   : > { %s4419_s2 = sld [smem:[#allocation20_spill]]  ;;  %s509_s0 = scalar_lea.vmem [#allocation3], %s3295_s30 }
  0x25   : > { %s516_s19 = sshll.u32 %s509_s0, 4  ;;  %s506_s23 = scalar_lea.sflag [#allocation4], %s3881_s20  ;;  %s3898_s19 = int_to_ptr.vmem [resolvable:$true] %s516_s19 }
  0x26   : > { %p3599_p12 = pneg %p3888_p10 }
  0x2a   : > { %s3896_s29 = scalar_lea.hbm %s4419_s2, %s3296_s21  ;;  %s3602_s18 = scalar_lea.hbm %s4419_s2, 24576 }
  0x2b   : > { %s3597_s14 = scalar_lea.hbm %s3896_s29, 12288  ;;  %p3603_p1 = scmp.lt.u32.totalorder %s3896_s29, %s4419_s2 }
  0x2c   : > { %p3598_p11 = scmp.ne.s32.totalorder %s3896_s29, %s3597_s14  ;;  %p3604_p2 = scmp.lt.u32.totalorder %s3602_s18, %s3597_s14 }
  0x2d   : > { %p3606_p4 = scmp.lt.u32.totalorder %s3597_s14, %s3896_s29 }
  0x2e   : > { %p3600_p13 = pnand %p3599_p12, %p3598_p11  ;;  %p3605_p3 = por %p3604_p2, %p3603_p1 }
  0x30   : > { %p3601_p0 = pneg %p3600_p13  ;;  %p3607_p5 = por %p3606_p4, %p3605_p3 }
  0x32   : > { %p3608_p6 = pnand %p3607_p5, %p3601_p0 }
  0x34   : > { %3611 = shalt.err (!%p3608_p6)
}
  0x35   : > { %s3612_s30 = scalar_lea.vmem %s3898_s19, 12288  ;;  %s3729_s0 = smov [#allocation3]  }
  0x36   : > { %p3613_p7 = scmp.ne.s32.totalorder %s3898_s19, %s3612_s30  ;;  %s3617_s17 = sshll.u32 %s3729_s0, 4  ;;  %s3618_s17 = int_to_ptr.vmem [resolvable:$false] %s3617_s17 }
  0x37   : > { %s3619_s1 = scalar_lea.vmem %s3618_s17, 24576  ;;  %p3620_p13 = scmp.lt.s32.totalorder %s3898_s19, %s3618_s17 }
  0x38   : > { %p3615_p8 = pnand %p3613_p7, %p3599_p12  ;;  %p3621_p1 = scmp.lt.s32.totalorder %s3619_s1, %s3612_s30 }
  0x3a   : > { %p3616_p11 = pneg %p3615_p8  ;;  %p3622_p2 = por %p3621_p1, %p3620_p13 }
  0x3c   : > { %p3623_p3 = pnand %p3622_p2, %p3616_p11 }
  0x3e   : > { %3626 = shalt.err (!%p3623_p3)
}
  0x3f   : > { %s3730_s14 = smov 768   ;;  %s3731_s16 = smov 48  }
  0x40   : > { %3306 = dma.hbm_to_vmem [thread:$0]  (!%p3888_p10), %s3896_s29, 12288, %s3898_s19, %s506_s23, %s3730_s14, %s3730_s14, %s3731_s16  }
  0x41   : > { %p2957_p0 = scmp.ge.s32.totalorder %s3727_s28, 1  ;;  %p610_p4 = scmp.lt.s32.totalorder %s3727_s28, 5 }
  0x42   : > { %s2954_s21 = sshll.u32 %s3881_s20, 8  ;;  %s3126_s30 = sshll.u32 %s3719_s26, 12 }
  0x43   : > { %p3931_p5 = pnand %p2957_p0, %p610_p4  ;;  %s537_s0 = scalar_lea.vmem [#allocation5], %s2954_s21 }
  0x44   : > { %s544_s17 = sshll.u32 %s537_s0, 4  ;;  %s4421_s4 = sld [smem:[#allocation22_spill]]  ;;  %s3941_s17 = int_to_ptr.vmem [resolvable:$true] %s544_s17 }
  0x45   : > { %s534_s23 = scalar_lea.sflag [#allocation6], %s3881_s20 }
  0x4a   : > { %s3939_s13 = scalar_lea.hbm %s4421_s4, %s3126_s30  ;;  %s3632_s16 = scalar_lea.hbm %s4421_s4, 8192 }
  0x4b   : > { %s3627_s19 = scalar_lea.hbm %s3939_s13, 4096  ;;  %p3633_p11 = scmp.lt.u32.totalorder %s3939_s13, %s4421_s4 }
  0x4c   : > { %p3628_p6 = scmp.ne.s32.totalorder %s3939_s13, %s3627_s19  ;;  %p3634_p13 = scmp.lt.u32.totalorder %s3632_s16, %s3627_s19 }
  0x4d   : > { %p3636_p2 = scmp.lt.u32.totalorder %s3627_s19, %s3939_s13 }
  0x4e   : > { %p3630_p7 = pnand %p3628_p6, %p3599_p12  ;;  %p3635_p1 = por %p3634_p13, %p3633_p11 }
  0x50   : > { %p3631_p8 = pneg %p3630_p7  ;;  %p3637_p3 = por %p3636_p2, %p3635_p1 }
  0x52   : > { %p3638_p0 = pnand %p3637_p3, %p3631_p8 }
  0x54   : > { %3641 = shalt.err (!%p3638_p0)
}
  0x55   : > { %s3642_s30 = scalar_lea.vmem %s3941_s17, 4096  ;;  %s3732_s0 = smov [#allocation5]  }
  0x56   : > { %p3643_p4 = scmp.ne.s32.totalorder %s3941_s17, %s3642_s30  ;;  %s3647_s1 = sshll.u32 %s3732_s0, 4  ;;  %s3648_s1 = int_to_ptr.vmem [resolvable:$false] %s3647_s1 }
  0x57   : > { %s3649_s29 = scalar_lea.vmem %s3648_s1, 8192  ;;  %p3650_p9 = scmp.lt.s32.totalorder %s3941_s17, %s3648_s1 }
  0x58   : > { %p3645_p6 = pnand %p3643_p4, %p3599_p12  ;;  %p3651_p11 = scmp.lt.s32.totalorder %s3649_s29, %s3642_s30 }
  0x5a   : > { %p3646_p7 = pneg %p3645_p6  ;;  %p3652_p13 = por %p3651_p11, %p3650_p9 }
  0x5c   : > { %p3653_p1 = pnand %p3652_p13, %p3646_p7 }
  0x5e   : > { %3656 = shalt.err (!%p3653_p1)
}
  0x5f   : > { %s3733_s19 = smov 64   ;;  %s3734_s14 = smov 4  }
  0x60   : > { %3309 = dma.hbm_to_vmem [thread:$0]  (!%p3888_p10), %s3939_s13, 4096, %s3941_s17, %s534_s23, %s3733_s19, %s3733_s19, %s3734_s14  }
  0x61   : > { %614 = sbr.rel (%p3931_p5) target bundleno = 2787 (0xae3), region = 84 }
  0x68   : > { %s616_s16 = sand.u32 1, %s3703_s22   ;;  %p4422_p9 = scmp.ne.s32.totalorder %s4417_s15, 0 }
  0x69   : > { %s3297_s2 = smul.u32 768, %s616_s16  ;;  %s617_s21 = scalar_lea.sflag [#allocation4], %s616_s16 }
  0x6b   : > { %s3972_s30 = scalar_lea.vmem [#allocation3], %s3297_s2 }
  0x6c   : > { %3690 = dma.done.wait (%p4422_p9), %s617_s21, 12288  }
  0x6d   : > { %3692 = vsyncadd (%p4422_p9), %s617_s21, 4294955008  ;;  %s2958_s0 = sshll.u32 %s616_s16, 8  ;;  %s626_s27 = scalar_lea.sflag [#allocation6], %s616_s16 }
  0x6e   : > { %s3978_s20 = scalar_lea.vmem [#allocation5], %s2958_s0 }
  0x6f   : > { %4423 = sst [smem:[#allocation17_spill]] %s3978_s20 }
  0x70   : > { %3694 = dma.done.wait (%p4422_p9), %s626_s27, 4096  }
  0x71   : > { %3696 = vsyncadd (%p4422_p9), %s626_s27, 4294963200  ;;  %p721_p10 = scmp.lt.s32.totalorder %s3715_s25, 1  ;;  %p725_p12 = scmp.lt.s32.totalorder %s3711_s24, 1 }
  0x72   : > { %s4424_s1 = sld [smem:[#allocation18_spill]]  ;;  %s4425_s3 = sld [smem:[#allocation21_spill]] }
  0x73   : > { %s4455_s25 = smov (!%p721_p10, %s3715_s25), 1  ;;  %s4427_s8 = sld [smem:[#allocation23_spill]] }
  0x74   : > { %s3988_s13 = scalar_select %p725_p12, %s3711_s24, 1 }
  0x75   : > { %s2959_s15 = sshll.u32 %s4455_s25, 3  ;;  %s2964_s18 = sshll.u32 %s4455_s25, 2 }
  0x76   : > { %s3298_s19 = smul.u32 12, %s3988_s13  ;;  %s3127_s17 = sshll.u32 %s3988_s13, 6 }
  0x77   : > { %s4024_s4 = scalar_lea.vmem %s4383_s10, %s3127_s17  ;;  %s753_s28 = scalar_lea.vmem %s4384_s11, %s3988_s13 }
  0x78   : > { %s724_s29 = scalar_lea.vmem %s4424_s1, %s2959_s15  ;;  %s4005_s22 = scalar_lea.vmem %s4425_s3, %s3298_s19 }
  0x79   : > { %s4019_s2 = scalar_lea.vmem %s4427_s8, %s3127_s17  ;;  %s756_s27 = scalar_lea.vmem %s4385_s12, %s3988_s13 }
  0x7a   : > { %s4428_s1 = sld [smem:[#allocation25_spill]]  ;;  %s4429_s8 = sld [smem:[#allocation28_spill]] }
  0x7b   : > { %p2965_p5 = scmp.ne.s32.totalorder %s3711_s24, 0 }
  0x7c   : > { %v769_v0 = vld [vmem:[%s724_s29] sm:$0xff] (!%p2965_p5)  ;;  %s4430_s0 = sld [smem:[#allocation19_spill]] (!%p2965_p5) }
  0x7d   : > { %768 = sbr.rel (%p2965_p5) target bundleno = 134 (0x86), region = 96  ;;  %v770_v2 = vmul.f32 (!%p2965_p5), 5.656854, %v769_v0 }
  0x80   : > { %s759_s3 = scalar_lea.vmem %s4428_s1, %s3988_s13  ;;  %s4041_s9 = scalar_lea.vmem %s4429_s8, %s2964_s18 }
  0x82   : > { %v771_v1 = vld [vmem:[%s4430_s0] sm:$0xff] (!%p2965_p5) }
  0x83   : > { %v772_v3 = vadd.f32 (!%p2965_p5), %v771_v1, %v770_v2 }
  0x85   : > { %773 = vst [vmem:[#allocation2] sm:$0xff] %v772_v3 }
  0x86 PF: > { %v3382_v4 = vld [vmem:[%s3972_s30 + $0x4] ss:$48 sps:$4 sm:$0xff]   ;;  %v3384_v5 = vld [vmem:[%s3972_s30] ss:$48 sps:$4 sm:$0xff]   ;;  %v3735_v6 = vmov 0   ;;  %vm3737_vm0 = vmmov 0   ;;  %s4432_s20 = scalar_lea.vmem %s4378_s5, %s3988_s13  ;;  %s4434_s19 = scalar_lea.vmem %s4380_s7, %s3988_s13 }
  0x87   : > { %1448 = vmatprep.mubr.bf16.mxu0 %v3735_v6  ;;  %1489 = vmatprep.mubr.bf16.mxu1 %v3735_v6  ;;  %v3385_v7 = vld [vmem:[%s3972_s30 + $0x64] ss:$48 sps:$4 sm:$0xff]   ;;  %v3387_v8 = vld [vmem:[%s3972_s30 + $0x60] ss:$48 sps:$4 sm:$0xff]   ;;  %v3394_v10 = vld [vmem:[%s3972_s30 + $0xc] ss:$48 sps:$4 sm:$0xff]  }
  0x88   : > { %1416 = vmatprep.subr.bf16.mxu0 %v3382_v4  ;;  %v3388_v9 = vld [vmem:[%s3972_s30 + $0xc4] ss:$48 sps:$4 sm:$0xff]   ;;  %v3396_v11 = vld [vmem:[%s3972_s30 + $0x8] ss:$48 sps:$4 sm:$0xff]   ;;  %v3390_v12 = vld [vmem:[%s3972_s30 + $0xc0] ss:$48 sps:$4 sm:$0xff]   ;;  %1457 = vmatprep.subr.bf16.mxu1 %v3394_v10 }
  0x89   : > { %1417 = vmatpush1.bf16.msra.mxu0 %v3384_v5  ;;  %v3391_v13 = vld [vmem:[%s3972_s30 + $0x124] ss:$48 sps:$4 sm:$0xff]   ;;  %v3400_v14 = vld [vmem:[%s3972_s30 + $0x6c] ss:$48 sps:$4 sm:$0xff]   ;;  %1458 = vmatpush1.bf16.msra.mxu1 %v3396_v11  ;;  %v3402_v15 = vld [vmem:[%s3972_s30 + $0x68] ss:$48 sps:$4 sm:$0xff]  }
  0x8a   : > { %1418 = vmatprep.subr.bf16.mxu0 %v3385_v7  ;;  %1459 = vmatprep.subr.bf16.mxu1 %v3400_v14  ;;  %v3393_v16 = vld [vmem:[%s3972_s30 + $0x120] ss:$48 sps:$4 sm:$0xff]   ;;  %v3406_v17 = vld [vmem:[%s3972_s30 + $0xcc] ss:$48 sps:$4 sm:$0xff]   ;;  %v3397_v18 = vld [vmem:[%s3972_s30 + $0x184] ss:$48 sps:$4 sm:$0xff]  }
  0x8b   : > { %v3408_v19 = vld [vmem:[%s3972_s30 + $0xc8] ss:$48 sps:$4 sm:$0xff]   ;;  %v3412_v20 = vld [vmem:[%s3972_s30 + $0x12c] ss:$48 sps:$4 sm:$0xff]   ;;  %v3399_v21 = vld [vmem:[%s3972_s30 + $0x180] ss:$48 sps:$4 sm:$0xff]  }
  0x8c   : > { %v3403_v22 = vld [vmem:[%s3972_s30 + $0x1e4] ss:$48 sps:$4 sm:$0xff]   ;;  %v3414_v23 = vld [vmem:[%s3972_s30 + $0x128] ss:$48 sps:$4 sm:$0xff]   ;;  %v3418_v24 = vld [vmem:[%s3972_s30 + $0x18c] ss:$48 sps:$4 sm:$0xff]  }
  0x8d   : > { %1419 = vmatpush1.bf16.msra.mxu0 %v3387_v8  ;;  %1460 = vmatpush1.bf16.msra.mxu1 %v3402_v15  ;;  %v3405_v25 = vld [vmem:[%s3972_s30 + $0x1e0] ss:$48 sps:$4 sm:$0xff]   ;;  %v3409_v26 = vld [vmem:[%s3972_s30 + $0x244] ss:$48 sps:$4 sm:$0xff]   ;;  %v3420_v27 = vld [vmem:[%s3972_s30 + $0x188] ss:$48 sps:$4 sm:$0xff]  }
  0x8e   : > { %1420 = vmatprep.subr.bf16.mxu0 %v3388_v9  ;;  %1461 = vmatprep.subr.bf16.mxu1 %v3406_v17  ;;  %v3424_v28 = vld [vmem:[%s3972_s30 + $0x1ec] ss:$48 sps:$4 sm:$0xff]   ;;  %v3411_v29 = vld [vmem:[%s3972_s30 + $0x240] ss:$48 sps:$4 sm:$0xff]   ;;  %v3415_v30 = vld [vmem:[%s3972_s30 + $0x2a4] ss:$48 sps:$4 sm:$0xff]  }
  0x8f   : > { %v3426_v31 = vld [vmem:[%s3972_s30 + $0x1e8] ss:$48 sps:$4 sm:$0xff]   ;;  %v3417_v32 = vld [vmem:[%s3972_s30 + $0x2a0] ss:$48 sps:$4 sm:$0xff]   ;;  %v3430_v33 = vld [vmem:[%s3972_s30 + $0x24c] ss:$48 sps:$4 sm:$0xff]  }
  0x90   : > { %v774_v34 = vld [vmem:[#allocation2] sm:$0xff]  ;;  %v3423_v35 = vld [vmem:[%s3972_s30 + $0x14] ss:$48 sps:$4 sm:$0xff]   ;;  %v3421_v39 = vld [vmem:[%s3972_s30 + $0x10] ss:$48 sps:$4 sm:$0xff]   ;;  %vm1721_vm1 = vcmask 1043456  }
  0x91   : > { %1421 = vmatpush1.bf16.msra.mxu0 %v3390_v12  ;;  %1462 = vmatpush1.bf16.msra.mxu1 %v3408_v19  ;;  %v3432_v36 = vld [vmem:[%s3972_s30 + $0x248] ss:$48 sps:$4 sm:$0xff]   ;;  %v4080_v37 = vpack.c.bf16 %v774_v34, %v774_v34  ;;  %v3436_v38 = vld [vmem:[%s3972_s30 + $0x2ac] ss:$48 sps:$4 sm:$0xff]   ;;  %v3429_v40 = vld [vmem:[%s3972_s30 + $0x74] ss:$48 sps:$4 sm:$0xff]  }
  0x92   : > { %1422 = vmatprep.subr.bf16.mxu0 %v3391_v13  ;;  %1463 = vmatprep.subr.bf16.mxu1 %v3412_v20  ;;  %v3438_v41 = vld [vmem:[%s3972_s30 + $0x2a8] ss:$48 sps:$4 sm:$0xff]   ;;  %v3444_v42 = vld [vmem:[%s3972_s30 + $0x1c] ss:$48 sps:$4 sm:$0xff]   ;;  %v3427_v43 = vld [vmem:[%s3972_s30 + $0x70] ss:$48 sps:$4 sm:$0xff]  }
  0x93   : > { %v3435_v44 = vld [vmem:[%s3972_s30 + $0xd4] ss:$48 sps:$4 sm:$0xff]   ;;  %v3442_v45 = vld [vmem:[%s3972_s30 + $0x18] ss:$48 sps:$4 sm:$0xff]   ;;  %v3450_v46 = vld [vmem:[%s3972_s30 + $0x7c] ss:$48 sps:$4 sm:$0xff]  }
  0x94   : > { %v3433_v47 = vld [vmem:[%s3972_s30 + $0xd0] ss:$48 sps:$4 sm:$0xff]   ;;  %v3441_v48 = vld [vmem:[%s3972_s30 + $0x134] ss:$48 sps:$4 sm:$0xff]   ;;  %v3448_v49 = vld [vmem:[%s3972_s30 + $0x78] ss:$48 sps:$4 sm:$0xff]  }
  0x95   : > { %1423 = vmatpush1.bf16.msra.mxu0 %v3393_v16  ;;  %1464 = vmatpush1.bf16.msra.mxu1 %v3414_v23  ;;  %v3439_v50 = vld [vmem:[%s3972_s30 + $0x130] ss:$48 sps:$4 sm:$0xff]   ;;  %v3456_v51 = vld [vmem:[%s3972_s30 + $0xdc] ss:$48 sps:$4 sm:$0xff]   ;;  %v3447_v52 = vld [vmem:[%s3972_s30 + $0x194] ss:$48 sps:$4 sm:$0xff]  }
  0x96   : > { %1424 = vmatprep.subr.bf16.mxu0 %v3397_v18  ;;  %1465 = vmatprep.subr.bf16.mxu1 %v3418_v24  ;;  %v3454_v53 = vld [vmem:[%s3972_s30 + $0xd8] ss:$48 sps:$4 sm:$0xff]   ;;  %v3462_v54 = vld [vmem:[%s3972_s30 + $0x13c] ss:$48 sps:$4 sm:$0xff]   ;;  %v3445_v55 = vld [vmem:[%s3972_s30 + $0x190] ss:$48 sps:$4 sm:$0xff]  }
  0x97   : > { %v3453_v56 = vld [vmem:[%s3972_s30 + $0x1f4] ss:$48 sps:$4 sm:$0xff]   ;;  %v3460_v57 = vld [vmem:[%s3972_s30 + $0x138] ss:$48 sps:$4 sm:$0xff]   ;;  %v3468_v58 = vld [vmem:[%s3972_s30 + $0x19c] ss:$48 sps:$4 sm:$0xff]  }
  0x98   : > { %v3451_v59 = vld [vmem:[%s3972_s30 + $0x1f0] ss:$48 sps:$4 sm:$0xff]   ;;  %v3459_v60 = vld [vmem:[%s3972_s30 + $0x254] ss:$48 sps:$4 sm:$0xff]   ;;  %v3466_v61 = vld [vmem:[%s3972_s30 + $0x198] ss:$48 sps:$4 sm:$0xff]  }
  0x99   : > { %1425 = vmatpush1.bf16.msra.mxu0 %v3399_v21  ;;  %1466 = vmatpush1.bf16.msra.mxu1 %v3420_v27  ;;  %v3471_v62 = vld [vmem:[%s3972_s30 + $0x1fc] ss:$48 sps:$4 sm:$0xff]   ;;  %v3457_v63 = vld [vmem:[%s3972_s30 + $0x250] ss:$48 sps:$4 sm:$0xff]   ;;  %v3465_v0 = vld [vmem:[%s3972_s30 + $0x2b4] ss:$48 sps:$4 sm:$0xff]  }
  0x9a   : > { %1426 = vmatprep.subr.bf16.mxu0 %v3403_v22  ;;  %1467 = vmatprep.subr.bf16.mxu1 %v3424_v28  ;;  %v3469_v1 = vld [vmem:[%s3972_s30 + $0x1f8] ss:$48 sps:$4 sm:$0xff]   ;;  %v3474_v2 = vld [vmem:[%s3972_s30 + $0x25c] ss:$48 sps:$4 sm:$0xff]   ;;  %v3463_v3 = vld [vmem:[%s3972_s30 + $0x2b0] ss:$48 sps:$4 sm:$0xff]  }
  0x9b   : > { %v3480_v4 = vld [vmem:[%s3972_s30 + $0x24] ss:$48 sps:$4 sm:$0xff]   ;;  %v3472_v5 = vld [vmem:[%s3972_s30 + $0x258] ss:$48 sps:$4 sm:$0xff]   ;;  %v3477_v7 = vld [vmem:[%s3972_s30 + $0x2bc] ss:$48 sps:$4 sm:$0xff]  }
  0x9c   : > { %v3478_v8 = vld [vmem:[%s3972_s30 + $0x20] ss:$48 sps:$4 sm:$0xff]   ;;  %v3475_v9 = vld [vmem:[%s3972_s30 + $0x2b8] ss:$48 sps:$4 sm:$0xff]   ;;  %v3483_v10 = vld [vmem:[%s3972_s30 + $0x84] ss:$48 sps:$4 sm:$0xff]  }
  0x9d   : > { %1427 = vmatpush1.bf16.msra.mxu0 %v3405_v25  ;;  %1468 = vmatpush1.bf16.msra.mxu1 %v3426_v31  ;;  %v3481_v11 = vld [vmem:[%s3972_s30 + $0x80] ss:$48 sps:$4 sm:$0xff]   ;;  %v3486_v13 = vld [vmem:[%s3972_s30 + $0xe4] ss:$48 sps:$4 sm:$0xff]   ;;  %v3736_v23 = vmov 0.0   ;;  %vm1704_vm2 = vcmask 64512  }
  0x9e   : > { %1428 = vmatprep.subr.bf16.mxu0 %v3409_v26  ;;  %1469 = vmatprep.subr.bf16.mxu1 %v3430_v33  ;;  %v3484_v12 = vld [vmem:[%s3972_s30 + $0xe0] ss:$48 sps:$4 sm:$0xff]   ;;  %v3489_v14 = vld [vmem:[%s3972_s30 + $0x144] ss:$48 sps:$4 sm:$0xff]   ;;  %v3502_v24 = vld [vmem:[%s3972_s30 + $0x28] ss:$48 sps:$4 sm:$0xff]  }
  0x9f   : > { %v3487_v15 = vld [vmem:[%s3972_s30 + $0x140] ss:$48 sps:$4 sm:$0xff]   ;;  %v3492_v16 = vld [vmem:[%s3972_s30 + $0x1a4] ss:$48 sps:$4 sm:$0xff]   ;;  %v3504_v25 = vld [vmem:[%s3972_s30 + $0x2c] ss:$48 sps:$4 sm:$0xff]  }
  0xa0   : > { %v3495_v17 = vld [vmem:[%s3972_s30 + $0x204] ss:$48 sps:$4 sm:$0xff]   ;;  %v3493_v18 = vld [vmem:[%s3972_s30 + $0x200] ss:$48 sps:$4 sm:$0xff]   ;;  %v3507_v26 = vld [vmem:[%s3972_s30 + $0x8c] ss:$48 sps:$4 sm:$0xff]  }
  0xa1   : > { %1429 = vmatpush1.bf16.msra.mxu0 %v3411_v29  ;;  %1470 = vmatpush1.bf16.msra.mxu1 %v3432_v36  ;;  %v3498_v19 = vld [vmem:[%s3972_s30 + $0x264] ss:$48 sps:$4 sm:$0xff]   ;;  %v3496_v20 = vld [vmem:[%s3972_s30 + $0x260] ss:$48 sps:$4 sm:$0xff]   ;;  %v3505_v27 = vld [vmem:[%s3972_s30 + $0x88] ss:$48 sps:$4 sm:$0xff]  }
  0xa2   : > { %1430 = vmatprep.subr.bf16.mxu0 %v3415_v30  ;;  %1471 = vmatprep.subr.bf16.mxu1 %v3436_v38  ;;  %v3501_v21 = vld [vmem:[%s3972_s30 + $0x2c4] ss:$48 sps:$4 sm:$0xff]   ;;  %v3499_v22 = vld [vmem:[%s3972_s30 + $0x2c0] ss:$48 sps:$4 sm:$0xff]   ;;  %v3510_v28 = vld [vmem:[%s3972_s30 + $0xec] ss:$48 sps:$4 sm:$0xff]  }
  0xa3   : > { %v3508_v29 = vld [vmem:[%s3972_s30 + $0xe8] ss:$48 sps:$4 sm:$0xff]   ;;  %v3513_v30 = vld [vmem:[%s3972_s30 + $0x14c] ss:$48 sps:$4 sm:$0xff]   ;;  %s4431_s8 = sld [smem:[#allocation17_spill]]  ;;  %s4435_s23 = sld [smem:[#allocation24_spill]] }
  0xa4   : > { %v3511_v31 = vld [vmem:[%s3972_s30 + $0x148] ss:$48 sps:$4 sm:$0xff]   ;;  %v3519_v34 = vld [vmem:[%s3972_s30 + $0x20c] ss:$48 sps:$4 sm:$0xff]   ;;  %p3121_p8 = scmp.ne.s32.totalorder %s3711_s24, 1 }
  0xa5   : > { %1431 = vmatpush1.bf16.msra.mxu0 %v3417_v32  ;;  %1472 = vmatpush1.bf16.msra.mxu1 %v3438_v41  ;;  %v3516_v32 = vld [vmem:[%s3972_s30 + $0x1ac] ss:$48 sps:$4 sm:$0xff]   ;;  %v3514_v33 = vld [vmem:[%s3972_s30 + $0x1a8] ss:$48 sps:$4 sm:$0xff]  }
  0xa6   : > { %1498 = vmatprep.subr.bf16.mxu0 %v3423_v35  ;;  %1539 = vmatprep.subr.bf16.mxu1 %v3444_v42  ;;  %v3517_v35 = vld [vmem:[%s3972_s30 + $0x208] ss:$48 sps:$4 sm:$0xff]   ;;  %v3522_v38 = vld [vmem:[%s3972_s30 + $0x26c] ss:$48 sps:$4 sm:$0xff]  }
  0xa7   : > { %v3520_v36 = vld [vmem:[%s3972_s30 + $0x268] ss:$48 sps:$4 sm:$0xff]  }
  0xa8   : > { %1449 = vmatmul.mubr.bf16.vlgmr.msra.gmra.mrb[0].mxu0 %v4080_v37  ;;  %1490 = vmatmul.mubr.bf16.vlgmr.msra.gmra.mrb[0].mxu1 %v4080_v37 }
  0xa9   : > { %1499 = vmatpush1.bf16.msra.mxu0 %v3421_v39  ;;  %1530 = vmatprep.mubr.bf16.mxu0 %v3735_v6  ;;  %v3525_v39 = vld [vmem:[%s3972_s30 + $0x2cc] ss:$48 sps:$4 sm:$0xff]   ;;  %s4436_s14 = scalar_lea.vmem %s4435_s23, %s3988_s13 }
  0xaa   : > { %1500 = vmatprep.subr.bf16.mxu0 %v3429_v40  ;;  %1540 = vmatpush1.bf16.msra.mxu1 %v3442_v45  ;;  %v3523_v40 = vld [vmem:[%s3972_s30 + $0x2c8] ss:$48 sps:$4 sm:$0xff]  }
  0xab   : > { %1571 = vmatprep.mubr.bf16.mxu1 %v3735_v6  ;;  %1541 = vmatprep.subr.bf16.mxu1 %v3450_v46 }
  0xad   : > { %1501 = vmatpush1.bf16.msra.mxu0 %v3427_v43 }
  0xae   : > { %1502 = vmatprep.subr.bf16.mxu0 %v3435_v44  ;;  %1542 = vmatpush1.bf16.msra.mxu1 %v3448_v49  ;;  %v876_v49 = vlaneseq }
  0xaf   : > { %1543 = vmatprep.subr.bf16.mxu1 %v3456_v51 }
  0xb1   : > { %1503 = vmatpush1.bf16.msra.mxu0 %v3433_v47 }
  0xb2   : > { %1504 = vmatprep.subr.bf16.mxu0 %v3441_v48  ;;  %1544 = vmatpush1.bf16.msra.mxu1 %v3454_v53 }
  0xb3   : > { %1545 = vmatprep.subr.bf16.mxu1 %v3462_v54 }
  0xb5   : > { %1505 = vmatpush1.bf16.msra.mxu0 %v3439_v50  ;;  %v4163_v50 = vshrl.u32 %v876_v49, 7 }
  0xb6   : > { %1506 = vmatprep.subr.bf16.mxu0 %v3447_v52  ;;  %1546 = vmatpush1.bf16.msra.mxu1 %v3460_v57  ;;  %v872_v52 = vld [vmem:[%s4005_s22] sm:$0xff] }
  0xb7   : > { %1547 = vmatprep.subr.bf16.mxu1 %v3468_v58  ;;  %v894_v51 = vsub.s32 4, %v4163_v50  ;;  %v878_v54 = vsub.s32 0, %v4163_v50 }
  0xb9   : > { %1507 = vmatpush1.bf16.msra.mxu0 %v3445_v55  ;;  %v895_v53 = vrot.slane %v872_v52, %v894_v51  ;;  %v879_v58 = vrot.slane %v872_v52, %v878_v54 }
  0xba   : > { %1508 = vmatprep.subr.bf16.mxu0 %v3453_v56  ;;  %1548 = vmatpush1.bf16.msra.mxu1 %v3466_v61 }
  0xbb   : > { %1549 = vmatprep.subr.bf16.mxu1 %v3471_v62 }
  0xbd   : > { %1509 = vmatpush1.bf16.msra.mxu0 %v3451_v59 }
  0xbe   : > { %1510 = vmatprep.subr.bf16.mxu0 %v3459_v60  ;;  %1550 = vmatpush1.bf16.msra.mxu1 %v3469_v1  ;;  %v882_v1 = vsub.s32 1, %v4163_v50 }
  0xbf   : > { %1551 = vmatprep.subr.bf16.mxu1 %v3474_v2 }
  0xc1   : > { %1511 = vmatpush1.bf16.msra.mxu0 %v3457_v63  ;;  %v902_v63 = vsub.s32 6, %v4163_v50 }
  0xc2   : > { %1512 = vmatprep.subr.bf16.mxu0 %v3465_v0  ;;  %1552 = vmatpush1.bf16.msra.mxu1 %v3472_v5 }
  0xc3   : > { %1553 = vmatprep.subr.bf16.mxu1 %v3477_v7  ;;  %v903_v7 = vrot.slane %v872_v52, %v902_v63 }
  0xc5   : > { %1513 = vmatpush1.bf16.msra.mxu0 %v3463_v3 }
  0xc6   : > { %1580 = vmatprep.subr.bf16.mxu0 %v3480_v4  ;;  %1554 = vmatpush1.bf16.msra.mxu1 %v3475_v9 }
  0xc7   : > { %1621 = vmatprep.subr.bf16.mxu1 %v3504_v25 }
  0xc8   : > { %1531 = vmatmul.mubr.bf16.vlgmr.msra.gmra.mrb[4].mxu0 %v4080_v37 }
  0xc9   : > { %1581 = vmatpush1.bf16.msra.mxu0 %v3478_v8  ;;  %1612 = vmatprep.mubr.bf16.mxu0 %v3735_v6 }
  0xca   : > { %1572 = vmatmul.mubr.bf16.vlgmr.msra.gmra.mrb[4].mxu1 %v4080_v37  ;;  %1582 = vmatprep.subr.bf16.mxu0 %v3483_v10  ;;  %v883_v10 = vrot.slane %v872_v52, %v882_v1 }
  0xcb   : > { %1653 = vmatprep.mubr.bf16.mxu1 %v3735_v6  ;;  %v3490_v6 = vld [vmem:[%s3972_s30 + $0x1a0] ss:$48 sps:$4 sm:$0xff]   ;;  %1622 = vmatpush1.bf16.msra.mxu1 %v3502_v24  ;;  %s4439_s30 = sld [smem:[#allocation27_spill]] (!%p3121_p8) }
  0xcc   : > { %1623 = vmatprep.subr.bf16.mxu1 %v3507_v26 }
  0xcd   : > { %1583 = vmatpush1.bf16.msra.mxu0 %v3481_v11 }
  0xce   : > { %1584 = vmatprep.subr.bf16.mxu0 %v3486_v13 }
  0xcf   : > { %1624 = vmatpush1.bf16.msra.mxu1 %v3505_v27 }
  0xd0   : > { %1625 = vmatprep.subr.bf16.mxu1 %v3510_v28  ;;  %v4190_v28 = vld [vmem:[%s4005_s22 + $0x8] sm:$0xf] }
  0xd1   : > { %1585 = vmatpush1.bf16.msra.mxu0 %v3484_v12 }
  0xd2   : > { %1586 = vmatprep.subr.bf16.mxu0 %v3489_v14  ;;  %v886_v14 = vsub.s32 2, %v4163_v50 }
  0xd3   : > { %1626 = vmatpush1.bf16.msra.mxu1 %v3508_v29  ;;  %v911_v29 = vrot.slane %v4190_v28, %v878_v54 }
  0xd4   : > { %1627 = vmatprep.subr.bf16.mxu1 %v3513_v30 }
  0xd5   : > { %1587 = vmatpush1.bf16.msra.mxu0 %v3487_v15  ;;  %v906_v15 = vsub.s32 7, %v4163_v50 }
  0xd6   : > { %1588 = vmatprep.subr.bf16.mxu0 %v3492_v16 }
  0xd7   : > { %1628 = vmatpush1.bf16.msra.mxu1 %v3511_v31 }
  0xd8   : > { %1629 = vmatprep.subr.bf16.mxu1 %v3516_v32 }
  0xd9   : > { %1589 = vmatpush1.bf16.msra.mxu0 %v3490_v6 }
  0xda   : > { %1590 = vmatprep.subr.bf16.mxu0 %v3495_v17  ;;  %v887_v17 = vrot.slane %v872_v52, %v886_v14 }
  0xdb   : > { %1630 = vmatpush1.bf16.msra.mxu1 %v3514_v33 }
  0xdc   : > { %1631 = vmatprep.subr.bf16.mxu1 %v3519_v34 }
  0xdd   : > { %1591 = vmatpush1.bf16.msra.mxu0 %v3493_v18  ;;  %v907_v18 = vrot.slane %v872_v52, %v906_v15 }
  0xde   : > { %1592 = vmatprep.subr.bf16.mxu0 %v3498_v19 }
  0xdf   : > { %1632 = vmatpush1.bf16.msra.mxu1 %v3517_v35 }
  0xe0   : > { %1633 = vmatprep.subr.bf16.mxu1 %v3522_v38 }
  0xe1   : > { %1593 = vmatpush1.bf16.msra.mxu0 %v3496_v20  ;;  %v890_v20 = vsub.s32 3, %v4163_v50 }
  0xe2   : > { %1594 = vmatprep.subr.bf16.mxu0 %v3501_v21 }
  0xe3   : > { %1634 = vmatpush1.bf16.msra.mxu1 %v3520_v36  ;;  %v891_v24 = vrot.slane %v872_v52, %v890_v20 }
  0xe4   : > { %1635 = vmatprep.subr.bf16.mxu1 %v3525_v39 }
  0xe5   : > { %1595 = vmatpush1.bf16.msra.mxu0 %v3499_v22 }
  0xe6   : > { %3207 = vmatprep.subr.bf16.mxu0 %v3736_v23 }
  0xe7   : > { %1636 = vmatpush1.bf16.msra.mxu1 %v3523_v40 }
  0xe8   : > { %1613 = vmatmul.mubr.bf16.vlgmr.msra.gmra.mrb[8].mxu0 %v4080_v37  ;;  %3213 = vmatprep.subr.bf16.mxu1 %v3736_v23 }
  0xe9   : > { %3209 = vmatprep.mubr.msk.bf16.mxu0 %vm3737_vm0, %v3736_v23 }
  0xea   : > { %1654 = vmatmul.mubr.bf16.vlgmr.msra.gmra.mrb[8].mxu1 %v4080_v37  ;;  %v898_v37 = vsub.s32 5, %v4163_v50 }
  0xeb   : > { %3215 = vmatprep.mubr.msk.bf16.mxu1 %vm3737_vm0, %v3736_v23 }
  0xec   : > { %v899_v61 = vrot.slane %v872_v52, %v898_v37 }
 0x17b   : > { %v1450_v41 = vpop.f32.mrb[0].mxu0  ;;  %v1491_v45 = vpop.f32.mrb[0].mxu1 }
 0x17c   : > { %v1452_v42 = vpop.f32.mrb[1].mxu0  ;;  %v1493_v46 = vpop.f32.mrb[1].mxu1  ;;  %v1451_v0 = vadd.f32 %v1450_v41, %v879_v58  ;;  %v1492_v19 = vadd.f32 %v1491_v45, %v887_v17 }
 0x17d   : > { %v1454_v43 = vpop.f32.mrb[2].mxu0  ;;  %v1495_v47 = vpop.f32.mrb[2].mxu1  ;;  %v1453_v13 = vadd.f32 %v1452_v42, %v883_v10  ;;  %v1494_v26 = vadd.f32 %v1493_v46, %v891_v24  ;;  %v3528_v24 = vld [vmem:[%s4431_s8 + $0x48] sm:$0xff]  }
 0x17e   : > { %v1455_v44 = vpop.f32.mrb[3].mxu0  ;;  %v1496_v48 = vpop.f32.mrb[3].mxu1  ;;  %v1662_v9 = vpack.c.bf16 %v1451_v0, %v1451_v0  ;;  %v1866_v22 = vpack.c.bf16 %v1492_v19, %v1492_v19 }
 0x17f   : > { %v1765_v6 = vpack.c.bf16 %v1453_v13, %v1453_v13  ;;  %v1967_v27 = vpack.c.bf16 %v1494_v26, %v1494_v26  ;;  %v3530_v26 = vld [vmem:[%s4431_s8 + $0x50] sm:$0xff]  }
 0x19b   : > { %v1532_v55 = vpop.f32.mrb[4].mxu0 }
 0x19c   : > { %v1533_v56 = vadd.f32 %v1532_v55, %v895_v53  ;;  %v1534_v57 = vpop.f32.mrb[5].mxu0 }
 0x19d   : > { %v1536_v59 = vpop.f32.mrb[6].mxu0  ;;  %v1573_v2 = vpop.f32.mrb[4].mxu1  ;;  %v1535_v3 = vadd.f32 %v1534_v57, %v899_v61 }
 0x19e   : > { %v1663_v60 = vpack.c.bf16 %v1533_v56, %v1533_v56  ;;  %v1537_v62 = vpop.f32.mrb[7].mxu0  ;;  %v1575_v4 = vpop.f32.mrb[5].mxu1  ;;  %v1574_v12 = vadd.f32 %v1573_v2, %v903_v7 }
 0x19f   : > { %v1577_v5 = vpop.f32.mrb[6].mxu1  ;;  %v1766_v11 = vpack.c.bf16 %v1535_v3, %v1535_v3  ;;  %v1576_v21 = vadd.f32 %v1575_v4, %v907_v18 }
 0x1a0   : > { %3208 = vmatpush3.bf16.xpose.msra.mxu0 %v1663_v60  ;;  %v1578_v8 = vpop.f32.mrb[7].mxu1  ;;  %v1867_v16 = vpack.c.bf16 %v1574_v12, %v1574_v12 }
 0x1a1   : > { %3219 = vmatprep.subr.bf16.mxu0 %v3736_v23  ;;  %v1968_v25 = vpack.c.bf16 %v1576_v21, %v1576_v21  ;;  %v3526_v21 = vld [vmem:[%s4431_s8 + $0x40] sm:$0xff]  }
 0x1a7   : > { %3210 = vmatmul.mubr.bf16.vlgmr.msra.gmra.mrb[12].mxu0 %v1662_v9 }
 0x1a8   : > { %3220 = vmatpush3.bf16.xpose.msra.mxu0 %v1766_v11  ;;  %3221 = vmatprep.mubr.msk.bf16.mxu0 %vm3737_vm0, %v3736_v23 }
 0x1a9   : > { %3231 = vmatprep.subr.bf16.mxu0 %v3736_v23 }
 0x1af   : > { %3222 = vmatmul.mubr.bf16.vlgmr.msra.gmra.mrb[16].mxu0 %v1765_v6 }
 0x1b0   : > { %3232 = vmatpush3.bf16.xpose.msra.mxu0 %v1867_v16  ;;  %3233 = vmatprep.mubr.msk.bf16.mxu0 %vm3737_vm0, %v3736_v23 }
 0x1b1   : > { %3243 = vmatprep.subr.bf16.mxu0 %v3736_v23 }
 0x1b7   : > { %3234 = vmatmul.mubr.bf16.vlgmr.msra.gmra.mrb[20].mxu0 %v1866_v22  ;;  %v3527_v22 = vld [vmem:[%s4431_s8] sm:$0xff]  }
 0x1b8   : > { %3244 = vmatpush3.bf16.xpose.msra.mxu0 %v1968_v25  ;;  %3245 = vmatprep.mubr.msk.bf16.mxu0 %vm3737_vm0, %v3736_v23  ;;  %v3529_v25 = vld [vmem:[%s4431_s8 + $0x8] sm:$0xff]  }
 0x1b9   : > { %3145 = vmatprep.subr.bf16.mxu0 %v3526_v21 }
 0x1bb   : > { %v1614_v30 = vpop.f32.mrb[8].mxu0 }
 0x1bc   : > { %v1615_v31 = vadd.f32 %v1614_v30, %v911_v29  ;;  %v4193_v32 = vpop.f32.mrb[9].mxu0  ;;  %v3532_v29 = vld [vmem:[%s4431_s8 + $0x58] sm:$0xff]  }
 0x1bd   : > { %v1618_v33 = vpop.f32.mrb[10].mxu0  ;;  %v1655_v6 = vpop.f32.mrb[8].mxu1  ;;  %v3533_v30 = vld [vmem:[%s4431_s8 + $0x18] sm:$0xff]  }
 0x1be   : > { %v1717_v34 = vpack.c.bf16 %v1615_v31, %v1615_v31  ;;  %v1619_v35 = vpop.f32.mrb[11].mxu0  ;;  %v1657_v17 = vpop.f32.mrb[9].mxu1  ;;  %v3534_v31 = vld [vmem:[%s4431_s8 + $0x60] sm:$0xff]  }
 0x1bf   : > { %3246 = vmatmul.mubr.bf16.vlgmr.msra.gmra.mrb[24].mxu0 %v1967_v27  ;;  %v1659_v18 = vpop.f32.mrb[10].mxu1  ;;  %v3531_v27 = vld [vmem:[%s4431_s8 + $0x10] sm:$0xff]   ;;  %v3536_v33 = vld [vmem:[%s4431_s8 + $0x20] sm:$0xff]   ;;  %v915_v35 = vrot.slane %v4190_v28, %v882_v1 }
 0x1c0   : > { %v1723_v36 = vsel %vm1721_vm1, %v1717_v34, 0  ;;  %v1660_v19 = vpop.f32.mrb[11].mxu1  ;;  %3146 = vmatpush3.bf16.msra.mxu0 %v3527_v22 }
 0x1c1   : > { %3214 = vmatpush3.bf16.msra.mxu1 %v1723_v36  ;;  %3147 = vmatprep.subr.bf16.mxu0 %v3528_v24  ;;  %v1617_v36 = vadd.f32 %v4193_v32, %v915_v35 }
 0x1c2   : > { %3225 = vmatprep.subr.bf16.mxu1 %v3736_v23 }
 0x1c4   : > { %3148 = vmatpush3.bf16.msra.mxu0 %v3529_v25 }
 0x1c5   : > { %3149 = vmatprep.subr.bf16.mxu0 %v3530_v26 }
 0x1c8   : > { %3150 = vmatpush3.bf16.msra.mxu0 %v3531_v27 }
 0x1c9   : > { %3151 = vmatprep.subr.bf16.mxu0 %v3532_v29 }
 0x1cc   : > { %3152 = vmatpush3.bf16.msra.mxu0 %v3533_v30 }
 0x1cd   : > { %3153 = vmatprep.subr.bf16.mxu0 %v3534_v31 }
 0x1d0   : > { %3154 = vmatpush3.bf16.msra.mxu0 %v3536_v33 }
 0x27a   : > { %v1698_v38 = vpop.f32.mrb[12].mxu0 }
 0x27b   : > { %v3211_v39 = vpop.f32.mrb[13].mxu0  ;;  %v1705_v40 = vsel %vm1704_vm2, %v1698_v38, -inf }
 0x27c   : > { %1706 = vmax.xlane.f32.xlu0 %v1705_v40  ;;  %v1701_v41 = vpop.f32.mrb[14].mxu0  ;;  %v919_v39 = vrot.slane %v4190_v28, %v886_v14 }
 0x27d   : > { %v3212_v42 = vpop.f32.mrb[15].mxu0  ;;  %v1819_v41 = vpack.c.bf16 %v1617_v36, %v1617_v36 }
 0x282   : > { %v1801_v43 = vpop.f32.mrb[16].mxu0 }
 0x283   : > { %v3223_v44 = vpop.f32.mrb[17].mxu0  ;;  %v1807_v45 = vsel %vm1704_vm2, %v1801_v43, -inf }
 0x284   : > { %1808 = vmax.xlane.f32.xlu0 %v1807_v45  ;;  %v1804_v46 = vpop.f32.mrb[18].mxu0  ;;  %v1824_v45 = vsel %vm1721_vm1, %v1819_v41, 0 }
 0x285   : > { %v3224_v47 = vpop.f32.mrb[19].mxu0 }
 0x286   : > { %v923_v47 = vrot.slane %v4190_v28, %v890_v20 }
 0x28a   : > { %v1902_v48 = vpop.f32.mrb[20].mxu0 }
 0x28b   : > { %v3235_v49 = vpop.f32.mrb[21].mxu0  ;;  %v1908_v51 = vsel %vm1704_vm2, %v1902_v48, -inf }
 0x28c   : > { %1909 = vmax.xlane.f32.xlu1 %v1908_v51  ;;  %v1905_v52 = vpop.f32.mrb[22].mxu0  ;;  %v1658_v51 = vadd.f32 %v1657_v17, %v923_v47 }
 0x28d   : > { %v3236_v53 = vpop.f32.mrb[23].mxu0 }
 0x28e   : > { %v2021_v20 = vpack.c.bf16 %v1658_v51, %v1658_v51 }
 0x292   : > { %v2003_v54 = vpop.f32.mrb[24].mxu0 }
 0x293   : > { %v3247_v37 = vpop.f32.mrb[25].mxu0  ;;  %v2009_v55 = vsel %vm1704_vm2, %v2003_v54, -inf }
 0x294   : > { %2010 = vmax.xlane.f32.xlu1 %v2009_v55  ;;  %v2006_v56 = vpop.f32.mrb[26].mxu0  ;;  %v2026_v37 = vsel %vm1721_vm1, %v2021_v20, 0  ;;  %v3558_v20 = vld [vmem:[%s4019_s2] sm:$0xff]  }
 0x295   : > { %v3248_v57 = vpop.f32.mrb[27].mxu0 }
 0x296   : > { %v3537_v57 = vld [vmem:[%s4431_s8 + $0x80] sm:$0xff]  }
 0x309   : > { %v1707_v58 = vpop.xlane.xlu0 %1706 }
 0x30a   : > { %v1708_v59 = vsub.f32 %v1698_v38, %v1707_v58 }
 0x30c   : > { %v1709_v60 = vmul.f32 1.442695, %v1708_v59  ;;  %v3538_v59 = vld [vmem:[%s4431_s8 + $0x68] sm:$0xff]  }
 0x30d   : > { %3155 = vmatprep.subr.bf16.mxu0 %v3538_v59  ;;  %v3562_v59 = vld [vmem:[%s4019_s2 + $0x20] sm:$0xff]  }
 0x30e   : > { %3574 = vpow2.f32 %v1709_v60  ;;  %v3539_v60 = vld [vmem:[%s4431_s8 + $0xc8] sm:$0xff]  }
 0x311   : > { %v1809_v61 = vpop.xlane.xlu0 %1808 }
 0x312   : > { %v1810_v62 = vsub.f32 %v1801_v43, %v1809_v61  ;;  %v1656_v43 = vadd.f32 %v1655_v6, %v919_v39  ;;  %v3540_v61 = vld [vmem:[%s4431_s8 + $0x28] sm:$0xff]   ;;  %v3557_v6 = vld [vmem:[%s4431_s8 + $0xb8] sm:$0xff]  }
 0x313   : > { %3156 = vmatpush3.bf16.msra.mxu0 %v3540_v61  ;;  %v3564_v61 = vld [vmem:[%s4019_s2 + $0x30] sm:$0xff]  }
 0x314   : > { %v1811_v63 = vmul.f32 1.442695, %v1810_v62  ;;  %v1920_v1 = vpack.c.bf16 %v1656_v43, %v1656_v43  ;;  %v3541_v62 = vld [vmem:[%s4431_s8 + $0x88] sm:$0xff]  }
 0x316   : > { %3576 = vpow2.f32 %v1811_v63  ;;  %v3542_v63 = vld [vmem:[%s4431_s8 + $0x70] sm:$0xff]  }
 0x317   : > { %3157 = vmatprep.subr.bf16.mxu0 %v3542_v63  ;;  %v3566_v63 = vld [vmem:[%s4024_s4] sm:$0xff]  }
 0x318   : > { %v3575_v0 = vpop.eup %3574 }
 0x319   : > { %v1910_v2 = vpop.xlane.xlu1 %1909  ;;  %v1711_v3 = vsel %vm1704_vm2, %v3575_v0, 0.0 }
 0x31a   : > { %v1911_v4 = vsub.f32 %v1902_v48, %v1910_v2  ;;  %1712 = vadd.xlane.f32.xlu0 %v1711_v3  ;;  %v1925_v48 = vsel %vm1721_vm1, %v1920_v1, 0  ;;  %v3544_v2 = vld [vmem:[%s4431_s8 + $0x30] sm:$0xff]   ;;  %v3066_v1 = vld [vmem:[%s4432_s20] ss:$0 sm:$0xff] }
 0x31b   : > { %v3545_v3 = vld [vmem:[%s4431_s8 + $0x90] sm:$0xff]   ;;  %3158 = vmatpush3.bf16.msra.mxu0 %v3544_v2 }
 0x31c   : > { %v1912_v5 = vmul.f32 1.442695, %v1911_v4  ;;  %v3546_v4 = vld [vmem:[%s4431_s8 + $0x78] sm:$0xff]   ;;  %v3568_v2 = vld [vmem:[%s4024_s4 + $0x10] sm:$0xff]  }
 0x31d   : > { %3159 = vmatprep.subr.bf16.mxu0 %v3546_v4  ;;  %v3570_v4 = vld [vmem:[%s4024_s4 + $0x20] sm:$0xff]  }
 0x31e   : > { %3578 = vpow2.f32 %v1912_v5  ;;  %v3547_v5 = vld [vmem:[%s4431_s8 + $0xd8] sm:$0xff]  }
 0x320   : > { %v3577_v7 = vpop.eup %3576 }
 0x321   : > { %v2011_v8 = vpop.xlane.xlu1 %2010  ;;  %v1813_v9 = vsel %vm1704_vm2, %v3577_v7, 0.0 }
 0x322   : > { %v2012_v10 = vsub.f32 %v2003_v54, %v2011_v8  ;;  %1814 = vadd.xlane.f32.xlu1 %v1813_v9  ;;  %v3535_v54 = vld [vmem:[%s4431_s8 + $0xc0] sm:$0xff]   ;;  %v3549_v8 = vld [vmem:[%s4431_s8 + $0x98] sm:$0xff]  }
 0x323   : > { %v3550_v9 = vld [vmem:[%s4431_s8 + $0xe0] sm:$0xff]  }
 0x324   : > { %v2013_v11 = vmul.f32 1.442695, %v2012_v10  ;;  %v3551_v10 = vld [vmem:[%s4431_s8 + $0xa0] sm:$0xff]  }
 0x326   : > { %3580 = vpow2.f32 %v2013_v11  ;;  %v3552_v11 = vld [vmem:[%s4431_s8 + $0xe8] sm:$0xff]  }
 0x328   : > { %v4203_v12 = vpop.eup %3578 }
 0x329   : > { %v1914_v13 = vsel %vm1704_vm2, %v4203_v12, 0.0 }
 0x32a   : > { %1915 = vadd.xlane.f32.xlu0 %v1914_v13  ;;  %v3554_v13 = vld [vmem:[%s4431_s8 + $0xf0] sm:$0xff]  }
 0x330   : > { %v4207_v15 = vpop.eup %3580 }
 0x331   : > { %v2015_v16 = vsel %vm1704_vm2, %v4207_v15, 0.0 }
 0x332   : > { %2016 = vadd.xlane.f32.xlu1 %v2015_v16  ;;  %v3556_v16 = vld [vmem:[%s4431_s8 + $0xf8] sm:$0xff]  }
 0x3a7   : > { %v1713_v34 = vpop.xlane.xlu0 %1712 }
 0x3a8   : > { %3582 = vrcp.f32 %v1713_v34 }
 0x3af   : > { %v1815_v38 = vpop.xlane.xlu1 %1814 }
 0x3b0   : > { %3584 = vrcp.f32 %v1815_v38 }
 0x3b2   : > { %v3583_v40 = vpop.eup %3582 }
 0x3b3   : > { %v1715_v42 = vmul.f32 %v3583_v40, %v3575_v0  ;;  %v3543_v0 = vld [vmem:[%s4431_s8 + $0xd0] sm:$0xff]  }
 0x3b5   : > { %v1716_v44 = vpack.c.bf16 %v1715_v42, %v1715_v42 }
 0x3b7   : > { %3216 = vmatmul.mubr.msk.bf16.vlgmr.msra.gmra.mrb[12].mxu1 %vm1704_vm2, %v1716_v44  ;;  %v1916_v46 = vpop.xlane.xlu0 %1915 }
 0x3b8   : > { %3226 = vmatpush3.bf16.msra.mxu1 %v1824_v45  ;;  %3586 = vrcp.f32 %v1916_v46  ;;  %3227 = vmatprep.mubr.msk.bf16.mxu1 %vm3737_vm0, %v3736_v23 }
 0x3b9   : > { %3237 = vmatprep.subr.bf16.mxu1 %v3736_v23 }
 0x3ba   : > { %v3585_v32 = vpop.eup %3584 }
 0x3bb   : > { %v1817_v14 = vmul.f32 %v3585_v32, %v3577_v7  ;;  %v3548_v7 = vld [vmem:[%s4431_s8 + $0x38] sm:$0xff]  }
 0x3bc   : > { %3160 = vmatpush3.bf16.msra.mxu0 %v3548_v7 }
 0x3bd   : > { %v1818_v49 = vpack.c.bf16 %v1817_v14, %v1817_v14  ;;  %3255 = vmatprep.subr.bf16.mxu0 %v3736_v23 }
 0x3bf   : > { %3228 = vmatmul.mubr.msk.bf16.vlgmr.msra.gmra.mrb[16].mxu1 %vm1704_vm2, %v1818_v49  ;;  %v2017_v52 = vpop.xlane.xlu1 %2016 }
 0x3c0   : > { %3588 = vrcp.f32 %v2017_v52  ;;  %3238 = vmatpush3.bf16.msra.mxu1 %v1925_v48  ;;  %3239 = vmatprep.mubr.msk.bf16.mxu1 %vm3737_vm0, %v3736_v23 }
 0x3c1   : > { %3249 = vmatprep.subr.bf16.mxu1 %v3736_v23 }
 0x3c2   : > { %v3587_v53 = vpop.eup %3586 }
 0x3c3   : > { %v1918_v50 = vmul.f32 %v3587_v53, %v4203_v12  ;;  %v3553_v12 = vld [vmem:[%s4431_s8 + $0xa8] sm:$0xff]   ;;  %v3594_v53 = vld [vmem:[#allocation2] sm:$0xff] }
 0x3c5   : > { %v1919_v28 = vpack.c.bf16 %v1918_v50, %v1918_v50 }
 0x3c7   : > { %3240 = vmatmul.mubr.msk.bf16.vlgmr.msra.gmra.mrb[20].mxu1 %vm1704_vm2, %v1919_v28  ;;  %v3559_v28 = vld [vmem:[%s4019_s2 + $0x8] sm:$0xff]  }
 0x3c8   : > { %3250 = vmatpush3.bf16.msra.mxu1 %v2026_v37  ;;  %3251 = vmatprep.mubr.msk.bf16.mxu1 %vm3737_vm0, %v3736_v23 }
 0x3c9   : > { %3167 = vmatprep.subr.bf16.mxu1 %v3535_v54 }
 0x3ca   : > { %v3589_v55 = vpop.eup %3588 }
 0x3cb   : > { %v2019_v56 = vmul.f32 %v3589_v55, %v4207_v15  ;;  %v3555_v15 = vld [vmem:[%s4431_s8 + $0xb0] sm:$0xff]  }
 0x3cd   : > { %v2020_v58 = vpack.c.bf16 %v2019_v56, %v2019_v56 }
 0x3cf   : > { %3252 = vmatmul.mubr.msk.bf16.vlgmr.msra.gmra.mrb[24].mxu1 %vm1704_vm2, %v2020_v58  ;;  %v3561_v58 = vld [vmem:[%s4019_s2 + $0x18] sm:$0xff]  }
 0x3d0   : > { %3168 = vmatpush3.bf16.msra.mxu1 %v3537_v57  ;;  %v3560_v57 = vld [vmem:[%s4019_s2 + $0x10] sm:$0xff]  }
 0x3d1   : > { %3169 = vmatprep.subr.bf16.mxu1 %v3539_v60  ;;  %v3563_v60 = vld [vmem:[%s4019_s2 + $0x28] sm:$0xff]  }
 0x3d4   : > { %3170 = vmatpush3.bf16.msra.mxu1 %v3541_v62  ;;  %v3565_v62 = vld [vmem:[%s4019_s2 + $0x38] sm:$0xff]   ;;  %s4433_s2 = scalar_lea.vmem %s4379_s6, %s3988_s13 }
 0x3d5   : > { %3171 = vmatprep.subr.bf16.mxu1 %v3543_v0  ;;  %v3567_v0 = vld [vmem:[%s4024_s4 + $0x8] sm:$0xff]  }
 0x3d8   : > { %3172 = vmatpush3.bf16.msra.mxu1 %v3545_v3  ;;  %v3569_v3 = vld [vmem:[%s4024_s4 + $0x18] sm:$0xff]  }
 0x3d9   : > { %3173 = vmatprep.subr.bf16.mxu1 %v3547_v5  ;;  %v3571_v5 = vld [vmem:[%s4024_s4 + $0x28] sm:$0xff]  }
 0x3dc   : > { %3174 = vmatpush3.bf16.msra.mxu1 %v3549_v8 }
 0x3dd   : > { %3175 = vmatprep.subr.bf16.mxu1 %v3550_v9 }
 0x3e0   : > { %3176 = vmatpush3.bf16.msra.mxu1 %v3551_v10 }
 0x3e1   : > { %3177 = vmatprep.subr.bf16.mxu1 %v3552_v11 }
 0x3e4   : > { %3178 = vmatpush3.bf16.msra.mxu1 %v3553_v12 }
 0x3e5   : > { %3179 = vmatprep.subr.bf16.mxu1 %v3554_v13 }
 0x3e8   : > { %3180 = vmatpush3.bf16.msra.mxu1 %v3555_v15  ;;  %v3099_v15 = vld [vmem:[%s4433_s2] ss:$0 sm:$0xff] }
 0x3e9   : > { %3181 = vmatprep.subr.bf16.mxu1 %v3556_v16 }
 0x3ec   : > { %3182 = vmatpush3.bf16.msra.mxu1 %v3557_v6  ;;  %v3100_v6 = vld [vmem:[%s4434_s19] ss:$0 sm:$0xff] }
 0x3ed   : > { %3275 = vmatprep.subr.bf16.mxu1 %v3736_v23 }
 0x48a   : > { %v1759_v17 = vpop.f32.mrb[12].mxu1 }
 0x48b   : > { %v3217_v18 = vpop.f32.mrb[13].mxu1  ;;  %v2132_v26 = vpack.c.bf16 %v1759_v17, %v1759_v17 }
 0x48c   : > { %v1762_v19 = vpop.f32.mrb[14].mxu1 }
 0x48d   : > { %v3218_v21 = vpop.f32.mrb[15].mxu1 }
 0x48e   : > { %v3572_v21 = vld [vmem:[%s4024_s4 + $0x30] sm:$0xff]  }
 0x492   : > { %v1860_v22 = vpop.f32.mrb[16].mxu1 }
 0x493   : > { %v2133_v24 = vpack.c.bf16 %v1860_v22, %v1860_v22  ;;  %v3229_v25 = vpop.f32.mrb[17].mxu1  ;;  %v3573_v22 = vld [vmem:[%s4024_s4 + $0x38] sm:$0xff]  }
 0x494   : > { %v1863_v27 = vpop.f32.mrb[18].mxu1 }
 0x495   : > { %v3230_v29 = vpop.f32.mrb[19].mxu1  ;;  %2367 = vmatprep.mubr.bf16.mxu0 %v2133_v24  ;;  %v3101_v24 = vld [vmem:[%s4436_s14] ss:$0 sm:$0xff] }
 0x496   : > { %2368 = vmatmul.mubr.bf16.vlgmr.msra.gmra.mrb[28].mxu0 %v2132_v26 }
 0x497   : > { %3271 = vmatprep.mubr.msk.bf16.mxu0 %vm3737_vm0, %v3736_v23  ;;  %3256 = vmatpush3.bf16.msra.mxu0 %v3558_v20 }
 0x498   : > { %3257 = vmatprep.subr.bf16.mxu0 %v3736_v23 }
 0x49a   : > { %v1961_v30 = vpop.f32.mrb[20].mxu1 }
 0x49b   : > { %v3241_v31 = vpop.f32.mrb[21].mxu1  ;;  %v2134_v39 = vpack.c.bf16 %v1961_v30, %v1961_v30  ;;  %3258 = vmatpush3.bf16.msra.mxu0 %v3559_v28 }
 0x49c   : > { %v1964_v33 = vpop.f32.mrb[22].mxu1  ;;  %3259 = vmatprep.subr.bf16.mxu0 %v3736_v23 }
 0x49d   : > { %v3242_v34 = vpop.f32.mrb[23].mxu1 }
 0x49f   : > { %3260 = vmatpush3.bf16.msra.mxu0 %v3560_v57 }
 0x4a0   : > { %3261 = vmatprep.subr.bf16.mxu0 %v3736_v23 }
 0x4a2   : > { %v2062_v35 = vpop.f32.mrb[24].mxu1 }
 0x4a3   : > { %v2135_v36 = vpack.c.bf16 %v2062_v35, %v2062_v35  ;;  %v3253_v38 = vpop.f32.mrb[25].mxu1  ;;  %3262 = vmatpush3.bf16.msra.mxu0 %v3561_v58 }
 0x4a4   : > { %v2065_v40 = vpop.f32.mrb[26].mxu1  ;;  %3263 = vmatprep.subr.bf16.mxu0 %v3736_v23 }
 0x4a5   : > { %v3254_v41 = vpop.f32.mrb[27].mxu1  ;;  %2407 = vmatprep.mubr.bf16.mxu1 %v2135_v36 }
 0x4a6   : > { %2408 = vmatmul.mubr.bf16.vlgmr.msra.gmra.mrb[28].mxu1 %v2134_v39 }
 0x4a7   : > { %3291 = vmatprep.mubr.msk.bf16.mxu1 %vm3737_vm0, %v3736_v23  ;;  %3264 = vmatpush3.bf16.msra.mxu0 %v3562_v59 }
 0x4a8   : > { %3265 = vmatprep.subr.bf16.mxu0 %v3736_v23  ;;  %3276 = vmatpush3.bf16.msra.mxu1 %v3566_v63 }
 0x4a9   : > { %3277 = vmatprep.subr.bf16.mxu1 %v3736_v23 }
 0x4ab   : > { %3266 = vmatpush3.bf16.msra.mxu0 %v3563_v60 }
 0x4ac   : > { %3267 = vmatprep.subr.bf16.mxu0 %v3736_v23  ;;  %3278 = vmatpush3.bf16.msra.mxu1 %v3567_v0  ;;  %v3123_v0 = vld [vmem:[%s4439_s30] ss:$0 sm:$0xff] (!%p3121_p8) }
 0x4ad   : > { %3279 = vmatprep.subr.bf16.mxu1 %v3736_v23 }
 0x4af   : > { %3268 = vmatpush3.bf16.msra.mxu0 %v3564_v61 }
 0x4b0   : > { %3269 = vmatprep.subr.bf16.mxu0 %v3736_v23  ;;  %3280 = vmatpush3.bf16.msra.mxu1 %v3568_v2 }
 0x4b1   : > { %3281 = vmatprep.subr.bf16.mxu1 %v3736_v23 }
 0x4b3   : > { %3270 = vmatpush3.bf16.msra.mxu0 %v3565_v62 }
 0x4b4   : > { %3282 = vmatpush3.bf16.msra.mxu1 %v3569_v3 }
 0x4b5   : > { %3283 = vmatprep.subr.bf16.mxu1 %v3736_v23 }
 0x4b8   : > { %3284 = vmatpush3.bf16.msra.mxu1 %v3570_v4 }
 0x4b9   : > { %3285 = vmatprep.subr.bf16.mxu1 %v3736_v23 }
 0x4bc   : > { %3286 = vmatpush3.bf16.msra.mxu1 %v3571_v5 }
 0x4bd   : > { %3287 = vmatprep.subr.bf16.mxu1 %v3736_v23 }
 0x4c0   : > { %3288 = vmatpush3.bf16.msra.mxu1 %v3572_v21 }
 0x4c1   : > { %3289 = vmatprep.subr.bf16.mxu1 %v3736_v23  ;;  %v3110_v23 = vld [vmem:[%s753_s28] ss:$0 sm:$0xff] }
 0x4c4   : > { %3290 = vmatpush3.bf16.msra.mxu1 %v3573_v22 }
 0x569   : > { %v3161_v42 = vpop.f32.mrb[28].mxu0 }
 0x56a   : > { %v3162_v43 = vpop.f32.mrb[29].mxu0 }
 0x56b   : > { %v3163_v44 = vadd.f32 %v3162_v43, %v3161_v42  ;;  %v3164_v45 = vpop.f32.mrb[30].mxu0 }
 0x56c   : > { %v3165_v46 = vpop.f32.mrb[31].mxu0 }
 0x56d   : > { %v2370_v47 = vadd.f32 %v3163_v44, %v3066_v1 }
 0x579   : > { %v3183_v32 = vpop.f32.mrb[28].mxu1 }
 0x57a   : > { %v3184_v14 = vpop.f32.mrb[29].mxu1 }
 0x57b   : > { %v3185_v48 = vadd.f32 %v3184_v14, %v3183_v32  ;;  %v3186_v49 = vpop.f32.mrb[30].mxu1 }
 0x57c   : > { %v3187_v51 = vpop.f32.mrb[31].mxu1  ;;  %v3119_v49 = vld [vmem:[%s756_s27] ss:$0 sm:$0xff]  ;;  %s4438_s27 = sld [smem:[#allocation26_spill]] (!%p3121_p8) }
 0x57d   : > { %v2410_v52 = vadd.f32 %v3185_v48, %v2370_v47 }
 0x57f   : > { %v2415_v50 = vadd.f32 %v3594_v53, %v2410_v52  ;;  %v3120_v52 = vld [vmem:[%s759_s3] ss:$0 sm:$0xff] }
 0x581   : > { %2418 = vadd.xlane.f32.xlu0 %v2415_v50 }
 0x582   : > { %v3122_v62 = vld [vmem:[%s4438_s27] ss:$0 sm:$0xff] (!%p3121_p8) }
 0x60e   : > { %v2419_v54 = vpop.xlane.xlu0 %2418 }
 0x60f   : > { %v2420_v37 = vmul.f32 0.03125, %v2419_v54 }
 0x611   : > { %v2421_v55 = vsub.f32 %v2415_v50, %v2420_v37  ;;  %v2425_v7 = vmul.f32 96.0, %v2420_v37 }
 0x613   : > { %v2422_v56 = vmul.f32 %v2421_v55, %v2421_v55  ;;  %v2426_v8 = vmul.f32 %v2425_v7, %v2420_v37 }
 0x615   : > { %2423 = vadd.xlane.f32.xlu1 %v2422_v56 }
 0x6a2   : > { %v2424_v9 = vpop.xlane.xlu1 %2423 }
 0x6a3   : > { %v2427_v10 = vsub.f32 %v2424_v9, %v2426_v8 }
 0x6a5   : > { %v2428_v11 = vmul.f32 0.03125, %v2427_v10 }
 0x6a7   : > { %v2429_v12 = vadd.f32 1e-05, %v2428_v11 }
 0x6a9   : > { %3590 = vrsqrt.f32 %v2429_v12 }
 0x6b3   : > { %v3591_v13 = vpop.eup %3590 }
 0x6b4   : > { %v2431_v16 = vmul.f32 %v3591_v13, %v2421_v55 }
 0x6b6   : > { %v2438_v17 = vmul.f32 %v3099_v15, %v2431_v16 }
 0x6b8   : > { %v2445_v18 = vadd.f32 %v3100_v6, %v2438_v17 }
 0x6ba   : > { %v2462_v19 = vpack.c.bf16 %v2445_v18, %v2445_v18 }
 0x6bc   : > { %3272 = vmatmul.mubr.bf16.vlgmr.msra.gmra.mrb[32].mxu0 %v2462_v19 }
 0x78f   : > { %v2552_v25 = vpop.f32.mrb[32].mxu0 }
 0x790   : > { %v2553_v26 = vadd.f32 %v3101_v24, %v2552_v25  ;;  %v3273_v27 = vpop.f32.mrb[33].mxu0 }
 0x791   : > { %v2555_v29 = vpop.f32.mrb[34].mxu0 }
 0x792   : > { %v2558_v30 = vmax.f32 %v2553_v26, 0.0  ;;  %v3274_v31 = vpop.f32.mrb[35].mxu0 }
 0x794   : > { %v2575_v33 = vpack.c.bf16 %v2558_v30, %v2558_v30 }
 0x796   : > { %3292 = vmatmul.mubr.bf16.vlgmr.msra.gmra.mrb[32].mxu1 %v2575_v33 }
 0x869   : > { %v2665_v34 = vpop.f32.mrb[32].mxu1 }
 0x86a   : > { %v2666_v35 = vadd.f32 %v3110_v23, %v2665_v34  ;;  %v3293_v36 = vpop.f32.mrb[33].mxu1 }
 0x86b   : > { %v2668_v38 = vpop.f32.mrb[34].mxu1 }
 0x86c   : > { %v3294_v39 = vpop.f32.mrb[35].mxu1  ;;  %v2671_v40 = vadd.f32 %v2666_v35, %v2445_v18 }
 0x86e   : > { %2674 = vadd.xlane.f32.xlu0 %v2671_v40 }
 0x8fb   : > { %v2675_v41 = vpop.xlane.xlu0 %2674 }
 0x8fc   : > { %v2676_v42 = vmul.f32 0.03125, %v2675_v41 }
 0x8fe   : > { %v2677_v43 = vsub.f32 %v2671_v40, %v2676_v42  ;;  %v2681_v45 = vmul.f32 96.0, %v2676_v42 }
 0x900   : > { %v2678_v44 = vmul.f32 %v2677_v43, %v2677_v43  ;;  %v2682_v46 = vmul.f32 %v2681_v45, %v2676_v42 }
 0x902   : > { %2679 = vadd.xlane.f32.xlu1 %v2678_v44 }
 0x98f   : > { %v2680_v1 = vpop.xlane.xlu1 %2679 }
 0x990   : > { %v2683_v32 = vsub.f32 %v2680_v1, %v2682_v46 }
 0x992   : > { %v2684_v14 = vmul.f32 0.03125, %v2683_v32 }
 0x994   : > { %v2685_v47 = vadd.f32 1e-05, %v2684_v14 }
 0x996   : > { %3592 = vrsqrt.f32 %v2685_v47 }
 0x9a0   : > { %v3593_v48 = vpop.eup %3592 }
 0x9a1   : > { %v2687_v51 = vmul.f32 %v3593_v48, %v2677_v43  ;;  %2706 = sbr.rel (%p3121_p8) target bundleno = 2787 (0xae3), region = 100 }
 0x9a3   : > { %v2694_v53 = vmul.f32 %v3119_v49, %v2687_v51 }
 0x9a5   : > { %v2701_v50 = vadd.f32 %v3120_v52, %v2694_v53 }
 0x9a7   : > { %2702 = vst [vmem:[#allocation2] sm:$0xff] %v2701_v50  ;;  %2709 = vadd.xlane.f32.xlu0 (!%p3121_p8), %v2701_v50 }
 0xa34   : > { %v2710_v20 = vpop.xlane.xlu0 %2709 }
 0xa35   : > { %v2711_v28 = vmul.f32 0.03125, %v2710_v20 }
 0xa37   : > { %v2712_v54 = vsub.f32 %v2701_v50, %v2711_v28  ;;  %v2716_v55 = vmul.f32 96.0, %v2711_v28 }
 0xa39   : > { %v2713_v37 = vmul.f32 %v2712_v54, %v2712_v54  ;;  %v2717_v56 = vmul.f32 %v2716_v55, %v2711_v28 }
 0xa3b   : > { %2714 = vadd.xlane.f32.xlu0 %v2713_v37 }
 0xac8   : > { %v2715_v57 = vpop.xlane.xlu0 %2714 }
 0xac9   : > { %v2718_v58 = vsub.f32 %v2715_v57, %v2717_v56 }
 0xacb   : > { %v2719_v59 = vmul.f32 0.03125, %v2718_v58 }
 0xacd   : > { %v2720_v60 = vadd.f32 1e-05, %v2719_v59 }
 0xacf   : > { %3595 = vrsqrt.f32 %v2720_v60 }
 0xad9   : > { %v3596_v61 = vpop.eup %3595 }
 0xada   : > { %v2722_v63 = vmul.f32 %v3596_v61, %v2712_v54 }
 0xadc   : > { %v2729_v2 = vmul.f32 %v3122_v62, %v2722_v63 }
 0xade   : > { %v2736_v3 = vadd.f32 %v3123_v0, %v2729_v2 }
 0xae0   : > { %v2737_v4 = vpack.c.bf16 %v2736_v3, %v2736_v3 }
 0xae2   : > { %2738 = vst [vmem:[%s4041_s9] sm:$0xf] %v2737_v4 }
 0xae3 PF: > { %s4440_s20 = sld [smem:[#allocation13_spill]]  ;;  %s4441_s21 = sld [smem:[#allocation9_spill]] }
 0xae4   : > { %s4442_s22 = sld [smem:[#allocation10_spill]]  ;;  %s4443_s23 = sld [smem:[#allocation16_spill]] }
 0xae5   : > { %s4444_s24 = sld [smem:[#allocation11_spill]]  ;;  %s4445_s25 = sld [smem:[#allocation12_spill]] }
 0xae6   : > { %s4446_s26 = sld [smem:[#allocation14_spill]]  ;;  %s4447_s27 = sld [smem:[#allocation15_spill]] }
 0xae9   : > { %s32_s28 = sadd.s32 1, %s4440_s20  }
 0xaea   : > { %p29_p2 = scmp.ge.s32.totalorder %s32_s28, 6  }
 0xaec   :  { %31 = sbr.rel (!%p29_p2) target bundleno = 19 (0x13), region = 178 }
 0xaf3   :  { %2758 = vsyncpa [#allocation4], 1 }
 0xaf4   :  { %2760 = vsyncpa [#allocation4 + $0x1], 1 }
 0xaf5   :  { %2761 = vsyncpa [#allocation6], 1 }
 0xaf6   :  { %2763 = vsyncpa [#allocation6 + $0x1], 1 }

// kernel: transformer_forward.4
= control target key start
LH: loop header
LB: loop body
LE: loop exit
PB: predicated region body
PF: predicated region fallthrough
CT: control target
= control target key end

     0   :  { %s8705_s0 = inlined_call_operand.vmem [shape: f32[2,8,128], index: 0, kind: input, shape index: {}]   ;;  %s8706_s1 = inlined_call_operand.vmem [shape: f32[8,128], index: 1, kind: input, shape index: {}]   ;;  %s8707_s2 = inlined_call_operand.vmem [shape: bf16[2,8,128], index: 2, kind: input, shape index: {}]   ;;  %s8708_s3 = inlined_call_operand.vmem [shape: bf16[2,128,1536], index: 3, kind: input, shape index: {}]   ;;  %s8709_s4 = inlined_call_operand.hbm [shape: f32[2,1,1536], index: 4, kind: input, shape index: {}]   ;;  %s8710_s5 = inlined_call_operand.hbm [shape: bf16[2,512,128], index: 5, kind: input, shape index: {}]   ;;  %s8711_s6 = inlined_call_operand.hbm [shape: f32[2,1,128], index: 6, kind: input, shape index: {}]   ;;  %s8712_s7 = inlined_call_operand.hbm [shape: f32[2,1,128], index: 7, kind: input, shape index: {}]   ;;  %s8713_s8 = inlined_call_operand.vmem [shape: f32[2,1,128], index: 8, kind: input, shape index: {}]   ;;  %s8714_s9 = inlined_call_operand.hbm [shape: bf16[2,128,512], index: 9, kind: input, shape index: {}]   ;;  %s8715_s10 = inlined_call_operand.hbm [shape: f32[2,1,512], index: 10, kind: input, shape index: {}]   ;;  %s8716_s11 = inlined_call_operand.vmem [shape: bf16[2,128,1024], index: 11, kind: input, shape index: {}]   ;;  %s8717_s12 = inlined_call_operand.vmem [shape: f32[2,1,1024], index: 12, kind: input, shape index: {}]   ;;  %s8718_s13 = inlined_call_operand.hbm [shape: bf16[2,512,128], index: 13, kind: input, shape index: {}]   ;;  %s8719_s14 = inlined_call_operand.hbm [shape: f32[2,1,128], index: 14, kind: input, shape index: {}]   ;;  %s8720_s15 = inlined_call_operand.hbm [shape: f32[2,1,128], index: 15, kind: input, shape index: {}]   ;;  %s8721_s16 = inlined_call_operand.hbm [shape: f32[2,1,128], index: 16, kind: input, shape index: {}]   ;;  %s8722_s17 = inlined_call_operand.hbm [shape: bf16[2,128,128], index: 17, kind: input, shape index: {}]   ;;  %s8723_s18 = inlined_call_operand.hbm [shape: f32[2,1,128], index: 18, kind: input, shape index: {}]   ;;  %s8724_s19 = inlined_call_operand.hbm [shape: bf16[2,128,128], index: 19, kind: input, shape index: {}]   ;;  %s8725_s20 = inlined_call_operand.hbm [shape: f32[2,1,128], index: 20, kind: input, shape index: {}]   ;;  %s8726_s21 = inlined_call_operand.hbm [shape: f32[2,1,128], index: 21, kind: input, shape index: {}]   ;;  %s8727_s22 = inlined_call_operand.hbm [shape: f32[2,1,128], index: 22, kind: input, shape index: {}]   ;;  %s8728_s23 = inlined_call_operand.hbm [shape: f32[1,128], index: 23, kind: input, shape index: {}]   ;;  %s8729_s24 = inlined_call_operand.hbm [shape: f32[1,128], index: 24, kind: input, shape index: {}]   ;;  %s8730_s25 = inlined_call_operand.vmem [shape: bf16[2,8,128], index: 25, kind: output, shape index: {}]  }
   0x1   :  { %8775 = sst [smem:[#allocation57_spill]] %s8705_s0 }
   0x2   :  { %8776 = sst [smem:[#allocation58_spill]] %s8706_s1 }
   0x3   :  { %8777 = sst [smem:[#allocation59_spill]] %s8707_s2 }
   0x4   :  { %8778 = sst [smem:[#allocation60_spill]] %s8708_s3 }
   0x5   :  { %8779 = sst [smem:[#allocation61_spill]] %s8709_s4 }
   0x6   :  { %8780 = sst [smem:[#allocation62_spill]] %s8710_s5 }
   0x7   :  { %8781 = sst [smem:[#allocation63_spill]] %s8711_s6 }
   0x8   :  { %8782 = sst [smem:[#allocation64_spill]] %s8712_s7 }
   0x9   :  { %8783 = sst [smem:[#allocation65_spill]] %s8713_s8 }
   0xa   :  { %8784 = sst [smem:[#allocation66_spill]] %s8714_s9 }
   0xb   :  { %8785 = sst [smem:[#allocation67_spill]] %s8715_s10 }
   0xc   :  { %8786 = sst [smem:[#allocation68_spill]] %s8716_s11 }
   0xd   :  { %8787 = sst [smem:[#allocation69_spill]] %s8717_s12 }
   0xe   :  { %8788 = sst [smem:[#allocation70_spill]] %s8718_s13 }
   0xf   :  { %8789 = sst [smem:[#allocation71_spill]] %s8719_s14 }
  0x10   :  { %8790 = sst [smem:[#allocation72_spill]] %s8720_s15 }
  0x11   :  { %8791 = sst [smem:[#allocation73_spill]] %s8721_s16 }
  0x12   :  { %8792 = sst [smem:[#allocation74_spill]] %s8722_s17 }
  0x13   :  { %8793 = sst [smem:[#allocation75_spill]] %s8723_s18 }
  0x14   :  { %8794 = sst [smem:[#allocation76_spill]] %s8724_s19 }
  0x15   :  { %8795 = sst [smem:[#allocation77_spill]] %s8725_s20 }
  0x16   :  { %8796 = sst [smem:[#allocation78_spill]] %s8726_s21 }
  0x17   :  { %8797 = sst [smem:[#allocation79_spill]] %s8727_s22 }
  0x18   :  { %8798 = sst [smem:[#allocation80_spill]] %s8728_s23 }
  0x19   :  { %8799 = sst [smem:[#allocation81_spill]] %s8729_s24 }
  0x1a   :  { %8800 = sst [smem:[#allocation82_spill]] %s8730_s25 }
  0x1b   :  { %30 = vsyncpa [#allocation4], 0 }
  0x1c   :  { %32 = vsyncpa [#allocation4 + $0x1], 0 }
  0x1d   :  { %33 = vsyncpa [#allocation6], 0 }
  0x1e   :  { %35 = vsyncpa [#allocation6 + $0x1], 0 }
  0x1f   :  { %36 = vsyncpa [#allocation9], 0 }
  0x20   :  { %38 = vsyncpa [#allocation9 + $0x1], 0 }
  0x21   :  { %39 = vsyncpa [#allocation12], 0 }
  0x22   :  { %41 = vsyncpa [#allocation12 + $0x1], 0 }
  0x23   :  { %42 = vsyncpa [#allocation15], 0 }
  0x24   :  { %44 = vsyncpa [#allocation15 + $0x1], 0 }
  0x25   :  { %45 = vsyncpa [#allocation18], 0 }
  0x26   :  { %47 = vsyncpa [#allocation18 + $0x1], 0 }
  0x27   :  { %48 = vsyncpa [#allocation21], 0 }
  0x28   :  { %50 = vsyncpa [#allocation21 + $0x1], 0 }
  0x29   :  { %51 = vsyncpa [#allocation24], 0 }
  0x2a   :  { %53 = vsyncpa [#allocation24 + $0x1], 0 }
  0x2b   :  { %54 = vsyncpa [#allocation27], 0 }
  0x2c   :  { %56 = vsyncpa [#allocation27 + $0x1], 0 }
  0x2d   :  { %57 = vsyncpa [#allocation30], 0  ;;  %s7387_s29 = smov 0   ;;  %s7389_s2 = smov 0  }
  0x2e   :  { %s7391_s6 = smov 0   ;;  %s7393_s30 = smov 0  }
  0x2f   :  { %s7395_s7 = smov 0   ;;  %s7397_s3 = smov 0  }
  0x30   :  { %s7399_s26 = smov 0   ;;  %s7401_s1 = smov 0  }
  0x31 LB: > { %8801 = sst [smem:[#allocation42_spill]] %s7206_s2  ;;  %s8736_s8 = sadd.s32 4294967295, %s7230_s1   ;;  %s7230_s1 = sphi %s7401_s1, %s63_s1   ;;  %s7226_s26 = sphi %s7399_s26, %s8889_s26   ;;  %s7222_s3 = sphi %s7397_s3, %s8888_s3   ;;  %s7218_s7 = sphi %s7395_s7, %s8887_s7   ;;  %s7214_s30 = sphi %s7393_s30, %s8886_s30   ;;  %s7210_s6 = sphi %s7391_s6, %s8885_s6   ;;  %s7206_s2 = sphi %s7389_s2, %s8884_s2   ;;  %s7202_s29 = sphi %s7387_s29, %s8883_s29  }
  0x32   : > { %8802 = sst [smem:[#allocation43_spill]] %s7210_s6  ;;  %s72_s27 = sadd.s32 1, %s7222_s3 }
  0x33   : > { %8803 = sst [smem:[#allocation44_spill]] %s7214_s30  ;;  %p73_p0 = scmp.ge.s32.totalorder %s72_s27, 2 }
  0x34   : > { %8804 = sst [smem:[#allocation45_spill]] %s7218_s7  ;;  %s75_s4 = sadd.s32 1, %s7226_s26 }
  0x35   : > { %8805 = sst [smem:[#allocation46_spill]] %s7222_s3  ;;  %s181_s28 = sadd.s32 1, %s7210_s6 }
  0x36   : > { %8806 = sst [smem:[#allocation47_spill]] %s7226_s26  ;;  %p188_p1 = scmp.ne.s32.totalorder %s7210_s6, %s7206_s2 }
  0x37   : > { %8807 = sst [smem:[#allocation48_spill]] %s7230_s1  ;;  %s8891_s27 = smov (%p73_p0, %s72_s27), 0 }
  0x38   : > { %8808 = sst [smem:[#allocation49_spill]] %s8891_s27  ;;  %s8893_s4 = smov (!%p73_p0, %s75_s4), %s7226_s26 }
  0x39   : > { %s178_s9 = ssub.s32 %s7222_s3, %s8891_s27  ;;  %p189_p2 = scmp.eq.s32.totalorder %s7230_s1, 0 }
  0x3a   : > { %p77_p3 = scmp.ge.s32.totalorder %s8893_s4, 2  ;;  %p179_p4 = scmp.eq.s32.totalorder %s178_s9, 0 }
  0x3b   : > { %p7437_p5 = por %p189_p2, %p188_p1  ;;  %p194_p6 = scmp.ne.s32.totalorder %s7206_s2, %s7202_s29 }
  0x3c   : > { %s8895_s4 = smov (%p77_p3, %s8893_s4), 0  ;;  %p7449_p7 = scmp.eq.s32.totalorder %s8736_s8, 0 }
  0x3d   : > { %s8809_s5 = scalar_select %p7437_p5, 1, 0 }
  0x3e   : > { %8810 = sst [smem:[#allocation50_spill]] %s8895_s4  ;;  %p5554_p8 = scmp.ge.s32.totalorder %s7230_s1, 1 }
  0x3f   : > { %s7445_s0 = scalar_select %p179_p4, %s7210_s6, %s181_s28  }
  0x40   : > { %s8812_s25 = scalar_select %p7449_p7, 1, 0 }
  0x41   : > { %8811 = sst [smem:[#allocation51_spill]] %s7445_s0  ;;  %p741_p9 = scmp.lt.s32.totalorder %s7230_s1, 5 }
  0x42   : > { %8813 = sst [smem:[#allocation52_spill]] %s8812_s25  ;;  %p7457_p10 = por %p7449_p7, %p194_p6 }
  0x43   : > { %p7461_p11 = pnand %p5554_p8, %p741_p9  ;;  %s7232_s28 = smov [#allocation28]  }
  0x44   : > { %s8814_s9 = scalar_select %p7457_p10, 1, 0 }
  0x45   : > { %s8816_s29 = scalar_select %p7461_p11, 1, 0 }
  0x46   : > { %8815 = sst [smem:[#allocation53_spill]] %s8814_s9  ;;  %s757_s4 = sshll.u32 %s7232_s28, 4  ;;  %s758_s4 = int_to_ptr.vmem [resolvable:$true] %s757_s4 }
  0x47   : > { %8817 = sst [smem:[#allocation54_spill]] %s8816_s29  ;;  %p6223_p12 = pneg %p7461_p11 }
  0x48   : > { %s7233_s8 = smov [#allocation29]   ;;  %s8819_s23 = sld [smem:[#allocation80_spill]] }
  0x49   : > { %s768_s27 = sshll.u32 %s7233_s8, 4  ;;  %p7469_p13 = pnand %p6223_p12, %p7449_p7  ;;  %s7473_s27 = int_to_ptr.vmem [resolvable:$true] %s768_s27 }
  0x4b   : > { %p6622_p1 = pneg %p7469_p13 }
  0x4e   : > { %s6620_s11 = scalar_lea.hbm %s8819_s23, 16 }
  0x4f   : > { %p6621_p0 = scmp.ne.s32.totalorder %s8819_s23, %s6620_s11  ;;  %p6627_p4 = scmp.lt.u32.totalorder %s6620_s11, %s8819_s23 }
  0x51   : > { %p6623_p2 = pnand %p6622_p1, %p6621_p0 }
  0x53   : > { %p6624_p3 = pneg %p6623_p2 }
  0x55   : > { %p6629_p6 = pnand %p6627_p4, %p6624_p3 }
  0x57   : > { %6632 = shalt.err (!%p6629_p6)
}
  0x58   : > { %s6633_s25 = scalar_lea.vmem %s758_s4, 16  ;;  %s6640_s12 = scalar_lea.vmem %s758_s4, 32 }
  0x59   : > { %p6634_p8 = scmp.ne.s32.totalorder %s758_s4, %s6633_s25  ;;  %p6641_p7 = scmp.lt.s32.totalorder %s758_s4, %s758_s4 }
  0x5a   : > { %p6642_p10 = scmp.lt.s32.totalorder %s6640_s12, %s6633_s25 }
  0x5b   : > { %p6636_p9 = pnand %p6634_p8, %p6622_p1 }
  0x5c   : > { %p6643_p11 = por %p6642_p10, %p6641_p7 }
  0x5d   : > { %p6637_p12 = pneg %p6636_p9 }
  0x5f   : > { %p6644_p5 = pnand %p6643_p11, %p6637_p12 }
  0x61   : > { %6647 = shalt.err (!%p6644_p5)
}
  0x62   : > { %6226 = dma.hbm_to_vmem [thread:$0]  (!%p7469_p13), %s8819_s23, 16, %s758_s4, [#allocation27]  }
  0x63   : > { %s8820_s24 = sld [smem:[#allocation81_spill]] }
  0x69   : > { %s6648_s28 = scalar_lea.hbm %s8820_s24, 16 }
  0x6a   : > { %p6649_p0 = scmp.ne.s32.totalorder %s8820_s24, %s6648_s28  ;;  %p6655_p5 = scmp.lt.u32.totalorder %s6648_s28, %s8820_s24 }
  0x6c   : > { %p6651_p7 = pnand %p6649_p0, %p6622_p1 }
  0x6e   : > { %p6652_p10 = pneg %p6651_p7 }
  0x70   : > { %p6657_p11 = pnand %p6655_p5, %p6652_p10 }
  0x72   : > { %6660 = shalt.err (!%p6657_p11)
}
  0x73   : > { %s6661_s4 = scalar_lea.vmem %s7473_s27, 16  ;;  %s6668_s9 = scalar_lea.vmem %s7473_s27, 32 }
  0x74   : > { %p6662_p2 = scmp.ne.s32.totalorder %s7473_s27, %s6661_s4  ;;  %p6669_p6 = scmp.lt.s32.totalorder %s7473_s27, %s7473_s27 }
  0x75   : > { %p6670_p8 = scmp.lt.s32.totalorder %s6668_s9, %s6661_s4 }
  0x76   : > { %p6664_p3 = pnand %p6662_p2, %p6622_p1 }
  0x77   : > { %p6671_p9 = por %p6670_p8, %p6669_p6 }
  0x78   : > { %p6665_p4 = pneg %p6664_p3 }
  0x7a   : > { %p6672_p12 = pnand %p6671_p9, %p6665_p4 }
  0x7c   : > { %6675 = shalt.err (!%p6672_p12)
}
  0x7d   : > { %6229 = dma.hbm_to_vmem [thread:$0]  (!%p7469_p13), %s8820_s24, 16, %s7473_s27, [#allocation30]  }
  0x7e   : > { %p5557_p0 = scmp.ge.s32.totalorder %s7230_s1, 4 }
  0x7f   : > { %s7525_s11 = sand.u32 (!%p5557_p0), 1, %s7210_s6   ;;  %s7528_s0 = sand.u32 (!%p5557_p0), 1, %s7230_s1  }
  0x80   : > { %775 = sbr.rel (%p5557_p0) target bundleno = 578 (0x242), region = 28  ;;  %s7531_s26 = sshll.u32 (!%p5557_p0), %s7525_s11, 8 }
  0x81   : > { %s7534_s28 = sshll.u32 (!%p5557_p0), %s7222_s3, 12  ;;  %s8821_s25 = sld [smem:[#allocation62_spill]] (!%p5557_p0) }
  0x82   : > { %s824_s4 = scalar_lea.vmem (!%p5557_p0), [#allocation5], %s7531_s26  ;;  %s7546_s30 = sshll.u32 (!%p5557_p0), %s7222_s3, 4 }
  0x83   : > { %s831_s9 = sshll.u32 (!%p5557_p0), %s824_s4, 4  ;;  %s8765_s7 = scalar_lea.sflag (!%p5557_p0), [#allocation6], %s7528_s0  ;;  %s7543_s9 = int_to_ptr.vmem [resolvable:$true] %s831_s9 }
  0x84   : > { %p8822_p1 = scmp.ne.s32.totalorder (!%p5557_p0), %s8809_s5, 0 }
  0x87   : > { %s7540_s12 = scalar_lea.hbm %s8821_s25, %s7534_s28  ;;  %s6680_s8 = scalar_lea.hbm %s8821_s25, 8192 }
  0x88   : > { %s6676_s23 = scalar_lea.hbm %s7540_s12, 4096  ;;  %p6681_p5 = scmp.lt.u32.totalorder %s7540_s12, %s8821_s25 }
  0x89   : > { %p6677_p13 = scmp.ne.s32.totalorder %s7540_s12, %s6676_s23  ;;  %p6682_p11 = scmp.lt.u32.totalorder %s6680_s8, %s6676_s23 }
  0x8a   : > { %p6684_p3 = scmp.lt.u32.totalorder %s6676_s23, %s7540_s12 }
  0x8b   : > { %p6678_p7 = pnand %p6677_p13, %p8822_p1  ;;  %p6683_p2 = por %p6682_p11, %p6681_p5 }
  0x8d   : > { %p6679_p10 = pneg %p6678_p7  ;;  %p6685_p4 = por %p6684_p3, %p6683_p2 }
  0x8f   : > { %p6686_p6 = pnand %p6685_p4, %p6679_p10 }
  0x91   : > { %6689 = shalt.err (!%p6686_p6)
}
  0x92   : > { %s6690_s4 = scalar_lea.vmem %s7543_s9, 4096  ;;  %s7234_s24 = smov [#allocation5]  }
  0x93   : > { %p6691_p8 = scmp.ne.s32.totalorder %s7543_s9, %s6690_s4  ;;  %s6694_s27 = sshll.u32 %s7234_s24, 4  ;;  %s6695_s27 = int_to_ptr.vmem [resolvable:$false] %s6694_s27 }
  0x94   : > { %s6696_s6 = scalar_lea.vmem %s6695_s27, 8192  ;;  %p6697_p0 = scmp.lt.s32.totalorder %s7543_s9, %s6695_s27 }
  0x95   : > { %p6692_p9 = pnand %p6691_p8, %p8822_p1  ;;  %p6698_p13 = scmp.lt.s32.totalorder %s6696_s6, %s6690_s4 }
  0x97   : > { %p6693_p12 = pneg %p6692_p9  ;;  %p6699_p7 = por %p6698_p13, %p6697_p0 }
  0x99   : > { %p6700_p5 = pnand %p6699_p7, %p6693_p12 }
  0x9b   : > { %6703 = shalt.err (!%p6700_p5)
}
  0x9c   : > { %s8756_s23 = smov 64   ;;  %s8758_s1 = smov 4  }
  0x9d   : > { %6188 = dma.hbm_to_vmem [thread:$0]  (%p8822_p1), %s7540_s12, 4096, %s7543_s9, %s8765_s7, %s8756_s23, %s8756_s23, %s8758_s1  }
  0x9e   : > { %s8823_s24 = sld [smem:[#allocation64_spill]]  ;;  %s861_s6 = scalar_lea.vmem [#allocation8], %s7525_s11 }
  0x9f   : > { %s868_s25 = sshll.u32 %s861_s6, 4  ;;  %s8760_s2 = scalar_lea.sflag [#allocation9], %s7528_s0  ;;  %s869_s25 = int_to_ptr.vmem [resolvable:$true] %s868_s25 }
  0xa4   : > { %s7579_s27 = scalar_lea.hbm %s8823_s24, %s7546_s30  ;;  %s6708_s9 = scalar_lea.hbm %s8823_s24, 32 }
  0xa5   : > { %s6704_s29 = scalar_lea.hbm %s7579_s27, 16  ;;  %p6709_p3 = scmp.lt.u32.totalorder %s7579_s27, %s8823_s24 }
  0xa6   : > { %p6705_p10 = scmp.ne.s32.totalorder %s7579_s27, %s6704_s29  ;;  %p6710_p4 = scmp.lt.u32.totalorder %s6708_s9, %s6704_s29 }
  0xa7   : > { %p6712_p8 = scmp.lt.u32.totalorder %s6704_s29, %s7579_s27 }
  0xa8   : > { %p6706_p11 = pnand %p6705_p10, %p8822_p1  ;;  %p6711_p6 = por %p6710_p4, %p6709_p3 }
  0xaa   : > { %p6707_p2 = pneg %p6706_p11  ;;  %p6713_p9 = por %p6712_p8, %p6711_p6 }
  0xac   : > { %p6714_p12 = pnand %p6713_p9, %p6707_p2 }
  0xae   : > { %6717 = shalt.err (!%p6714_p12)
}
  0xaf   : > { %s6718_s6 = scalar_lea.vmem %s869_s25, 16  ;;  %s7237_s23 = smov [#allocation8]  }
  0xb0   : > { %p6719_p0 = scmp.ne.s32.totalorder %s869_s25, %s6718_s6  ;;  %s6722_s1 = sshll.u32 %s7237_s23, 4  ;;  %s6723_s1 = int_to_ptr.vmem [resolvable:$false] %s6722_s1 }
  0xb1   : > { %s6724_s22 = scalar_lea.vmem %s6723_s1, 32  ;;  %p6725_p5 = scmp.lt.s32.totalorder %s869_s25, %s6723_s1 }
  0xb2   : > { %p6720_p13 = pnand %p6719_p0, %p8822_p1  ;;  %p6726_p10 = scmp.lt.s32.totalorder %s6724_s22, %s6718_s6 }
  0xb4   : > { %p6721_p7 = pneg %p6720_p13  ;;  %p6727_p11 = por %p6726_p10, %p6725_p5 }
  0xb6   : > { %p6728_p3 = pnand %p6727_p11, %p6721_p7 }
  0xb8   : > { %6731 = shalt.err (!%p6728_p3)
}
  0xb9   : > { %6190 = dma.hbm_to_vmem [thread:$0]  (%p8822_p1), %s7579_s27, 16, %s869_s25, %s8760_s2  }
  0xba   : > { %s5567_s29 = sshll.u32 %s7525_s11, 2  ;;  %s5900_s12 = sshll.u32 %s7222_s3, 6 }
  0xbb   : > { %s8824_s10 = sld [smem:[#allocation67_spill]]  ;;  %s906_s8 = scalar_lea.vmem [#allocation11], %s5567_s29 }
  0xbc   : > { %s914_s4 = sshll.u32 %s906_s8, 4  ;;  %s8761_s6 = scalar_lea.sflag [#allocation12], %s7528_s0  ;;  %s915_s4 = int_to_ptr.vmem [resolvable:$true] %s914_s4 }
  0xc1   : > { %s7607_s1 = scalar_lea.hbm %s8824_s10, %s5900_s12  ;;  %s6736_s2 = scalar_lea.hbm %s8824_s10, 128 }
  0xc2   : > { %s6732_s22 = scalar_lea.hbm %s7607_s1, 64  ;;  %p6737_p8 = scmp.lt.u32.totalorder %s7607_s1, %s8824_s10 }
  0xc3   : > { %p6733_p2 = scmp.ne.s32.totalorder %s7607_s1, %s6732_s22  ;;  %p6738_p9 = scmp.lt.u32.totalorder %s6736_s2, %s6732_s22 }
  0xc4   : > { %p6740_p0 = scmp.lt.u32.totalorder %s6732_s22, %s7607_s1 }
  0xc5   : > { %p6734_p4 = pnand %p6733_p2, %p8822_p1  ;;  %p6739_p12 = por %p6738_p9, %p6737_p8 }
  0xc7   : > { %p6735_p6 = pneg %p6734_p4  ;;  %p6741_p13 = por %p6740_p0, %p6739_p12 }
  0xc9   : > { %p6742_p7 = pnand %p6741_p13, %p6735_p6 }
  0xcb   : > { %6745 = shalt.err (!%p6742_p7)
}
  0xcc   : > { %s6746_s29 = scalar_lea.vmem %s915_s4, 64  ;;  %s7238_s9 = smov [#allocation11]  }
  0xcd   : > { %p6747_p5 = scmp.ne.s32.totalorder %s915_s4, %s6746_s29  ;;  %s6750_s8 = sshll.u32 %s7238_s9, 4  ;;  %s6751_s8 = int_to_ptr.vmem [resolvable:$false] %s6750_s8 }
  0xce   : > { %s6752_s25 = scalar_lea.vmem %s6751_s8, 128  ;;  %p6753_p3 = scmp.lt.s32.totalorder %s915_s4, %s6751_s8 }
  0xcf   : > { %p6748_p10 = pnand %p6747_p5, %p8822_p1  ;;  %p6754_p2 = scmp.lt.s32.totalorder %s6752_s25, %s6746_s29 }
  0xd1   : > { %p6749_p11 = pneg %p6748_p10  ;;  %p6755_p4 = por %p6754_p2, %p6753_p3 }
  0xd3   : > { %p6756_p8 = pnand %p6755_p4, %p6749_p11 }
  0xd5   : > { %6759 = shalt.err (!%p6756_p8)
}
  0xd6   : > { %6192 = dma.hbm_to_vmem [thread:$0]  (%p8822_p1), %s7607_s1, 64, %s915_s4, %s8761_s6  }
  0xd7   : > { %s8825_s14 = sld [smem:[#allocation71_spill]]  ;;  %s960_s23 = scalar_lea.vmem [#allocation14], %s7525_s11 }
  0xd8   : > { %s967_s12 = sshll.u32 %s960_s23, 4  ;;  %s8762_s29 = scalar_lea.sflag [#allocation15], %s7528_s0  ;;  %s968_s12 = int_to_ptr.vmem [resolvable:$true] %s967_s12 }
  0xdd   : > { %s7633_s27 = scalar_lea.hbm %s8825_s14, %s7546_s30  ;;  %s6764_s4 = scalar_lea.hbm %s8825_s14, 32 }
  0xde   : > { %s6760_s9 = scalar_lea.hbm %s7633_s27, 16  ;;  %p6765_p0 = scmp.lt.u32.totalorder %s7633_s27, %s8825_s14 }
  0xdf   : > { %p6761_p6 = scmp.ne.s32.totalorder %s7633_s27, %s6760_s9  ;;  %p6766_p13 = scmp.lt.u32.totalorder %s6764_s4, %s6760_s9 }
  0xe0   : > { %p6768_p5 = scmp.lt.u32.totalorder %s6760_s9, %s7633_s27 }
  0xe1   : > { %p6762_p9 = pnand %p6761_p6, %p8822_p1  ;;  %p6767_p7 = por %p6766_p13, %p6765_p0 }
  0xe3   : > { %p6763_p12 = pneg %p6762_p9  ;;  %p6769_p10 = por %p6768_p5, %p6767_p7 }
  0xe5   : > { %p6770_p11 = pnand %p6769_p10, %p6763_p12 }
  0xe7   : > { %6773 = shalt.err (!%p6770_p11)
}
  0xe8   : > { %s6774_s22 = scalar_lea.vmem %s968_s12, 16  ;;  %s7239_s23 = smov [#allocation14]  }
  0xe9   : > { %p6775_p3 = scmp.ne.s32.totalorder %s968_s12, %s6774_s22  ;;  %s6778_s6 = sshll.u32 %s7239_s23, 4  ;;  %s6779_s6 = int_to_ptr.vmem [resolvable:$false] %s6778_s6 }
  0xea   : > { %s6780_s8 = scalar_lea.vmem %s6779_s6, 32  ;;  %p6781_p8 = scmp.lt.s32.totalorder %s968_s12, %s6779_s6 }
  0xeb   : > { %p6776_p2 = pnand %p6775_p3, %p8822_p1  ;;  %p6782_p6 = scmp.lt.s32.totalorder %s6780_s8, %s6774_s22 }
  0xed   : > { %p6777_p4 = pneg %p6776_p2  ;;  %p6783_p9 = por %p6782_p6, %p6781_p8 }
  0xef   : > { %p6784_p0 = pnand %p6783_p9, %p6777_p4 }
  0xf1   : > { %6787 = shalt.err (!%p6784_p0)
}
  0xf2   : > { %6194 = dma.hbm_to_vmem [thread:$0]  (%p8822_p1), %s7633_s27, 16, %s968_s12, %s8762_s29  }
  0xf3   : > { %s8826_s16 = sld [smem:[#allocation73_spill]]  ;;  %s994_s6 = scalar_lea.vmem [#allocation17], %s7525_s11 }
  0xf4   : > { %s1001_s25 = sshll.u32 %s994_s6, 4  ;;  %s8763_s2 = scalar_lea.sflag [#allocation18], %s7528_s0  ;;  %s1002_s25 = int_to_ptr.vmem [resolvable:$true] %s1001_s25 }
  0xf9   : > { %s7660_s4 = scalar_lea.hbm %s8826_s16, %s7546_s30  ;;  %s6792_s12 = scalar_lea.hbm %s8826_s16, 32 }
  0xfa   : > { %s6788_s22 = scalar_lea.hbm %s7660_s4, 16  ;;  %p6793_p5 = scmp.lt.u32.totalorder %s7660_s4, %s8826_s16 }
  0xfb   : > { %p6789_p12 = scmp.ne.s32.totalorder %s7660_s4, %s6788_s22  ;;  %p6794_p10 = scmp.lt.u32.totalorder %s6792_s12, %s6788_s22 }
  0xfc   : > { %p6796_p3 = scmp.lt.u32.totalorder %s6788_s22, %s7660_s4 }
  0xfd   : > { %p6790_p13 = pnand %p6789_p12, %p8822_p1  ;;  %p6795_p11 = por %p6794_p10, %p6793_p5 }
  0xff   : > { %p6791_p7 = pneg %p6790_p13  ;;  %p6797_p2 = por %p6796_p3, %p6795_p11 }
 0x101   : > { %p6798_p4 = pnand %p6797_p2, %p6791_p7 }
 0x103   : > { %6801 = shalt.err (!%p6798_p4)
}
 0x104   : > { %s6802_s1 = scalar_lea.vmem %s1002_s25, 16  ;;  %s7240_s6 = smov [#allocation17]  }
 0x105   : > { %p6803_p8 = scmp.ne.s32.totalorder %s1002_s25, %s6802_s1  ;;  %s6806_s29 = sshll.u32 %s7240_s6, 4  ;;  %s6807_s29 = int_to_ptr.vmem [resolvable:$false] %s6806_s29 }
 0x106   : > { %s6808_s23 = scalar_lea.vmem %s6807_s29, 32  ;;  %p6809_p0 = scmp.lt.s32.totalorder %s1002_s25, %s6807_s29 }
 0x107   : > { %p6804_p6 = pnand %p6803_p8, %p8822_p1  ;;  %p6810_p12 = scmp.lt.s32.totalorder %s6808_s23, %s6802_s1 }
 0x109   : > { %p6805_p9 = pneg %p6804_p6  ;;  %p6811_p13 = por %p6810_p12, %p6809_p0 }
 0x10b   : > { %p6812_p5 = pnand %p6811_p13, %p6805_p9 }
 0x10d   : > { %6815 = shalt.err (!%p6812_p5)
}
 0x10e   : > { %6196 = dma.hbm_to_vmem [thread:$0]  (%p8822_p1), %s7660_s4, 16, %s1002_s25, %s8763_s2  }
 0x10f   : > { %s8827_s18 = sld [smem:[#allocation75_spill]]  ;;  %s1032_s29 = scalar_lea.vmem [#allocation20], %s7525_s11 }
 0x110   : > { %s1039_s8 = sshll.u32 %s1032_s29, 4  ;;  %s8764_s9 = scalar_lea.sflag [#allocation21], %s7528_s0  ;;  %s1040_s8 = int_to_ptr.vmem [resolvable:$true] %s1039_s8 }
 0x115   : > { %s7687_s12 = scalar_lea.hbm %s8827_s18, %s7546_s30  ;;  %s6820_s25 = scalar_lea.hbm %s8827_s18, 32 }
 0x116   : > { %s6816_s1 = scalar_lea.hbm %s7687_s12, 16  ;;  %p6821_p3 = scmp.lt.u32.totalorder %s7687_s12, %s8827_s18 }
 0x117   : > { %p6817_p7 = scmp.ne.s32.totalorder %s7687_s12, %s6816_s1  ;;  %p6822_p2 = scmp.lt.u32.totalorder %s6820_s25, %s6816_s1 }
 0x118   : > { %p6824_p8 = scmp.lt.u32.totalorder %s6816_s1, %s7687_s12 }
 0x119   : > { %p6818_p10 = pnand %p6817_p7, %p8822_p1  ;;  %p6823_p4 = por %p6822_p2, %p6821_p3 }
 0x11b   : > { %p6819_p11 = pneg %p6818_p10  ;;  %p6825_p6 = por %p6824_p8, %p6823_p4 }
 0x11d   : > { %p6826_p9 = pnand %p6825_p6, %p6819_p11 }
 0x11f   : > { %6829 = shalt.err (!%p6826_p9)
}
 0x120   : > { %s6830_s27 = scalar_lea.vmem %s1040_s8, 16  ;;  %s7241_s29 = smov [#allocation20]  }
 0x121   : > { %p6831_p0 = scmp.ne.s32.totalorder %s1040_s8, %s6830_s27  ;;  %s6834_s2 = sshll.u32 %s7241_s29, 4  ;;  %s6835_s2 = int_to_ptr.vmem [resolvable:$false] %s6834_s2 }
 0x122   : > { %s6836_s6 = scalar_lea.vmem %s6835_s2, 32  ;;  %p6837_p5 = scmp.lt.s32.totalorder %s1040_s8, %s6835_s2 }
 0x123   : > { %p6832_p12 = pnand %p6831_p0, %p8822_p1  ;;  %p6838_p7 = scmp.lt.s32.totalorder %s6836_s6, %s6830_s27 }
 0x125   : > { %p6833_p13 = pneg %p6832_p12  ;;  %p6839_p10 = por %p6838_p7, %p6837_p5 }
 0x127   : > { %p6840_p2 = pnand %p6839_p10, %p6833_p13 }
 0x129   : > { %6843 = shalt.err (!%p6840_p2)
}
 0x12a   : > { %6198 = dma.hbm_to_vmem [thread:$0]  (%p8822_p1), %s7687_s12, 16, %s1040_s8, %s8764_s9  }
 0x12b   : > { %s8828_s20 = sld [smem:[#allocation77_spill]]  ;;  %s1070_s2 = scalar_lea.vmem [#allocation23], %s7525_s11 }
 0x12c   : > { %s1077_s23 = sshll.u32 %s1070_s2, 4  ;;  %s6179_s22 = smul.u32 12, %s7525_s11  ;;  %s7717_s23 = int_to_ptr.vmem [resolvable:$true] %s1077_s23 }
 0x12d   : > { %s8766_s27 = scalar_lea.sflag [#allocation24], %s7528_s0 }
 0x131   : > { %s7714_s25 = scalar_lea.hbm %s8828_s20, %s7546_s30  ;;  %s6848_s6 = scalar_lea.hbm %s8828_s20, 32 }
 0x132   : > { %s6844_s29 = scalar_lea.hbm %s7714_s25, 16  ;;  %p6849_p8 = scmp.lt.u32.totalorder %s7714_s25, %s8828_s20 }
 0x133   : > { %p6845_p11 = scmp.ne.s32.totalorder %s7714_s25, %s6844_s29  ;;  %p6850_p6 = scmp.lt.u32.totalorder %s6848_s6, %s6844_s29 }
 0x134   : > { %p6852_p0 = scmp.lt.u32.totalorder %s6844_s29, %s7714_s25 }
 0x135   : > { %p6846_p3 = pnand %p6845_p11, %p8822_p1  ;;  %p6851_p9 = por %p6850_p6, %p6849_p8 }
 0x137   : > { %p6847_p4 = pneg %p6846_p3  ;;  %p6853_p12 = por %p6852_p0, %p6851_p9 }
 0x139   : > { %p6854_p13 = pnand %p6853_p12, %p6847_p4 }
 0x13b   : > { %6857 = shalt.err (!%p6854_p13)
}
 0x13c   : > { %s6858_s2 = scalar_lea.vmem %s7717_s23, 16  ;;  %s7242_s12 = smov [#allocation23]  }
 0x13d   : > { %p6859_p5 = scmp.ne.s32.totalorder %s7717_s23, %s6858_s2  ;;  %s6862_s8 = sshll.u32 %s7242_s12, 4  ;;  %s6863_s8 = int_to_ptr.vmem [resolvable:$false] %s6862_s8 }
 0x13e   : > { %s6864_s1 = scalar_lea.vmem %s6863_s8, 32  ;;  %p6865_p2 = scmp.lt.s32.totalorder %s7717_s23, %s6863_s8 }
 0x13f   : > { %p6860_p7 = pnand %p6859_p5, %p8822_p1  ;;  %p6866_p11 = scmp.lt.s32.totalorder %s6864_s1, %s6858_s2 }
 0x141   : > { %p6861_p10 = pneg %p6860_p7  ;;  %p6867_p3 = por %p6866_p11, %p6865_p2 }
 0x143   : > { %p6868_p8 = pnand %p6867_p3, %p6861_p10 }
 0x145   : > { %6871 = shalt.err (!%p6868_p8)
}
 0x146   : > { %6200 = dma.hbm_to_vmem [thread:$0]  (%p8822_p1), %s7714_s25, 16, %s7717_s23, %s8766_s27  }
 0x147   : > { %s6180_s29 = smul.u32 192, %s7222_s3  ;;  %s805_s6 = scalar_lea.vmem [#allocation3], %s6179_s22 }
 0x148   : > { %s813_s4 = sshll.u32 %s805_s6, 4  ;;  %s8829_s8 = sld [smem:[#allocation61_spill]]  ;;  %s814_s4 = int_to_ptr.vmem [resolvable:$true] %s813_s4 }
 0x149   : > { %s802_s9 = scalar_lea.sflag [#allocation4], %s7525_s11 }
 0x14e   : > { %s7750_s1 = scalar_lea.hbm %s8829_s8, %s6180_s29  ;;  %s6876_s22 = scalar_lea.hbm %s8829_s8, 384 }
 0x14f   : > { %s6872_s7 = scalar_lea.hbm %s7750_s1, 192  ;;  %p6877_p0 = scmp.lt.u32.totalorder %s7750_s1, %s8829_s8 }
 0x150   : > { %p6873_p4 = scmp.ne.s32.totalorder %s7750_s1, %s6872_s7  ;;  %p6878_p12 = scmp.lt.u32.totalorder %s6876_s22, %s6872_s7 }
 0x151   : > { %p6880_p5 = scmp.lt.u32.totalorder %s6872_s7, %s7750_s1 }
 0x152   : > { %p6874_p6 = pnand %p6873_p4, %p8822_p1  ;;  %p6879_p13 = por %p6878_p12, %p6877_p0 }
 0x154   : > { %p6875_p9 = pneg %p6874_p6  ;;  %p6881_p7 = por %p6880_p5, %p6879_p13 }
 0x156   : > { %p6882_p10 = pnand %p6881_p7, %p6875_p9 }
 0x158   : > { %6885 = shalt.err (!%p6882_p10)
}
 0x159   : > { %s6886_s29 = scalar_lea.vmem %s814_s4, 192  ;;  %s7243_s12 = smov [#allocation3]  }
 0x15a   : > { %p6887_p2 = scmp.ne.s32.totalorder %s814_s4, %s6886_s29  ;;  %s6890_s2 = sshll.u32 %s7243_s12, 4  ;;  %s6891_s2 = int_to_ptr.vmem [resolvable:$false] %s6890_s2 }
 0x15b   : > { %s6892_s25 = scalar_lea.vmem %s6891_s2, 384  ;;  %p6893_p8 = scmp.lt.s32.totalorder %s814_s4, %s6891_s2 }
 0x15c   : > { %p6888_p11 = pnand %p6887_p2, %p8822_p1  ;;  %p6894_p4 = scmp.lt.s32.totalorder %s6892_s25, %s6886_s29 }
 0x15e   : > { %p6889_p3 = pneg %p6888_p11  ;;  %p6895_p6 = por %p6894_p4, %p6893_p8 }
 0x160   : > { %p6896_p0 = pnand %p6895_p6, %p6889_p3 }
 0x162   : > { %6899 = shalt.err (!%p6896_p0)
}
 0x163   : > { %6187 = dma.hbm_to_vmem [thread:$0]  (%p8822_p1), %s7750_s1, 192, %s814_s4, %s802_s9  }
 0x164   : > { %s8830_s23 = sld [smem:[#allocation63_spill]]  ;;  %s844_s6 = scalar_lea.vmem [#allocation7], %s7525_s11 }
 0x165   : > { %s851_s29 = sshll.u32 %s844_s6, 4  ;;  %s852_s29 = int_to_ptr.vmem [resolvable:$true] %s851_s29 }
 0x16a   : > { %s7774_s22 = scalar_lea.hbm %s8830_s23, %s7546_s30  ;;  %s6904_s9 = scalar_lea.hbm %s8830_s23, 32 }
 0x16b   : > { %s6900_s12 = scalar_lea.hbm %s7774_s22, 16  ;;  %p6905_p5 = scmp.lt.u32.totalorder %s7774_s22, %s8830_s23 }
 0x16c   : > { %p6901_p9 = scmp.ne.s32.totalorder %s7774_s22, %s6900_s12  ;;  %p6906_p7 = scmp.lt.u32.totalorder %s6904_s9, %s6900_s12 }
 0x16d   : > { %p6908_p2 = scmp.lt.u32.totalorder %s6900_s12, %s7774_s22 }
 0x16e   : > { %p6902_p12 = pnand %p6901_p9, %p8822_p1  ;;  %p6907_p10 = por %p6906_p7, %p6905_p5 }
 0x170   : > { %p6903_p13 = pneg %p6902_p12  ;;  %p6909_p11 = por %p6908_p2, %p6907_p10 }
 0x172   : > { %p6910_p3 = pnand %p6909_p11, %p6903_p13 }
 0x174   : > { %6913 = shalt.err (!%p6910_p3)
}
 0x175   : > { %s6914_s7 = scalar_lea.vmem %s852_s29, 16  ;;  %s7244_s27 = smov [#allocation7]  }
 0x176   : > { %p6915_p8 = scmp.ne.s32.totalorder %s852_s29, %s6914_s7  ;;  %s6918_s6 = sshll.u32 %s7244_s27, 4  ;;  %s6919_s6 = int_to_ptr.vmem [resolvable:$false] %s6918_s6 }
 0x177   : > { %s6920_s2 = scalar_lea.vmem %s6919_s6, 32  ;;  %p6921_p0 = scmp.lt.s32.totalorder %s852_s29, %s6919_s6 }
 0x178   : > { %p6916_p4 = pnand %p6915_p8, %p8822_p1  ;;  %p6922_p9 = scmp.lt.s32.totalorder %s6920_s2, %s6914_s7 }
 0x17a   : > { %p6917_p6 = pneg %p6916_p4  ;;  %p6923_p12 = por %p6922_p9, %p6921_p0 }
 0x17c   : > { %p6924_p5 = pnand %p6923_p12, %p6917_p6 }
 0x17e   : > { %6927 = shalt.err (!%p6924_p5)
}
 0x17f   : > { %s8831_s12 = scalar_lea.sflag [#allocation6], %s7528_s0  ;;  %s8832_s4 = sld [smem:[#allocation66_spill]] }
 0x180   : > { %6189 = dma.hbm_to_vmem [thread:$0]  (%p8822_p1), %s7774_s22, 16, %s852_s29, %s8831_s12  }
 0x181   : > { %s885_s7 = scalar_lea.vmem [#allocation10], %s7531_s26 }
 0x182   : > { %s892_s27 = sshll.u32 %s885_s7, 4  ;;  %s7803_s27 = int_to_ptr.vmem [resolvable:$true] %s892_s27 }
 0x185   : > { %s7800_s1 = scalar_lea.hbm %s8832_s4, %s7534_s28  ;;  %s6932_s29 = scalar_lea.hbm %s8832_s4, 8192 }
 0x186   : > { %s6928_s6 = scalar_lea.hbm %s7800_s1, 4096  ;;  %p6933_p2 = scmp.lt.u32.totalorder %s7800_s1, %s8832_s4 }
 0x187   : > { %p6929_p13 = scmp.ne.s32.totalorder %s7800_s1, %s6928_s6  ;;  %p6934_p11 = scmp.lt.u32.totalorder %s6932_s29, %s6928_s6 }
 0x188   : > { %p6936_p8 = scmp.lt.u32.totalorder %s6928_s6, %s7800_s1 }
 0x189   : > { %p6930_p7 = pnand %p6929_p13, %p8822_p1  ;;  %p6935_p3 = por %p6934_p11, %p6933_p2 }
 0x18b   : > { %p6931_p10 = pneg %p6930_p7  ;;  %p6937_p4 = por %p6936_p8, %p6935_p3 }
 0x18d   : > { %p6938_p6 = pnand %p6937_p4, %p6931_p10 }
 0x18f   : > { %6941 = shalt.err (!%p6938_p6)
}
 0x190   : > { %s6942_s9 = scalar_lea.vmem %s7803_s27, 4096  ;;  %s7245_s7 = smov [#allocation10]  }
 0x191   : > { %p6943_p0 = scmp.ne.s32.totalorder %s7803_s27, %s6942_s9  ;;  %s6946_s2 = sshll.u32 %s7245_s7, 4  ;;  %s6947_s2 = int_to_ptr.vmem [resolvable:$false] %s6946_s2 }
 0x192   : > { %s6948_s22 = scalar_lea.vmem %s6947_s2, 8192  ;;  %p6949_p5 = scmp.lt.s32.totalorder %s7803_s27, %s6947_s2 }
 0x193   : > { %p6944_p9 = pnand %p6943_p0, %p8822_p1  ;;  %p6950_p13 = scmp.lt.s32.totalorder %s6948_s22, %s6942_s9 }
 0x195   : > { %p6945_p12 = pneg %p6944_p9  ;;  %p6951_p7 = por %p6950_p13, %p6949_p5 }
 0x197   : > { %p6952_p2 = pnand %p6951_p7, %p6945_p12 }
 0x199   : > { %6955 = shalt.err (!%p6952_p2)
}
 0x19a   : > { %s7246_s6 = smov 256   ;;  %s7247_s29 = smov 16  }
 0x19b   : > { %s8833_s12 = scalar_lea.sflag [#allocation9], %s7528_s0  ;;  %s8834_s13 = sld [smem:[#allocation70_spill]] }
 0x19c   : > { %6191 = dma.hbm_to_vmem [thread:$0]  (%p8822_p1), %s7800_s1, 4096, %s7803_s27, %s8833_s12, %s7246_s6, %s7246_s6, %s7247_s29  }
 0x19d   : > { %s940_s9 = scalar_lea.vmem [#allocation13], %s7531_s26 }
 0x19e   : > { %s947_s22 = sshll.u32 %s940_s9, 4  ;;  %s7835_s22 = int_to_ptr.vmem [resolvable:$true] %s947_s22 }
 0x1a1   : > { %s7832_s2 = scalar_lea.hbm %s8834_s13, %s7534_s28  ;;  %s6960_s27 = scalar_lea.hbm %s8834_s13, 8192 }
 0x1a2   : > { %s6956_s4 = scalar_lea.hbm %s7832_s2, 4096  ;;  %p6961_p8 = scmp.lt.u32.totalorder %s7832_s2, %s8834_s13 }
 0x1a3   : > { %p6957_p10 = scmp.ne.s32.totalorder %s7832_s2, %s6956_s4  ;;  %p6962_p4 = scmp.lt.u32.totalorder %s6960_s27, %s6956_s4 }
 0x1a4   : > { %p6964_p0 = scmp.lt.u32.totalorder %s6956_s4, %s7832_s2 }
 0x1a5   : > { %p6958_p11 = pnand %p6957_p10, %p8822_p1  ;;  %p6963_p6 = por %p6962_p4, %p6961_p8 }
 0x1a7   : > { %p6959_p3 = pneg %p6958_p11  ;;  %p6965_p9 = por %p6964_p0, %p6963_p6 }
 0x1a9   : > { %p6966_p12 = pnand %p6965_p9, %p6959_p3 }
 0x1ab   : > { %6969 = shalt.err (!%p6966_p12)
}
 0x1ac   : > { %s6970_s26 = scalar_lea.vmem %s7835_s22, 4096  ;;  %s7248_s8 = smov [#allocation13]  }
 0x1ad   : > { %p6971_p5 = scmp.ne.s32.totalorder %s7835_s22, %s6970_s26  ;;  %s6974_s29 = sshll.u32 %s7248_s8, 4  ;;  %s6975_s29 = int_to_ptr.vmem [resolvable:$false] %s6974_s29 }
 0x1ae   : > { %s6976_s12 = scalar_lea.vmem %s6975_s29, 8192  ;;  %p6977_p2 = scmp.lt.s32.totalorder %s7835_s22, %s6975_s29 }
 0x1af   : > { %p6972_p13 = pnand %p6971_p5, %p8822_p1  ;;  %p6978_p10 = scmp.lt.s32.totalorder %s6976_s12, %s6970_s26 }
 0x1b1   : > { %p6973_p7 = pneg %p6972_p13  ;;  %p6979_p11 = por %p6978_p10, %p6977_p2 }
 0x1b3   : > { %p6980_p8 = pnand %p6979_p11, %p6973_p7 }
 0x1b5   : > { %6983 = shalt.err (!%p6980_p8)
}
 0x1b6   : > { %s8835_s4 = smov 4   ;;  %s8836_s25 = smov 64  }
 0x1b7   : > { %s8837_s7 = scalar_lea.sflag [#allocation12], %s7528_s0  ;;  %s8838_s15 = sld [smem:[#allocation72_spill]] }
 0x1b8   : > { %6193 = dma.hbm_to_vmem [thread:$0]  (%p8822_p1), %s7832_s2, 4096, %s7835_s22, %s8837_s7, %s8836_s25, %s8836_s25, %s8835_s4  }
 0x1b9   : > { %s977_s6 = scalar_lea.vmem [#allocation16], %s7525_s11  ;;  %s5576_s26 = sshll.u32 %s7525_s11, 6 }
 0x1ba   : > { %s984_s28 = sshll.u32 %s977_s6, 4  ;;  %s985_s28 = int_to_ptr.vmem [resolvable:$true] %s984_s28 }
 0x1bd   : > { %s7867_s27 = scalar_lea.hbm %s8838_s15, %s7546_s30  ;;  %s6988_s22 = scalar_lea.hbm %s8838_s15, 32 }
 0x1be   : > { %s6984_s8 = scalar_lea.hbm %s7867_s27, 16  ;;  %p6989_p0 = scmp.lt.u32.totalorder %s7867_s27, %s8838_s15 }
 0x1bf   : > { %p6985_p3 = scmp.ne.s32.totalorder %s7867_s27, %s6984_s8  ;;  %p6990_p9 = scmp.lt.u32.totalorder %s6988_s22, %s6984_s8 }
 0x1c0   : > { %p6992_p5 = scmp.lt.u32.totalorder %s6984_s8, %s7867_s27 }
 0x1c1   : > { %p6986_p4 = pnand %p6985_p3, %p8822_p1  ;;  %p6991_p12 = por %p6990_p9, %p6989_p0 }
 0x1c3   : > { %p6987_p6 = pneg %p6986_p4  ;;  %p6993_p13 = por %p6992_p5, %p6991_p12 }
 0x1c5   : > { %p6994_p7 = pnand %p6993_p13, %p6987_p6 }
 0x1c7   : > { %6997 = shalt.err (!%p6994_p7)
}
 0x1c8   : > { %s6998_s9 = scalar_lea.vmem %s985_s28, 16  ;;  %s7249_s1 = smov [#allocation16]  }
 0x1c9   : > { %p6999_p2 = scmp.ne.s32.totalorder %s985_s28, %s6998_s9  ;;  %s7002_s6 = sshll.u32 %s7249_s1, 4  ;;  %s7003_s6 = int_to_ptr.vmem [resolvable:$false] %s7002_s6 }
 0x1ca   : > { %s7004_s29 = scalar_lea.vmem %s7003_s6, 32  ;;  %p7005_p8 = scmp.lt.s32.totalorder %s985_s28, %s7003_s6 }
 0x1cb   : > { %p7000_p10 = pnand %p6999_p2, %p8822_p1  ;;  %p7006_p3 = scmp.lt.s32.totalorder %s7004_s29, %s6998_s9 }
 0x1cd   : > { %p7001_p11 = pneg %p7000_p10  ;;  %p7007_p4 = por %p7006_p3, %p7005_p8 }
 0x1cf   : > { %p7008_p0 = pnand %p7007_p4, %p7001_p11 }
 0x1d1   : > { %7011 = shalt.err (!%p7008_p0)
}
 0x1d2   : > { %s8839_s8 = scalar_lea.sflag [#allocation15], %s7528_s0  ;;  %s5902_s2 = sshll.u32 %s7222_s3, 10 }
 0x1d3   : > { %6195 = dma.hbm_to_vmem [thread:$0]  (%p8822_p1), %s7867_s27, 16, %s985_s28, %s8839_s8  }
 0x1d4   : > { %s8840_s17 = sld [smem:[#allocation74_spill]]  ;;  %s1012_s9 = scalar_lea.vmem [#allocation19], %s5576_s26 }
 0x1d5   : > { %s1019_s1 = sshll.u32 %s1012_s9, 4  ;;  %s7900_s1 = int_to_ptr.vmem [resolvable:$true] %s1019_s1 }
 0x1da   : > { %s7896_s7 = scalar_lea.hbm %s8840_s17, %s5902_s2  ;;  %s7016_s29 = scalar_lea.hbm %s8840_s17, 2048 }
 0x1db   : > { %s7012_s6 = scalar_lea.hbm %s7896_s7, 1024  ;;  %p7017_p5 = scmp.lt.u32.totalorder %s7896_s7, %s8840_s17 }
 0x1dc   : > { %p7013_p6 = scmp.ne.s32.totalorder %s7896_s7, %s7012_s6  ;;  %p7018_p13 = scmp.lt.u32.totalorder %s7016_s29, %s7012_s6 }
 0x1dd   : > { %p7020_p2 = scmp.lt.u32.totalorder %s7012_s6, %s7896_s7 }
 0x1de   : > { %p7014_p9 = pnand %p7013_p6, %p8822_p1  ;;  %p7019_p7 = por %p7018_p13, %p7017_p5 }
 0x1e0   : > { %p7015_p12 = pneg %p7014_p9  ;;  %p7021_p10 = por %p7020_p2, %p7019_p7 }
 0x1e2   : > { %p7022_p11 = pnand %p7021_p10, %p7015_p12 }
 0x1e4   : > { %7025 = shalt.err (!%p7022_p11)
}
 0x1e5   : > { %s7026_s12 = scalar_lea.vmem %s7900_s1, 1024  ;;  %s7250_s9 = smov [#allocation19]  }
 0x1e6   : > { %p7027_p8 = scmp.ne.s32.totalorder %s7900_s1, %s7026_s12  ;;  %s7030_s27 = sshll.u32 %s7250_s9, 4  ;;  %s7031_s27 = int_to_ptr.vmem [resolvable:$false] %s7030_s27 }
 0x1e7   : > { %s7032_s28 = scalar_lea.vmem %s7031_s27, 2048  ;;  %p7033_p0 = scmp.lt.s32.totalorder %s7900_s1, %s7031_s27 }
 0x1e8   : > { %p7028_p3 = pnand %p7027_p8, %p8822_p1  ;;  %p7034_p6 = scmp.lt.s32.totalorder %s7032_s28, %s7026_s12 }
 0x1ea   : > { %p7029_p4 = pneg %p7028_p3  ;;  %p7035_p9 = por %p7034_p6, %p7033_p0 }
 0x1ec   : > { %p7036_p5 = pnand %p7035_p9, %p7029_p4 }
 0x1ee   : > { %7039 = shalt.err (!%p7036_p5)
}
 0x1ef   : > { %s8841_s6 = scalar_lea.sflag [#allocation18], %s7528_s0  ;;  %s8842_s19 = sld [smem:[#allocation76_spill]] }
 0x1f0   : > { %6197 = dma.hbm_to_vmem [thread:$0]  (%p8822_p1), %s7896_s7, 1024, %s7900_s1, %s8841_s6, %s8836_s25, %s8836_s25, %s8835_s4  }
 0x1f1   : > { %s1050_s12 = scalar_lea.vmem [#allocation22], %s5576_s26 }
 0x1f2   : > { %s1057_s9 = sshll.u32 %s1050_s12, 4  ;;  %s7937_s9 = int_to_ptr.vmem [resolvable:$true] %s1057_s9 }
 0x1f5   : > { %s7933_s22 = scalar_lea.hbm %s8842_s19, %s5902_s2  ;;  %s7044_s28 = scalar_lea.hbm %s8842_s19, 2048 }
 0x1f6   : > { %s7040_s27 = scalar_lea.hbm %s7933_s22, 1024  ;;  %p7045_p2 = scmp.lt.u32.totalorder %s7933_s22, %s8842_s19 }
 0x1f7   : > { %p7041_p12 = scmp.ne.s32.totalorder %s7933_s22, %s7040_s27  ;;  %p7046_p10 = scmp.lt.u32.totalorder %s7044_s28, %s7040_s27 }
 0x1f8   : > { %p7048_p8 = scmp.lt.u32.totalorder %s7040_s27, %s7933_s22 }
 0x1f9   : > { %p7042_p13 = pnand %p7041_p12, %p8822_p1  ;;  %p7047_p11 = por %p7046_p10, %p7045_p2 }
 0x1fb   : > { %p7043_p7 = pneg %p7042_p13  ;;  %p7049_p3 = por %p7048_p8, %p7047_p11 }
 0x1fd   : > { %p7050_p4 = pnand %p7049_p3, %p7043_p7 }
 0x1ff   : > { %7053 = shalt.err (!%p7050_p4)
}
 0x200   : > { %s7054_s26 = scalar_lea.vmem %s7937_s9, 1024  ;;  %s7251_s29 = smov [#allocation22]  }
 0x201   : > { %p7055_p0 = scmp.ne.s32.totalorder %s7937_s9, %s7054_s26  ;;  %s7058_s8 = sshll.u32 %s7251_s29, 4  ;;  %s7059_s8 = int_to_ptr.vmem [resolvable:$false] %s7058_s8 }
 0x202   : > { %s7060_s12 = scalar_lea.vmem %s7059_s8, 2048  ;;  %p7061_p5 = scmp.lt.s32.totalorder %s7937_s9, %s7059_s8 }
 0x203   : > { %p7056_p6 = pnand %p7055_p0, %p8822_p1  ;;  %p7062_p12 = scmp.lt.s32.totalorder %s7060_s12, %s7054_s26 }
 0x205   : > { %p7057_p9 = pneg %p7056_p6  ;;  %p7063_p13 = por %p7062_p12, %p7061_p5 }
 0x207   : > { %p7064_p2 = pnand %p7063_p13, %p7057_p9 }
 0x209   : > { %7067 = shalt.err (!%p7064_p2)
}
 0x20a   : > { %s8843_s27 = scalar_lea.sflag [#allocation21], %s7528_s0  ;;  %s8844_s21 = sld [smem:[#allocation78_spill]] }
 0x20b   : > { %6199 = dma.hbm_to_vmem [thread:$0]  (%p8822_p1), %s7933_s22, 1024, %s7937_s9, %s8843_s27, %s8836_s25, %s8836_s25, %s8835_s4  }
 0x20c   : > { %s1087_s2 = scalar_lea.vmem [#allocation25], %s7525_s11 }
 0x20d   : > { %s1094_s6 = sshll.u32 %s1087_s2, 4  ;;  %s1095_s6 = int_to_ptr.vmem [resolvable:$true] %s1094_s6 }
 0x210   : > { %s7969_s28 = scalar_lea.hbm %s8844_s21, %s7546_s30  ;;  %s7072_s4 = scalar_lea.hbm %s8844_s21, 32 }
 0x211   : > { %s7068_s26 = scalar_lea.hbm %s7969_s28, 16  ;;  %p7073_p8 = scmp.lt.u32.totalorder %s7969_s28, %s8844_s21 }
 0x212   : > { %p7069_p7 = scmp.ne.s32.totalorder %s7969_s28, %s7068_s26  ;;  %p7074_p3 = scmp.lt.u32.totalorder %s7072_s4, %s7068_s26 }
 0x213   : > { %p7076_p0 = scmp.lt.u32.totalorder %s7068_s26, %s7969_s28 }
 0x214   : > { %p7070_p10 = pnand %p7069_p7, %p8822_p1  ;;  %p7075_p4 = por %p7074_p3, %p7073_p8 }
 0x216   : > { %p7071_p11 = pneg %p7070_p10  ;;  %p7077_p6 = por %p7076_p0, %p7075_p4 }
 0x218   : > { %p7078_p9 = pnand %p7077_p6, %p7071_p11 }
 0x21a   : > { %7081 = shalt.err (!%p7078_p9)
}
 0x21b   : > { %s7082_s9 = scalar_lea.vmem %s1095_s6, 16  ;;  %s7252_s12 = smov [#allocation25]  }
 0x21c   : > { %p7083_p5 = scmp.ne.s32.totalorder %s1095_s6, %s7082_s9  ;;  %s7086_s27 = sshll.u32 %s7252_s12, 4  ;;  %s7087_s27 = int_to_ptr.vmem [resolvable:$false] %s7086_s27 }
 0x21d   : > { %s7088_s7 = scalar_lea.vmem %s7087_s27, 32  ;;  %p7089_p2 = scmp.lt.s32.totalorder %s1095_s6, %s7087_s27 }
 0x21e   : > { %p7084_p12 = pnand %p7083_p5, %p8822_p1  ;;  %p7090_p7 = scmp.lt.s32.totalorder %s7088_s7, %s7082_s9 }
 0x220   : > { %p7085_p13 = pneg %p7084_p12  ;;  %p7091_p10 = por %p7090_p7, %p7089_p2 }
 0x222   : > { %p7092_p3 = pnand %p7091_p10, %p7085_p13 }
 0x224   : > { %7095 = shalt.err (!%p7092_p3)
}
 0x225   : > { %s8845_s1 = scalar_lea.sflag [#allocation24], %s7528_s0  ;;  %s8846_s29 = sld [smem:[#allocation79_spill]] }
 0x226   : > { %6201 = dma.hbm_to_vmem [thread:$0]  (%p8822_p1), %s7969_s28, 16, %s1095_s6, %s8845_s1  }
 0x227   : > { %s1104_s25 = scalar_lea.vmem [#allocation26], %s7525_s11  ;;  %s1102_s9 = scalar_lea.sflag [#allocation27], %s7528_s0 }
 0x228   : > { %s1111_s22 = sshll.u32 %s1104_s25, 4  ;;  %s1112_s22 = int_to_ptr.vmem [resolvable:$true] %s1111_s22 }
 0x22b   : > { %s8847_s8 = smov %s8846_s29  ;;  %s7995_s4 = scalar_lea.hbm %s8846_s29, %s7546_s30 }
 0x22c   : > { %s7096_s12 = scalar_lea.hbm %s7995_s4, 16  ;;  %s7100_s6 = scalar_lea.hbm %s8847_s8, 32 }
 0x22d   : > { %p7097_p11 = scmp.ne.s32.totalorder %s7995_s4, %s7096_s12  ;;  %p7101_p0 = scmp.lt.u32.totalorder %s7995_s4, %s8847_s8 }
 0x22e   : > { %p7102_p6 = scmp.lt.u32.totalorder %s7100_s6, %s7096_s12  ;;  %p7104_p5 = scmp.lt.u32.totalorder %s7096_s12, %s7995_s4 }
 0x22f   : > { %p7098_p8 = pnand %p7097_p11, %p8822_p1 }
 0x230   : > { %p7103_p9 = por %p7102_p6, %p7101_p0 }
 0x231   : > { %p7099_p4 = pneg %p7098_p8 }
 0x232   : > { %p7105_p12 = por %p7104_p5, %p7103_p9 }
 0x234   : > { %p7106_p13 = pnand %p7105_p12, %p7099_p4 }
 0x236   : > { %7109 = shalt.err (!%p7106_p13)
}
 0x237   : > { %s7110_s11 = scalar_lea.vmem %s1112_s22, 16  ;;  %s7253_s0 = smov [#allocation26]  }
 0x238   : > { %p7111_p2 = scmp.ne.s32.totalorder %s1112_s22, %s7110_s11  ;;  %s7114_s1 = sshll.u32 %s7253_s0, 4  ;;  %s7115_s1 = int_to_ptr.vmem [resolvable:$false] %s7114_s1 }
 0x239   : > { %s7116_s2 = scalar_lea.vmem %s7115_s1, 32  ;;  %p7117_p3 = scmp.lt.s32.totalorder %s1112_s22, %s7115_s1 }
 0x23a   : > { %p7112_p7 = pnand %p7111_p2, %p8822_p1  ;;  %p7118_p11 = scmp.lt.s32.totalorder %s7116_s2, %s7110_s11 }
 0x23c   : > { %p7113_p10 = pneg %p7112_p7  ;;  %p7119_p8 = por %p7118_p11, %p7117_p3 }
 0x23e   : > { %p7120_p0 = pnand %p7119_p8, %p7113_p10 }
 0x240   : > { %7123 = shalt.err (!%p7120_p0)
}
 0x241   : > { %6202 = dma.hbm_to_vmem [thread:$0]  (%p8822_p1), %s7995_s4, 16, %s1112_s22, %s1102_s9  }
 0x242 PF: > { %s8848_s26 = sld [smem:[#allocation54_spill]] }
 0x248   : > { %p8849_p4 = scmp.ne.s32.totalorder %s8848_s26, 0 }
 0x24a   : > { %1120 = sbr.rel (%p8849_p4) target bundleno = 4875 (0x130b), region = 120 }
 0x251   : > { %s8850_s29 = sld [smem:[#allocation42_spill]]  ;;  %s8851_s25 = sld [smem:[#allocation53_spill]] }
 0x257   : > { %s8019_s12 = sand.u32 1, %s8850_s29   ;;  %p8852_p6 = scmp.ne.s32.totalorder %s8851_s25, 0 }
 0x258   : > { %s6181_s27 = smul.u32 12, %s8019_s12  ;;  %s1123_s28 = scalar_lea.sflag [#allocation4], %s8019_s12 }
 0x25a   : > { %s8023_s6 = scalar_lea.vmem [#allocation3], %s6181_s27 }
 0x25b   : > { %7157 = dma.done.wait (%p8852_p6), %s1123_s28, 192  }
 0x25c   : > { %7159 = vsyncadd (%p8852_p6), %s1123_s28, 4294967104  ;;  %s8853_s5 = sld [smem:[#allocation48_spill]]  ;;  %s5587_s9 = sshll.u32 %s8019_s12, 8 }
 0x25d   : > { %s8035_s30 = scalar_lea.vmem [#allocation5], %s5587_s9 }
 0x262   : > { %s8854_s4 = sadd.s32 4294967295, %s8853_s5  }
 0x263   : > { %s8031_s22 = sand.u32 1, %s8854_s4  }
 0x264   : > { %s1132_s7 = scalar_lea.sflag [#allocation6], %s8031_s22 }
 0x265   : > { %7161 = dma.done.wait (%p8852_p6), %s1132_s7, 4112  }
 0x266   : > { %7163 = vsyncadd (%p8852_p6), %s1132_s7, 4294963184  ;;  %s1149_s0 = scalar_lea.sflag [#allocation9], %s8031_s22 }
 0x267   : > { %7165 = dma.done.wait (%p8852_p6), %s1149_s0, 4112  }
 0x268   : > { %7167 = vsyncadd (%p8852_p6), %s1149_s0, 4294963184  ;;  %s5589_s2 = sshll.u32 %s8019_s12, 2  ;;  %s8049_s26 = scalar_lea.vmem [#allocation10], %s5587_s9 }
 0x269   : > { %s1166_s29 = scalar_lea.sflag [#allocation12], %s8031_s22  ;;  %s8052_s27 = scalar_lea.vmem [#allocation11], %s5589_s2 }
 0x26a   : > { %7169 = dma.done.wait (%p8852_p6), %s1166_s29, 4160  }
 0x26b   : > { %7171 = vsyncadd (%p8852_p6), %s1166_s29, 4294963136  ;;  %s8058_s28 = scalar_lea.vmem [#allocation13], %s5587_s9  ;;  %s1184_s5 = scalar_lea.sflag [#allocation15], %s8031_s22 }
 0x26c   : > { %7173 = dma.done.wait (%p8852_p6), %s1184_s5, 32  }
 0x26d   : > { %7175 = vsyncadd (%p8852_p6), %s1184_s5, 4294967264  ;;  %s1200_s0 = scalar_lea.sflag [#allocation18], %s8031_s22 }
 0x26e   : > { %7177 = dma.done.wait (%p8852_p6), %s1200_s0, 1040  }
 0x26f   : > { %7179 = vsyncadd (%p8852_p6), %s1200_s0, 4294966256  ;;  %s5591_s9 = sshll.u32 %s8019_s12, 6  ;;  %s1217_s5 = scalar_lea.sflag [#allocation21], %s8031_s22 }
 0x270   : > { %s8074_s29 = scalar_lea.vmem [#allocation19], %s5591_s9 }
 0x271   : > { %8855 = sst [smem:[#allocation55_spill]] %s8074_s29 }
 0x272   : > { %7181 = dma.done.wait (%p8852_p6), %s1217_s5, 1040  }
 0x273   : > { %7183 = vsyncadd (%p8852_p6), %s1217_s5, 4294966256  ;;  %s8082_s2 = scalar_lea.vmem [#allocation22], %s5591_s9  ;;  %s1234_s0 = scalar_lea.sflag [#allocation24], %s8031_s22 }
 0x274   : > { %8856 = sst [smem:[#allocation56_spill]] %s8082_s2 }
 0x275   : > { %7185 = dma.done.wait (%p8852_p6), %s1234_s0, 32  }
 0x276   : > { %7187 = vsyncadd (%p8852_p6), %s1234_s0, 4294967264  ;;  %s1250_s1 = scalar_lea.sflag [#allocation27], %s8031_s22 }
 0x277   : > { %7189 = dma.done.wait (%p8852_p6), %s1250_s1, 16  }
 0x278   : > { %7191 = vsyncadd (%p8852_p6), %s1250_s1, 4294967280  ;;  %s8857_s9 = sld [smem:[#allocation52_spill]] }
 0x27e   : > { %p8858_p1 = scmp.ne.s32.totalorder %s8857_s9, 0 }
 0x280   : > { %7193 = dma.done.wait (%p8858_p1), [#allocation27], 16  }
 0x281   : > { %7195 = vsyncadd (%p8858_p1), [#allocation27], 4294967280 }
 0x282   : > { %7197 = dma.done.wait (%p8858_p1), [#allocation30], 16  }
 0x283   : > { %7199 = vsyncadd (%p8858_p1), [#allocation30], 4294967280  ;;  %s8859_s5 = sld [smem:[#allocation45_spill]]  ;;  %s8860_s22 = sld [smem:[#allocation44_spill]] }
 0x284   : > { %s8861_s7 = sld [smem:[#allocation57_spill]]  ;;  %s8862_s13 = sld [smem:[#allocation59_spill]] }
 0x285   : > { %s8863_s18 = sld [smem:[#allocation65_spill]]  ;;  %s8864_s3 = sld [smem:[#allocation60_spill]] }
 0x286   : > { %s8865_s4 = sld [smem:[#allocation68_spill]]  ;;  %s8866_s8 = sld [smem:[#allocation69_spill]] }
 0x287   : > { %s8867_s17 = sld [smem:[#allocation82_spill]] }
 0x289   : > { %p1417_p9 = scmp.lt.s32.totalorder %s8859_s5, 1  ;;  %p1425_p5 = scmp.lt.s32.totalorder %s8860_s22, 1 }
 0x28a   : > { %p5602_p12 = scmp.ne.s32.totalorder %s8860_s22, 0 }
 0x28b   : > { %s8897_s5 = smov (!%p1417_p9, %s8859_s5), 1  ;;  %s8868_s24 = sld [smem:[#allocation58_spill]] (!%p5602_p12) }
 0x28c   : > { %s8109_s25 = scalar_select %p1425_p5, %s8860_s22, 1 }
 0x28d   : > { %s5595_s1 = sshll.u32 %s8897_s5, 3  ;;  %s5596_s0 = sshll.u32 %s8897_s5, 2 }
 0x28e   : > { %s1420_s9 = scalar_lea.vmem %s8861_s7, %s5595_s1  ;;  %s8117_s14 = scalar_lea.vmem %s8862_s13, %s5596_s0 }
 0x28f   : > { %s6182_s15 = smul.u32 768, %s8109_s25  ;;  %s1432_s19 = scalar_lea.vmem %s8863_s18, %s8109_s25  ;;  %v1451_v0 = vld [vmem:[%s1420_s9] sm:$0xff] (!%p5602_p12) }
 0x290   : > { %s5904_s20 = sshll.u32 %s8109_s25, 9  ;;  %s5600_s21 = sshll.u32 %s8109_s25, 3  ;;  %v1452_v2 = vmul.f32 (!%p5602_p12), 5.656854, %v1451_v0 }
 0x291   : > { %s8129_s5 = scalar_lea.vmem %s8864_s3, %s6182_s15  ;;  %s8134_s7 = scalar_lea.vmem %s8865_s4, %s5904_s20  ;;  %v1453_v1 = vld [vmem:[%s8868_s24] sm:$0xff] (!%p5602_p12) }
 0x292   : > { %s8139_s1 = scalar_lea.vmem %s8866_s8, %s5600_s21  ;;  %s8144_s18 = scalar_lea.vmem %s8867_s17, %s5596_s0  ;;  %v1454_v3 = vadd.f32 (!%p5602_p12), %v1453_v1, %v1452_v2 }
 0x293   : > { %1450 = sbr.rel (%p5602_p12) target bundleno = 666 (0x29a), region = 196 }
 0x294   : > { %1455 = vst [vmem:[#allocation2] sm:$0xff] (!%p5602_p12), %v1454_v3 }
 0x29a PF: > { %v6307_v4 = vld [vmem:[%s8129_s5 + $0x4] ss:$48 sps:$4 sm:$0xff]   ;;  %v6309_v5 = vld [vmem:[%s8129_s5] ss:$48 sps:$4 sm:$0xff]   ;;  %v7254_v6 = vmov 0   ;;  %vm7256_vm0 = vmmov 0  }
 0x29b   : > { %2131 = vmatprep.mubr.bf16.mxu0 %v7254_v6  ;;  %2172 = vmatprep.mubr.bf16.mxu1 %v7254_v6  ;;  %v6310_v7 = vld [vmem:[%s8129_s5 + $0x64] ss:$48 sps:$4 sm:$0xff]   ;;  %v6312_v8 = vld [vmem:[%s8129_s5 + $0x60] ss:$48 sps:$4 sm:$0xff]   ;;  %v6319_v10 = vld [vmem:[%s8129_s5 + $0xc] ss:$48 sps:$4 sm:$0xff]  }
 0x29c   : > { %2099 = vmatprep.subr.bf16.mxu0 %v6307_v4  ;;  %v6313_v9 = vld [vmem:[%s8129_s5 + $0xc4] ss:$48 sps:$4 sm:$0xff]   ;;  %v6321_v11 = vld [vmem:[%s8129_s5 + $0x8] ss:$48 sps:$4 sm:$0xff]   ;;  %v6315_v12 = vld [vmem:[%s8129_s5 + $0xc0] ss:$48 sps:$4 sm:$0xff]   ;;  %2140 = vmatprep.subr.bf16.mxu1 %v6319_v10 }
 0x29d   : > { %2100 = vmatpush1.bf16.msra.mxu0 %v6309_v5  ;;  %v6316_v13 = vld [vmem:[%s8129_s5 + $0x124] ss:$48 sps:$4 sm:$0xff]   ;;  %v6325_v14 = vld [vmem:[%s8129_s5 + $0x6c] ss:$48 sps:$4 sm:$0xff]   ;;  %2141 = vmatpush1.bf16.msra.mxu1 %v6321_v11  ;;  %v6327_v15 = vld [vmem:[%s8129_s5 + $0x68] ss:$48 sps:$4 sm:$0xff]  }
 0x29e   : > { %2101 = vmatprep.subr.bf16.mxu0 %v6310_v7  ;;  %2142 = vmatprep.subr.bf16.mxu1 %v6325_v14  ;;  %v6318_v16 = vld [vmem:[%s8129_s5 + $0x120] ss:$48 sps:$4 sm:$0xff]   ;;  %v6331_v17 = vld [vmem:[%s8129_s5 + $0xcc] ss:$48 sps:$4 sm:$0xff]   ;;  %v6322_v18 = vld [vmem:[%s8129_s5 + $0x184] ss:$48 sps:$4 sm:$0xff]  }
 0x29f   : > { %v6333_v19 = vld [vmem:[%s8129_s5 + $0xc8] ss:$48 sps:$4 sm:$0xff]   ;;  %v6337_v20 = vld [vmem:[%s8129_s5 + $0x12c] ss:$48 sps:$4 sm:$0xff]   ;;  %v6324_v21 = vld [vmem:[%s8129_s5 + $0x180] ss:$48 sps:$4 sm:$0xff]  }
 0x2a0   : > { %v6328_v22 = vld [vmem:[%s8129_s5 + $0x1e4] ss:$48 sps:$4 sm:$0xff]   ;;  %v6339_v23 = vld [vmem:[%s8129_s5 + $0x128] ss:$48 sps:$4 sm:$0xff]   ;;  %v6343_v24 = vld [vmem:[%s8129_s5 + $0x18c] ss:$48 sps:$4 sm:$0xff]  }
 0x2a1   : > { %2102 = vmatpush1.bf16.msra.mxu0 %v6312_v8  ;;  %2143 = vmatpush1.bf16.msra.mxu1 %v6327_v15  ;;  %v6330_v25 = vld [vmem:[%s8129_s5 + $0x1e0] ss:$48 sps:$4 sm:$0xff]   ;;  %v6334_v26 = vld [vmem:[%s8129_s5 + $0x244] ss:$48 sps:$4 sm:$0xff]   ;;  %v6345_v27 = vld [vmem:[%s8129_s5 + $0x188] ss:$48 sps:$4 sm:$0xff]  }
 0x2a2   : > { %2103 = vmatprep.subr.bf16.mxu0 %v6313_v9  ;;  %2144 = vmatprep.subr.bf16.mxu1 %v6331_v17  ;;  %v6349_v28 = vld [vmem:[%s8129_s5 + $0x1ec] ss:$48 sps:$4 sm:$0xff]   ;;  %v6336_v29 = vld [vmem:[%s8129_s5 + $0x240] ss:$48 sps:$4 sm:$0xff]   ;;  %v6340_v30 = vld [vmem:[%s8129_s5 + $0x2a4] ss:$48 sps:$4 sm:$0xff]  }
 0x2a3   : > { %v6351_v31 = vld [vmem:[%s8129_s5 + $0x1e8] ss:$48 sps:$4 sm:$0xff]   ;;  %v6342_v32 = vld [vmem:[%s8129_s5 + $0x2a0] ss:$48 sps:$4 sm:$0xff]   ;;  %v6355_v33 = vld [vmem:[%s8129_s5 + $0x24c] ss:$48 sps:$4 sm:$0xff]  }
 0x2a4   : > { %v1456_v34 = vld [vmem:[#allocation2] sm:$0xff]  ;;  %v6357_v36 = vld [vmem:[%s8129_s5 + $0x248] ss:$48 sps:$4 sm:$0xff]   ;;  %v6361_v38 = vld [vmem:[%s8129_s5 + $0x2ac] ss:$48 sps:$4 sm:$0xff]   ;;  %vm2404_vm1 = vcmask 1043456  }
 0x2a5   : > { %2104 = vmatpush1.bf16.msra.mxu0 %v6315_v12  ;;  %2145 = vmatpush1.bf16.msra.mxu1 %v6333_v19  ;;  %v6348_v35 = vld [vmem:[%s8129_s5 + $0x14] ss:$48 sps:$4 sm:$0xff]   ;;  %v8183_v37 = vpack.c.bf16 %v1456_v34, %v1456_v34  ;;  %v6346_v39 = vld [vmem:[%s8129_s5 + $0x10] ss:$48 sps:$4 sm:$0xff]   ;;  %v6363_v41 = vld [vmem:[%s8129_s5 + $0x2a8] ss:$48 sps:$4 sm:$0xff]  }
 0x2a6   : > { %2105 = vmatprep.subr.bf16.mxu0 %v6316_v13  ;;  %2146 = vmatprep.subr.bf16.mxu1 %v6337_v20  ;;  %v6354_v40 = vld [vmem:[%s8129_s5 + $0x74] ss:$48 sps:$4 sm:$0xff]   ;;  %v6369_v42 = vld [vmem:[%s8129_s5 + $0x1c] ss:$48 sps:$4 sm:$0xff]   ;;  %v6352_v43 = vld [vmem:[%s8129_s5 + $0x70] ss:$48 sps:$4 sm:$0xff]  }
 0x2a7   : > { %v6360_v44 = vld [vmem:[%s8129_s5 + $0xd4] ss:$48 sps:$4 sm:$0xff]   ;;  %v6367_v45 = vld [vmem:[%s8129_s5 + $0x18] ss:$48 sps:$4 sm:$0xff]   ;;  %v6375_v46 = vld [vmem:[%s8129_s5 + $0x7c] ss:$48 sps:$4 sm:$0xff]  }
 0x2a8   : > { %v6358_v47 = vld [vmem:[%s8129_s5 + $0xd0] ss:$48 sps:$4 sm:$0xff]   ;;  %v6366_v48 = vld [vmem:[%s8129_s5 + $0x134] ss:$48 sps:$4 sm:$0xff]   ;;  %v6373_v49 = vld [vmem:[%s8129_s5 + $0x78] ss:$48 sps:$4 sm:$0xff]  }
 0x2a9   : > { %2106 = vmatpush1.bf16.msra.mxu0 %v6318_v16  ;;  %2147 = vmatpush1.bf16.msra.mxu1 %v6339_v23  ;;  %v6364_v50 = vld [vmem:[%s8129_s5 + $0x130] ss:$48 sps:$4 sm:$0xff]   ;;  %v6381_v51 = vld [vmem:[%s8129_s5 + $0xdc] ss:$48 sps:$4 sm:$0xff]   ;;  %v6372_v52 = vld [vmem:[%s8129_s5 + $0x194] ss:$48 sps:$4 sm:$0xff]  }
 0x2aa   : > { %2107 = vmatprep.subr.bf16.mxu0 %v6322_v18  ;;  %2148 = vmatprep.subr.bf16.mxu1 %v6343_v24  ;;  %v6379_v53 = vld [vmem:[%s8129_s5 + $0xd8] ss:$48 sps:$4 sm:$0xff]   ;;  %v6387_v54 = vld [vmem:[%s8129_s5 + $0x13c] ss:$48 sps:$4 sm:$0xff]   ;;  %v6370_v55 = vld [vmem:[%s8129_s5 + $0x190] ss:$48 sps:$4 sm:$0xff]  }
 0x2ab   : > { %v6378_v56 = vld [vmem:[%s8129_s5 + $0x1f4] ss:$48 sps:$4 sm:$0xff]   ;;  %v6385_v57 = vld [vmem:[%s8129_s5 + $0x138] ss:$48 sps:$4 sm:$0xff]   ;;  %v6393_v58 = vld [vmem:[%s8129_s5 + $0x19c] ss:$48 sps:$4 sm:$0xff]  }
 0x2ac   : > { %v6376_v59 = vld [vmem:[%s8129_s5 + $0x1f0] ss:$48 sps:$4 sm:$0xff]   ;;  %v6384_v60 = vld [vmem:[%s8129_s5 + $0x254] ss:$48 sps:$4 sm:$0xff]   ;;  %v6391_v61 = vld [vmem:[%s8129_s5 + $0x198] ss:$48 sps:$4 sm:$0xff]  }
 0x2ad   : > { %2108 = vmatpush1.bf16.msra.mxu0 %v6324_v21  ;;  %2149 = vmatpush1.bf16.msra.mxu1 %v6345_v27  ;;  %v6396_v62 = vld [vmem:[%s8129_s5 + $0x1fc] ss:$48 sps:$4 sm:$0xff]   ;;  %v6382_v63 = vld [vmem:[%s8129_s5 + $0x250] ss:$48 sps:$4 sm:$0xff]   ;;  %v6390_v0 = vld [vmem:[%s8129_s5 + $0x2b4] ss:$48 sps:$4 sm:$0xff]  }
 0x2ae   : > { %2109 = vmatprep.subr.bf16.mxu0 %v6328_v22  ;;  %2150 = vmatprep.subr.bf16.mxu1 %v6349_v28  ;;  %v6394_v1 = vld [vmem:[%s8129_s5 + $0x1f8] ss:$48 sps:$4 sm:$0xff]   ;;  %v6399_v2 = vld [vmem:[%s8129_s5 + $0x25c] ss:$48 sps:$4 sm:$0xff]   ;;  %v6388_v3 = vld [vmem:[%s8129_s5 + $0x2b0] ss:$48 sps:$4 sm:$0xff]  }
 0x2af   : > { %v6405_v4 = vld [vmem:[%s8129_s5 + $0x24] ss:$48 sps:$4 sm:$0xff]   ;;  %v6397_v5 = vld [vmem:[%s8129_s5 + $0x258] ss:$48 sps:$4 sm:$0xff]   ;;  %v6402_v7 = vld [vmem:[%s8129_s5 + $0x2bc] ss:$48 sps:$4 sm:$0xff]  }
 0x2b0   : > { %v6403_v8 = vld [vmem:[%s8129_s5 + $0x20] ss:$48 sps:$4 sm:$0xff]   ;;  %v6400_v9 = vld [vmem:[%s8129_s5 + $0x2b8] ss:$48 sps:$4 sm:$0xff]   ;;  %v6408_v10 = vld [vmem:[%s8129_s5 + $0x84] ss:$48 sps:$4 sm:$0xff]  }
 0x2b1   : > { %2110 = vmatpush1.bf16.msra.mxu0 %v6330_v25  ;;  %2151 = vmatpush1.bf16.msra.mxu1 %v6351_v31  ;;  %v6406_v11 = vld [vmem:[%s8129_s5 + $0x80] ss:$48 sps:$4 sm:$0xff]   ;;  %v6411_v13 = vld [vmem:[%s8129_s5 + $0xe4] ss:$48 sps:$4 sm:$0xff]   ;;  %v7255_v24 = vmov 0.0   ;;  %vm2387_vm2 = vcmask 64512  }
 0x2b2   : > { %2111 = vmatprep.subr.bf16.mxu0 %v6334_v26  ;;  %2152 = vmatprep.subr.bf16.mxu1 %v6355_v33  ;;  %v6409_v12 = vld [vmem:[%s8129_s5 + $0xe0] ss:$48 sps:$4 sm:$0xff]   ;;  %v6414_v14 = vld [vmem:[%s8129_s5 + $0x144] ss:$48 sps:$4 sm:$0xff]   ;;  %v6427_v25 = vld [vmem:[%s8129_s5 + $0x28] ss:$48 sps:$4 sm:$0xff]  }
 0x2b3   : > { %v6412_v15 = vld [vmem:[%s8129_s5 + $0x140] ss:$48 sps:$4 sm:$0xff]   ;;  %v6417_v16 = vld [vmem:[%s8129_s5 + $0x1a4] ss:$48 sps:$4 sm:$0xff]   ;;  %v6429_v26 = vld [vmem:[%s8129_s5 + $0x2c] ss:$48 sps:$4 sm:$0xff]  }
 0x2b4   : > { %v6415_v17 = vld [vmem:[%s8129_s5 + $0x1a0] ss:$48 sps:$4 sm:$0xff]   ;;  %v6420_v18 = vld [vmem:[%s8129_s5 + $0x204] ss:$48 sps:$4 sm:$0xff]   ;;  %v6432_v27 = vld [vmem:[%s8129_s5 + $0x8c] ss:$48 sps:$4 sm:$0xff]  }
 0x2b5   : > { %2112 = vmatpush1.bf16.msra.mxu0 %v6336_v29  ;;  %2153 = vmatpush1.bf16.msra.mxu1 %v6357_v36  ;;  %v6418_v19 = vld [vmem:[%s8129_s5 + $0x200] ss:$48 sps:$4 sm:$0xff]   ;;  %v6423_v20 = vld [vmem:[%s8129_s5 + $0x264] ss:$48 sps:$4 sm:$0xff]   ;;  %v6430_v28 = vld [vmem:[%s8129_s5 + $0x88] ss:$48 sps:$4 sm:$0xff]  }
 0x2b6   : > { %2113 = vmatprep.subr.bf16.mxu0 %v6340_v30  ;;  %2154 = vmatprep.subr.bf16.mxu1 %v6361_v38  ;;  %v6421_v21 = vld [vmem:[%s8129_s5 + $0x260] ss:$48 sps:$4 sm:$0xff]   ;;  %v6426_v22 = vld [vmem:[%s8129_s5 + $0x2c4] ss:$48 sps:$4 sm:$0xff]   ;;  %v6435_v29 = vld [vmem:[%s8129_s5 + $0xec] ss:$48 sps:$4 sm:$0xff]  }
 0x2b7   : > { %v6424_v23 = vld [vmem:[%s8129_s5 + $0x2c0] ss:$48 sps:$4 sm:$0xff]   ;;  %v6433_v30 = vld [vmem:[%s8129_s5 + $0xe8] ss:$48 sps:$4 sm:$0xff]   ;;  %v6438_v31 = vld [vmem:[%s8129_s5 + $0x14c] ss:$48 sps:$4 sm:$0xff]  }
 0x2b8   : > { %v6441_v33 = vld [vmem:[%s8129_s5 + $0x1ac] ss:$48 sps:$4 sm:$0xff]   ;;  %v6439_v34 = vld [vmem:[%s8129_s5 + $0x1a8] ss:$48 sps:$4 sm:$0xff]   ;;  %s8869_s20 = scalar_lea.vmem [#allocation7], %s8019_s12  ;;  %s8870_s21 = scalar_lea.vmem [#allocation8], %s8019_s12 }
 0x2b9   : > { %2114 = vmatpush1.bf16.msra.mxu0 %v6342_v32  ;;  %2155 = vmatpush1.bf16.msra.mxu1 %v6363_v41  ;;  %v6436_v32 = vld [vmem:[%s8129_s5 + $0x148] ss:$48 sps:$4 sm:$0xff]   ;;  %s8877_s2 = scalar_lea.vmem [#allocation20], %s8019_s12  ;;  %s8878_s29 = scalar_lea.vmem [#allocation23], %s8019_s12 }
 0x2ba   : > { %2181 = vmatprep.subr.bf16.mxu0 %v6348_v35  ;;  %2222 = vmatprep.subr.bf16.mxu1 %v6369_v42  ;;  %v6444_v35 = vld [vmem:[%s8129_s5 + $0x20c] ss:$48 sps:$4 sm:$0xff]   ;;  %v6442_v36 = vld [vmem:[%s8129_s5 + $0x208] ss:$48 sps:$4 sm:$0xff]   ;;  %s8879_s22 = scalar_lea.vmem [#allocation25], %s8019_s12  ;;  %s8880_s25 = scalar_lea.vmem [#allocation26], %s8019_s12 }
 0x2bb   : > { %v6445_v38 = vld [vmem:[%s8129_s5 + $0x268] ss:$48 sps:$4 sm:$0xff]   ;;  %s8881_s0 = sld [smem:[#allocation44_spill]] }
 0x2bc   : > { %2132 = vmatmul.mubr.bf16.vlgmr.msra.gmra.mrb[0].mxu0 %v8183_v37  ;;  %2173 = vmatmul.mubr.bf16.vlgmr.msra.gmra.mrb[0].mxu1 %v8183_v37  ;;  %v6448_v41 = vld [vmem:[%s8129_s5 + $0x2c8] ss:$48 sps:$4 sm:$0xff]  }
 0x2bd   : > { %2182 = vmatpush1.bf16.msra.mxu0 %v6346_v39  ;;  %2213 = vmatprep.mubr.bf16.mxu0 %v7254_v6  ;;  %v6447_v39 = vld [vmem:[%s8129_s5 + $0x26c] ss:$48 sps:$4 sm:$0xff]  }
 0x2be   : > { %2183 = vmatprep.subr.bf16.mxu0 %v6354_v40  ;;  %2223 = vmatpush1.bf16.msra.mxu1 %v6367_v45  ;;  %v6450_v40 = vld [vmem:[%s8129_s5 + $0x2cc] ss:$48 sps:$4 sm:$0xff]  }
 0x2bf   : > { %2254 = vmatprep.mubr.bf16.mxu1 %v7254_v6  ;;  %2224 = vmatprep.subr.bf16.mxu1 %v6375_v46 }
 0x2c1   : > { %2184 = vmatpush1.bf16.msra.mxu0 %v6352_v43  ;;  %p5893_p13 = scmp.ne.s32.totalorder %s8881_s0, 1 }
 0x2c2   : > { %2185 = vmatprep.subr.bf16.mxu0 %v6360_v44  ;;  %2225 = vmatpush1.bf16.msra.mxu1 %v6373_v49 }
 0x2c3   : > { %2226 = vmatprep.subr.bf16.mxu1 %v6381_v51 }
 0x2c5   : > { %2186 = vmatpush1.bf16.msra.mxu0 %v6358_v47 }
 0x2c6   : > { %2187 = vmatprep.subr.bf16.mxu0 %v6366_v48  ;;  %2227 = vmatpush1.bf16.msra.mxu1 %v6379_v53  ;;  %v1555_v53 = vld [vmem:[%s8023_s6] sm:$0xff] }
 0x2c7   : > { %2228 = vmatprep.subr.bf16.mxu1 %v6387_v54 }
 0x2c9   : > { %2188 = vmatpush1.bf16.msra.mxu0 %v6364_v50  ;;  %v1559_v50 = vlaneseq }
 0x2ca   : > { %2189 = vmatprep.subr.bf16.mxu0 %v6372_v52  ;;  %2229 = vmatpush1.bf16.msra.mxu1 %v6385_v57 }
 0x2cb   : > { %2230 = vmatprep.subr.bf16.mxu1 %v6393_v58  ;;  %v8266_v51 = vshrl.u32 %v1559_v50, 7 }
 0x2cd   : > { %2190 = vmatpush1.bf16.msra.mxu0 %v6370_v55  ;;  %v1577_v52 = vsub.s32 4, %v8266_v51  ;;  %v1581_v55 = vsub.s32 5, %v8266_v51 }
 0x2ce   : > { %2191 = vmatprep.subr.bf16.mxu0 %v6378_v56  ;;  %2231 = vmatpush1.bf16.msra.mxu1 %v6391_v61 }
 0x2cf   : > { %2232 = vmatprep.subr.bf16.mxu1 %v6396_v62  ;;  %v1578_v54 = vrot.slane %v1555_v53, %v1577_v52  ;;  %v1582_v62 = vrot.slane %v1555_v53, %v1581_v55 }
 0x2d1   : > { %2192 = vmatpush1.bf16.msra.mxu0 %v6376_v59 }
 0x2d2   : > { %2193 = vmatprep.subr.bf16.mxu0 %v6384_v60  ;;  %2233 = vmatpush1.bf16.msra.mxu1 %v6394_v1 }
 0x2d3   : > { %2234 = vmatprep.subr.bf16.mxu1 %v6399_v2  ;;  %v8281_v2 = vsub.s32 1, %v8266_v51 }
 0x2d5   : > { %2194 = vmatpush1.bf16.msra.mxu0 %v6382_v63 }
 0x2d6   : > { %2195 = vmatprep.subr.bf16.mxu0 %v6390_v0  ;;  %2235 = vmatpush1.bf16.msra.mxu1 %v6397_v5  ;;  %v1585_v0 = vsub.s32 6, %v8266_v51 }
 0x2d7   : > { %2236 = vmatprep.subr.bf16.mxu1 %v6402_v7 }
 0x2d9   : > { %2196 = vmatpush1.bf16.msra.mxu0 %v6388_v3 }
 0x2da   : > { %2263 = vmatprep.subr.bf16.mxu0 %v6405_v4  ;;  %2237 = vmatpush1.bf16.msra.mxu1 %v6400_v9 }
 0x2db   : > { %2304 = vmatprep.subr.bf16.mxu1 %v6429_v26 }
 0x2dc   : > { %2214 = vmatmul.mubr.bf16.vlgmr.msra.gmra.mrb[4].mxu0 %v8183_v37 }
 0x2dd   : > { %2264 = vmatpush1.bf16.msra.mxu0 %v6403_v8  ;;  %2295 = vmatprep.mubr.bf16.mxu0 %v7254_v6  ;;  %v1586_v8 = vrot.slane %v1555_v53, %v1585_v0 }
 0x2de   : > { %2255 = vmatmul.mubr.bf16.vlgmr.msra.gmra.mrb[4].mxu1 %v8183_v37  ;;  %2265 = vmatprep.subr.bf16.mxu0 %v6408_v10 }
 0x2df   : > { %2336 = vmatprep.mubr.bf16.mxu1 %v7254_v6  ;;  %2305 = vmatpush1.bf16.msra.mxu1 %v6427_v25 }
 0x2e0   : > { %2306 = vmatprep.subr.bf16.mxu1 %v6432_v27 }
 0x2e1   : > { %2266 = vmatpush1.bf16.msra.mxu0 %v6406_v11  ;;  %v1566_v11 = vrot.slane %v1555_v53, %v8281_v2 }
 0x2e2   : > { %2267 = vmatprep.subr.bf16.mxu0 %v6411_v13 }
 0x2e3   : > { %2307 = vmatpush1.bf16.msra.mxu1 %v6430_v28 }
 0x2e4   : > { %2308 = vmatprep.subr.bf16.mxu1 %v6435_v29 }
 0x2e5   : > { %2268 = vmatpush1.bf16.msra.mxu0 %v6409_v12 }
 0x2e6   : > { %2269 = vmatprep.subr.bf16.mxu0 %v6414_v14 }
 0x2e7   : > { %2309 = vmatpush1.bf16.msra.mxu1 %v6433_v30  ;;  %v8307_v30 = vld [vmem:[%s8023_s6 + $0x8] sm:$0xf] }
 0x2e8   : > { %2310 = vmatprep.subr.bf16.mxu1 %v6438_v31 }
 0x2e9   : > { %2270 = vmatpush1.bf16.msra.mxu0 %v6412_v15  ;;  %v8290_v15 = vsub.s32 2, %v8266_v51 }
 0x2ea   : > { %2271 = vmatprep.subr.bf16.mxu0 %v6417_v16  ;;  %v1589_v16 = vsub.s32 7, %v8266_v51 }
 0x2eb   : > { %2311 = vmatpush1.bf16.msra.mxu1 %v6436_v32 }
 0x2ec   : > { %2312 = vmatprep.subr.bf16.mxu1 %v6441_v33 }
 0x2ed   : > { %2272 = vmatpush1.bf16.msra.mxu0 %v6415_v17 }
 0x2ee   : > { %2273 = vmatprep.subr.bf16.mxu0 %v6420_v18 }
 0x2ef   : > { %2313 = vmatpush1.bf16.msra.mxu1 %v6439_v34 }
 0x2f0   : > { %2314 = vmatprep.subr.bf16.mxu1 %v6444_v35 }
 0x2f1   : > { %2274 = vmatpush1.bf16.msra.mxu0 %v6418_v19  ;;  %v1570_v19 = vrot.slane %v1555_v53, %v8290_v15 }
 0x2f2   : > { %2275 = vmatprep.subr.bf16.mxu0 %v6423_v20  ;;  %v1590_v20 = vrot.slane %v1555_v53, %v1589_v16 }
 0x2f3   : > { %2315 = vmatpush1.bf16.msra.mxu1 %v6442_v36 }
 0x2f4   : > { %2316 = vmatprep.subr.bf16.mxu1 %v6447_v39 }
 0x2f5   : > { %2276 = vmatpush1.bf16.msra.mxu0 %v6421_v21 }
 0x2f6   : > { %2277 = vmatprep.subr.bf16.mxu0 %v6426_v22  ;;  %v8300_v22 = vsub.s32 3, %v8266_v51 }
 0x2f7   : > { %2317 = vmatpush1.bf16.msra.mxu1 %v6445_v38 }
 0x2f8   : > { %2318 = vmatprep.subr.bf16.mxu1 %v6450_v40  ;;  %v1574_v26 = vrot.slane %v1555_v53, %v8300_v22 }
 0x2f9   : > { %2278 = vmatpush1.bf16.msra.mxu0 %v6424_v23 }
 0x2fa   : > { %6043 = vmatprep.subr.bf16.mxu0 %v7255_v24 }
 0x2fb   : > { %2319 = vmatpush1.bf16.msra.mxu1 %v6448_v41 }
 0x2fc   : > { %2296 = vmatmul.mubr.bf16.vlgmr.msra.gmra.mrb[8].mxu0 %v8183_v37  ;;  %6049 = vmatprep.subr.bf16.mxu1 %v7255_v24 }
 0x2fd   : > { %6045 = vmatprep.mubr.msk.bf16.mxu0 %vm7256_vm0, %v7255_v24 }
 0x2fe   : > { %2337 = vmatmul.mubr.bf16.vlgmr.msra.gmra.mrb[8].mxu1 %v8183_v37  ;;  %v8273_v37 = vsub.s32 0, %v8266_v51 }
 0x2ff   : > { %6051 = vmatprep.mubr.msk.bf16.mxu1 %vm7256_vm0, %v7255_v24 }
 0x300   : > { %v1562_v59 = vrot.slane %v1555_v53, %v8273_v37  ;;  %v1594_v31 = vrot.slane %v8307_v30, %v8273_v37 }
 0x38f   : > { %v2133_v42 = vpop.f32.mrb[0].mxu0  ;;  %v2174_v46 = vpop.f32.mrb[0].mxu1 }
 0x390   : > { %v2135_v43 = vpop.f32.mrb[1].mxu0  ;;  %v2176_v47 = vpop.f32.mrb[1].mxu1  ;;  %v2134_v1 = vadd.f32 %v2133_v42, %v1562_v59  ;;  %v2175_v21 = vadd.f32 %v2174_v46, %v1570_v19 }
 0x391   : > { %v2137_v44 = vpop.f32.mrb[2].mxu0  ;;  %v2178_v48 = vpop.f32.mrb[2].mxu1  ;;  %v2136_v14 = vadd.f32 %v2135_v43, %v1566_v11  ;;  %v2177_v28 = vadd.f32 %v2176_v47, %v1574_v26 }
 0x392   : > { %v2138_v45 = vpop.f32.mrb[3].mxu0  ;;  %v2179_v49 = vpop.f32.mrb[3].mxu1  ;;  %v2345_v10 = vpack.c.bf16 %v2134_v1, %v2134_v1  ;;  %v2549_v25 = vpack.c.bf16 %v2175_v21, %v2175_v21 }
 0x393   : > { %v2448_v18 = vpack.c.bf16 %v2136_v14, %v2136_v14  ;;  %v2650_v29 = vpack.c.bf16 %v2177_v28, %v2177_v28 }
 0x3af   : > { %v2215_v56 = vpop.f32.mrb[4].mxu0 }
 0x3b0   : > { %v2216_v57 = vadd.f32 %v2215_v56, %v1578_v54  ;;  %v2217_v58 = vpop.f32.mrb[5].mxu0 }
 0x3b1   : > { %v2219_v60 = vpop.f32.mrb[6].mxu0  ;;  %v2256_v3 = vpop.f32.mrb[4].mxu1  ;;  %v2218_v4 = vadd.f32 %v2217_v58, %v1582_v62 }
 0x3b2   : > { %v2346_v61 = vpack.c.bf16 %v2216_v57, %v2216_v57  ;;  %v2220_v63 = vpop.f32.mrb[7].mxu0  ;;  %v2258_v5 = vpop.f32.mrb[5].mxu1  ;;  %v2257_v13 = vadd.f32 %v2256_v3, %v1586_v8 }
 0x3b3   : > { %v2260_v7 = vpop.f32.mrb[6].mxu1  ;;  %v2449_v12 = vpack.c.bf16 %v2218_v4, %v2218_v4  ;;  %v2259_v23 = vadd.f32 %v2258_v5, %v1590_v20 }
 0x3b4   : > { %6044 = vmatpush3.bf16.xpose.msra.mxu0 %v2346_v61  ;;  %v2261_v9 = vpop.f32.mrb[7].mxu1  ;;  %v2550_v17 = vpack.c.bf16 %v2257_v13, %v2257_v13 }
 0x3b5   : > { %6055 = vmatprep.subr.bf16.mxu0 %v7255_v24  ;;  %v2651_v27 = vpack.c.bf16 %v2259_v23, %v2259_v23 }
 0x3bb   : > { %6046 = vmatmul.mubr.bf16.vlgmr.msra.gmra.mrb[12].mxu0 %v2345_v10 }
 0x3bc   : > { %6056 = vmatpush3.bf16.xpose.msra.mxu0 %v2449_v12  ;;  %6057 = vmatprep.mubr.msk.bf16.mxu0 %vm7256_vm0, %v7255_v24 }
 0x3bd   : > { %6067 = vmatprep.subr.bf16.mxu0 %v7255_v24 }
 0x3c3   : > { %6058 = vmatmul.mubr.bf16.vlgmr.msra.gmra.mrb[16].mxu0 %v2448_v18 }
 0x3c4   : > { %6068 = vmatpush3.bf16.xpose.msra.mxu0 %v2550_v17  ;;  %6069 = vmatprep.mubr.msk.bf16.mxu0 %vm7256_vm0, %v7255_v24 }
 0x3c5   : > { %6079 = vmatprep.subr.bf16.mxu0 %v7255_v24 }
 0x3cb   : > { %6070 = vmatmul.mubr.bf16.vlgmr.msra.gmra.mrb[20].mxu0 %v2549_v25 }
 0x3cc   : > { %6080 = vmatpush3.bf16.xpose.msra.mxu0 %v2651_v27  ;;  %6081 = vmatprep.mubr.msk.bf16.mxu0 %vm7256_vm0, %v7255_v24 }
 0x3cf   : > { %v2297_v32 = vpop.f32.mrb[8].mxu0 }
 0x3d0   : > { %v2298_v33 = vadd.f32 %v2297_v32, %v1594_v31  ;;  %v8311_v34 = vpop.f32.mrb[9].mxu0  ;;  %v6451_v31 = vld [vmem:[%s8035_s30 + $0x40] sm:$0xff]  }
 0x3d1   : > { %v2301_v35 = vpop.f32.mrb[10].mxu0  ;;  %v2338_v26 = vpop.f32.mrb[8].mxu1  ;;  %v6452_v32 = vld [vmem:[%s8035_s30] sm:$0xff]   ;;  %5921 = vmatprep.subr.bf16.mxu0 %v6451_v31 }
 0x3d2   : > { %v2400_v36 = vpack.c.bf16 %v2298_v33, %v2298_v33  ;;  %v2302_v38 = vpop.f32.mrb[11].mxu0  ;;  %v2340_v27 = vpop.f32.mrb[9].mxu1  ;;  %v6453_v33 = vld [vmem:[%s8035_s30 + $0x48] sm:$0xff]   ;;  %v6476_v31 = vld [vmem:[%s8035_s30 + $0xa0] sm:$0xff]  }
 0x3d3   : > { %6082 = vmatmul.mubr.bf16.vlgmr.msra.gmra.mrb[24].mxu0 %v2650_v29  ;;  %v2342_v28 = vpop.f32.mrb[10].mxu1  ;;  %v6454_v35 = vld [vmem:[%s8035_s30 + $0x8] sm:$0xff]   ;;  %v6456_v38 = vld [vmem:[%s8035_s30 + $0x10] sm:$0xff]  }
 0x3d4   : > { %v2406_v39 = vsel %vm2404_vm1, %v2400_v36, 0  ;;  %v2343_v29 = vpop.f32.mrb[11].mxu1  ;;  %5922 = vmatpush3.bf16.msra.mxu0 %v6452_v32  ;;  %v6455_v36 = vld [vmem:[%s8035_s30 + $0x50] sm:$0xff]   ;;  %v6474_v28 = vld [vmem:[%s8035_s30 + $0x98] sm:$0xff]   ;;  %v6477_v32 = vld [vmem:[%s8035_s30 + $0xe8] sm:$0xff]  }
 0x3d5   : > { %6050 = vmatpush3.bf16.msra.mxu1 %v2406_v39  ;;  %5923 = vmatprep.subr.bf16.mxu0 %v6453_v33  ;;  %v6457_v39 = vld [vmem:[%s8035_s30 + $0x58] sm:$0xff]   ;;  %v6475_v29 = vld [vmem:[%s8035_s30 + $0xe0] sm:$0xff]   ;;  %v6478_v33 = vld [vmem:[%s8035_s30 + $0xa8] sm:$0xff]  }
 0x3d6   : > { %6061 = vmatprep.subr.bf16.mxu1 %v7255_v24 }
 0x3d8   : > { %5924 = vmatpush3.bf16.msra.mxu0 %v6454_v35  ;;  %v6479_v35 = vld [vmem:[%s8035_s30 + $0xf0] sm:$0xff]  }
 0x3d9   : > { %5925 = vmatprep.subr.bf16.mxu0 %v6455_v36  ;;  %v6480_v36 = vld [vmem:[%s8035_s30 + $0xb0] sm:$0xff]  }
 0x3dc   : > { %5926 = vmatpush3.bf16.msra.mxu0 %v6456_v38  ;;  %v6481_v38 = vld [vmem:[%s8035_s30 + $0xf8] sm:$0xff]  }
 0x3dd   : > { %5927 = vmatprep.subr.bf16.mxu0 %v6457_v39  ;;  %v6482_v39 = vld [vmem:[%s8035_s30 + $0xb8] sm:$0xff]  }
 0x48e   : > { %v2381_v40 = vpop.f32.mrb[12].mxu0 }
 0x48f   : > { %v6047_v41 = vpop.f32.mrb[13].mxu0  ;;  %v2388_v42 = vsel %vm2387_vm2, %v2381_v40, -inf }
 0x490   : > { %2389 = vmax.xlane.f32.xlu0 %v2388_v42  ;;  %v2384_v43 = vpop.f32.mrb[14].mxu0  ;;  %v6459_v41 = vld [vmem:[%s8035_s30 + $0x60] sm:$0xff]  }
 0x491   : > { %v6048_v44 = vpop.f32.mrb[15].mxu0  ;;  %v6461_v42 = vld [vmem:[%s8035_s30 + $0x20] sm:$0xff]  }
 0x492   : > { %v1598_v44 = vrot.slane %v8307_v30, %v8281_v2 }
 0x496   : > { %v2484_v45 = vpop.f32.mrb[16].mxu0 }
 0x497   : > { %v6059_v46 = vpop.f32.mrb[17].mxu0  ;;  %v2490_v47 = vsel %vm2387_vm2, %v2484_v45, -inf }
 0x498   : > { %2491 = vmax.xlane.f32.xlu0 %v2490_v47  ;;  %v2487_v48 = vpop.f32.mrb[18].mxu0  ;;  %v1602_v47 = vrot.slane %v8307_v30, %v8290_v15 }
 0x499   : > { %v6060_v49 = vpop.f32.mrb[19].mxu0 }
 0x49e   : > { %v2585_v50 = vpop.f32.mrb[20].mxu0 }
 0x49f   : > { %v6071_v53 = vpop.f32.mrb[21].mxu0  ;;  %v2591_v54 = vsel %vm2387_vm2, %v2585_v50, -inf }
 0x4a0   : > { %2592 = vmax.xlane.f32.xlu1 %v2591_v54  ;;  %v2588_v56 = vpop.f32.mrb[22].mxu0  ;;  %v2339_v53 = vadd.f32 %v2338_v26, %v1602_v47  ;;  %v6472_v26 = vld [vmem:[%s8035_s30 + $0xd8] sm:$0xff]  }
 0x4a1   : > { %v6072_v57 = vpop.f32.mrb[23].mxu0 }
 0x4a6   : > { %v2686_v58 = vpop.f32.mrb[24].mxu0 }
 0x4a7   : > { %v6083_v59 = vpop.f32.mrb[25].mxu0  ;;  %v2692_v60 = vsel %vm2387_vm2, %v2686_v58, -inf }
 0x4a8   : > { %2693 = vmax.xlane.f32.xlu1 %v2692_v60  ;;  %v2689_v61 = vpop.f32.mrb[26].mxu0  ;;  %v1606_v60 = vrot.slane %v8307_v30, %v8300_v22 }
 0x4a9   : > { %v6084_v62 = vpop.f32.mrb[27].mxu0 }
 0x51d   : > { %v2390_v63 = vpop.xlane.xlu0 %2389 }
 0x51e   : > { %v2391_v1 = vsub.f32 %v2381_v40, %v2390_v63  ;;  %v6458_v40 = vld [vmem:[%s8035_s30 + $0x18] sm:$0xff]   ;;  %v2341_v63 = vadd.f32 %v2340_v27, %v1606_v60 }
 0x51f   : > { %5928 = vmatpush3.bf16.msra.mxu0 %v6458_v40  ;;  %v6473_v27 = vld [vmem:[%s8035_s30 + $0x38] sm:$0xff]  }
 0x520   : > { %v2392_v3 = vmul.f32 1.442695, %v2391_v1  ;;  %5929 = vmatprep.subr.bf16.mxu0 %v6459_v41  ;;  %v2704_v30 = vpack.c.bf16 %v2341_v63, %v2341_v63 }
 0x522   : > { %6579 = vpow2.f32 %v2392_v3 }
 0x523   : > { %5930 = vmatpush3.bf16.msra.mxu0 %v6461_v42 }
 0x525   : > { %v2492_v4 = vpop.xlane.xlu0 %2491 }
 0x526   : > { %v2493_v5 = vsub.f32 %v2484_v45, %v2492_v4  ;;  %v2300_v45 = vadd.f32 %v8311_v34, %v1598_v44  ;;  %v2603_v34 = vpack.c.bf16 %v2339_v53, %v2339_v53 }
 0x528   : > { %v2494_v7 = vmul.f32 1.442695, %v2493_v5  ;;  %v2502_v49 = vpack.c.bf16 %v2300_v45, %v2300_v45  ;;  %v2608_v61 = vsel %vm2404_vm1, %v2603_v34, 0 }
 0x52a   : > { %6581 = vpow2.f32 %v2494_v7  ;;  %v2507_v56 = vsel %vm2404_vm1, %v2502_v49, 0  ;;  %v6460_v7 = vld [vmem:[%s8035_s30 + $0xc0] sm:$0xff]  }
 0x52c   : > { %v6580_v8 = vpop.eup %6579 }
 0x52d   : > { %v2593_v9 = vpop.xlane.xlu1 %2592  ;;  %v2394_v10 = vsel %vm2387_vm2, %v6580_v8, 0.0 }
 0x52e   : > { %v2594_v11 = vsub.f32 %v2585_v50, %v2593_v9  ;;  %2395 = vadd.xlane.f32.xlu0 %v2394_v10 }
 0x530   : > { %v2595_v12 = vmul.f32 1.442695, %v2594_v11  ;;  %v6462_v11 = vld [vmem:[%s8035_s30 + $0x80] sm:$0xff]  }
 0x532   : > { %6583 = vpow2.f32 %v2595_v12 }
 0x534   : > { %v6582_v13 = vpop.eup %6581 }
 0x535   : > { %v2694_v14 = vpop.xlane.xlu1 %2693  ;;  %v2496_v17 = vsel %vm2387_vm2, %v6582_v13, 0.0 }
 0x536   : > { %v2695_v18 = vsub.f32 %v2686_v58, %v2694_v14  ;;  %2497 = vadd.xlane.f32.xlu1 %v2496_v17  ;;  %v6464_v14 = vld [vmem:[%s8035_s30 + $0xc8] sm:$0xff]  }
 0x537   : > { %v6465_v17 = vld [vmem:[%s8035_s30 + $0x28] sm:$0xff]  }
 0x538   : > { %v2696_v19 = vmul.f32 1.442695, %v2695_v18  ;;  %v6466_v18 = vld [vmem:[%s8035_s30 + $0x88] sm:$0xff]  }
 0x53a   : > { %6585 = vpow2.f32 %v2696_v19  ;;  %v6467_v19 = vld [vmem:[%s8035_s30 + $0x70] sm:$0xff]  }
 0x53c   : > { %v8321_v20 = vpop.eup %6583 }
 0x53d   : > { %v2597_v21 = vsel %vm2387_vm2, %v8321_v20, 0.0 }
 0x53e   : > { %2598 = vadd.xlane.f32.xlu0 %v2597_v21  ;;  %v6469_v21 = vld [vmem:[%s8035_s30 + $0x30] sm:$0xff]  }
 0x544   : > { %v8325_v23 = vpop.eup %6585 }
 0x545   : > { %v2698_v25 = vsel %vm2387_vm2, %v8325_v23, 0.0 }
 0x546   : > { %2699 = vadd.xlane.f32.xlu1 %v2698_v25  ;;  %v6471_v25 = vld [vmem:[%s8035_s30 + $0x78] sm:$0xff]  }
 0x5bb   : > { %v2396_v43 = vpop.xlane.xlu0 %2395 }
 0x5bc   : > { %6587 = vrcp.f32 %v2396_v43 }
 0x5c3   : > { %v2498_v46 = vpop.xlane.xlu1 %2497 }
 0x5c4   : > { %6589 = vrcp.f32 %v2498_v46 }
 0x5c6   : > { %v6588_v48 = vpop.eup %6587 }
 0x5c7   : > { %v2398_v50 = vmul.f32 %v6588_v48, %v6580_v8  ;;  %v2709_v8 = vsel %vm2404_vm1, %v2704_v30, 0  ;;  %v5703_v30 = vld [vmem:[%s8869_s20] ss:$0 sm:$0xff] }
 0x5c9   : > { %v2399_v54 = vpack.c.bf16 %v2398_v50, %v2398_v50 }
 0x5cb   : > { %6052 = vmatmul.mubr.msk.bf16.vlgmr.msra.gmra.mrb[12].mxu1 %vm2387_vm2, %v2399_v54  ;;  %v2599_v57 = vpop.xlane.xlu0 %2598 }
 0x5cc   : > { %6062 = vmatpush3.bf16.msra.mxu1 %v2507_v56  ;;  %6591 = vrcp.f32 %v2599_v57  ;;  %6063 = vmatprep.mubr.msk.bf16.mxu1 %vm7256_vm0, %v7255_v24 }
 0x5cd   : > { %6073 = vmatprep.subr.bf16.mxu1 %v7255_v24 }
 0x5ce   : > { %v6590_v58 = vpop.eup %6589 }
 0x5cf   : > { %v2500_v59 = vmul.f32 %v6590_v58, %v6582_v13  ;;  %v6463_v13 = vld [vmem:[%s8035_s30 + $0x68] sm:$0xff]  }
 0x5d0   : > { %5931 = vmatprep.subr.bf16.mxu0 %v6463_v13  ;;  %v6617_v13 = vld [vmem:[#allocation2] sm:$0xff] }
 0x5d1   : > { %v2501_v62 = vpack.c.bf16 %v2500_v59, %v2500_v59  ;;  %5932 = vmatpush3.bf16.msra.mxu0 %v6465_v17  ;;  %v6483_v17 = vld [vmem:[%s8049_s26] ss:$16 sps:$4 sm:$0xff]  }
 0x5d2   : > { %5933 = vmatprep.subr.bf16.mxu0 %v6467_v19  ;;  %v6486_v19 = vld [vmem:[%s8049_s26 + $0x8] ss:$16 sps:$4 sm:$0xff]  }
 0x5d3   : > { %6064 = vmatmul.mubr.msk.bf16.vlgmr.msra.gmra.mrb[16].mxu1 %vm2387_vm2, %v2501_v62  ;;  %v2700_v1 = vpop.xlane.xlu1 %2699 }
 0x5d4   : > { %6593 = vrcp.f32 %v2700_v1  ;;  %6074 = vmatpush3.bf16.msra.mxu1 %v2608_v61  ;;  %6075 = vmatprep.mubr.msk.bf16.mxu1 %vm7256_vm0, %v7255_v24 }
 0x5d5   : > { %6085 = vmatprep.subr.bf16.mxu1 %v7255_v24  ;;  %5934 = vmatpush3.bf16.msra.mxu0 %v6469_v21  ;;  %v6491_v21 = vld [vmem:[%s8049_s26 + $0x24] ss:$16 sps:$4 sm:$0xff]  }
 0x5d6   : > { %v6592_v3 = vpop.eup %6591  ;;  %5935 = vmatprep.subr.bf16.mxu0 %v6471_v25  ;;  %v6489_v25 = vld [vmem:[%s8049_s26 + $0x20] ss:$16 sps:$4 sm:$0xff]  }
 0x5d7   : > { %v2601_v4 = vmul.f32 %v6592_v3, %v8321_v20  ;;  %v6468_v20 = vld [vmem:[%s8035_s30 + $0xd0] sm:$0xff]  }
 0x5d9   : > { %v2602_v5 = vpack.c.bf16 %v2601_v4, %v2601_v4  ;;  %5936 = vmatpush3.bf16.msra.mxu0 %v6473_v27 }
 0x5db   : > { %6076 = vmatmul.mubr.msk.bf16.vlgmr.msra.gmra.mrb[20].mxu1 %vm2387_vm2, %v2602_v5 }
 0x5dc   : > { %6086 = vmatpush3.bf16.msra.mxu1 %v2709_v8  ;;  %6087 = vmatprep.mubr.msk.bf16.mxu1 %vm7256_vm0, %v7255_v24 }
 0x5dd   : > { %5943 = vmatprep.subr.bf16.mxu1 %v6460_v7 }
 0x5de   : > { %v6594_v9 = vpop.eup %6593 }
 0x5df   : > { %v2702_v10 = vmul.f32 %v6594_v9, %v8325_v23  ;;  %v6470_v23 = vld [vmem:[%s8035_s30 + $0x90] sm:$0xff]  }
 0x5e1   : > { %v2703_v12 = vpack.c.bf16 %v2702_v10, %v2702_v10 }
 0x5e3   : > { %6088 = vmatmul.mubr.msk.bf16.vlgmr.msra.gmra.mrb[24].mxu1 %vm2387_vm2, %v2703_v12 }
 0x5e4   : > { %5944 = vmatpush3.bf16.msra.mxu1 %v6462_v11 }
 0x5e5   : > { %5945 = vmatprep.subr.bf16.mxu1 %v6464_v14 }
 0x5e8   : > { %5946 = vmatpush3.bf16.msra.mxu1 %v6466_v18  ;;  %v6485_v18 = vld [vmem:[%s8049_s26 + $0x4] ss:$16 sps:$4 sm:$0xff]  }
 0x5e9   : > { %5947 = vmatprep.subr.bf16.mxu1 %v6468_v20  ;;  %v6488_v20 = vld [vmem:[%s8049_s26 + $0xc] ss:$16 sps:$4 sm:$0xff]   ;;  %3344 = vmatprep.subr.bf16.mxu0 %v6485_v18 }
 0x5ec   : > { %5948 = vmatpush3.bf16.msra.mxu1 %v6470_v23  ;;  %v6494_v23 = vld [vmem:[%s8049_s26 + $0x2c] ss:$16 sps:$4 sm:$0xff]  }
 0x5ed   : > { %5949 = vmatprep.subr.bf16.mxu1 %v6472_v26  ;;  %v6492_v26 = vld [vmem:[%s8049_s26 + $0x28] ss:$16 sps:$4 sm:$0xff]  }
 0x5f0   : > { %5950 = vmatpush3.bf16.msra.mxu1 %v6474_v28 }
 0x5f1   : > { %5951 = vmatprep.subr.bf16.mxu1 %v6475_v29 }
 0x5f4   : > { %5952 = vmatpush3.bf16.msra.mxu1 %v6476_v31 }
 0x5f5   : > { %5953 = vmatprep.subr.bf16.mxu1 %v6477_v32  ;;  %v6497_v32 = vld [vmem:[%s8049_s26 + $0x44] ss:$16 sps:$4 sm:$0xff]  }
 0x5f8   : > { %5954 = vmatpush3.bf16.msra.mxu1 %v6478_v33  ;;  %v6495_v33 = vld [vmem:[%s8049_s26 + $0x40] ss:$16 sps:$4 sm:$0xff]  }
 0x5f9   : > { %5955 = vmatprep.subr.bf16.mxu1 %v6479_v35  ;;  %v6500_v35 = vld [vmem:[%s8049_s26 + $0x4c] ss:$16 sps:$4 sm:$0xff]  }
 0x5fc   : > { %5956 = vmatpush3.bf16.msra.mxu1 %v6480_v36  ;;  %v6498_v36 = vld [vmem:[%s8049_s26 + $0x48] ss:$16 sps:$4 sm:$0xff]  }
 0x5fd   : > { %5957 = vmatprep.subr.bf16.mxu1 %v6481_v38  ;;  %v6503_v38 = vld [vmem:[%s8049_s26 + $0x64] ss:$16 sps:$4 sm:$0xff]  }
 0x600   : > { %5958 = vmatpush3.bf16.msra.mxu1 %v6482_v39  ;;  %v6501_v39 = vld [vmem:[%s8049_s26 + $0x60] ss:$16 sps:$4 sm:$0xff]  }
 0x601   : > { %3385 = vmatprep.subr.bf16.mxu1 %v6488_v20  ;;  %v3438_v20 = vld [vmem:[%s8134_s7 + $0x60] sm:$0xff] }
 0x69e   : > { %v2442_v40 = vpop.f32.mrb[12].mxu1 }
 0x69f   : > { %v6053_v41 = vpop.f32.mrb[13].mxu1  ;;  %v2815_v47 = vpack.c.bf16 %v2442_v40, %v2442_v40  ;;  %v6506_v40 = vld [vmem:[%s8049_s26 + $0x6c] ss:$16 sps:$4 sm:$0xff]  }
 0x6a0   : > { %v2445_v42 = vpop.f32.mrb[14].mxu1  ;;  %v6504_v41 = vld [vmem:[%s8049_s26 + $0x68] ss:$16 sps:$4 sm:$0xff]  }
 0x6a1   : > { %v6054_v43 = vpop.f32.mrb[15].mxu1  ;;  %v6509_v42 = vld [vmem:[%s8049_s26 + $0x84] ss:$16 sps:$4 sm:$0xff]  }
 0x6a2   : > { %v6507_v43 = vld [vmem:[%s8049_s26 + $0x80] ss:$16 sps:$4 sm:$0xff]  }
 0x6a6   : > { %v2543_v44 = vpop.f32.mrb[16].mxu1 }
 0x6a7   : > { %v2816_v45 = vpack.c.bf16 %v2543_v44, %v2543_v44  ;;  %v6065_v46 = vpop.f32.mrb[17].mxu1  ;;  %v6512_v44 = vld [vmem:[%s8049_s26 + $0x8c] ss:$16 sps:$4 sm:$0xff]  }
 0x6a8   : > { %v2546_v48 = vpop.f32.mrb[18].mxu1  ;;  %v6515_v46 = vld [vmem:[%s8049_s26 + $0xa4] ss:$16 sps:$4 sm:$0xff]  }
 0x6a9   : > { %v6066_v49 = vpop.f32.mrb[19].mxu1  ;;  %3050 = vmatprep.mubr.bf16.mxu0 %v2816_v45  ;;  %v6510_v45 = vld [vmem:[%s8049_s26 + $0x88] ss:$16 sps:$4 sm:$0xff]   ;;  %v6518_v48 = vld [vmem:[%s8049_s26 + $0xac] ss:$16 sps:$4 sm:$0xff]  }
 0x6aa   : > { %3051 = vmatmul.mubr.bf16.vlgmr.msra.gmra.mrb[28].mxu0 %v2815_v47  ;;  %v6513_v47 = vld [vmem:[%s8049_s26 + $0xa0] ss:$16 sps:$4 sm:$0xff]   ;;  %v6516_v49 = vld [vmem:[%s8049_s26 + $0xa8] ss:$16 sps:$4 sm:$0xff]  }
 0x6ab   : > { %3376 = vmatprep.mubr.bf16.mxu0 %v7254_v6  ;;  %3345 = vmatpush1.bf16.msra.mxu0 %v6483_v17  ;;  %v5737_v17 = vld [vmem:[%s1432_s19] ss:$0 sm:$0xff]  ;;  %s8873_s19 = scalar_lea.vmem [#allocation14], %s8019_s12 }
 0x6ac   : > { %3346 = vmatprep.subr.bf16.mxu0 %v6491_v21  ;;  %v3435_v21 = vld [vmem:[%s8134_s7 + $0x48] sm:$0xff] }
 0x6ae   : > { %v2644_v50 = vpop.f32.mrb[20].mxu1 }
 0x6af   : > { %v6077_v53 = vpop.f32.mrb[21].mxu1  ;;  %v2817_v59 = vpack.c.bf16 %v2644_v50, %v2644_v50  ;;  %3347 = vmatpush1.bf16.msra.mxu0 %v6489_v25  ;;  %v6521_v50 = vld [vmem:[%s8049_s26 + $0xc4] ss:$16 sps:$4 sm:$0xff]  }
 0x6b0   : > { %v2647_v54 = vpop.f32.mrb[22].mxu1  ;;  %3348 = vmatprep.subr.bf16.mxu0 %v6497_v32  ;;  %v6519_v53 = vld [vmem:[%s8049_s26 + $0xc0] ss:$16 sps:$4 sm:$0xff]   ;;  %v3443_v32 = vld [vmem:[%s8134_s7 + $0x88] sm:$0xff] }
 0x6b1   : > { %v6078_v56 = vpop.f32.mrb[23].mxu1  ;;  %v6524_v54 = vld [vmem:[%s8049_s26 + $0xcc] ss:$16 sps:$4 sm:$0xff]  }
 0x6b2   : > { %v6522_v56 = vld [vmem:[%s8049_s26 + $0xc8] ss:$16 sps:$4 sm:$0xff]  }
 0x6b3   : > { %3349 = vmatpush1.bf16.msra.mxu0 %v6495_v33  ;;  %v3447_v33 = vld [vmem:[%s8134_s7 + $0xa8] sm:$0xff] }
 0x6b4   : > { %3350 = vmatprep.subr.bf16.mxu0 %v6503_v38 }
 0x6b6   : > { %v2745_v57 = vpop.f32.mrb[24].mxu1 }
 0x6b7   : > { %v2818_v34 = vpack.c.bf16 %v2745_v57, %v2745_v57  ;;  %v6089_v58 = vpop.f32.mrb[25].mxu1  ;;  %3351 = vmatpush1.bf16.msra.mxu0 %v6501_v39  ;;  %v6527_v57 = vld [vmem:[%s8049_s26 + $0xe4] ss:$16 sps:$4 sm:$0xff]   ;;  %v3450_v39 = vld [vmem:[%s8134_s7 + $0xc0] sm:$0xff] }
 0x6b8   : > { %v2748_v60 = vpop.f32.mrb[26].mxu1  ;;  %3352 = vmatprep.subr.bf16.mxu0 %v6509_v42  ;;  %v6530_v58 = vld [vmem:[%s8049_s26 + $0xec] ss:$16 sps:$4 sm:$0xff]   ;;  %v3451_v42 = vld [vmem:[%s8134_s7 + $0xc8] sm:$0xff] }
 0x6b9   : > { %v6090_v61 = vpop.f32.mrb[27].mxu1  ;;  %3090 = vmatprep.mubr.bf16.mxu1 %v2818_v34  ;;  %v6525_v34 = vld [vmem:[%s8049_s26 + $0xe0] ss:$16 sps:$4 sm:$0xff]   ;;  %v6528_v60 = vld [vmem:[%s8049_s26 + $0xe8] ss:$16 sps:$4 sm:$0xff]   ;;  %s8874_s26 = sld [smem:[#allocation56_spill]] }
 0x6ba   : > { %3091 = vmatmul.mubr.bf16.vlgmr.msra.gmra.mrb[28].mxu1 %v2817_v59  ;;  %v3426_v59 = vld [vmem:[%s8134_s7] sm:$0xff] }
 0x6bb   : > { %3417 = vmatprep.mubr.bf16.mxu1 %v7254_v6  ;;  %3386 = vmatpush1.bf16.msra.mxu1 %v6486_v19  ;;  %v3430_v61 = vld [vmem:[%s8134_s7 + $0x20] sm:$0xff] }
 0x6bc   : > { %3387 = vmatprep.subr.bf16.mxu1 %v6494_v23  ;;  %3353 = vmatpush1.bf16.msra.mxu0 %v6507_v43  ;;  %v3434_v19 = vld [vmem:[%s8134_s7 + $0x40] sm:$0xff]  ;;  %v3439_v23 = vld [vmem:[%s8134_s7 + $0x68] sm:$0xff] }
 0x6bd   : > { %3354 = vmatprep.subr.bf16.mxu0 %v6515_v46  ;;  %v3455_v43 = vld [vmem:[%s8134_s7 + $0xe8] sm:$0xff] }
 0x6bf   : > { %3388 = vmatpush1.bf16.msra.mxu1 %v6492_v26 }
 0x6c0   : > { %3389 = vmatprep.subr.bf16.mxu1 %v6500_v35  ;;  %3355 = vmatpush1.bf16.msra.mxu0 %v6513_v47  ;;  %v5778_v35 = vcombine.low %v3434_v19, %v3438_v20  ;;  %v3458_v47 = vld [vmem:[%s8134_s7 + $0x100] sm:$0xff] }
 0x6c1   : > { %3356 = vmatprep.subr.bf16.mxu0 %v6521_v50  ;;  %v3459_v50 = vld [vmem:[%s8134_s7 + $0x108] sm:$0xff] }
 0x6c3   : > { %3390 = vmatpush1.bf16.msra.mxu1 %v6498_v36  ;;  %v5780_v36 = vcombine.low %v3435_v21, %v3439_v23 }
 0x6c4   : > { %3391 = vmatprep.subr.bf16.mxu1 %v6506_v40  ;;  %3357 = vmatpush1.bf16.msra.mxu0 %v6519_v53  ;;  %v5789_v40 = vcombine.high %v3443_v32, %v3447_v33  ;;  %v3463_v53 = vld [vmem:[%s8134_s7 + $0x128] sm:$0xff] }
 0x6c5   : > { %3358 = vmatprep.subr.bf16.mxu0 %v6527_v57 }
 0x6c7   : > { %3392 = vmatpush1.bf16.msra.mxu1 %v6504_v41  ;;  %v3454_v41 = vld [vmem:[%s8134_s7 + $0xe0] sm:$0xff] }
 0x6c8   : > { %3393 = vmatprep.subr.bf16.mxu1 %v6512_v44  ;;  %3359 = vmatpush1.bf16.msra.mxu0 %v6525_v34  ;;  %v5795_v46 = vcombine.high %v3450_v39, %v3454_v41  ;;  %v3466_v34 = vld [vmem:[%s8134_s7 + $0x140] sm:$0xff] }
 0x6cb   : > { %3394 = vmatpush1.bf16.msra.mxu1 %v6510_v45  ;;  %v5788_v45 = vcombine.low %v3443_v32, %v3447_v33  ;;  %v3436_v33 = vld [vmem:[%s8134_s7 + $0x50] sm:$0xff] }
 0x6cc   : > { %3395 = vmatprep.subr.bf16.mxu1 %v6518_v48  ;;  %v5797_v48 = vcombine.high %v3451_v42, %v3455_v43 }
 0x6cf   : > { %3396 = vmatpush1.bf16.msra.mxu1 %v6516_v49  ;;  %v3462_v49 = vld [vmem:[%s8134_s7 + $0x120] sm:$0xff] }
 0x6d0   : > { %3397 = vmatprep.subr.bf16.mxu1 %v6524_v54  ;;  %v5794_v54 = vcombine.low %v3450_v39, %v3454_v41  ;;  %v5803_v57 = vcombine.high %v3458_v47, %v3462_v49  ;;  %v3444_v39 = vld [vmem:[%s8134_s7 + $0x90] sm:$0xff] }
 0x6d1   : > { %v3452_v41 = vld [vmem:[%s8134_s7 + $0xd0] sm:$0xff] }
 0x6d3   : > { %3398 = vmatpush1.bf16.msra.mxu1 %v6522_v56  ;;  %v5796_v56 = vcombine.low %v3451_v42, %v3455_v43 }
 0x6d4   : > { %3399 = vmatprep.subr.bf16.mxu1 %v6530_v58  ;;  %v5805_v58 = vcombine.high %v3459_v50, %v3463_v53 }
 0x6d7   : > { %3400 = vmatpush1.bf16.msra.mxu1 %v6528_v60  ;;  %v3467_v60 = vld [vmem:[%s8134_s7 + $0x148] sm:$0xff] }
 0x77d   : > { %v5937_v62 = vpop.f32.mrb[28].mxu0 }
 0x77e   : > { %v5938_v63 = vpop.f32.mrb[29].mxu0 }
 0x77f   : > { %v5939_v1 = vadd.f32 %v5938_v63, %v5937_v62  ;;  %v5940_v3 = vpop.f32.mrb[30].mxu0  ;;  %v5770_v62 = vcombine.low %v3426_v59, %v3430_v61  ;;  %v5771_v63 = vcombine.high %v3426_v59, %v3430_v61  ;;  %v3470_v59 = vld [vmem:[%s8134_s7 + $0x160] sm:$0xff]  ;;  %v3471_v61 = vld [vmem:[%s8134_s7 + $0x168] sm:$0xff] }
 0x780   : > { %v5941_v4 = vpop.f32.mrb[31].mxu0  ;;  %v3431_v3 = vld [vmem:[%s8134_s7 + $0x28] sm:$0xff] }
 0x781   : > { %v3053_v8 = vadd.f32 %v5939_v1, %v5703_v30  ;;  %3852 = vmatprep.subr.bf16.mxu0 %v5771_v63  ;;  %v3427_v1 = vld [vmem:[%s8134_s7 + $0x8] sm:$0xff]  ;;  %v5804_v63 = vcombine.low %v3459_v50, %v3463_v53  ;;  %v3472_v50 = vld [vmem:[%s8134_s7 + $0x170] sm:$0xff] }
 0x782   : > { %v5773_v4 = vcombine.high %v3427_v1, %v3431_v3  ;;  %v5772_v30 = vcombine.low %v3427_v1, %v3431_v3  ;;  %v5811_v1 = vcombine.high %v3466_v34, %v3470_v59  ;;  %v3474_v3 = vld [vmem:[%s8134_s7 + $0x180] sm:$0xff] }
 0x784   : > { %3893 = vmatprep.subr.bf16.mxu1 %v5773_v4  ;;  %v5813_v4 = vcombine.high %v3467_v60, %v3471_v61 }
 0x78d   : > { %v5959_v5 = vpop.f32.mrb[28].mxu1 }
 0x78e   : > { %v5960_v7 = vpop.f32.mrb[29].mxu1 }
 0x78f   : > { %v5961_v9 = vadd.f32 %v5960_v7, %v5959_v5  ;;  %v5962_v10 = vpop.f32.mrb[30].mxu1 }
 0x790   : > { %v5963_v11 = vpop.f32.mrb[31].mxu1 }
 0x791   : > { %v3093_v12 = vadd.f32 %v5961_v9, %v3053_v8 }
 0x793   : > { %v3098_v14 = vadd.f32 %v6617_v13, %v3093_v12  ;;  %v5736_v13 = vld [vmem:[%s8870_s21] ss:$0 sm:$0xff] }
 0x795   : > { %3101 = vadd.xlane.f32.xlu0 %v3098_v14 }
 0x822   : > { %v3102_v27 = vpop.xlane.xlu0 %3101 }
 0x823   : > { %v8397_v28 = vmul.f32 0.03125, %v3102_v27  ;;  %v5779_v27 = vcombine.high %v3434_v19, %v3438_v20 }
 0x825   : > { %v8400_v29 = vsub.f32 %v3098_v14, %v8397_v28  ;;  %v3108_v5 = vmul.f32 96.0, %v8397_v28 }
 0x827   : > { %v3105_v31 = vmul.f32 %v8400_v29, %v8400_v29  ;;  %v3109_v7 = vmul.f32 %v3108_v5, %v8397_v28  ;;  %v3442_v28 = vld [vmem:[%s8134_s7 + $0x80] sm:$0xff]  ;;  %v3475_v5 = vld [vmem:[%s8134_s7 + $0x188] sm:$0xff] }
 0x829   : > { %3106 = vadd.xlane.f32.xlu1 %v3105_v31  ;;  %v3446_v31 = vld [vmem:[%s8134_s7 + $0xa0] sm:$0xff] }
 0x82a   : > { %v5787_v38 = vcombine.high %v3442_v28, %v3446_v31  ;;  %v5786_v44 = vcombine.low %v3442_v28, %v3446_v31  ;;  %v8479_v31 = vld [vmem:[%s8117_s14] sm:$0xf]  ;;  %s8872_s14 = sld [smem:[#allocation55_spill]] }
 0x8b6   : > { %v3107_v8 = vpop.xlane.xlu1 %3106 }
 0x8b7   : > { %v3110_v9 = vsub.f32 %v3107_v8, %v3109_v7  ;;  %v3479_v7 = vld [vmem:[%s8134_s7 + $0x1a8] sm:$0xff]  ;;  %v5810_v8 = vcombine.low %v3466_v34, %v3470_v59  ;;  %v3484_v59 = vld [vmem:[%s8134_s7 + $0x1d0] sm:$0xff] }
 0x8b8   : > { %v5820_v19 = vcombine.low %v3475_v5, %v3479_v7 }
 0x8b9   : > { %v3111_v10 = vmul.f32 0.03125, %v3110_v9  ;;  %v5812_v9 = vcombine.low %v3467_v60, %v3471_v61  ;;  %v3488_v60 = vld [vmem:[%s8134_s7 + $0x1f0] sm:$0xff] }
 0x8bb   : > { %v3112_v11 = vadd.f32 1e-05, %v3111_v10 }
 0x8bd   : > { %6595 = vrsqrt.f32 %v3112_v11  ;;  %v3482_v11 = vld [vmem:[%s8134_s7 + $0x1c0] sm:$0xff] }
 0x8c7   : > { %v6596_v12 = vpop.eup %6595 }
 0x8c8   : > { %v3114_v14 = vmul.f32 %v6596_v12, %v8400_v29  ;;  %v5781_v29 = vcombine.high %v3435_v21, %v3439_v23  ;;  %v5821_v12 = vcombine.high %v3475_v5, %v3479_v7  ;;  %v3428_v23 = vld [vmem:[%s8134_s7 + $0x10] sm:$0xff]  ;;  %v3441_v7 = vld [vmem:[%s8134_s7 + $0x78] sm:$0xff] }
 0x8ca   : > { %v3121_v18 = vmul.f32 %v5736_v13, %v3114_v14  ;;  %v3486_v13 = vld [vmem:[%s8134_s7 + $0x1e0] sm:$0xff]  ;;  %v3483_v14 = vld [vmem:[%s8134_s7 + $0x1c8] sm:$0xff] }
 0x8cb   : > { %v5827_v20 = vcombine.high %v3482_v11, %v3486_v13 }
 0x8cc   : > { %v8446_v25 = vadd.f32 %v5737_v17, %v3121_v18  ;;  %v3487_v17 = vld [vmem:[%s8134_s7 + $0x1e8] sm:$0xff] }
 0x8cd   : > { %v5829_v21 = vcombine.high %v3483_v14, %v3487_v17  ;;  %v5828_v28 = vcombine.low %v3483_v14, %v3487_v17  ;;  %v3457_v14 = vld [vmem:[%s8134_s7 + $0xf8] sm:$0xff] }
 0x8ce   : > { %v3161_v26 = vpack.c.bf16 %v8446_v25, %v8446_v25 }
 0x8d0   : > { %3377 = vmatmul.mubr.bf16.vlgmr.msra.gmra.mrb[32].mxu0 %v3161_v26  ;;  %3418 = vmatmul.mubr.bf16.vlgmr.msra.gmra.mrb[32].mxu1 %v3161_v26  ;;  %v3432_v26 = vld [vmem:[%s8134_s7 + $0x30] sm:$0xff] }
 0x8d1   : > { %3853 = vmatpush1.bf16.msra.mxu0 %v5770_v62  ;;  %3894 = vmatpush1.bf16.msra.mxu1 %v5772_v30  ;;  %v5802_v62 = vcombine.low %v3458_v47, %v3462_v49  ;;  %v3478_v30 = vld [vmem:[%s8134_s7 + $0x1a0] sm:$0xff]  ;;  %v5774_v32 = vcombine.low %v3428_v23, %v3432_v26  ;;  %v3464_v47 = vld [vmem:[%s8134_s7 + $0x130] sm:$0xff] }
 0x8d2   : > { %3854 = vmatprep.subr.bf16.mxu0 %v5779_v27  ;;  %3895 = vmatprep.subr.bf16.mxu1 %v5781_v29  ;;  %v5819_v10 = vcombine.high %v3474_v3, %v3478_v30  ;;  %v5818_v18 = vcombine.low %v3474_v3, %v3478_v30  ;;  %v5826_v27 = vcombine.low %v3482_v11, %v3486_v13  ;;  %v3468_v49 = vld [vmem:[%s8134_s7 + $0x150] sm:$0xff]  ;;  %v3433_v3 = vld [vmem:[%s8134_s7 + $0x38] sm:$0xff] }
 0x8d3   : > { %3884 = vmatprep.mubr.bf16.mxu0 %v7254_v6  ;;  %3925 = vmatprep.mubr.bf16.mxu1 %v7254_v6  ;;  %v5775_v29 = vcombine.high %v3428_v23, %v3432_v26  ;;  %v5814_v34 = vcombine.low %v3468_v49, %v3472_v50  ;;  %v3453_v13 = vld [vmem:[%s8134_s7 + $0xd8] sm:$0xff] }
 0x8d4   : > { %v3469_v26 = vld [vmem:[%s8134_s7 + $0x158] sm:$0xff] }
 0x8d5   : > { %3855 = vmatpush1.bf16.msra.mxu0 %v5778_v35  ;;  %3896 = vmatpush1.bf16.msra.mxu1 %v5780_v36  ;;  %v3440_v35 = vld [vmem:[%s8134_s7 + $0x70] sm:$0xff] }
 0x8d6   : > { %3856 = vmatprep.subr.bf16.mxu0 %v5787_v38  ;;  %3897 = vmatprep.subr.bf16.mxu1 %v5789_v40  ;;  %v5783_v36 = vcombine.high %v3436_v33, %v3440_v35  ;;  %v5782_v38 = vcombine.low %v3436_v33, %v3440_v35  ;;  %v3448_v40 = vld [vmem:[%s8134_s7 + $0xb0] sm:$0xff]  ;;  %v3477_v33 = vld [vmem:[%s8134_s7 + $0x198] sm:$0xff] }
 0x8d7   : > { %v5790_v42 = vcombine.low %v3444_v39, %v3448_v40  ;;  %v5791_v43 = vcombine.high %v3444_v39, %v3448_v40  ;;  %v3481_v35 = vld [vmem:[%s8134_s7 + $0x1b8] sm:$0xff] }
 0x8d8   : > { %v3485_v39 = vld [vmem:[%s8134_s7 + $0x1d8] sm:$0xff] }
 0x8d9   : > { %3857 = vmatpush1.bf16.msra.mxu0 %v5786_v44  ;;  %3898 = vmatpush1.bf16.msra.mxu1 %v5788_v45  ;;  %v3456_v44 = vld [vmem:[%s8134_s7 + $0xf0] sm:$0xff]  ;;  %v3489_v40 = vld [vmem:[%s8134_s7 + $0x1f8] sm:$0xff] }
 0x8da   : > { %3858 = vmatprep.subr.bf16.mxu0 %v5795_v46  ;;  %3899 = vmatprep.subr.bf16.mxu1 %v5797_v48  ;;  %v5799_v45 = vcombine.high %v3452_v41, %v3456_v44  ;;  %v3460_v46 = vld [vmem:[%s8134_s7 + $0x110] sm:$0xff] }
 0x8db   : > { %v5807_v48 = vcombine.high %v3460_v46, %v3464_v47  ;;  %v5806_v53 = vcombine.low %v3460_v46, %v3464_v47 }
 0x8dd   : > { %3859 = vmatpush1.bf16.msra.mxu0 %v5794_v54  ;;  %3900 = vmatpush1.bf16.msra.mxu1 %v5796_v56  ;;  %v5815_v54 = vcombine.high %v3468_v49, %v3472_v50  ;;  %v3476_v56 = vld [vmem:[%s8134_s7 + $0x190] sm:$0xff]  ;;  %v8524_v50 = vld [vmem:[%s8139_s1] sm:$0xff] }
 0x8de   : > { %3860 = vmatprep.subr.bf16.mxu0 %v5803_v57  ;;  %3901 = vmatprep.subr.bf16.mxu1 %v5805_v58  ;;  %v3480_v57 = vld [vmem:[%s8134_s7 + $0x1b0] sm:$0xff] }
 0x8df   : > { %v5823_v58 = vcombine.high %v3476_v56, %v3480_v57  ;;  %v5822_v61 = vcombine.low %v3476_v56, %v3480_v57 }
 0x8e1   : > { %3861 = vmatpush1.bf16.msra.mxu0 %v5802_v62  ;;  %3902 = vmatpush1.bf16.msra.mxu1 %v5804_v63  ;;  %v5831_v62 = vcombine.high %v3484_v59, %v3488_v60  ;;  %v5830_v63 = vcombine.low %v3484_v59, %v3488_v60 }
 0x8e2   : > { %3862 = vmatprep.subr.bf16.mxu0 %v5811_v1  ;;  %3903 = vmatprep.subr.bf16.mxu1 %v5813_v4  ;;  %v3429_v1 = vld [vmem:[%s8134_s7 + $0x18] sm:$0xff] }
 0x8e3   : > { %v3437_v4 = vld [vmem:[%s8134_s7 + $0x58] sm:$0xff]  ;;  %v5776_v30 = vcombine.low %v3429_v1, %v3433_v3  ;;  %v5777_v5 = vcombine.high %v3429_v1, %v3433_v3 }
 0x8e4   : > { %v5784_v11 = vcombine.low %v3437_v4, %v3441_v7 }
 0x8e5   : > { %3863 = vmatpush1.bf16.msra.mxu0 %v5810_v8  ;;  %3904 = vmatpush1.bf16.msra.mxu1 %v5812_v9  ;;  %v5785_v8 = vcombine.high %v3437_v4, %v3441_v7  ;;  %v3445_v9 = vld [vmem:[%s8134_s7 + $0x98] sm:$0xff] }
 0x8e6   : > { %3864 = vmatprep.subr.bf16.mxu0 %v5819_v10  ;;  %3905 = vmatprep.subr.bf16.mxu1 %v5821_v12  ;;  %v3449_v10 = vld [vmem:[%s8134_s7 + $0xb8] sm:$0xff] }
 0x8e7   : > { %v5793_v12 = vcombine.high %v3445_v9, %v3449_v10  ;;  %v5792_v17 = vcombine.low %v3445_v9, %v3449_v10 }
 0x8e9   : > { %3865 = vmatpush1.bf16.msra.mxu0 %v5818_v18  ;;  %3906 = vmatpush1.bf16.msra.mxu1 %v5820_v19  ;;  %v5801_v18 = vcombine.high %v3453_v13, %v3457_v14  ;;  %v3461_v19 = vld [vmem:[%s8134_s7 + $0x118] sm:$0xff] }
 0x8ea   : > { %3866 = vmatprep.subr.bf16.mxu0 %v5827_v20  ;;  %3907 = vmatprep.subr.bf16.mxu1 %v5829_v21  ;;  %v3465_v20 = vld [vmem:[%s8134_s7 + $0x138] sm:$0xff]  ;;  %v5800_v21 = vcombine.low %v3453_v13, %v3457_v14  ;;  %v3507_v14 = vrot.slane %v8524_v50, %v8300_v22 }
 0x8eb   : > { %v5809_v23 = vcombine.high %v3461_v19, %v3465_v20 }
 0x8ed   : > { %3867 = vmatpush1.bf16.msra.mxu0 %v5826_v27  ;;  %3908 = vmatpush1.bf16.msra.mxu1 %v5828_v28  ;;  %v3473_v27 = vld [vmem:[%s8134_s7 + $0x178] sm:$0xff]  ;;  %v5808_v28 = vcombine.low %v3461_v19, %v3465_v20 }
 0x8ee   : > { %3934 = vmatprep.subr.bf16.mxu0 %v5775_v29  ;;  %3975 = vmatprep.subr.bf16.mxu1 %v5777_v5  ;;  %v5817_v29 = vcombine.high %v3469_v26, %v3473_v27  ;;  %v3503_v5 = vrot.slane %v8524_v50, %v8290_v15 }
 0x8f0   : > { %3885 = vmatmul.mubr.bf16.vlgmr.msra.gmra.mrb[36].mxu0 %v8479_v31  ;;  %3926 = vmatmul.mubr.bf16.vlgmr.msra.gmra.mrb[36].mxu1 %v8479_v31 }
 0x8f1   : > { %3935 = vmatpush1.bf16.msra.mxu0 %v5774_v32  ;;  %3966 = vmatprep.mubr.bf16.mxu0 %v7254_v6  ;;  %v5816_v32 = vcombine.low %v3469_v26, %v3473_v27 }
 0x8f2   : > { %4007 = vmatprep.mubr.bf16.mxu1 %v7254_v6  ;;  %3936 = vmatprep.subr.bf16.mxu0 %v5783_v36  ;;  %v5798_v6 = vcombine.low %v3452_v41, %v3456_v44  ;;  %v5824_v36 = vcombine.low %v3477_v33, %v3481_v35  ;;  %v5833_v41 = vcombine.high %v3485_v39, %v3489_v40 }
 0x8f3   : > { %3976 = vmatpush1.bf16.msra.mxu1 %v5776_v30 }
 0x8f4   : > { %3977 = vmatprep.subr.bf16.mxu1 %v5785_v8 }
 0x8f5   : > { %3937 = vmatpush1.bf16.msra.mxu0 %v5782_v38  ;;  %v5825_v38 = vcombine.high %v3477_v33, %v3481_v35 }
 0x8f6   : > { %3938 = vmatprep.subr.bf16.mxu0 %v5791_v43 }
 0x8f7   : > { %3978 = vmatpush1.bf16.msra.mxu1 %v5784_v11 }
 0x8f8   : > { %3979 = vmatprep.subr.bf16.mxu1 %v5793_v12 }
 0x8f9   : > { %3939 = vmatpush1.bf16.msra.mxu0 %v5790_v42  ;;  %v5832_v42 = vcombine.low %v3485_v39, %v3489_v40 }
 0x8fa   : > { %3940 = vmatprep.subr.bf16.mxu0 %v5799_v45 }
 0x8fb   : > { %3980 = vmatpush1.bf16.msra.mxu1 %v5792_v17 }
 0x8fc   : > { %3981 = vmatprep.subr.bf16.mxu1 %v5801_v18 }
 0x8fd   : > { %3941 = vmatpush1.bf16.msra.mxu0 %v5798_v6 }
 0x8fe   : > { %3942 = vmatprep.subr.bf16.mxu0 %v5807_v48 }
 0x8ff   : > { %3982 = vmatpush1.bf16.msra.mxu1 %v5800_v21 }
 0x900   : > { %3983 = vmatprep.subr.bf16.mxu1 %v5809_v23  ;;  %v3511_v23 = vrot.slane %v8524_v50, %v1577_v52 }
 0x901   : > { %3943 = vmatpush1.bf16.msra.mxu0 %v5806_v53  ;;  %v3495_v53 = vrot.slane %v8524_v50, %v8273_v37 }
 0x902   : > { %3944 = vmatprep.subr.bf16.mxu0 %v5815_v54  ;;  %v3162_v54 = vld [vmem:[%s8052_s27] sm:$0xf]  ;;  %s8875_s27 = scalar_lea.vmem [#allocation16], %s8019_s12 }
 0x903   : > { %3984 = vmatpush1.bf16.msra.mxu1 %v5808_v28  ;;  %v3167_v60 = vrot.slane %v3162_v54, %v8273_v37  ;;  %v3171_v8 = vrot.slane %v3162_v54, %v8281_v2  ;;  %v3175_v12 = vrot.slane %v3162_v54, %v8290_v15  ;;  %v3179_v19 = vrot.slane %v3162_v54, %v8300_v22 }
 0x904   : > { %3985 = vmatprep.subr.bf16.mxu1 %v5817_v29 }
 0x905   : > { %3945 = vmatpush1.bf16.msra.mxu0 %v5814_v34 }
 0x906   : > { %3946 = vmatprep.subr.bf16.mxu0 %v5823_v58 }
 0x907   : > { %3986 = vmatpush1.bf16.msra.mxu1 %v5816_v32 }
 0x908   : > { %3987 = vmatprep.subr.bf16.mxu1 %v5825_v38 }
 0x909   : > { %3947 = vmatpush1.bf16.msra.mxu0 %v5822_v61 }
 0x90a   : > { %3948 = vmatprep.subr.bf16.mxu0 %v5831_v62 }
 0x90b   : > { %3988 = vmatpush1.bf16.msra.mxu1 %v5824_v36 }
 0x90c   : > { %3989 = vmatprep.subr.bf16.mxu1 %v5833_v41 }
 0x90d   : > { %3949 = vmatpush1.bf16.msra.mxu0 %v5830_v63  ;;  %v3499_v63 = vrot.slane %v8524_v50, %v8281_v2 }
 0x90e   : > { %6091 = vmatprep.subr.bf16.mxu0 %v7255_v24 }
 0x90f   : > { %3990 = vmatpush1.bf16.msra.mxu1 %v5832_v42 }
 0x910   : > { %3967 = vmatmul.mubr.bf16.vlgmr.msra.gmra.mrb[40].mxu0 %v8479_v31  ;;  %6097 = vmatprep.subr.bf16.mxu1 %v7255_v24 }
 0x911   : > { %6093 = vmatprep.mubr.msk.bf16.mxu0 %vm7256_vm0, %v7255_v24 }
 0x912   : > { %4008 = vmatmul.mubr.bf16.vlgmr.msra.gmra.mrb[40].mxu1 %v8479_v31 }
 0x913   : > { %6099 = vmatprep.mubr.msk.bf16.mxu1 %vm7256_vm0, %v7255_v24 }
 0x9a3   : > { %v3378_v43 = vpop.f32.mrb[32].mxu0  ;;  %v3419_v44 = vpop.f32.mrb[32].mxu1 }
 0x9a4   : > { %v3380_v45 = vpop.f32.mrb[33].mxu0  ;;  %v3421_v46 = vpop.f32.mrb[33].mxu1  ;;  %v3379_v4 = vadd.f32 %v3378_v43, %v3167_v60  ;;  %v3420_v2 = vadd.f32 %v3419_v44, %v3175_v12 }
 0x9a5   : > { %v3382_v47 = vpop.f32.mrb[34].mxu0  ;;  %v3423_v6 = vpop.f32.mrb[34].mxu1  ;;  %v3381_v10 = vadd.f32 %v3380_v45, %v3171_v8  ;;  %v3422_v15 = vadd.f32 %v3421_v46, %v3179_v19  ;;  %v6532_v19 = vld [vmem:[%s8058_s28] sm:$0xff]  }
 0x9a6   : > { %v3383_v48 = vpop.f32.mrb[35].mxu0  ;;  %v3424_v49 = vpop.f32.mrb[35].mxu1  ;;  %v4016_v7 = vpack.c.bf16 %v3379_v4, %v3379_v4  ;;  %v4218_v18 = vpack.c.bf16 %v3420_v2, %v3420_v2 }
 0x9a7   : > { %v4117_v13 = vpack.c.bf16 %v3381_v10, %v3381_v10  ;;  %v4319_v21 = vpack.c.bf16 %v3422_v15, %v3422_v15  ;;  %v6534_v15 = vld [vmem:[%s8058_s28 + $0x8] sm:$0xff]  }
 0x9c3   : > { %v3886_v56 = vpop.f32.mrb[36].mxu0  ;;  %v3927_v57 = vpop.f32.mrb[36].mxu1 }
 0x9c4   : > { %v3887_v34 = vadd.f32 %v3886_v56, %v3495_v53  ;;  %v3888_v58 = vpop.f32.mrb[37].mxu0  ;;  %v3929_v59 = vpop.f32.mrb[37].mxu1  ;;  %v3928_v9 = vadd.f32 %v3927_v57, %v3503_v5 }
 0x9c5   : > { %v3890_v61 = vpop.f32.mrb[38].mxu0  ;;  %v3931_v31 = vpop.f32.mrb[38].mxu1  ;;  %v3889_v30 = vadd.f32 %v3888_v58, %v3499_v63  ;;  %v3930_v17 = vadd.f32 %v3929_v59, %v3507_v14 }
 0x9c6   : > { %v4017_v62 = vpack.c.bf16 %v3887_v34, %v3887_v34  ;;  %v3891_v1 = vpop.f32.mrb[39].mxu0  ;;  %v3932_v3 = vpop.f32.mrb[39].mxu1  ;;  %v4219_v11 = vpack.c.bf16 %v3928_v9, %v3928_v9 }
 0x9c7   : > { %v4118_v37 = vpack.c.bf16 %v3889_v30, %v3889_v30  ;;  %v4320_v20 = vpack.c.bf16 %v3930_v17, %v3930_v17 }
 0x9c8   : > { %6092 = vmatpush3.bf16.xpose.msra.mxu0 %v4017_v62 }
 0x9c9   : > { %6103 = vmatprep.subr.bf16.mxu0 %v7255_v24 }
 0x9cf   : > { %6094 = vmatmul.mubr.bf16.vlgmr.msra.gmra.mrb[44].mxu0 %v4016_v7 }
 0x9d0   : > { %6104 = vmatpush3.bf16.xpose.msra.mxu0 %v4118_v37  ;;  %6105 = vmatprep.mubr.msk.bf16.mxu0 %vm7256_vm0, %v7255_v24 }
 0x9d1   : > { %6115 = vmatprep.subr.bf16.mxu0 %v7255_v24 }
 0x9d7   : > { %6106 = vmatmul.mubr.bf16.vlgmr.msra.gmra.mrb[48].mxu0 %v4117_v13 }
 0x9d8   : > { %6116 = vmatpush3.bf16.xpose.msra.mxu0 %v4219_v11  ;;  %6117 = vmatprep.mubr.msk.bf16.mxu0 %vm7256_vm0, %v7255_v24 }
 0x9d9   : > { %6127 = vmatprep.subr.bf16.mxu0 %v7255_v24 }
 0x9df   : > { %6118 = vmatmul.mubr.bf16.vlgmr.msra.gmra.mrb[52].mxu0 %v4218_v18  ;;  %v6531_v18 = vld [vmem:[%s8058_s28 + $0x40] sm:$0xff]  }
 0x9e0   : > { %6128 = vmatpush3.bf16.xpose.msra.mxu0 %v4320_v20  ;;  %6129 = vmatprep.mubr.msk.bf16.mxu0 %vm7256_vm0, %v7255_v24  ;;  %v6533_v20 = vld [vmem:[%s8058_s28 + $0x48] sm:$0xff]  }
 0x9e1   : > { %5981 = vmatprep.subr.bf16.mxu0 %v6531_v18 }
 0x9e3   : > { %v3968_v26 = vpop.f32.mrb[40].mxu0 }
 0x9e4   : > { %v3969_v27 = vadd.f32 %v3968_v26, %v3511_v23  ;;  %v8551_v28 = vpop.f32.mrb[41].mxu0  ;;  %v6536_v23 = vld [vmem:[%s8058_s28 + $0x10] sm:$0xff]   ;;  %v6537_v26 = vld [vmem:[%s8058_s28 + $0x58] sm:$0xff]  }
 0x9e5   : > { %v3972_v29 = vpop.f32.mrb[42].mxu0  ;;  %v4009_v13 = vpop.f32.mrb[40].mxu1 }
 0x9e6   : > { %v4070_v32 = vpack.c.bf16 %v3969_v27, %v3969_v27  ;;  %v3973_v22 = vpop.f32.mrb[43].mxu0  ;;  %v4011_v14 = vpop.f32.mrb[41].mxu1  ;;  %v6538_v27 = vld [vmem:[%s8058_s28 + $0x18] sm:$0xff]   ;;  %v6539_v29 = vld [vmem:[%s8058_s28 + $0x60] sm:$0xff]  }
 0x9e7   : > { %6130 = vmatmul.mubr.bf16.vlgmr.msra.gmra.mrb[56].mxu0 %v4319_v21  ;;  %v4013_v2 = vpop.f32.mrb[42].mxu1  ;;  %v6535_v21 = vld [vmem:[%s8058_s28 + $0x50] sm:$0xff]  }
 0x9e8   : > { %v4075_v33 = vsel %vm2404_vm1, %v4070_v32, 0  ;;  %v4014_v17 = vpop.f32.mrb[43].mxu1  ;;  %5982 = vmatpush3.bf16.msra.mxu0 %v6532_v19  ;;  %v6541_v32 = vld [vmem:[%s8058_s28 + $0x20] sm:$0xff]  }
 0x9e9   : > { %6098 = vmatpush3.bf16.msra.mxu1 %v4075_v33  ;;  %5983 = vmatprep.subr.bf16.mxu0 %v6533_v20  ;;  %v3515_v33 = vrot.slane %v8524_v50, %v1581_v55 }
 0x9ea   : > { %6109 = vmatprep.subr.bf16.mxu1 %v7255_v24 }
 0x9ec   : > { %5984 = vmatpush3.bf16.msra.mxu0 %v6534_v15 }
 0x9ed   : > { %5985 = vmatprep.subr.bf16.mxu0 %v6535_v21 }
 0x9f0   : > { %5986 = vmatpush3.bf16.msra.mxu0 %v6536_v23 }
 0x9f1   : > { %5987 = vmatprep.subr.bf16.mxu0 %v6537_v26 }
 0x9f4   : > { %5988 = vmatpush3.bf16.msra.mxu0 %v6538_v27 }
 0x9f5   : > { %5989 = vmatprep.subr.bf16.mxu0 %v6539_v29 }
 0x9f8   : > { %5990 = vmatpush3.bf16.msra.mxu0 %v6541_v32 }
 0xaa2   : > { %v4052_v35 = vpop.f32.mrb[44].mxu0 }
 0xaa3   : > { %v6095_v36 = vpop.f32.mrb[45].mxu0  ;;  %v4058_v38 = vsel %vm2387_vm2, %v4052_v35, -inf }
 0xaa4   : > { %4059 = vmax.xlane.f32.xlu0 %v4058_v38  ;;  %v4055_v39 = vpop.f32.mrb[46].mxu0  ;;  %v3519_v38 = vrot.slane %v8524_v50, %v1585_v0 }
 0xaa5   : > { %v6096_v40 = vpop.f32.mrb[47].mxu0 }
 0xaaa   : > { %v4153_v52 = vpop.f32.mrb[48].mxu0 }
 0xaab   : > { %v6107_v41 = vpop.f32.mrb[49].mxu0  ;;  %v4159_v42 = vsel %vm2387_vm2, %v4153_v52, -inf }
 0xaac   : > { %4160 = vmax.xlane.f32.xlu1 %v4159_v42  ;;  %v4156_v43 = vpop.f32.mrb[50].mxu0  ;;  %v4010_v41 = vadd.f32 %v4009_v13, %v3519_v38  ;;  %v6561_v13 = vld [vmem:[%s8058_s28 + $0xf8] sm:$0xff]  }
 0xaad   : > { %v6108_v44 = vpop.f32.mrb[51].mxu0 }
 0xaae   : > { %v4272_v55 = vpack.c.bf16 %v4010_v41, %v4010_v41 }
 0xab2   : > { %v4254_v45 = vpop.f32.mrb[52].mxu0 }
 0xab3   : > { %v6119_v46 = vpop.f32.mrb[53].mxu0  ;;  %v4260_v47 = vsel %vm2387_vm2, %v4254_v45, -inf }
 0xab4   : > { %4261 = vmax.xlane.f32.xlu0 %v4260_v47  ;;  %v4257_v6 = vpop.f32.mrb[54].mxu0  ;;  %v4277_v46 = vsel %vm2404_vm1, %v4272_v55, 0 }
 0xab5   : > { %v6120_v48 = vpop.f32.mrb[55].mxu0 }
 0xaba   : > { %v4355_v49 = vpop.f32.mrb[56].mxu0 }
 0xabb   : > { %v6131_v53 = vpop.f32.mrb[57].mxu0  ;;  %v4361_v54 = vsel %vm2387_vm2, %v4355_v49, -inf }
 0xabc   : > { %4362 = vmax.xlane.f32.xlu1 %v4361_v54  ;;  %v4358_v56 = vpop.f32.mrb[58].mxu0  ;;  %v6540_v53 = vld [vmem:[%s8058_s28 + $0xc0] sm:$0xff]  }
 0xabd   : > { %v6132_v57 = vpop.f32.mrb[59].mxu0 }
 0xb31   : > { %v4060_v34 = vpop.xlane.xlu0 %4059 }
 0xb32   : > { %v4061_v58 = vsub.f32 %v4052_v35, %v4060_v34  ;;  %v3971_v35 = vadd.f32 %v8551_v28, %v3515_v33  ;;  %v6542_v34 = vld [vmem:[%s8058_s28 + $0x80] sm:$0xff]  }
 0xb34   : > { %v4062_v59 = vmul.f32 1.442695, %v4061_v58  ;;  %v4171_v40 = vpack.c.bf16 %v3971_v35, %v3971_v35 }
 0xb36   : > { %6597 = vpow2.f32 %v4062_v59  ;;  %v4176_v43 = vsel %vm2404_vm1, %v4171_v40, 0  ;;  %v6543_v59 = vld [vmem:[%s8058_s28 + $0x68] sm:$0xff]  }
 0xb37   : > { %5991 = vmatprep.subr.bf16.mxu0 %v6543_v59  ;;  %v6568_v59 = vld [vmem:[%s8872_s14 + $0x28] sm:$0xff]  }
 0xb39   : > { %v4161_v60 = vpop.xlane.xlu1 %4160 }
 0xb3a   : > { %v4162_v61 = vsub.f32 %v4153_v52, %v4161_v60  ;;  %v6544_v60 = vld [vmem:[%s8058_s28 + $0xc8] sm:$0xff]  }
 0xb3c   : > { %v4163_v31 = vmul.f32 1.442695, %v4162_v61  ;;  %v6545_v61 = vld [vmem:[%s8058_s28 + $0x28] sm:$0xff]  }
 0xb3d   : > { %5992 = vmatpush3.bf16.msra.mxu0 %v6545_v61  ;;  %v6570_v61 = vld [vmem:[%s8872_s14 + $0x38] sm:$0xff]  }
 0xb3e   : > { %6599 = vpow2.f32 %v4163_v31  ;;  %v6546_v31 = vld [vmem:[%s8058_s28 + $0x88] sm:$0xff]  }
 0xb40   : > { %v6598_v62 = vpop.eup %6597 }
 0xb41   : > { %v4262_v63 = vpop.xlane.xlu0 %4261  ;;  %v4064_v1 = vsel %vm2387_vm2, %v6598_v62, 0.0 }
 0xb42   : > { %v4263_v3 = vsub.f32 %v4254_v45, %v4262_v63  ;;  %4065 = vadd.xlane.f32.xlu0 %v4064_v1  ;;  %v3523_v45 = vrot.slane %v8524_v50, %v1589_v16  ;;  %v6548_v63 = vld [vmem:[%s8058_s28 + $0xd0] sm:$0xff]  }
 0xb43   : > { %v6549_v1 = vld [vmem:[%s8058_s28 + $0x30] sm:$0xff]  }
 0xb44   : > { %v4264_v4 = vmul.f32 1.442695, %v4263_v3  ;;  %v4012_v6 = vadd.f32 %v4011_v14, %v3523_v45  ;;  %v6550_v3 = vld [vmem:[%s8058_s28 + $0x90] sm:$0xff]   ;;  %v6562_v14 = vld [vmem:[%s8058_s28 + $0xb8] sm:$0xff]  }
 0xb46   : > { %6601 = vpow2.f32 %v4264_v4  ;;  %v4373_v16 = vpack.c.bf16 %v4012_v6, %v4012_v6  ;;  %v6551_v4 = vld [vmem:[%s8058_s28 + $0x78] sm:$0xff]  }
 0xb48   : > { %v6600_v30 = vpop.eup %6599  ;;  %v4378_v54 = vsel %vm2404_vm1, %v4373_v16, 0  ;;  %v6563_v16 = vld [vmem:[%s8872_s14] sm:$0xff]  }
 0xb49   : > { %v4363_v5 = vpop.xlane.xlu1 %4362  ;;  %v4165_v7 = vsel %vm2387_vm2, %v6600_v30, 0.0 }
 0xb4a   : > { %v4364_v8 = vsub.f32 %v4355_v49, %v4363_v5  ;;  %4166 = vadd.xlane.f32.xlu1 %v4165_v7  ;;  %v6553_v5 = vld [vmem:[%s8058_s28 + $0x38] sm:$0xff]  }
 0xb4b   : > { %v6554_v7 = vld [vmem:[%s8058_s28 + $0x98] sm:$0xff]  }
 0xb4c   : > { %v4365_v37 = vmul.f32 1.442695, %v4364_v8  ;;  %v6555_v8 = vld [vmem:[%s8058_s28 + $0xe0] sm:$0xff]  }
 0xb4e   : > { %6603 = vpow2.f32 %v4365_v37  ;;  %v6556_v37 = vld [vmem:[%s8058_s28 + $0xa0] sm:$0xff]  }
 0xb50   : > { %v8561_v9 = vpop.eup %6601 }
 0xb51   : > { %v4266_v10 = vsel %vm2387_vm2, %v8561_v9, 0.0 }
 0xb52   : > { %4267 = vadd.xlane.f32.xlu0 %v4266_v10  ;;  %v6558_v10 = vld [vmem:[%s8058_s28 + $0xa8] sm:$0xff]  }
 0xb58   : > { %v8565_v11 = vpop.eup %6603 }
 0xb59   : > { %v4367_v12 = vsel %vm2387_vm2, %v8565_v11, 0.0 }
 0xb5a   : > { %4368 = vadd.xlane.f32.xlu1 %v4367_v12  ;;  %v6560_v12 = vld [vmem:[%s8058_s28 + $0xb0] sm:$0xff]  }
 0xbcf   : > { %v4066_v22 = vpop.xlane.xlu0 %4065 }
 0xbd0   : > { %6605 = vrcp.f32 %v4066_v22 }
 0xbd7   : > { %v4167_v36 = vpop.xlane.xlu1 %4166 }
 0xbd8   : > { %6607 = vrcp.f32 %v4167_v36 }
 0xbda   : > { %v6606_v39 = vpop.eup %6605 }
 0xbdb   : > { %v4068_v52 = vmul.f32 %v6606_v39, %v6598_v62  ;;  %v6547_v62 = vld [vmem:[%s8058_s28 + $0x70] sm:$0xff]  }
 0xbdc   : > { %5993 = vmatprep.subr.bf16.mxu0 %v6547_v62  ;;  %v6572_v62 = vld [vmem:[%s8874_s26 + $0x8] sm:$0xff]  }
 0xbdd   : > { %v4069_v42 = vpack.c.bf16 %v4068_v52, %v4068_v52  ;;  %5994 = vmatpush3.bf16.msra.mxu0 %v6549_v1  ;;  %v6574_v1 = vld [vmem:[%s8874_s26 + $0x18] sm:$0xff]  }
 0xbde   : > { %5995 = vmatprep.subr.bf16.mxu0 %v6551_v4  ;;  %v6576_v4 = vld [vmem:[%s8874_s26 + $0x28] sm:$0xff]  }
 0xbdf   : > { %6100 = vmatmul.mubr.msk.bf16.vlgmr.msra.gmra.mrb[44].mxu1 %vm2387_vm2, %v4069_v42  ;;  %v4268_v44 = vpop.xlane.xlu0 %4267 }
 0xbe0   : > { %6110 = vmatpush3.bf16.msra.mxu1 %v4176_v43  ;;  %6609 = vrcp.f32 %v4268_v44  ;;  %6111 = vmatprep.mubr.msk.bf16.mxu1 %vm7256_vm0, %v7255_v24 }
 0xbe1   : > { %6121 = vmatprep.subr.bf16.mxu1 %v7255_v24  ;;  %5996 = vmatpush3.bf16.msra.mxu0 %v6553_v5 }
 0xbe2   : > { %v6608_v28 = vpop.eup %6607  ;;  %6139 = vmatprep.subr.bf16.mxu0 %v7255_v24 }
 0xbe3   : > { %v4169_v0 = vmul.f32 %v6608_v28, %v6600_v30  ;;  %v6552_v30 = vld [vmem:[%s8058_s28 + $0xd8] sm:$0xff]   ;;  %v5838_v28 = vld [vmem:[%s8873_s19] ss:$0 sm:$0xff] }
 0xbe5   : > { %v4170_v47 = vpack.c.bf16 %v4169_v0, %v4169_v0 }
 0xbe7   : > { %6112 = vmatmul.mubr.msk.bf16.vlgmr.msra.gmra.mrb[48].mxu1 %vm2387_vm2, %v4170_v47  ;;  %v4369_v48 = vpop.xlane.xlu1 %4368 }
 0xbe8   : > { %6611 = vrcp.f32 %v4369_v48  ;;  %6122 = vmatpush3.bf16.msra.mxu1 %v4277_v46  ;;  %6123 = vmatprep.mubr.msk.bf16.mxu1 %vm7256_vm0, %v7255_v24 }
 0xbe9   : > { %6133 = vmatprep.subr.bf16.mxu1 %v7255_v24 }
 0xbea   : > { %v6610_v49 = vpop.eup %6609 }
 0xbeb   : > { %v4270_v51 = vmul.f32 %v6610_v49, %v8561_v9  ;;  %v6557_v9 = vld [vmem:[%s8058_s28 + $0xe8] sm:$0xff]  }
 0xbed   : > { %v4271_v50 = vpack.c.bf16 %v4270_v51, %v4270_v51 }
 0xbef   : > { %6124 = vmatmul.mubr.msk.bf16.vlgmr.msra.gmra.mrb[52].mxu1 %vm2387_vm2, %v4271_v50  ;;  %v6564_v50 = vld [vmem:[%s8872_s14 + $0x8] sm:$0xff]  }
 0xbf0   : > { %6134 = vmatpush3.bf16.msra.mxu1 %v4378_v54  ;;  %6135 = vmatprep.mubr.msk.bf16.mxu1 %vm7256_vm0, %v7255_v24 }
 0xbf1   : > { %6003 = vmatprep.subr.bf16.mxu1 %v6540_v53 }
 0xbf2   : > { %v6612_v56 = vpop.eup %6611 }
 0xbf3   : > { %v4371_v57 = vmul.f32 %v6612_v56, %v8565_v11  ;;  %v6559_v11 = vld [vmem:[%s8058_s28 + $0xf0] sm:$0xff]   ;;  %s8876_s28 = scalar_lea.vmem [#allocation17], %s8019_s12 }
 0xbf5   : > { %v4372_v58 = vpack.c.bf16 %v4371_v57, %v4371_v57 }
 0xbf7   : > { %6136 = vmatmul.mubr.msk.bf16.vlgmr.msra.gmra.mrb[56].mxu1 %vm2387_vm2, %v4372_v58  ;;  %v6567_v58 = vld [vmem:[%s8872_s14 + $0x20] sm:$0xff]  }
 0xbf8   : > { %6004 = vmatpush3.bf16.msra.mxu1 %v6542_v34  ;;  %v6566_v34 = vld [vmem:[%s8872_s14 + $0x18] sm:$0xff]  }
 0xbf9   : > { %6005 = vmatprep.subr.bf16.mxu1 %v6544_v60  ;;  %v6569_v60 = vld [vmem:[%s8872_s14 + $0x30] sm:$0xff]  }
 0xbfc   : > { %6006 = vmatpush3.bf16.msra.mxu1 %v6546_v31  ;;  %v6571_v31 = vld [vmem:[%s8874_s26] sm:$0xff]  }
 0xbfd   : > { %6007 = vmatprep.subr.bf16.mxu1 %v6548_v63  ;;  %v6573_v63 = vld [vmem:[%s8874_s26 + $0x10] sm:$0xff]  }
 0xc00   : > { %6008 = vmatpush3.bf16.msra.mxu1 %v6550_v3  ;;  %v6575_v3 = vld [vmem:[%s8874_s26 + $0x20] sm:$0xff]  }
 0xc01   : > { %6009 = vmatprep.subr.bf16.mxu1 %v6552_v30 }
 0xc04   : > { %6010 = vmatpush3.bf16.msra.mxu1 %v6554_v7 }
 0xc05   : > { %6011 = vmatprep.subr.bf16.mxu1 %v6555_v8 }
 0xc08   : > { %6012 = vmatpush3.bf16.msra.mxu1 %v6556_v37 }
 0xc09   : > { %6013 = vmatprep.subr.bf16.mxu1 %v6557_v9 }
 0xc0c   : > { %6014 = vmatpush3.bf16.msra.mxu1 %v6558_v10 }
 0xc0d   : > { %6015 = vmatprep.subr.bf16.mxu1 %v6559_v11  ;;  %v5871_v11 = vld [vmem:[%s8875_s27] ss:$0 sm:$0xff] }
 0xc10   : > { %6016 = vmatpush3.bf16.msra.mxu1 %v6560_v12 }
 0xc11   : > { %6017 = vmatprep.subr.bf16.mxu1 %v6561_v13  ;;  %v5872_v13 = vld [vmem:[%s8876_s28] ss:$0 sm:$0xff] }
 0xc14   : > { %6018 = vmatpush3.bf16.msra.mxu1 %v6562_v14 }
 0xc15   : > { %6159 = vmatprep.subr.bf16.mxu1 %v7255_v24 }
 0xcb2   : > { %v4111_v2 = vpop.f32.mrb[44].mxu1 }
 0xcb3   : > { %v6101_v17 = vpop.f32.mrb[45].mxu1  ;;  %v4484_v23 = vpack.c.bf16 %v4111_v2, %v4111_v2 }
 0xcb4   : > { %v4114_v18 = vpop.f32.mrb[46].mxu1 }
 0xcb5   : > { %v6102_v19 = vpop.f32.mrb[47].mxu1  ;;  %v6577_v18 = vld [vmem:[%s8874_s26 + $0x30] sm:$0xff]  }
 0xcb6   : > { %v6578_v19 = vld [vmem:[%s8874_s26 + $0x38] sm:$0xff]  }
 0xcba   : > { %v4212_v20 = vpop.f32.mrb[48].mxu1 }
 0xcbb   : > { %v4485_v15 = vpack.c.bf16 %v4212_v20, %v4212_v20  ;;  %v6113_v21 = vpop.f32.mrb[49].mxu1  ;;  %v5873_v20 = vld [vmem:[%s8877_s2] ss:$0 sm:$0xff] }
 0xcbc   : > { %v4215_v26 = vpop.f32.mrb[50].mxu1 }
 0xcbd   : > { %v6114_v27 = vpop.f32.mrb[51].mxu1  ;;  %4719 = vmatprep.mubr.bf16.mxu0 %v4485_v15 }
 0xcbe   : > { %4720 = vmatmul.mubr.bf16.vlgmr.msra.gmra.mrb[60].mxu0 %v4484_v23 }
 0xcbf   : > { %6155 = vmatprep.mubr.msk.bf16.mxu0 %vm7256_vm0, %v7255_v24  ;;  %6140 = vmatpush3.bf16.msra.mxu0 %v6563_v16 }
 0xcc0   : > { %6141 = vmatprep.subr.bf16.mxu0 %v7255_v24 }
 0xcc2   : > { %v4313_v29 = vpop.f32.mrb[52].mxu1 }
 0xcc3   : > { %v6125_v32 = vpop.f32.mrb[53].mxu1  ;;  %v4486_v39 = vpack.c.bf16 %v4313_v29, %v4313_v29  ;;  %6142 = vmatpush3.bf16.msra.mxu0 %v6564_v50 }
 0xcc4   : > { %v4316_v22 = vpop.f32.mrb[54].mxu1  ;;  %6143 = vmatprep.subr.bf16.mxu0 %v7255_v24 }
 0xcc5   : > { %v6126_v33 = vpop.f32.mrb[55].mxu1  ;;  %v5882_v22 = vld [vmem:[%s8878_s29] ss:$0 sm:$0xff] }
 0xcca   : > { %v4414_v35 = vpop.f32.mrb[56].mxu1 }
 0xccb   : > { %v4487_v36 = vpack.c.bf16 %v4414_v35, %v4414_v35  ;;  %v6137_v38 = vpop.f32.mrb[57].mxu1 }
 0xccc   : > { %v4417_v40 = vpop.f32.mrb[58].mxu1 }
 0xccd   : > { %v6138_v52 = vpop.f32.mrb[59].mxu1  ;;  %4759 = vmatprep.mubr.bf16.mxu1 %v4487_v36 }
 0xcce   : > { %4760 = vmatmul.mubr.bf16.vlgmr.msra.gmra.mrb[60].mxu1 %v4486_v39 }
 0xccf   : > { %6175 = vmatprep.mubr.msk.bf16.mxu1 %vm7256_vm0, %v7255_v24  ;;  %6160 = vmatpush3.bf16.msra.mxu1 %v6571_v31 }
 0xcd0   : > { %6161 = vmatprep.subr.bf16.mxu1 %v7255_v24 }
 0xcd3   : > { %6162 = vmatpush3.bf16.msra.mxu1 %v6572_v62  ;;  %v5895_v62 = vld [vmem:[#allocation29] ss:$0 sm:$0xff] (!%p5893_p13) }
 0xcd4   : > { %6163 = vmatprep.subr.bf16.mxu1 %v7255_v24 }
 0xcd7   : > { %6164 = vmatpush3.bf16.msra.mxu1 %v6573_v63 }
 0xcd8   : > { %6165 = vmatprep.subr.bf16.mxu1 %v7255_v24 }
 0xcdb   : > { %6166 = vmatpush3.bf16.msra.mxu1 %v6574_v1 }
 0xcdc   : > { %6167 = vmatprep.subr.bf16.mxu1 %v7255_v24 }
 0xcdf   : > { %6168 = vmatpush3.bf16.msra.mxu1 %v6575_v3 }
 0xce0   : > { %6169 = vmatprep.subr.bf16.mxu1 %v7255_v24 }
 0xce3   : > { %6170 = vmatpush3.bf16.msra.mxu1 %v6576_v4 }
 0xce4   : > { %6171 = vmatprep.subr.bf16.mxu1 %v7255_v24 }
 0xce7   : > { %6172 = vmatpush3.bf16.msra.mxu1 %v6577_v18 }
 0xce8   : > { %6173 = vmatprep.subr.bf16.mxu1 %v7255_v24 }
 0xceb   : > { %6174 = vmatpush3.bf16.msra.mxu1 %v6578_v19 }
 0xd91   : > { %v5997_v41 = vpop.f32.mrb[60].mxu0 }
 0xd92   : > { %v5998_v42 = vpop.f32.mrb[61].mxu0 }
 0xd93   : > { %v5999_v43 = vadd.f32 %v5998_v42, %v5997_v41  ;;  %v6000_v44 = vpop.f32.mrb[62].mxu0 }
 0xd94   : > { %v6001_v55 = vpop.f32.mrb[63].mxu0 }
 0xd95   : > { %v4722_v46 = vadd.f32 %v5999_v43, %v5838_v28 }
 0xda1   : > { %v6019_v0 = vpop.f32.mrb[60].mxu1 }
 0xda2   : > { %v6020_v45 = vpop.f32.mrb[61].mxu1 }
 0xda3   : > { %v6021_v47 = vadd.f32 %v6020_v45, %v6019_v0  ;;  %v6022_v6 = vpop.f32.mrb[62].mxu1 }
 0xda4   : > { %v6023_v48 = vpop.f32.mrb[63].mxu1 }
 0xda5   : > { %v4762_v49 = vadd.f32 %v6021_v47, %v4722_v46  ;;  %v5891_v47 = vld [vmem:[%s8879_s22] ss:$0 sm:$0xff] }
 0xda6   : > { %v5892_v48 = vld [vmem:[%s8880_s25] ss:$0 sm:$0xff] }
 0xda7   : > { %v4767_v51 = vadd.f32 %v4762_v49, %v8446_v25  ;;  %v6565_v25 = vld [vmem:[%s8872_s14 + $0x10] sm:$0xff]  }
 0xda8   : > { %6144 = vmatpush3.bf16.msra.mxu0 %v6565_v25 }
 0xda9   : > { %4770 = vadd.xlane.f32.xlu0 %v4767_v51  ;;  %6145 = vmatprep.subr.bf16.mxu0 %v7255_v24 }
 0xdac   : > { %6146 = vmatpush3.bf16.msra.mxu0 %v6566_v34 }
 0xdad   : > { %6147 = vmatprep.subr.bf16.mxu0 %v7255_v24 }
 0xdb0   : > { %6148 = vmatpush3.bf16.msra.mxu0 %v6567_v58 }
 0xdb1   : > { %6149 = vmatprep.subr.bf16.mxu0 %v7255_v24 }
 0xdb4   : > { %6150 = vmatpush3.bf16.msra.mxu0 %v6568_v59 }
 0xdb5   : > { %6151 = vmatprep.subr.bf16.mxu0 %v7255_v24 }
 0xdb8   : > { %6152 = vmatpush3.bf16.msra.mxu0 %v6569_v60 }
 0xdb9   : > { %6153 = vmatprep.subr.bf16.mxu0 %v7255_v24 }
 0xdbc   : > { %6154 = vmatpush3.bf16.msra.mxu0 %v6570_v61  ;;  %v5894_v61 = vld [vmem:[#allocation28] ss:$0 sm:$0xff] (!%p5893_p13) }
 0xe36   : > { %v4771_v53 = vpop.xlane.xlu0 %4770 }
 0xe37   : > { %v4772_v54 = vmul.f32 0.03125, %v4771_v53 }
 0xe39   : > { %v4773_v56 = vsub.f32 %v4767_v51, %v4772_v54  ;;  %v4777_v30 = vmul.f32 96.0, %v4772_v54 }
 0xe3b   : > { %v4774_v57 = vmul.f32 %v4773_v56, %v4773_v56  ;;  %v4778_v5 = vmul.f32 %v4777_v30, %v4772_v54 }
 0xe3d   : > { %4775 = vadd.xlane.f32.xlu1 %v4774_v57 }
 0xeca   : > { %v4776_v7 = vpop.xlane.xlu1 %4775 }
 0xecb   : > { %v4779_v8 = vsub.f32 %v4776_v7, %v4778_v5 }
 0xecd   : > { %v4780_v37 = vmul.f32 0.03125, %v4779_v8 }
 0xecf   : > { %v4781_v9 = vadd.f32 1e-05, %v4780_v37 }
 0xed1   : > { %6613 = vrsqrt.f32 %v4781_v9 }
 0xedb   : > { %v6614_v10 = vpop.eup %6613 }
 0xedc   : > { %v4783_v12 = vmul.f32 %v6614_v10, %v4773_v56 }
 0xede   : > { %v4790_v14 = vmul.f32 %v5871_v11, %v4783_v12 }
 0xee0   : > { %v4797_v2 = vadd.f32 %v5872_v13, %v4790_v14 }
 0xee2   : > { %v4814_v17 = vpack.c.bf16 %v4797_v2, %v4797_v2 }
 0xee4   : > { %6156 = vmatmul.mubr.bf16.vlgmr.msra.gmra.mrb[64].mxu0 %v4814_v17 }
 0xfb7   : > { %v4904_v15 = vpop.f32.mrb[64].mxu0 }
 0xfb8   : > { %v4905_v21 = vadd.f32 %v5873_v20, %v4904_v15  ;;  %v6157_v23 = vpop.f32.mrb[65].mxu0 }
 0xfb9   : > { %v4907_v26 = vpop.f32.mrb[66].mxu0 }
 0xfba   : > { %v4910_v27 = vmax.f32 %v4905_v21, 0.0  ;;  %v6158_v29 = vpop.f32.mrb[67].mxu0 }
 0xfbc   : > { %v4927_v32 = vpack.c.bf16 %v4910_v27, %v4910_v27 }
 0xfbe   : > { %6176 = vmatmul.mubr.bf16.vlgmr.msra.gmra.mrb[64].mxu1 %v4927_v32 }
0x1091   : > { %v5017_v33 = vpop.f32.mrb[64].mxu1 }
0x1092   : > { %v5018_v35 = vadd.f32 %v5882_v22, %v5017_v33  ;;  %v6177_v36 = vpop.f32.mrb[65].mxu1 }
0x1093   : > { %v5020_v38 = vpop.f32.mrb[66].mxu1 }
0x1094   : > { %v6178_v39 = vpop.f32.mrb[67].mxu1  ;;  %v5023_v24 = vadd.f32 %v5018_v35, %v4797_v2 }
0x1096   : > { %5026 = vadd.xlane.f32.xlu0 %v5023_v24 }
0x1123   : > { %v5027_v40 = vpop.xlane.xlu0 %5026 }
0x1124   : > { %v5028_v52 = vmul.f32 0.03125, %v5027_v40 }
0x1126   : > { %v5029_v41 = vsub.f32 %v5023_v24, %v5028_v52  ;;  %v5033_v43 = vmul.f32 96.0, %v5028_v52 }
0x1128   : > { %v5030_v42 = vmul.f32 %v5029_v41, %v5029_v41  ;;  %v5034_v44 = vmul.f32 %v5033_v43, %v5028_v52 }
0x112a   : > { %5031 = vadd.xlane.f32.xlu1 %v5030_v42 }
0x11b7   : > { %v5032_v55 = vpop.xlane.xlu1 %5031 }
0x11b8   : > { %v5035_v28 = vsub.f32 %v5032_v55, %v5034_v44 }
0x11ba   : > { %v5036_v0 = vmul.f32 0.03125, %v5035_v28 }
0x11bc   : > { %v5037_v45 = vadd.f32 1e-05, %v5036_v0 }
0x11be   : > { %6615 = vrsqrt.f32 %v5037_v45 }
0x11c8   : > { %v6616_v46 = vpop.eup %6615 }
0x11c9   : > { %v5039_v6 = vmul.f32 %v6616_v46, %v5029_v41  ;;  %5058 = sbr.rel (%p5893_p13) target bundleno = 4875 (0x130b), region = 200 }
0x11cb   : > { %v5046_v49 = vmul.f32 %v5891_v47, %v5039_v6 }
0x11cd   : > { %v5053_v51 = vadd.f32 %v5892_v48, %v5046_v49 }
0x11cf   : > { %5054 = vst [vmem:[#allocation2] sm:$0xff] %v5053_v51  ;;  %5061 = vadd.xlane.f32.xlu0 (!%p5893_p13), %v5053_v51 }
0x125c   : > { %v5062_v16 = vpop.xlane.xlu0 %5061 }
0x125d   : > { %v5063_v50 = vmul.f32 0.03125, %v5062_v16 }
0x125f   : > { %v5064_v53 = vsub.f32 %v5053_v51, %v5063_v50  ;;  %v5068_v56 = vmul.f32 96.0, %v5063_v50 }
0x1261   : > { %v5065_v54 = vmul.f32 %v5064_v53, %v5064_v53  ;;  %v5069_v57 = vmul.f32 %v5068_v56, %v5063_v50 }
0x1263   : > { %5066 = vadd.xlane.f32.xlu0 %v5065_v54 }
0x12f0   : > { %v5067_v25 = vpop.xlane.xlu0 %5066 }
0x12f1   : > { %v5070_v34 = vsub.f32 %v5067_v25, %v5069_v57 }
0x12f3   : > { %v5071_v58 = vmul.f32 0.03125, %v5070_v34 }
0x12f5   : > { %v5072_v59 = vadd.f32 1e-05, %v5071_v58 }
0x12f7   : > { %6618 = vrsqrt.f32 %v5072_v59 }
0x1301   : > { %v6619_v60 = vpop.eup %6618 }
0x1302   : > { %v5074_v31 = vmul.f32 %v6619_v60, %v5064_v53 }
0x1304   : > { %v5081_v63 = vmul.f32 %v5894_v61, %v5074_v31 }
0x1306   : > { %v5088_v1 = vadd.f32 %v5895_v62, %v5081_v63 }
0x1308   : > { %v5089_v3 = vpack.c.bf16 %v5088_v1, %v5088_v1 }
0x130a   : > { %5090 = vst [vmem:[%s8144_s18] sm:$0xf] %v5089_v3 }
0x130b PF: > { %s8882_s12 = sld [smem:[#allocation48_spill]]  ;;  %s8883_s29 = sld [smem:[#allocation42_spill]] }
0x130c   : > { %s8884_s2 = sld [smem:[#allocation43_spill]]  ;;  %s8885_s6 = sld [smem:[#allocation51_spill]] }
0x130d   : > { %s8886_s30 = sld [smem:[#allocation46_spill]]  ;;  %s8887_s7 = sld [smem:[#allocation47_spill]] }
0x130e   : > { %s8888_s3 = sld [smem:[#allocation49_spill]]  ;;  %s8889_s26 = sld [smem:[#allocation50_spill]] }
0x1311   : > { %s63_s1 = sadd.s32 1, %s8882_s12  }
0x1312   : > { %p60_p2 = scmp.ge.s32.totalorder %s63_s1, 6  }
0x1314   :  { %62 = sbr.rel (!%p60_p2) target bundleno = 49 (0x31), region = 375 }
0x131b   :  { %5110 = vsyncpa [#allocation4], 1 }
0x131c   :  { %5112 = vsyncpa [#allocation4 + $0x1], 1 }
0x131d   :  { %5113 = vsyncpa [#allocation6], 1 }
0x131e   :  { %5115 = vsyncpa [#allocation6 + $0x1], 1 }
0x131f   :  { %5116 = vsyncpa [#allocation9], 1 }
0x1320   :  { %5118 = vsyncpa [#allocation9 + $0x1], 1 }
0x1321   :  { %5119 = vsyncpa [#allocation12], 1 }
0x1322   :  { %5121 = vsyncpa [#allocation12 + $0x1], 1 }
0x1323   :  { %5122 = vsyncpa [#allocation15], 1 }
0x1324   :  { %5124 = vsyncpa [#allocation15 + $0x1], 1 }
0x1325   :  { %5125 = vsyncpa [#allocation18], 1 }
0x1326   :  { %5127 = vsyncpa [#allocation18 + $0x1], 1 }
0x1327   :  { %5128 = vsyncpa [#allocation21], 1 }
0x1328   :  { %5130 = vsyncpa [#allocation21 + $0x1], 1 }
0x1329   :  { %5131 = vsyncpa [#allocation24], 1 }
0x132a   :  { %5133 = vsyncpa [#allocation24 + $0x1], 1 }
0x132b   :  { %5134 = vsyncpa [#allocation27], 1 }
0x132c   :  { %5136 = vsyncpa [#allocation27 + $0x1], 1 }
0x132d   :  { %5137 = vsyncpa [#allocation30], 1 }

</bundles_post_ra>
